<compile_context>
chip_gen: v5e
topology: v5e:2x2
jax: 0.10.0
libtpu: 0.0.40
codegen_flags: <defaults>
</compile_context>

<pallas_src>
import jax
import jax.numpy as jnp
import numpy as np
from jax.experimental import pallas as pl
from jax.experimental.pallas import tpu as pltpu


# ----------------------------------------------------------------------------
# Pallas kernel: full DARNN forward (closure over static dims + blob layouts)
# ----------------------------------------------------------------------------
def _make_darnn_kernel(B, T, N, M, P, WL, FL):
    f32, bf16 = jnp.float32, jnp.bfloat16

    def kernel(x_ref, yh_ref, yenc_ref, wblob_ref, fblob_ref, out_ref):
        def wload(name):                      # static slice of the bf16 blob
            r, nr, nc = WL[name]
            return wblob_ref[r:r + nr, 0:nc]

        def fload(name):                      # static slice of the f32 blob
            r, nr, nc = FL[name]
            return fblob_ref[r:r + nr, 0:nc]

        def dot(a, b):
            return jnp.dot(a, b, preferred_element_type=f32)

        x = x_ref[...]                        # (B, T, N) f32
        y_enc = yenc_ref[...]                 # (B, N, T) f32 (U_e proj + W_e bias)

        # ----------------------- encoder (input attention) -------------------
        WeT = wload("WeT")                    # (2M, T) bf16
        eWihT = wload("eWihT")                # (N, 4M) bf16, gate order [i,f,o,g]
        eWhhT = wload("eWhhT")                # (M, 4M) bf16
        eb = fload("eb")                      # (1, 4M) f32
        ve = fload("ve").reshape(1, 1, T)     # (1, 1, T) f32

        h = jnp.zeros((B, M), f32)
        s = jnp.zeros((B, M), f32)
        h_b = jnp.zeros((B, M), bf16)
        hs_b = jnp.zeros((B, 2 * M), bf16)    # bf16 shadow of cat(h, s)
        hs = []
        for t in range(T):
            # W_e(cat(h, s)) as one fused MXU dot; W_e bias folded into y_enc.
            x_att = dot(hs_b, WeT)                                # (B, T)
            z = jnp.tanh(x_att[:, None, :] + y_enc)               # (B, N, T)
            e = jnp.sum(z * ve, axis=-1)                          # (B, N)
            e = e - jnp.max(e, axis=-1, keepdims=True)
            ee = jnp.exp(e)
            alpha = ee * pl.reciprocal(jnp.sum(ee, axis=-1, keepdims=True),
                                       approx=True)
            wi = alpha * x[:, t, :]                               # (B, N)

            # encoder LSTMCell, gates reordered [i, f, o | g]
            gates = dot(wi.astype(bf16), eWihT) + dot(h_b, eWhhT) + eb
            sg = jax.nn.sigmoid(gates[:, :3 * M])                 # i, f, o
            gg = jnp.tanh(gates[:, 3 * M:])                       # g
            s = sg[:, M:2 * M] * s + sg[:, :M] * gg
            h = sg[:, 2 * M:3 * M] * jnp.tanh(s)
            hs.append(h)                                          # register-resident
            h_b = h.astype(bf16)
            hs_b = jnp.concatenate([h_b, s.astype(bf16)], axis=1)

        enc = jnp.concatenate([ht[:, None, :] for ht in hs], axis=1)   # (B, T, M)

        # -------------------- decoder (temporal attention) -------------------
        # Decoder weights are only loaded here (shorter live ranges).
        UdT = wload("UdT")                    # (M, M) bf16
        WdT = wload("WdT")                    # (2P, M) bf16
        dWhhT = wload("dWhhT")                # (P, 4P) bf16, gate order [i,f,o,g]
        bd = fload("bd").reshape(1, 1, M)     # W_d bias
        vd = fload("vd").reshape(1, 1, M)
        wtc = fload("wtc")                    # (1, M)   w_tilda, c_t part
        wty = fload("wty")                    # (1, 1)   w_tilda, y part
        dWihR = fload("dWihR")                # (1, 4P)
        b_dec = fload("bdec")                 # (1, 4P)  LSTM biases + w_tilda bias
        u_off = FL["u"][0]

        yh = yh_ref[...]                      # (B, T, 1)

        # Loop-invariant U_d(enc) as one MXU dot; W_d bias folded in once.
        enc2 = enc.reshape(B * T, M).astype(bf16)
        y1 = dot(enc2, UdT).reshape(B, T, M) + bd                 # (B, T, M)

        d = jnp.zeros((B, P), f32)
        sp = jnp.zeros((B, P), f32)
        d_b = jnp.zeros((B, P), bf16)
        dsp_b = jnp.zeros((B, 2 * P), bf16)   # bf16 shadow of cat(d, s')
        acc = jnp.zeros((B, P), f32)          # sum_t d_t * u_t (head pre-folded)
        c_t = jnp.zeros((B, M), f32)
        for t in range(T):
            x1 = dot(dsp_b, WdT)                                  # (B, M)
            z1 = jnp.tanh(x1[:, None, :] + y1)                    # (B, T, M)
            l = jnp.sum(z1 * vd, axis=-1)                         # (B, T)
            l = l - jnp.max(l, axis=-1, keepdims=True)
            el = jnp.exp(l)
            beta = el * pl.reciprocal(jnp.sum(el, axis=-1, keepdims=True),
                                      approx=True)
            c_t = jnp.sum(beta[:, :, None] * enc, axis=1)         # (B, M)

            # y_tilda = w_tilda(cat(c_t, y_t)); its bias is folded into b_dec.
            # 1-column "matmul" done on the VPU (mul + lane reduce), not the MXU.
            y_tilda = (jnp.sum(c_t * wtc, axis=-1, keepdims=True)
                       + yh[:, t, :] * wty)                       # (B, 1)

            # decoder LSTMCell (input size 1), gates reordered [i, f, o | g]
            gates = y_tilda * dWihR + dot(d_b, dWhhT) + b_dec     # (B, 4P)
            sg = jax.nn.sigmoid(gates[:, :3 * P])
            gg = jnp.tanh(gates[:, 3 * P:])
            sp = sg[:, P:2 * P] * sp + sg[:, :P] * gg
            d = sg[:, 2 * P:3 * P] * jnp.tanh(sp)

            # Head contribution of dt_list chunk (t+1): W_dec/W_y/v_y folded
            # into the f32 vector u_t (chunk 0 multiplies zeros -> skipped).
            u_t = fblob_ref[u_off + t:u_off + t + 1, 0:P]         # (1, P) f32
            acc = acc + d * u_t
            d_b = d.astype(bf16)
            dsp_b = jnp.concatenate([d_b, sp.astype(bf16)], axis=1)

        # Folded head: out = sum_t d_t.u_t + c_T.w_c + c0  (pure f32 VPU/XLU).
        wc = fload("wc")                      # (1, M)
        c0 = fload("c0")                      # (1, 1)
        out_ref[...] = (jnp.sum(acc, axis=-1, keepdims=True)
                        + jnp.sum(c_t * wc, axis=-1, keepdims=True) + c0)

    return kernel


# ----------------------------------------------------------------------------
# Wrapper: weight packing, bias/head folding, pallas_call
# ----------------------------------------------------------------------------
def _pack_blob(entries, dtype, row_align, width=128):
    """Pack small 2-D arrays row-wise into one (rows, width) blob.

    Returns (blob, layout) where layout[name] = (row_offset, rows, cols) with
    row_offset aligned to the dtype's sublane tile so in-kernel Ref slices are
    tile-aligned.
    """
    chunks, layout, off = [], {}, 0
    for name, arr in entries:
        arr = jnp.asarray(arr, dtype)
        r, c = arr.shape
        rp = ((r + row_align - 1) // row_align) * row_align
        buf = jnp.zeros((rp, width), dtype).at[:r, :c].set(arr)
        chunks.append(buf)
        layout[name] = (off, r, c)
        off += rp
    return jnp.concatenate(chunks, axis=0), layout


def darnn_pallas(X, Y, p):
    f32, bf16 = jnp.float32, jnp.bfloat16
    B, T, N = X.shape
    M = p["Ud_w"].shape[0]
    P = p["dWhh"].shape[1]

    X = X.astype(f32)
    Y = Y.astype(f32)

    # Loop-invariant encoder projection U_e(X.permute(0,2,1)); W_e bias folded in.
    y_enc = (jnp.einsum("btn,st->bns", X, p["Ue_w"])
             + p["We_b"][None, None, :]).astype(f32)

    def reorder(w):
        # LSTM gate rows [i, f, g, o] -> [i, f, o, g]
        H = w.shape[0] // 4
        return jnp.concatenate([w[:2 * H], w[3 * H:], w[2 * H:3 * H]], axis=0)

    # Encoder LSTM weights (transposed for MXU, gate-reordered, biases summed).
    eWihT = reorder(p["eWih"]).T                                  # (N, 4M)
    eWhhT = reorder(p["eWhh"]).T                                  # (M, 4M)
    eb = reorder(p["eb_ih"] + p["eb_hh"])[None, :]                # (1, 4M)

    # Decoder LSTM weights; w_tilda bias folded through dWih into the gate bias.
    dWhhT = reorder(p["dWhh"]).T                                  # (P, 4P)
    dWihR = reorder(p["dWih"][:, 0])[None, :]                     # (1, 4P)
    b_dec = reorder(p["db_ih"] + p["db_hh"]
                    + p["wt_b"][0] * p["dWih"][:, 0])[None, :]    # (1, 4P)

    # Fold the W_dec -> W_y -> v_y head into vectors (exact f32 algebra):
    #   out = sum_t d_t . u_t  +  c_T . w_c  +  c0
    Wy_d = p["Wy_w"][:, :P]
    Wy_c = p["Wy_w"][:, P:]
    vy_Wyd = p["vy_w"] @ Wy_d                                     # (1, P)
    u_mat = (vy_Wyd @ p["Wdec_w"]).reshape(T + 1, P)[1:]          # (T, P); chunk 0 is zeros
    w_c = p["vy_w"] @ Wy_c                                        # (1, M)
    c0 = (jnp.dot(p["Wdec_b"], vy_Wyd[0])
          + jnp.dot(p["Wy_b"], p["vy_w"][0]) + p["vy_b"][0]).reshape(1, 1)

    # Two packed blobs -> 5 input DMAs total (X, Y, y_enc, bf16 blob, f32 blob).
    wblob, WL = _pack_blob([
        ("eWihT", eWihT), ("eWhhT", eWhhT), ("dWhhT", dWhhT),
        ("WeT", p["We_w"].T), ("WdT", p["Wd_w"].T), ("UdT", p["Ud_w"].T),
    ], bf16, row_align=16)
    fblob, FL = _pack_blob([
        ("ve", p["ve_w"]), ("eb", eb), ("bd", p["Wd_b"][None, :]),
        ("vd", p["vd_w"]), ("wtc", p["wt_w"][:, :M]),
        ("wty", p["wt_w"][:, M:M + 1]), ("dWihR", dWihR), ("bdec", b_dec),
        ("u", u_mat), ("wc", w_c), ("c0", c0),
    ], f32, row_align=8)

    kernel = _make_darnn_kernel(B, T, N, M, P, WL, FL)

    # Advisory cost estimate for XLA scheduling around the custom call.
    mxu_flops = (T * 2 * B * (2 * M * T + 4 * M * (N + M) + 2 * P * M + 4 * P * P)
                 + 2 * B * T * M * M)
    vpu_flops = T * B * (10 * N * T + 12 * T * M + 12 * M + 12 * P)
    transcend = T * B * (N * T + N + 5 * M + T * M + T + 5 * P)
    bytes_acc = 4 * (X.size + Y.size + y_enc.size + fblob.size + B) + 2 * wblob.size
    cost = pl.CostEstimate(flops=int(mxu_flops + vpu_flops),
                           transcendentals=int(transcend),
                           bytes_accessed=int(bytes_acc))

    vmem = pl.BlockSpec(memory_space=pltpu.MemorySpace.VMEM)
    out = pl.pallas_call(
        kernel,
        out_shape=jax.ShapeDtypeStruct((B, 1), jnp.float32),
        in_specs=[vmem] * 5,
        out_specs=vmem,
        cost_estimate=cost,
    )(X, Y, y_enc, wblob, fblob)
    return out


# ----------------------------------------------------------------------------
# Deterministic synthetic parameters (PyTorch nn.Module shapes)
# ----------------------------------------------------------------------------
def init_params(key, N, M, P, T):
    ks = jax.random.split(key, 24)

    def w(k, shape, scale=0.1):
        return (scale * jax.random.normal(k, shape)).astype(jnp.float32)

    return {
        # InputAttentionEncoder
        "We_w": w(ks[0], (T, 2 * M)), "We_b": w(ks[1], (T,)),
        "Ue_w": w(ks[2], (T, T)), "ve_w": w(ks[3], (1, T)),
        "eWih": w(ks[4], (4 * M, N)), "eWhh": w(ks[5], (4 * M, M)),
        "eb_ih": w(ks[6], (4 * M,)), "eb_hh": w(ks[7], (4 * M,)),
        # TemporalAttentionDecoder_prev_decoder_states
        "Wd_w": w(ks[8], (M, 2 * P)), "Wd_b": w(ks[9], (M,)),
        "Ud_w": w(ks[10], (M, M)), "vd_w": w(ks[11], (1, M)),
        "wt_w": w(ks[12], (1, M + 1)), "wt_b": w(ks[13], (1,)),
        "dWih": w(ks[14], (4 * P, 1)), "dWhh": w(ks[15], (4 * P, P)),
        "db_ih": w(ks[16], (4 * P,)), "db_hh": w(ks[17], (4 * P,)),
        "Wdec_w": w(ks[18], (P, P * (T + 1))), "Wdec_b": w(ks[19], (P,)),
        "Wy_w": w(ks[20], (P, P + M)), "Wy_b": w(ks[21], (P,)),
        "vy_w": w(ks[22], (1, P)), "vy_b": w(ks[23], (1,)),
    }


# ----------------------------------------------------------------------------
# Pure-JAX reference (direct transcription of the PyTorch forward, f32)
# ----------------------------------------------------------------------------
def _linear(x, w, b=None):
    out = x @ w.T
    return out if b is None else out + b


def _lstm_cell(x, h, c, w_ih, w_hh, b_ih, b_hh):
    gates = x @ w_ih.T + b_ih + h @ w_hh.T + b_hh
    i, f, g, o = jnp.split(gates, 4, axis=1)
    c_new = jax.nn.sigmoid(f) * c + jax.nn.sigmoid(i) * jnp.tanh(g)
    h_new = jax.nn.sigmoid(o) * jnp.tanh(c_new)
    return h_new, c_new


def darnn_reference(X, Y, p):
    B, T, N = X.shape
    M = p["Ud_w"].shape[0]
    P = p["dWhh"].shape[1]

    h = jnp.zeros((B, M), jnp.float32)
    s = jnp.zeros((B, M), jnp.float32)
    enc = []
    for t in range(T):
        hc = jnp.concatenate([h, s], axis=1)
        xatt = _linear(hc, p["We_w"], p["We_b"])[:, None, :]         # (B,1,T)
        yatt = _linear(jnp.transpose(X, (0, 2, 1)), p["Ue_w"])       # (B,N,T)
        z = jnp.tanh(xatt + yatt)
        e = _linear(z, p["ve_w"])[..., 0]                            # (B,N)
        alpha = jax.nn.softmax(e, axis=1)
        wi = alpha * X[:, t, :]
        h, s = _lstm_cell(wi, h, s, p["eWih"], p["eWhh"], p["eb_ih"], p["eb_hh"])
        enc.append(h)
    enc = jnp.stack(enc, axis=1)                                     # (B,T,M)

    d = jnp.zeros((B, P), jnp.float32)
    sp = jnp.zeros((B, P), jnp.float32)
    dt_list = [jnp.zeros((B, P), jnp.float32)]
    c_t = jnp.zeros((B, M), jnp.float32)
    for t in range(T):
        ds = jnp.concatenate([d, sp], axis=1)
        x1 = _linear(ds, p["Wd_w"], p["Wd_b"])[:, None, :]           # (B,1,M)
        y1 = _linear(enc, p["Ud_w"])                                 # (B,T,M)
        z1 = jnp.tanh(x1 + y1)
        l = _linear(z1, p["vd_w"])                                   # (B,T,1)
        beta = jax.nn.softmax(l, axis=1)
        c_t = jnp.sum(beta * enc, axis=1)                            # (B,M)
        yc = jnp.concatenate([c_t, Y[:, t, :]], axis=1)
        y_tilda = _linear(yc, p["wt_w"], p["wt_b"])
        d, sp = _lstm_cell(y_tilda, d, sp, p["dWih"], p["dWhh"],
                           p["db_ih"], p["db_hh"])
        dt_list.append(d)
    dt = jnp.concatenate(dt_list, axis=1)                            # (B,(T+1)P)
    d_final = _linear(dt, p["Wdec_w"], p["Wdec_b"])
    dc = jnp.concatenate([d_final, c_t], axis=1)
    return _linear(_linear(dc, p["Wy_w"], p["Wy_b"]), p["vy_w"], p["vy_b"])


# ----------------------------------------------------------------------------
if __name__ == "__main__":
    B, T, N, M, P = 8, 8, 8, 32, 32
    key = jax.random.PRNGKey(0)
    kx, ky, kp = jax.random.split(key, 3)
    X_history = jax.random.normal(kx, (B, T, N), dtype=jnp.float32)
    y_history = jax.random.normal(ky, (B, T, 1), dtype=jnp.float32)
    params = init_params(kp, N, M, P, T)

    out = darnn_pallas(X_history, y_history, params)
    out = jax.block_until_ready(out)

    ref = darnn_reference(X_history, y_history, params)
    # bf16 MXU inputs (f32 accumulation) + approx softmax reciprocal ->
    # attention weights do not sum to exactly 1; tolerance reflects that.
    np.testing.assert_allclose(np.asarray(out), np.asarray(ref),
                               rtol=2e-2, atol=2e-2)
    print("KERNEL_OK")
</pallas_src>

<mosaic_0001>
module attributes {stable_mosaic.version = 11 : i64} {
  func.func @kernel(%arg0: memref<8x8x8xf32, #tpu.memory_space<vmem>>, %arg1: memref<8x8x1xf32, #tpu.memory_space<vmem>>, %arg2: memref<8x8x8xf32, #tpu.memory_space<vmem>>, %arg3: memref<240x128xbf16, #tpu.memory_space<vmem>>, %arg4: memref<88x128xf32, #tpu.memory_space<vmem>>, %arg5: memref<8x1xf32, #tpu.memory_space<vmem>>) attributes {dimension_semantics = [], scalar_prefetch = 0 : i64, scratch_operands = 0 : i64, tpu.core_type = #tpu.core_type<tc>} {
    %c0 = arith.constant 0 : index
    %c0_0 = arith.constant 0 : index
    %c0_1 = arith.constant 0 : index
    %0 = vector.load %arg0[%c0, %c0_0, %c0_1] : memref<8x8x8xf32, #tpu.memory_space<vmem>>, vector<8x8x8xf32>
    %c0_2 = arith.constant 0 : index
    %c0_3 = arith.constant 0 : index
    %c0_4 = arith.constant 0 : index
    %1 = vector.load %arg2[%c0_2, %c0_3, %c0_4] : memref<8x8x8xf32, #tpu.memory_space<vmem>>, vector<8x8x8xf32>
    %c80 = arith.constant 80 : index
    %c0_5 = arith.constant 0 : index
    %2 = vector.load %arg3[%c80, %c0_5] : memref<240x128xbf16, #tpu.memory_space<vmem>>, vector<64x8xbf16>
    %c0_6 = arith.constant 0 : index
    %c0_7 = arith.constant 0 : index
    %3 = vector.load %arg3[%c0_6, %c0_7] : memref<240x128xbf16, #tpu.memory_space<vmem>>, vector<8x128xbf16>
    %c16 = arith.constant 16 : index
    %c0_8 = arith.constant 0 : index
    %4 = vector.load %arg3[%c16, %c0_8] : memref<240x128xbf16, #tpu.memory_space<vmem>>, vector<32x128xbf16>
    %c8 = arith.constant 8 : index
    %c0_9 = arith.constant 0 : index
    %5 = vector.load %arg4[%c8, %c0_9] : memref<88x128xf32, #tpu.memory_space<vmem>>, vector<1x128xf32>
    %c0_10 = arith.constant 0 : index
    %c0_11 = arith.constant 0 : index
    %6 = vector.load %arg4[%c0_10, %c0_11] : memref<88x128xf32, #tpu.memory_space<vmem>>, vector<1x8xf32>
    %7 = vector.shape_cast %6 : vector<1x8xf32> to vector<1x1x8xf32>
    %cst = arith.constant 0.000000e+00 : f32
    %8 = vector.broadcast %cst : f32 to vector<8x32xf32>
    %cst_12 = arith.constant 0.000000e+00 : bf16
    %9 = vector.broadcast %cst_12 : bf16 to vector<8x32xbf16>
    %cst_13 = arith.constant 0.000000e+00 : bf16
    %10 = vector.broadcast %cst_13 : bf16 to vector<8x64xbf16>
    %cst_14 = arith.constant dense<0.000000e+00> : vector<8x8xf32>
    %11 = tpu.matmul %10, %2, %cst_14 {dimension_numbers = #tpu.dot_dimension_numbers<[1], [0], [0], [1], [0, 0, 1, 1], [], []>} : vector<8x64xbf16>, vector<64x8xbf16>, vector<8x8xf32> -> vector<8x8xf32>
    %12 = vector.shape_cast %11 : vector<8x8xf32> to vector<8x1x8xf32>
    %13 = vector.broadcast %12 : vector<8x1x8xf32> to vector<8x8x8xf32>
    %14 = arith.addf %13, %1 : vector<8x8x8xf32>
    %15 = math.tanh %14 : vector<8x8x8xf32>
    %16 = vector.broadcast %7 : vector<1x1x8xf32> to vector<8x8x8xf32>
    %17 = arith.mulf %15, %16 : vector<8x8x8xf32>
    %cst_15 = arith.constant dense<0.000000e+00> : vector<8x8xf32>
    %18 = vector.multi_reduction <add>, %17, %cst_15 [2] : vector<8x8x8xf32> to vector<8x8xf32>
    %cst_16 = arith.constant dense<0xFF800000> : vector<8xf32>
    %19 = vector.multi_reduction <maximumf>, %18, %cst_16 [1] : vector<8x8xf32> to vector<8xf32>
    %20 = vector.shape_cast %19 : vector<8xf32> to vector<8x1xf32>
    %21 = vector.broadcast %20 : vector<8x1xf32> to vector<8x8xf32>
    %22 = arith.subf %18, %21 : vector<8x8xf32>
    %23 = math.exp %22 : vector<8x8xf32>
    %cst_17 = arith.constant dense<0.000000e+00> : vector<8xf32>
    %24 = vector.multi_reduction <add>, %23, %cst_17 [1] : vector<8x8xf32> to vector<8xf32>
    %25 = vector.shape_cast %24 : vector<8xf32> to vector<8x1xf32>
    %26 = tpu.reciprocal %25 {approx = true} : vector<8x1xf32> -> vector<8x1xf32>
    %27 = vector.broadcast %26 : vector<8x1xf32> to vector<8x8xf32>
    %28 = arith.mulf %23, %27 : vector<8x8xf32>
    %29 = vector.extract_strided_slice %0 {offsets = [0, 0, 0], sizes = [8, 1, 8], strides = [1, 1, 1]} : vector<8x8x8xf32> to vector<8x1x8xf32>
    %30 = vector.shape_cast %29 : vector<8x1x8xf32> to vector<8x8xf32>
    %31 = arith.mulf %28, %30 : vector<8x8xf32>
    %32 = arith.truncf %31 : vector<8x8xf32> to vector<8x8xbf16>
    %cst_18 = arith.constant dense<0.000000e+00> : vector<8x128xf32>
    %33 = tpu.matmul %32, %3, %cst_18 {dimension_numbers = #tpu.dot_dimension_numbers<[1], [0], [0], [1], [0, 0, 1, 1], [], []>} : vector<8x8xbf16>, vector<8x128xbf16>, vector<8x128xf32> -> vector<8x128xf32>
    %cst_19 = arith.constant dense<0.000000e+00> : vector<8x128xf32>
    %34 = tpu.matmul %9, %4, %cst_19 {dimension_numbers = #tpu.dot_dimension_numbers<[1], [0], [0], [1], [0, 0, 1, 1], [], []>} : vector<8x32xbf16>, vector<32x128xbf16>, vector<8x128xf32> -> vector<8x128xf32>
    %35 = arith.addf %33, %34 : vector<8x128xf32>
    %36 = vector.broadcast %5 : vector<1x128xf32> to vector<8x128xf32>
    %37 = arith.addf %35, %36 : vector<8x128xf32>
    %38 = vector.extract_strided_slice %37 {offsets = [0, 0], sizes = [8, 96], strides = [1, 1]} : vector<8x128xf32> to vector<8x96xf32>
    %39 = arith.negf %38 : vector<8x96xf32>
    %40 = math.exp %39 : vector<8x96xf32>
    %cst_20 = arith.constant 1.000000e+00 : f32
    %41 = vector.broadcast %cst_20 : f32 to vector<8x96xf32>
    %42 = arith.addf %41, %40 : vector<8x96xf32>
    %43 = arith.divf %41, %42 : vector<8x96xf32>
    %44 = vector.extract_strided_slice %37 {offsets = [0, 96], sizes = [8, 32], strides = [1, 1]} : vector<8x128xf32> to vector<8x32xf32>
    %45 = math.tanh %44 : vector<8x32xf32>
    %46 = vector.extract_strided_slice %43 {offsets = [0, 32], sizes = [8, 32], strides = [1, 1]} : vector<8x96xf32> to vector<8x32xf32>
    %47 = arith.mulf %46, %8 : vector<8x32xf32>
    %48 = vector.extract_strided_slice %43 {offsets = [0, 0], sizes = [8, 32], strides = [1, 1]} : vector<8x96xf32> to vector<8x32xf32>
    %49 = arith.mulf %48, %45 : vector<8x32xf32>
    %50 = arith.addf %47, %49 : vector<8x32xf32>
    %51 = vector.extract_strided_slice %43 {offsets = [0, 64], sizes = [8, 32], strides = [1, 1]} : vector<8x96xf32> to vector<8x32xf32>
    %52 = math.tanh %50 : vector<8x32xf32>
    %53 = arith.mulf %51, %52 : vector<8x32xf32>
    %54 = arith.truncf %53 : vector<8x32xf32> to vector<8x32xbf16>
    %55 = arith.truncf %50 : vector<8x32xf32> to vector<8x32xbf16>
    %56 = tpu.concatenate %54, %55 in 1 : vector<8x32xbf16>, vector<8x32xbf16> -> vector<8x64xbf16>
    %cst_21 = arith.constant dense<0.000000e+00> : vector<8x8xf32>
    %57 = tpu.matmul %56, %2, %cst_21 {dimension_numbers = #tpu.dot_dimension_numbers<[1], [0], [0], [1], [0, 0, 1, 1], [], []>} : vector<8x64xbf16>, vector<64x8xbf16>, vector<8x8xf32> -> vector<8x8xf32>
    %58 = vector.shape_cast %57 : vector<8x8xf32> to vector<8x1x8xf32>
    %59 = vector.broadcast %58 : vector<8x1x8xf32> to vector<8x8x8xf32>
    %60 = arith.addf %59, %1 : vector<8x8x8xf32>
    %61 = math.tanh %60 : vector<8x8x8xf32>
    %62 = vector.broadcast %7 : vector<1x1x8xf32> to vector<8x8x8xf32>
    %63 = arith.mulf %61, %62 : vector<8x8x8xf32>
    %cst_22 = arith.constant dense<0.000000e+00> : vector<8x8xf32>
    %64 = vector.multi_reduction <add>, %63, %cst_22 [2] : vector<8x8x8xf32> to vector<8x8xf32>
    %cst_23 = arith.constant dense<0xFF800000> : vector<8xf32>
    %65 = vector.multi_reduction <maximumf>, %64, %cst_23 [1] : vector<8x8xf32> to vector<8xf32>
    %66 = vector.shape_cast %65 : vector<8xf32> to vector<8x1xf32>
    %67 = vector.broadcast %66 : vector<8x1xf32> to vector<8x8xf32>
    %68 = arith.subf %64, %67 : vector<8x8xf32>
    %69 = math.exp %68 : vector<8x8xf32>
    %cst_24 = arith.constant dense<0.000000e+00> : vector<8xf32>
    %70 = vector.multi_reduction <add>, %69, %cst_24 [1] : vector<8x8xf32> to vector<8xf32>
    %71 = vector.shape_cast %70 : vector<8xf32> to vector<8x1xf32>
    %72 = tpu.reciprocal %71 {approx = true} : vector<8x1xf32> -> vector<8x1xf32>
    %73 = vector.broadcast %72 : vector<8x1xf32> to vector<8x8xf32>
    %74 = arith.mulf %69, %73 : vector<8x8xf32>
    %75 = vector.extract_strided_slice %0 {offsets = [0, 1, 0], sizes = [8, 1, 8], strides = [1, 1, 1]} : vector<8x8x8xf32> to vector<8x1x8xf32>
    %76 = vector.shape_cast %75 : vector<8x1x8xf32> to vector<8x8xf32>
    %77 = arith.mulf %74, %76 : vector<8x8xf32>
    %78 = arith.truncf %77 : vector<8x8xf32> to vector<8x8xbf16>
    %cst_25 = arith.constant dense<0.000000e+00> : vector<8x128xf32>
    %79 = tpu.matmul %78, %3, %cst_25 {dimension_numbers = #tpu.dot_dimension_numbers<[1], [0], [0], [1], [0, 0, 1, 1], [], []>} : vector<8x8xbf16>, vector<8x128xbf16>, vector<8x128xf32> -> vector<8x128xf32>
    %cst_26 = arith.constant dense<0.000000e+00> : vector<8x128xf32>
    %80 = tpu.matmul %54, %4, %cst_26 {dimension_numbers = #tpu.dot_dimension_numbers<[1], [0], [0], [1], [0, 0, 1, 1], [], []>} : vector<8x32xbf16>, vector<32x128xbf16>, vector<8x128xf32> -> vector<8x128xf32>
    %81 = arith.addf %79, %80 : vector<8x128xf32>
    %82 = vector.broadcast %5 : vector<1x128xf32> to vector<8x128xf32>
    %83 = arith.addf %81, %82 : vector<8x128xf32>
    %84 = vector.extract_strided_slice %83 {offsets = [0, 0], sizes = [8, 96], strides = [1, 1]} : vector<8x128xf32> to vector<8x96xf32>
    %85 = arith.negf %84 : vector<8x96xf32>
    %86 = math.exp %85 : vector<8x96xf32>
    %cst_27 = arith.constant 1.000000e+00 : f32
    %87 = vector.broadcast %cst_27 : f32 to vector<8x96xf32>
    %88 = arith.addf %87, %86 : vector<8x96xf32>
    %89 = arith.divf %87, %88 : vector<8x96xf32>
    %90 = vector.extract_strided_slice %83 {offsets = [0, 96], sizes = [8, 32], strides = [1, 1]} : vector<8x128xf32> to vector<8x32xf32>
    %91 = math.tanh %90 : vector<8x32xf32>
    %92 = vector.extract_strided_slice %89 {offsets = [0, 32], sizes = [8, 32], strides = [1, 1]} : vector<8x96xf32> to vector<8x32xf32>
    %93 = arith.mulf %92, %50 : vector<8x32xf32>
    %94 = vector.extract_strided_slice %89 {offsets = [0, 0], sizes = [8, 32], strides = [1, 1]} : vector<8x96xf32> to vector<8x32xf32>
    %95 = arith.mulf %94, %91 : vector<8x32xf32>
    %96 = arith.addf %93, %95 : vector<8x32xf32>
    %97 = vector.extract_strided_slice %89 {offsets = [0, 64], sizes = [8, 32], strides = [1, 1]} : vector<8x96xf32> to vector<8x32xf32>
    %98 = math.tanh %96 : vector<8x32xf32>
    %99 = arith.mulf %97, %98 : vector<8x32xf32>
    %100 = arith.truncf %99 : vector<8x32xf32> to vector<8x32xbf16>
    %101 = arith.truncf %96 : vector<8x32xf32> to vector<8x32xbf16>
    %102 = tpu.concatenate %100, %101 in 1 : vector<8x32xbf16>, vector<8x32xbf16> -> vector<8x64xbf16>
    %cst_28 = arith.constant dense<0.000000e+00> : vector<8x8xf32>
    %103 = tpu.matmul %102, %2, %cst_28 {dimension_numbers = #tpu.dot_dimension_numbers<[1], [0], [0], [1], [0, 0, 1, 1], [], []>} : vector<8x64xbf16>, vector<64x8xbf16>, vector<8x8xf32> -> vector<8x8xf32>
    %104 = vector.shape_cast %103 : vector<8x8xf32> to vector<8x1x8xf32>
    %105 = vector.broadcast %104 : vector<8x1x8xf32> to vector<8x8x8xf32>
    %106 = arith.addf %105, %1 : vector<8x8x8xf32>
    %107 = math.tanh %106 : vector<8x8x8xf32>
    %108 = vector.broadcast %7 : vector<1x1x8xf32> to vector<8x8x8xf32>
    %109 = arith.mulf %107, %108 : vector<8x8x8xf32>
    %cst_29 = arith.constant dense<0.000000e+00> : vector<8x8xf32>
    %110 = vector.multi_reduction <add>, %109, %cst_29 [2] : vector<8x8x8xf32> to vector<8x8xf32>
    %cst_30 = arith.constant dense<0xFF800000> : vector<8xf32>
    %111 = vector.multi_reduction <maximumf>, %110, %cst_30 [1] : vector<8x8xf32> to vector<8xf32>
    %112 = vector.shape_cast %111 : vector<8xf32> to vector<8x1xf32>
    %113 = vector.broadcast %112 : vector<8x1xf32> to vector<8x8xf32>
    %114 = arith.subf %110, %113 : vector<8x8xf32>
    %115 = math.exp %114 : vector<8x8xf32>
    %cst_31 = arith.constant dense<0.000000e+00> : vector<8xf32>
    %116 = vector.multi_reduction <add>, %115, %cst_31 [1] : vector<8x8xf32> to vector<8xf32>
    %117 = vector.shape_cast %116 : vector<8xf32> to vector<8x1xf32>
    %118 = tpu.reciprocal %117 {approx = true} : vector<8x1xf32> -> vector<8x1xf32>
    %119 = vector.broadcast %118 : vector<8x1xf32> to vector<8x8xf32>
    %120 = arith.mulf %115, %119 : vector<8x8xf32>
    %121 = vector.extract_strided_slice %0 {offsets = [0, 2, 0], sizes = [8, 1, 8], strides = [1, 1, 1]} : vector<8x8x8xf32> to vector<8x1x8xf32>
    %122 = vector.shape_cast %121 : vector<8x1x8xf32> to vector<8x8xf32>
    %123 = arith.mulf %120, %122 : vector<8x8xf32>
    %124 = arith.truncf %123 : vector<8x8xf32> to vector<8x8xbf16>
    %cst_32 = arith.constant dense<0.000000e+00> : vector<8x128xf32>
    %125 = tpu.matmul %124, %3, %cst_32 {dimension_numbers = #tpu.dot_dimension_numbers<[1], [0], [0], [1], [0, 0, 1, 1], [], []>} : vector<8x8xbf16>, vector<8x128xbf16>, vector<8x128xf32> -> vector<8x128xf32>
    %cst_33 = arith.constant dense<0.000000e+00> : vector<8x128xf32>
    %126 = tpu.matmul %100, %4, %cst_33 {dimension_numbers = #tpu.dot_dimension_numbers<[1], [0], [0], [1], [0, 0, 1, 1], [], []>} : vector<8x32xbf16>, vector<32x128xbf16>, vector<8x128xf32> -> vector<8x128xf32>
    %127 = arith.addf %125, %126 : vector<8x128xf32>
    %128 = vector.broadcast %5 : vector<1x128xf32> to vector<8x128xf32>
    %129 = arith.addf %127, %128 : vector<8x128xf32>
    %130 = vector.extract_strided_slice %129 {offsets = [0, 0], sizes = [8, 96], strides = [1, 1]} : vector<8x128xf32> to vector<8x96xf32>
    %131 = arith.negf %130 : vector<8x96xf32>
    %132 = math.exp %131 : vector<8x96xf32>
    %cst_34 = arith.constant 1.000000e+00 : f32
    %133 = vector.broadcast %cst_34 : f32 to vector<8x96xf32>
    %134 = arith.addf %133, %132 : vector<8x96xf32>
    %135 = arith.divf %133, %134 : vector<8x96xf32>
    %136 = vector.extract_strided_slice %129 {offsets = [0, 96], sizes = [8, 32], strides = [1, 1]} : vector<8x128xf32> to vector<8x32xf32>
    %137 = math.tanh %136 : vector<8x32xf32>
    %138 = vector.extract_strided_slice %135 {offsets = [0, 32], sizes = [8, 32], strides = [1, 1]} : vector<8x96xf32> to vector<8x32xf32>
    %139 = arith.mulf %138, %96 : vector<8x32xf32>
    %140 = vector.extract_strided_slice %135 {offsets = [0, 0], sizes = [8, 32], strides = [1, 1]} : vector<8x96xf32> to vector<8x32xf32>
    %141 = arith.mulf %140, %137 : vector<8x32xf32>
    %142 = arith.addf %139, %141 : vector<8x32xf32>
    %143 = vector.extract_strided_slice %135 {offsets = [0, 64], sizes = [8, 32], strides = [1, 1]} : vector<8x96xf32> to vector<8x32xf32>
    %144 = math.tanh %142 : vector<8x32xf32>
    %145 = arith.mulf %143, %144 : vector<8x32xf32>
    %146 = arith.truncf %145 : vector<8x32xf32> to vector<8x32xbf16>
    %147 = arith.truncf %142 : vector<8x32xf32> to vector<8x32xbf16>
    %148 = tpu.concatenate %146, %147 in 1 : vector<8x32xbf16>, vector<8x32xbf16> -> vector<8x64xbf16>
    %cst_35 = arith.constant dense<0.000000e+00> : vector<8x8xf32>
    %149 = tpu.matmul %148, %2, %cst_35 {dimension_numbers = #tpu.dot_dimension_numbers<[1], [0], [0], [1], [0, 0, 1, 1], [], []>} : vector<8x64xbf16>, vector<64x8xbf16>, vector<8x8xf32> -> vector<8x8xf32>
    %150 = vector.shape_cast %149 : vector<8x8xf32> to vector<8x1x8xf32>
    %151 = vector.broadcast %150 : vector<8x1x8xf32> to vector<8x8x8xf32>
    %152 = arith.addf %151, %1 : vector<8x8x8xf32>
    %153 = math.tanh %152 : vector<8x8x8xf32>
    %154 = vector.broadcast %7 : vector<1x1x8xf32> to vector<8x8x8xf32>
    %155 = arith.mulf %153, %154 : vector<8x8x8xf32>
    %cst_36 = arith.constant dense<0.000000e+00> : vector<8x8xf32>
    %156 = vector.multi_reduction <add>, %155, %cst_36 [2] : vector<8x8x8xf32> to vector<8x8xf32>
    %cst_37 = arith.constant dense<0xFF800000> : vector<8xf32>
    %157 = vector.multi_reduction <maximumf>, %156, %cst_37 [1] : vector<8x8xf32> to vector<8xf32>
    %158 = vector.shape_cast %157 : vector<8xf32> to vector<8x1xf32>
    %159 = vector.broadcast %158 : vector<8x1xf32> to vector<8x8xf32>
    %160 = arith.subf %156, %159 : vector<8x8xf32>
    %161 = math.exp %160 : vector<8x8xf32>
    %cst_38 = arith.constant dense<0.000000e+00> : vector<8xf32>
    %162 = vector.multi_reduction <add>, %161, %cst_38 [1] : vector<8x8xf32> to vector<8xf32>
    %163 = vector.shape_cast %162 : vector<8xf32> to vector<8x1xf32>
    %164 = tpu.reciprocal %163 {approx = true} : vector<8x1xf32> -> vector<8x1xf32>
    %165 = vector.broadcast %164 : vector<8x1xf32> to vector<8x8xf32>
    %166 = arith.mulf %161, %165 : vector<8x8xf32>
    %167 = vector.extract_strided_slice %0 {offsets = [0, 3, 0], sizes = [8, 1, 8], strides = [1, 1, 1]} : vector<8x8x8xf32> to vector<8x1x8xf32>
    %168 = vector.shape_cast %167 : vector<8x1x8xf32> to vector<8x8xf32>
    %169 = arith.mulf %166, %168 : vector<8x8xf32>
    %170 = arith.truncf %169 : vector<8x8xf32> to vector<8x8xbf16>
    %cst_39 = arith.constant dense<0.000000e+00> : vector<8x128xf32>
    %171 = tpu.matmul %170, %3, %cst_39 {dimension_numbers = #tpu.dot_dimension_numbers<[1], [0], [0], [1], [0, 0, 1, 1], [], []>} : vector<8x8xbf16>, vector<8x128xbf16>, vector<8x128xf32> -> vector<8x128xf32>
    %cst_40 = arith.constant dense<0.000000e+00> : vector<8x128xf32>
    %172 = tpu.matmul %146, %4, %cst_40 {dimension_numbers = #tpu.dot_dimension_numbers<[1], [0], [0], [1], [0, 0, 1, 1], [], []>} : vector<8x32xbf16>, vector<32x128xbf16>, vector<8x128xf32> -> vector<8x128xf32>
    %173 = arith.addf %171, %172 : vector<8x128xf32>
    %174 = vector.broadcast %5 : vector<1x128xf32> to vector<8x128xf32>
    %175 = arith.addf %173, %174 : vector<8x128xf32>
    %176 = vector.extract_strided_slice %175 {offsets = [0, 0], sizes = [8, 96], strides = [1, 1]} : vector<8x128xf32> to vector<8x96xf32>
    %177 = arith.negf %176 : vector<8x96xf32>
    %178 = math.exp %177 : vector<8x96xf32>
    %cst_41 = arith.constant 1.000000e+00 : f32
    %179 = vector.broadcast %cst_41 : f32 to vector<8x96xf32>
    %180 = arith.addf %179, %178 : vector<8x96xf32>
    %181 = arith.divf %179, %180 : vector<8x96xf32>
    %182 = vector.extract_strided_slice %175 {offsets = [0, 96], sizes = [8, 32], strides = [1, 1]} : vector<8x128xf32> to vector<8x32xf32>
    %183 = math.tanh %182 : vector<8x32xf32>
    %184 = vector.extract_strided_slice %181 {offsets = [0, 32], sizes = [8, 32], strides = [1, 1]} : vector<8x96xf32> to vector<8x32xf32>
    %185 = arith.mulf %184, %142 : vector<8x32xf32>
    %186 = vector.extract_strided_slice %181 {offsets = [0, 0], sizes = [8, 32], strides = [1, 1]} : vector<8x96xf32> to vector<8x32xf32>
    %187 = arith.mulf %186, %183 : vector<8x32xf32>
    %188 = arith.addf %185, %187 : vector<8x32xf32>
    %189 = vector.extract_strided_slice %181 {offsets = [0, 64], sizes = [8, 32], strides = [1, 1]} : vector<8x96xf32> to vector<8x32xf32>
    %190 = math.tanh %188 : vector<8x32xf32>
    %191 = arith.mulf %189, %190 : vector<8x32xf32>
    %192 = arith.truncf %191 : vector<8x32xf32> to vector<8x32xbf16>
    %193 = arith.truncf %188 : vector<8x32xf32> to vector<8x32xbf16>
    %194 = tpu.concatenate %192, %193 in 1 : vector<8x32xbf16>, vector<8x32xbf16> -> vector<8x64xbf16>
    %cst_42 = arith.constant dense<0.000000e+00> : vector<8x8xf32>
    %195 = tpu.matmul %194, %2, %cst_42 {dimension_numbers = #tpu.dot_dimension_numbers<[1], [0], [0], [1], [0, 0, 1, 1], [], []>} : vector<8x64xbf16>, vector<64x8xbf16>, vector<8x8xf32> -> vector<8x8xf32>
    %196 = vector.shape_cast %195 : vector<8x8xf32> to vector<8x1x8xf32>
    %197 = vector.broadcast %196 : vector<8x1x8xf32> to vector<8x8x8xf32>
    %198 = arith.addf %197, %1 : vector<8x8x8xf32>
    %199 = math.tanh %198 : vector<8x8x8xf32>
    %200 = vector.broadcast %7 : vector<1x1x8xf32> to vector<8x8x8xf32>
    %201 = arith.mulf %199, %200 : vector<8x8x8xf32>
    %cst_43 = arith.constant dense<0.000000e+00> : vector<8x8xf32>
    %202 = vector.multi_reduction <add>, %201, %cst_43 [2] : vector<8x8x8xf32> to vector<8x8xf32>
    %cst_44 = arith.constant dense<0xFF800000> : vector<8xf32>
    %203 = vector.multi_reduction <maximumf>, %202, %cst_44 [1] : vector<8x8xf32> to vector<8xf32>
    %204 = vector.shape_cast %203 : vector<8xf32> to vector<8x1xf32>
    %205 = vector.broadcast %204 : vector<8x1xf32> to vector<8x8xf32>
    %206 = arith.subf %202, %205 : vector<8x8xf32>
    %207 = math.exp %206 : vector<8x8xf32>
    %cst_45 = arith.constant dense<0.000000e+00> : vector<8xf32>
    %208 = vector.multi_reduction <add>, %207, %cst_45 [1] : vector<8x8xf32> to vector<8xf32>
    %209 = vector.shape_cast %208 : vector<8xf32> to vector<8x1xf32>
    %210 = tpu.reciprocal %209 {approx = true} : vector<8x1xf32> -> vector<8x1xf32>
    %211 = vector.broadcast %210 : vector<8x1xf32> to vector<8x8xf32>
    %212 = arith.mulf %207, %211 : vector<8x8xf32>
    %213 = vector.extract_strided_slice %0 {offsets = [0, 4, 0], sizes = [8, 1, 8], strides = [1, 1, 1]} : vector<8x8x8xf32> to vector<8x1x8xf32>
    %214 = vector.shape_cast %213 : vector<8x1x8xf32> to vector<8x8xf32>
    %215 = arith.mulf %212, %214 : vector<8x8xf32>
    %216 = arith.truncf %215 : vector<8x8xf32> to vector<8x8xbf16>
    %cst_46 = arith.constant dense<0.000000e+00> : vector<8x128xf32>
    %217 = tpu.matmul %216, %3, %cst_46 {dimension_numbers = #tpu.dot_dimension_numbers<[1], [0], [0], [1], [0, 0, 1, 1], [], []>} : vector<8x8xbf16>, vector<8x128xbf16>, vector<8x128xf32> -> vector<8x128xf32>
    %cst_47 = arith.constant dense<0.000000e+00> : vector<8x128xf32>
    %218 = tpu.matmul %192, %4, %cst_47 {dimension_numbers = #tpu.dot_dimension_numbers<[1], [0], [0], [1], [0, 0, 1, 1], [], []>} : vector<8x32xbf16>, vector<32x128xbf16>, vector<8x128xf32> -> vector<8x128xf32>
    %219 = arith.addf %217, %218 : vector<8x128xf32>
    %220 = vector.broadcast %5 : vector<1x128xf32> to vector<8x128xf32>
    %221 = arith.addf %219, %220 : vector<8x128xf32>
    %222 = vector.extract_strided_slice %221 {offsets = [0, 0], sizes = [8, 96], strides = [1, 1]} : vector<8x128xf32> to vector<8x96xf32>
    %223 = arith.negf %222 : vector<8x96xf32>
    %224 = math.exp %223 : vector<8x96xf32>
    %cst_48 = arith.constant 1.000000e+00 : f32
    %225 = vector.broadcast %cst_48 : f32 to vector<8x96xf32>
    %226 = arith.addf %225, %224 : vector<8x96xf32>
    %227 = arith.divf %225, %226 : vector<8x96xf32>
    %228 = vector.extract_strided_slice %221 {offsets = [0, 96], sizes = [8, 32], strides = [1, 1]} : vector<8x128xf32> to vector<8x32xf32>
    %229 = math.tanh %228 : vector<8x32xf32>
    %230 = vector.extract_strided_slice %227 {offsets = [0, 32], sizes = [8, 32], strides = [1, 1]} : vector<8x96xf32> to vector<8x32xf32>
    %231 = arith.mulf %230, %188 : vector<8x32xf32>
    %232 = vector.extract_strided_slice %227 {offsets = [0, 0], sizes = [8, 32], strides = [1, 1]} : vector<8x96xf32> to vector<8x32xf32>
    %233 = arith.mulf %232, %229 : vector<8x32xf32>
    %234 = arith.addf %231, %233 : vector<8x32xf32>
    %235 = vector.extract_strided_slice %227 {offsets = [0, 64], sizes = [8, 32], strides = [1, 1]} : vector<8x96xf32> to vector<8x32xf32>
    %236 = math.tanh %234 : vector<8x32xf32>
    %237 = arith.mulf %235, %236 : vector<8x32xf32>
    %238 = arith.truncf %237 : vector<8x32xf32> to vector<8x32xbf16>
    %239 = arith.truncf %234 : vector<8x32xf32> to vector<8x32xbf16>
    %240 = tpu.concatenate %238, %239 in 1 : vector<8x32xbf16>, vector<8x32xbf16> -> vector<8x64xbf16>
    %cst_49 = arith.constant dense<0.000000e+00> : vector<8x8xf32>
    %241 = tpu.matmul %240, %2, %cst_49 {dimension_numbers = #tpu.dot_dimension_numbers<[1], [0], [0], [1], [0, 0, 1, 1], [], []>} : vector<8x64xbf16>, vector<64x8xbf16>, vector<8x8xf32> -> vector<8x8xf32>
    %242 = vector.shape_cast %241 : vector<8x8xf32> to vector<8x1x8xf32>
    %243 = vector.broadcast %242 : vector<8x1x8xf32> to vector<8x8x8xf32>
    %244 = arith.addf %243, %1 : vector<8x8x8xf32>
    %245 = math.tanh %244 : vector<8x8x8xf32>
    %246 = vector.broadcast %7 : vector<1x1x8xf32> to vector<8x8x8xf32>
    %247 = arith.mulf %245, %246 : vector<8x8x8xf32>
    %cst_50 = arith.constant dense<0.000000e+00> : vector<8x8xf32>
    %248 = vector.multi_reduction <add>, %247, %cst_50 [2] : vector<8x8x8xf32> to vector<8x8xf32>
    %cst_51 = arith.constant dense<0xFF800000> : vector<8xf32>
    %249 = vector.multi_reduction <maximumf>, %248, %cst_51 [1] : vector<8x8xf32> to vector<8xf32>
    %250 = vector.shape_cast %249 : vector<8xf32> to vector<8x1xf32>
    %251 = vector.broadcast %250 : vector<8x1xf32> to vector<8x8xf32>
    %252 = arith.subf %248, %251 : vector<8x8xf32>
    %253 = math.exp %252 : vector<8x8xf32>
    %cst_52 = arith.constant dense<0.000000e+00> : vector<8xf32>
    %254 = vector.multi_reduction <add>, %253, %cst_52 [1] : vector<8x8xf32> to vector<8xf32>
    %255 = vector.shape_cast %254 : vector<8xf32> to vector<8x1xf32>
    %256 = tpu.reciprocal %255 {approx = true} : vector<8x1xf32> -> vector<8x1xf32>
    %257 = vector.broadcast %256 : vector<8x1xf32> to vector<8x8xf32>
    %258 = arith.mulf %253, %257 : vector<8x8xf32>
    %259 = vector.extract_strided_slice %0 {offsets = [0, 5, 0], sizes = [8, 1, 8], strides = [1, 1, 1]} : vector<8x8x8xf32> to vector<8x1x8xf32>
    %260 = vector.shape_cast %259 : vector<8x1x8xf32> to vector<8x8xf32>
    %261 = arith.mulf %258, %260 : vector<8x8xf32>
    %262 = arith.truncf %261 : vector<8x8xf32> to vector<8x8xbf16>
    %cst_53 = arith.constant dense<0.000000e+00> : vector<8x128xf32>
    %263 = tpu.matmul %262, %3, %cst_53 {dimension_numbers = #tpu.dot_dimension_numbers<[1], [0], [0], [1], [0, 0, 1, 1], [], []>} : vector<8x8xbf16>, vector<8x128xbf16>, vector<8x128xf32> -> vector<8x128xf32>
    %cst_54 = arith.constant dense<0.000000e+00> : vector<8x128xf32>
    %264 = tpu.matmul %238, %4, %cst_54 {dimension_numbers = #tpu.dot_dimension_numbers<[1], [0], [0], [1], [0, 0, 1, 1], [], []>} : vector<8x32xbf16>, vector<32x128xbf16>, vector<8x128xf32> -> vector<8x128xf32>
    %265 = arith.addf %263, %264 : vector<8x128xf32>
    %266 = vector.broadcast %5 : vector<1x128xf32> to vector<8x128xf32>
    %267 = arith.addf %265, %266 : vector<8x128xf32>
    %268 = vector.extract_strided_slice %267 {offsets = [0, 0], sizes = [8, 96], strides = [1, 1]} : vector<8x128xf32> to vector<8x96xf32>
    %269 = arith.negf %268 : vector<8x96xf32>
    %270 = math.exp %269 : vector<8x96xf32>
    %cst_55 = arith.constant 1.000000e+00 : f32
    %271 = vector.broadcast %cst_55 : f32 to vector<8x96xf32>
    %272 = arith.addf %271, %270 : vector<8x96xf32>
    %273 = arith.divf %271, %272 : vector<8x96xf32>
    %274 = vector.extract_strided_slice %267 {offsets = [0, 96], sizes = [8, 32], strides = [1, 1]} : vector<8x128xf32> to vector<8x32xf32>
    %275 = math.tanh %274 : vector<8x32xf32>
    %276 = vector.extract_strided_slice %273 {offsets = [0, 32], sizes = [8, 32], strides = [1, 1]} : vector<8x96xf32> to vector<8x32xf32>
    %277 = arith.mulf %276, %234 : vector<8x32xf32>
    %278 = vector.extract_strided_slice %273 {offsets = [0, 0], sizes = [8, 32], strides = [1, 1]} : vector<8x96xf32> to vector<8x32xf32>
    %279 = arith.mulf %278, %275 : vector<8x32xf32>
    %280 = arith.addf %277, %279 : vector<8x32xf32>
    %281 = vector.extract_strided_slice %273 {offsets = [0, 64], sizes = [8, 32], strides = [1, 1]} : vector<8x96xf32> to vector<8x32xf32>
    %282 = math.tanh %280 : vector<8x32xf32>
    %283 = arith.mulf %281, %282 : vector<8x32xf32>
    %284 = arith.truncf %283 : vector<8x32xf32> to vector<8x32xbf16>
    %285 = arith.truncf %280 : vector<8x32xf32> to vector<8x32xbf16>
    %286 = tpu.concatenate %284, %285 in 1 : vector<8x32xbf16>, vector<8x32xbf16> -> vector<8x64xbf16>
    %cst_56 = arith.constant dense<0.000000e+00> : vector<8x8xf32>
    %287 = tpu.matmul %286, %2, %cst_56 {dimension_numbers = #tpu.dot_dimension_numbers<[1], [0], [0], [1], [0, 0, 1, 1], [], []>} : vector<8x64xbf16>, vector<64x8xbf16>, vector<8x8xf32> -> vector<8x8xf32>
    %288 = vector.shape_cast %287 : vector<8x8xf32> to vector<8x1x8xf32>
    %289 = vector.broadcast %288 : vector<8x1x8xf32> to vector<8x8x8xf32>
    %290 = arith.addf %289, %1 : vector<8x8x8xf32>
    %291 = math.tanh %290 : vector<8x8x8xf32>
    %292 = vector.broadcast %7 : vector<1x1x8xf32> to vector<8x8x8xf32>
    %293 = arith.mulf %291, %292 : vector<8x8x8xf32>
    %cst_57 = arith.constant dense<0.000000e+00> : vector<8x8xf32>
    %294 = vector.multi_reduction <add>, %293, %cst_57 [2] : vector<8x8x8xf32> to vector<8x8xf32>
    %cst_58 = arith.constant dense<0xFF800000> : vector<8xf32>
    %295 = vector.multi_reduction <maximumf>, %294, %cst_58 [1] : vector<8x8xf32> to vector<8xf32>
    %296 = vector.shape_cast %295 : vector<8xf32> to vector<8x1xf32>
    %297 = vector.broadcast %296 : vector<8x1xf32> to vector<8x8xf32>
    %298 = arith.subf %294, %297 : vector<8x8xf32>
    %299 = math.exp %298 : vector<8x8xf32>
    %cst_59 = arith.constant dense<0.000000e+00> : vector<8xf32>
    %300 = vector.multi_reduction <add>, %299, %cst_59 [1] : vector<8x8xf32> to vector<8xf32>
    %301 = vector.shape_cast %300 : vector<8xf32> to vector<8x1xf32>
    %302 = tpu.reciprocal %301 {approx = true} : vector<8x1xf32> -> vector<8x1xf32>
    %303 = vector.broadcast %302 : vector<8x1xf32> to vector<8x8xf32>
    %304 = arith.mulf %299, %303 : vector<8x8xf32>
    %305 = vector.extract_strided_slice %0 {offsets = [0, 6, 0], sizes = [8, 1, 8], strides = [1, 1, 1]} : vector<8x8x8xf32> to vector<8x1x8xf32>
    %306 = vector.shape_cast %305 : vector<8x1x8xf32> to vector<8x8xf32>
    %307 = arith.mulf %304, %306 : vector<8x8xf32>
    %308 = arith.truncf %307 : vector<8x8xf32> to vector<8x8xbf16>
    %cst_60 = arith.constant dense<0.000000e+00> : vector<8x128xf32>
    %309 = tpu.matmul %308, %3, %cst_60 {dimension_numbers = #tpu.dot_dimension_numbers<[1], [0], [0], [1], [0, 0, 1, 1], [], []>} : vector<8x8xbf16>, vector<8x128xbf16>, vector<8x128xf32> -> vector<8x128xf32>
    %cst_61 = arith.constant dense<0.000000e+00> : vector<8x128xf32>
    %310 = tpu.matmul %284, %4, %cst_61 {dimension_numbers = #tpu.dot_dimension_numbers<[1], [0], [0], [1], [0, 0, 1, 1], [], []>} : vector<8x32xbf16>, vector<32x128xbf16>, vector<8x128xf32> -> vector<8x128xf32>
    %311 = arith.addf %309, %310 : vector<8x128xf32>
    %312 = vector.broadcast %5 : vector<1x128xf32> to vector<8x128xf32>
    %313 = arith.addf %311, %312 : vector<8x128xf32>
    %314 = vector.extract_strided_slice %313 {offsets = [0, 0], sizes = [8, 96], strides = [1, 1]} : vector<8x128xf32> to vector<8x96xf32>
    %315 = arith.negf %314 : vector<8x96xf32>
    %316 = math.exp %315 : vector<8x96xf32>
    %cst_62 = arith.constant 1.000000e+00 : f32
    %317 = vector.broadcast %cst_62 : f32 to vector<8x96xf32>
    %318 = arith.addf %317, %316 : vector<8x96xf32>
    %319 = arith.divf %317, %318 : vector<8x96xf32>
    %320 = vector.extract_strided_slice %313 {offsets = [0, 96], sizes = [8, 32], strides = [1, 1]} : vector<8x128xf32> to vector<8x32xf32>
    %321 = math.tanh %320 : vector<8x32xf32>
    %322 = vector.extract_strided_slice %319 {offsets = [0, 32], sizes = [8, 32], strides = [1, 1]} : vector<8x96xf32> to vector<8x32xf32>
    %323 = arith.mulf %322, %280 : vector<8x32xf32>
    %324 = vector.extract_strided_slice %319 {offsets = [0, 0], sizes = [8, 32], strides = [1, 1]} : vector<8x96xf32> to vector<8x32xf32>
    %325 = arith.mulf %324, %321 : vector<8x32xf32>
    %326 = arith.addf %323, %325 : vector<8x32xf32>
    %327 = vector.extract_strided_slice %319 {offsets = [0, 64], sizes = [8, 32], strides = [1, 1]} : vector<8x96xf32> to vector<8x32xf32>
    %328 = math.tanh %326 : vector<8x32xf32>
    %329 = arith.mulf %327, %328 : vector<8x32xf32>
    %330 = arith.truncf %329 : vector<8x32xf32> to vector<8x32xbf16>
    %331 = arith.truncf %326 : vector<8x32xf32> to vector<8x32xbf16>
    %332 = tpu.concatenate %330, %331 in 1 : vector<8x32xbf16>, vector<8x32xbf16> -> vector<8x64xbf16>
    %cst_63 = arith.constant dense<0.000000e+00> : vector<8x8xf32>
    %333 = tpu.matmul %332, %2, %cst_63 {dimension_numbers = #tpu.dot_dimension_numbers<[1], [0], [0], [1], [0, 0, 1, 1], [], []>} : vector<8x64xbf16>, vector<64x8xbf16>, vector<8x8xf32> -> vector<8x8xf32>
    %334 = vector.shape_cast %333 : vector<8x8xf32> to vector<8x1x8xf32>
    %335 = vector.broadcast %334 : vector<8x1x8xf32> to vector<8x8x8xf32>
    %336 = arith.addf %335, %1 : vector<8x8x8xf32>
    %337 = math.tanh %336 : vector<8x8x8xf32>
    %338 = vector.broadcast %7 : vector<1x1x8xf32> to vector<8x8x8xf32>
    %339 = arith.mulf %337, %338 : vector<8x8x8xf32>
    %cst_64 = arith.constant dense<0.000000e+00> : vector<8x8xf32>
    %340 = vector.multi_reduction <add>, %339, %cst_64 [2] : vector<8x8x8xf32> to vector<8x8xf32>
    %cst_65 = arith.constant dense<0xFF800000> : vector<8xf32>
    %341 = vector.multi_reduction <maximumf>, %340, %cst_65 [1] : vector<8x8xf32> to vector<8xf32>
    %342 = vector.shape_cast %341 : vector<8xf32> to vector<8x1xf32>
    %343 = vector.broadcast %342 : vector<8x1xf32> to vector<8x8xf32>
    %344 = arith.subf %340, %343 : vector<8x8xf32>
    %345 = math.exp %344 : vector<8x8xf32>
    %cst_66 = arith.constant dense<0.000000e+00> : vector<8xf32>
    %346 = vector.multi_reduction <add>, %345, %cst_66 [1] : vector<8x8xf32> to vector<8xf32>
    %347 = vector.shape_cast %346 : vector<8xf32> to vector<8x1xf32>
    %348 = tpu.reciprocal %347 {approx = true} : vector<8x1xf32> -> vector<8x1xf32>
    %349 = vector.broadcast %348 : vector<8x1xf32> to vector<8x8xf32>
    %350 = arith.mulf %345, %349 : vector<8x8xf32>
    %351 = vector.extract_strided_slice %0 {offsets = [0, 7, 0], sizes = [8, 1, 8], strides = [1, 1, 1]} : vector<8x8x8xf32> to vector<8x1x8xf32>
    %352 = vector.shape_cast %351 : vector<8x1x8xf32> to vector<8x8xf32>
    %353 = arith.mulf %350, %352 : vector<8x8xf32>
    %354 = arith.truncf %353 : vector<8x8xf32> to vector<8x8xbf16>
    %cst_67 = arith.constant dense<0.000000e+00> : vector<8x128xf32>
    %355 = tpu.matmul %354, %3, %cst_67 {dimension_numbers = #tpu.dot_dimension_numbers<[1], [0], [0], [1], [0, 0, 1, 1], [], []>} : vector<8x8xbf16>, vector<8x128xbf16>, vector<8x128xf32> -> vector<8x128xf32>
    %cst_68 = arith.constant dense<0.000000e+00> : vector<8x128xf32>
    %356 = tpu.matmul %330, %4, %cst_68 {dimension_numbers = #tpu.dot_dimension_numbers<[1], [0], [0], [1], [0, 0, 1, 1], [], []>} : vector<8x32xbf16>, vector<32x128xbf16>, vector<8x128xf32> -> vector<8x128xf32>
    %357 = arith.addf %355, %356 : vector<8x128xf32>
    %358 = vector.broadcast %5 : vector<1x128xf32> to vector<8x128xf32>
    %359 = arith.addf %357, %358 : vector<8x128xf32>
    %360 = vector.extract_strided_slice %359 {offsets = [0, 0], sizes = [8, 96], strides = [1, 1]} : vector<8x128xf32> to vector<8x96xf32>
    %361 = arith.negf %360 : vector<8x96xf32>
    %362 = math.exp %361 : vector<8x96xf32>
    %cst_69 = arith.constant 1.000000e+00 : f32
    %363 = vector.broadcast %cst_69 : f32 to vector<8x96xf32>
    %364 = arith.addf %363, %362 : vector<8x96xf32>
    %365 = arith.divf %363, %364 : vector<8x96xf32>
    %366 = vector.extract_strided_slice %359 {offsets = [0, 96], sizes = [8, 32], strides = [1, 1]} : vector<8x128xf32> to vector<8x32xf32>
    %367 = math.tanh %366 : vector<8x32xf32>
    %368 = vector.extract_strided_slice %365 {offsets = [0, 32], sizes = [8, 32], strides = [1, 1]} : vector<8x96xf32> to vector<8x32xf32>
    %369 = arith.mulf %368, %326 : vector<8x32xf32>
    %370 = vector.extract_strided_slice %365 {offsets = [0, 0], sizes = [8, 32], strides = [1, 1]} : vector<8x96xf32> to vector<8x32xf32>
    %371 = arith.mulf %370, %367 : vector<8x32xf32>
    %372 = arith.addf %369, %371 : vector<8x32xf32>
    %373 = vector.extract_strided_slice %365 {offsets = [0, 64], sizes = [8, 32], strides = [1, 1]} : vector<8x96xf32> to vector<8x32xf32>
    %374 = math.tanh %372 : vector<8x32xf32>
    %375 = arith.mulf %373, %374 : vector<8x32xf32>
    %376 = vector.shape_cast %53 : vector<8x32xf32> to vector<8x1x32xf32>
    %377 = vector.shape_cast %99 : vector<8x32xf32> to vector<8x1x32xf32>
    %378 = vector.shape_cast %145 : vector<8x32xf32> to vector<8x1x32xf32>
    %379 = vector.shape_cast %191 : vector<8x32xf32> to vector<8x1x32xf32>
    %380 = vector.shape_cast %237 : vector<8x32xf32> to vector<8x1x32xf32>
    %381 = vector.shape_cast %283 : vector<8x32xf32> to vector<8x1x32xf32>
    %382 = vector.shape_cast %329 : vector<8x32xf32> to vector<8x1x32xf32>
    %383 = vector.shape_cast %375 : vector<8x32xf32> to vector<8x1x32xf32>
    %384 = tpu.concatenate %376, %377, %378, %379, %380, %381, %382, %383 in 1 : vector<8x1x32xf32>, vector<8x1x32xf32>, vector<8x1x32xf32>, vector<8x1x32xf32>, vector<8x1x32xf32>, vector<8x1x32xf32>, vector<8x1x32xf32>, vector<8x1x32xf32> -> vector<8x8x32xf32>
    %c208 = arith.constant 208 : index
    %c0_70 = arith.constant 0 : index
    %385 = vector.load %arg3[%c208, %c0_70] : memref<240x128xbf16, #tpu.memory_space<vmem>>, vector<32x32xbf16>
    %c144 = arith.constant 144 : index
    %c0_71 = arith.constant 0 : index
    %386 = vector.load %arg3[%c144, %c0_71] : memref<240x128xbf16, #tpu.memory_space<vmem>>, vector<64x32xbf16>
    %c48 = arith.constant 48 : index
    %c0_72 = arith.constant 0 : index
    %387 = vector.load %arg3[%c48, %c0_72] : memref<240x128xbf16, #tpu.memory_space<vmem>>, vector<32x128xbf16>
    %c16_73 = arith.constant 16 : index
    %c0_74 = arith.constant 0 : index
    %388 = vector.load %arg4[%c16_73, %c0_74] : memref<88x128xf32, #tpu.memory_space<vmem>>, vector<1x32xf32>
    %389 = vector.shape_cast %388 : vector<1x32xf32> to vector<1x1x32xf32>
    %c24 = arith.constant 24 : index
    %c0_75 = arith.constant 0 : index
    %390 = vector.load %arg4[%c24, %c0_75] : memref<88x128xf32, #tpu.memory_space<vmem>>, vector<1x32xf32>
    %391 = vector.shape_cast %390 : vector<1x32xf32> to vector<1x1x32xf32>
    %c32 = arith.constant 32 : index
    %c0_76 = arith.constant 0 : index
    %392 = vector.load %arg4[%c32, %c0_76] : memref<88x128xf32, #tpu.memory_space<vmem>>, vector<1x32xf32>
    %c40 = arith.constant 40 : index
    %c0_77 = arith.constant 0 : index
    %393 = vector.load %arg4[%c40, %c0_77] : memref<88x128xf32, #tpu.memory_space<vmem>>, vector<1x1xf32>
    %c48_78 = arith.constant 48 : index
    %c0_79 = arith.constant 0 : index
    %394 = vector.load %arg4[%c48_78, %c0_79] : memref<88x128xf32, #tpu.memory_space<vmem>>, vector<1x128xf32>
    %c56 = arith.constant 56 : index
    %c0_80 = arith.constant 0 : index
    %395 = vector.load %arg4[%c56, %c0_80] : memref<88x128xf32, #tpu.memory_space<vmem>>, vector<1x128xf32>
    %c0_81 = arith.constant 0 : index
    %c0_82 = arith.constant 0 : index
    %c0_83 = arith.constant 0 : index
    %396 = vector.load %arg1[%c0_81, %c0_82, %c0_83] : memref<8x8x1xf32, #tpu.memory_space<vmem>>, vector<8x8x1xf32>
    %397 = vector.shape_cast %384 : vector<8x8x32xf32> to vector<64x32xf32>
    %398 = arith.truncf %397 : vector<64x32xf32> to vector<64x32xbf16>
    %cst_84 = arith.constant dense<0.000000e+00> : vector<64x32xf32>
    %399 = tpu.matmul %398, %385, %cst_84 {dimension_numbers = #tpu.dot_dimension_numbers<[1], [0], [0], [1], [0, 0, 1, 1], [], []>} : vector<64x32xbf16>, vector<32x32xbf16>, vector<64x32xf32> -> vector<64x32xf32>
    %400 = vector.shape_cast %399 : vector<64x32xf32> to vector<8x8x32xf32>
    %401 = vector.broadcast %389 : vector<1x1x32xf32> to vector<8x8x32xf32>
    %402 = arith.addf %400, %401 : vector<8x8x32xf32>
    %cst_85 = arith.constant 0.000000e+00 : f32
    %403 = vector.broadcast %cst_85 : f32 to vector<8x32xf32>
    %cst_86 = arith.constant 0.000000e+00 : bf16
    %404 = vector.broadcast %cst_86 : bf16 to vector<8x32xbf16>
    %cst_87 = arith.constant 0.000000e+00 : bf16
    %405 = vector.broadcast %cst_87 : bf16 to vector<8x64xbf16>
    %cst_88 = arith.constant 0.000000e+00 : f32
    %406 = vector.broadcast %cst_88 : f32 to vector<8x32xf32>
    %cst_89 = arith.constant dense<0.000000e+00> : vector<8x32xf32>
    %407 = tpu.matmul %405, %386, %cst_89 {dimension_numbers = #tpu.dot_dimension_numbers<[1], [0], [0], [1], [0, 0, 1, 1], [], []>} : vector<8x64xbf16>, vector<64x32xbf16>, vector<8x32xf32> -> vector<8x32xf32>
    %408 = vector.shape_cast %407 : vector<8x32xf32> to vector<8x1x32xf32>
    %409 = vector.broadcast %408 : vector<8x1x32xf32> to vector<8x8x32xf32>
    %410 = arith.addf %409, %402 : vector<8x8x32xf32>
    %411 = math.tanh %410 : vector<8x8x32xf32>
    %412 = vector.broadcast %391 : vector<1x1x32xf32> to vector<8x8x32xf32>
    %413 = arith.mulf %411, %412 : vector<8x8x32xf32>
    %cst_90 = arith.constant dense<0.000000e+00> : vector<8x8xf32>
    %414 = vector.multi_reduction <add>, %413, %cst_90 [2] : vector<8x8x32xf32> to vector<8x8xf32>
    %cst_91 = arith.constant dense<0xFF800000> : vector<8xf32>
    %415 = vector.multi_reduction <maximumf>, %414, %cst_91 [1] : vector<8x8xf32> to vector<8xf32>
    %416 = vector.shape_cast %415 : vector<8xf32> to vector<8x1xf32>
    %417 = vector.broadcast %416 : vector<8x1xf32> to vector<8x8xf32>
    %418 = arith.subf %414, %417 : vector<8x8xf32>
    %419 = math.exp %418 : vector<8x8xf32>
    %cst_92 = arith.constant dense<0.000000e+00> : vector<8xf32>
    %420 = vector.multi_reduction <add>, %419, %cst_92 [1] : vector<8x8xf32> to vector<8xf32>
    %421 = vector.shape_cast %420 : vector<8xf32> to vector<8x1xf32>
    %422 = tpu.reciprocal %421 {approx = true} : vector<8x1xf32> -> vector<8x1xf32>
    %423 = vector.broadcast %422 : vector<8x1xf32> to vector<8x8xf32>
    %424 = arith.mulf %419, %423 : vector<8x8xf32>
    %425 = vector.shape_cast %424 : vector<8x8xf32> to vector<8x8x1xf32>
    %426 = vector.broadcast %425 : vector<8x8x1xf32> to vector<8x8x32xf32>
    %427 = arith.mulf %426, %384 : vector<8x8x32xf32>
    %cst_93 = arith.constant dense<0.000000e+00> : vector<8x32xf32>
    %428 = vector.multi_reduction <add>, %427, %cst_93 [1] : vector<8x8x32xf32> to vector<8x32xf32>
    %429 = vector.broadcast %392 : vector<1x32xf32> to vector<8x32xf32>
    %430 = arith.mulf %428, %429 : vector<8x32xf32>
    %cst_94 = arith.constant dense<0.000000e+00> : vector<8xf32>
    %431 = vector.multi_reduction <add>, %430, %cst_94 [1] : vector<8x32xf32> to vector<8xf32>
    %432 = vector.shape_cast %431 : vector<8xf32> to vector<8x1xf32>
    %433 = vector.extract_strided_slice %396 {offsets = [0, 0, 0], sizes = [8, 1, 1], strides = [1, 1, 1]} : vector<8x8x1xf32> to vector<8x1x1xf32>
    %434 = vector.shape_cast %433 : vector<8x1x1xf32> to vector<8x1xf32>
    %435 = vector.broadcast %393 : vector<1x1xf32> to vector<8x1xf32>
    %436 = arith.mulf %434, %435 : vector<8x1xf32>
    %437 = arith.addf %432, %436 : vector<8x1xf32>
    %438 = vector.broadcast %437 : vector<8x1xf32> to vector<8x128xf32>
    %439 = vector.broadcast %394 : vector<1x128xf32> to vector<8x128xf32>
    %440 = arith.mulf %438, %439 : vector<8x128xf32>
    %cst_95 = arith.constant dense<0.000000e+00> : vector<8x128xf32>
    %441 = tpu.matmul %404, %387, %cst_95 {dimension_numbers = #tpu.dot_dimension_numbers<[1], [0], [0], [1], [0, 0, 1, 1], [], []>} : vector<8x32xbf16>, vector<32x128xbf16>, vector<8x128xf32> -> vector<8x128xf32>
    %442 = arith.addf %440, %441 : vector<8x128xf32>
    %443 = vector.broadcast %395 : vector<1x128xf32> to vector<8x128xf32>
    %444 = arith.addf %442, %443 : vector<8x128xf32>
    %445 = vector.extract_strided_slice %444 {offsets = [0, 0], sizes = [8, 96], strides = [1, 1]} : vector<8x128xf32> to vector<8x96xf32>
    %446 = arith.negf %445 : vector<8x96xf32>
    %447 = math.exp %446 : vector<8x96xf32>
    %cst_96 = arith.constant 1.000000e+00 : f32
    %448 = vector.broadcast %cst_96 : f32 to vector<8x96xf32>
    %449 = arith.addf %448, %447 : vector<8x96xf32>
    %450 = arith.divf %448, %449 : vector<8x96xf32>
    %451 = vector.extract_strided_slice %444 {offsets = [0, 96], sizes = [8, 32], strides = [1, 1]} : vector<8x128xf32> to vector<8x32xf32>
    %452 = math.tanh %451 : vector<8x32xf32>
    %453 = vector.extract_strided_slice %450 {offsets = [0, 32], sizes = [8, 32], strides = [1, 1]} : vector<8x96xf32> to vector<8x32xf32>
    %454 = arith.mulf %453, %403 : vector<8x32xf32>
    %455 = vector.extract_strided_slice %450 {offsets = [0, 0], sizes = [8, 32], strides = [1, 1]} : vector<8x96xf32> to vector<8x32xf32>
    %456 = arith.mulf %455, %452 : vector<8x32xf32>
    %457 = arith.addf %454, %456 : vector<8x32xf32>
    %458 = vector.extract_strided_slice %450 {offsets = [0, 64], sizes = [8, 32], strides = [1, 1]} : vector<8x96xf32> to vector<8x32xf32>
    %459 = math.tanh %457 : vector<8x32xf32>
    %460 = arith.mulf %458, %459 : vector<8x32xf32>
    %c64 = arith.constant 64 : index
    %c0_97 = arith.constant 0 : index
    %461 = vector.load %arg4[%c64, %c0_97] : memref<88x128xf32, #tpu.memory_space<vmem>>, vector<1x32xf32>
    %462 = vector.broadcast %461 : vector<1x32xf32> to vector<8x32xf32>
    %463 = arith.mulf %460, %462 : vector<8x32xf32>
    %464 = arith.addf %406, %463 : vector<8x32xf32>
    %465 = arith.truncf %460 : vector<8x32xf32> to vector<8x32xbf16>
    %466 = arith.truncf %457 : vector<8x32xf32> to vector<8x32xbf16>
    %467 = tpu.concatenate %465, %466 in 1 : vector<8x32xbf16>, vector<8x32xbf16> -> vector<8x64xbf16>
    %cst_98 = arith.constant dense<0.000000e+00> : vector<8x32xf32>
    %468 = tpu.matmul %467, %386, %cst_98 {dimension_numbers = #tpu.dot_dimension_numbers<[1], [0], [0], [1], [0, 0, 1, 1], [], []>} : vector<8x64xbf16>, vector<64x32xbf16>, vector<8x32xf32> -> vector<8x32xf32>
    %469 = vector.shape_cast %468 : vector<8x32xf32> to vector<8x1x32xf32>
    %470 = vector.broadcast %469 : vector<8x1x32xf32> to vector<8x8x32xf32>
    %471 = arith.addf %470, %402 : vector<8x8x32xf32>
    %472 = math.tanh %471 : vector<8x8x32xf32>
    %473 = vector.broadcast %391 : vector<1x1x32xf32> to vector<8x8x32xf32>
    %474 = arith.mulf %472, %473 : vector<8x8x32xf32>
    %cst_99 = arith.constant dense<0.000000e+00> : vector<8x8xf32>
    %475 = vector.multi_reduction <add>, %474, %cst_99 [2] : vector<8x8x32xf32> to vector<8x8xf32>
    %cst_100 = arith.constant dense<0xFF800000> : vector<8xf32>
    %476 = vector.multi_reduction <maximumf>, %475, %cst_100 [1] : vector<8x8xf32> to vector<8xf32>
    %477 = vector.shape_cast %476 : vector<8xf32> to vector<8x1xf32>
    %478 = vector.broadcast %477 : vector<8x1xf32> to vector<8x8xf32>
    %479 = arith.subf %475, %478 : vector<8x8xf32>
    %480 = math.exp %479 : vector<8x8xf32>
    %cst_101 = arith.constant dense<0.000000e+00> : vector<8xf32>
    %481 = vector.multi_reduction <add>, %480, %cst_101 [1] : vector<8x8xf32> to vector<8xf32>
    %482 = vector.shape_cast %481 : vector<8xf32> to vector<8x1xf32>
    %483 = tpu.reciprocal %482 {approx = true} : vector<8x1xf32> -> vector<8x1xf32>
    %484 = vector.broadcast %483 : vector<8x1xf32> to vector<8x8xf32>
    %485 = arith.mulf %480, %484 : vector<8x8xf32>
    %486 = vector.shape_cast %485 : vector<8x8xf32> to vector<8x8x1xf32>
    %487 = vector.broadcast %486 : vector<8x8x1xf32> to vector<8x8x32xf32>
    %488 = arith.mulf %487, %384 : vector<8x8x32xf32>
    %cst_102 = arith.constant dense<0.000000e+00> : vector<8x32xf32>
    %489 = vector.multi_reduction <add>, %488, %cst_102 [1] : vector<8x8x32xf32> to vector<8x32xf32>
    %490 = vector.broadcast %392 : vector<1x32xf32> to vector<8x32xf32>
    %491 = arith.mulf %489, %490 : vector<8x32xf32>
    %cst_103 = arith.constant dense<0.000000e+00> : vector<8xf32>
    %492 = vector.multi_reduction <add>, %491, %cst_103 [1] : vector<8x32xf32> to vector<8xf32>
    %493 = vector.shape_cast %492 : vector<8xf32> to vector<8x1xf32>
    %494 = vector.extract_strided_slice %396 {offsets = [0, 1, 0], sizes = [8, 1, 1], strides = [1, 1, 1]} : vector<8x8x1xf32> to vector<8x1x1xf32>
    %495 = vector.shape_cast %494 : vector<8x1x1xf32> to vector<8x1xf32>
    %496 = vector.broadcast %393 : vector<1x1xf32> to vector<8x1xf32>
    %497 = arith.mulf %495, %496 : vector<8x1xf32>
    %498 = arith.addf %493, %497 : vector<8x1xf32>
    %499 = vector.broadcast %498 : vector<8x1xf32> to vector<8x128xf32>
    %500 = vector.broadcast %394 : vector<1x128xf32> to vector<8x128xf32>
    %501 = arith.mulf %499, %500 : vector<8x128xf32>
    %cst_104 = arith.constant dense<0.000000e+00> : vector<8x128xf32>
    %502 = tpu.matmul %465, %387, %cst_104 {dimension_numbers = #tpu.dot_dimension_numbers<[1], [0], [0], [1], [0, 0, 1, 1], [], []>} : vector<8x32xbf16>, vector<32x128xbf16>, vector<8x128xf32> -> vector<8x128xf32>
    %503 = arith.addf %501, %502 : vector<8x128xf32>
    %504 = vector.broadcast %395 : vector<1x128xf32> to vector<8x128xf32>
    %505 = arith.addf %503, %504 : vector<8x128xf32>
    %506 = vector.extract_strided_slice %505 {offsets = [0, 0], sizes = [8, 96], strides = [1, 1]} : vector<8x128xf32> to vector<8x96xf32>
    %507 = arith.negf %506 : vector<8x96xf32>
    %508 = math.exp %507 : vector<8x96xf32>
    %cst_105 = arith.constant 1.000000e+00 : f32
    %509 = vector.broadcast %cst_105 : f32 to vector<8x96xf32>
    %510 = arith.addf %509, %508 : vector<8x96xf32>
    %511 = arith.divf %509, %510 : vector<8x96xf32>
    %512 = vector.extract_strided_slice %505 {offsets = [0, 96], sizes = [8, 32], strides = [1, 1]} : vector<8x128xf32> to vector<8x32xf32>
    %513 = math.tanh %512 : vector<8x32xf32>
    %514 = vector.extract_strided_slice %511 {offsets = [0, 32], sizes = [8, 32], strides = [1, 1]} : vector<8x96xf32> to vector<8x32xf32>
    %515 = arith.mulf %514, %457 : vector<8x32xf32>
    %516 = vector.extract_strided_slice %511 {offsets = [0, 0], sizes = [8, 32], strides = [1, 1]} : vector<8x96xf32> to vector<8x32xf32>
    %517 = arith.mulf %516, %513 : vector<8x32xf32>
    %518 = arith.addf %515, %517 : vector<8x32xf32>
    %519 = vector.extract_strided_slice %511 {offsets = [0, 64], sizes = [8, 32], strides = [1, 1]} : vector<8x96xf32> to vector<8x32xf32>
    %520 = math.tanh %518 : vector<8x32xf32>
    %521 = arith.mulf %519, %520 : vector<8x32xf32>
    %c65 = arith.constant 65 : index
    %c0_106 = arith.constant 0 : index
    %522 = vector.load %arg4[%c65, %c0_106] : memref<88x128xf32, #tpu.memory_space<vmem>>, vector<1x32xf32>
    %523 = vector.broadcast %522 : vector<1x32xf32> to vector<8x32xf32>
    %524 = arith.mulf %521, %523 : vector<8x32xf32>
    %525 = arith.addf %464, %524 : vector<8x32xf32>
    %526 = arith.truncf %521 : vector<8x32xf32> to vector<8x32xbf16>
    %527 = arith.truncf %518 : vector<8x32xf32> to vector<8x32xbf16>
    %528 = tpu.concatenate %526, %527 in 1 : vector<8x32xbf16>, vector<8x32xbf16> -> vector<8x64xbf16>
    %cst_107 = arith.constant dense<0.000000e+00> : vector<8x32xf32>
    %529 = tpu.matmul %528, %386, %cst_107 {dimension_numbers = #tpu.dot_dimension_numbers<[1], [0], [0], [1], [0, 0, 1, 1], [], []>} : vector<8x64xbf16>, vector<64x32xbf16>, vector<8x32xf32> -> vector<8x32xf32>
    %530 = vector.shape_cast %529 : vector<8x32xf32> to vector<8x1x32xf32>
    %531 = vector.broadcast %530 : vector<8x1x32xf32> to vector<8x8x32xf32>
    %532 = arith.addf %531, %402 : vector<8x8x32xf32>
    %533 = math.tanh %532 : vector<8x8x32xf32>
    %534 = vector.broadcast %391 : vector<1x1x32xf32> to vector<8x8x32xf32>
    %535 = arith.mulf %533, %534 : vector<8x8x32xf32>
    %cst_108 = arith.constant dense<0.000000e+00> : vector<8x8xf32>
    %536 = vector.multi_reduction <add>, %535, %cst_108 [2] : vector<8x8x32xf32> to vector<8x8xf32>
    %cst_109 = arith.constant dense<0xFF800000> : vector<8xf32>
    %537 = vector.multi_reduction <maximumf>, %536, %cst_109 [1] : vector<8x8xf32> to vector<8xf32>
    %538 = vector.shape_cast %537 : vector<8xf32> to vector<8x1xf32>
    %539 = vector.broadcast %538 : vector<8x1xf32> to vector<8x8xf32>
    %540 = arith.subf %536, %539 : vector<8x8xf32>
    %541 = math.exp %540 : vector<8x8xf32>
    %cst_110 = arith.constant dense<0.000000e+00> : vector<8xf32>
    %542 = vector.multi_reduction <add>, %541, %cst_110 [1] : vector<8x8xf32> to vector<8xf32>
    %543 = vector.shape_cast %542 : vector<8xf32> to vector<8x1xf32>
    %544 = tpu.reciprocal %543 {approx = true} : vector<8x1xf32> -> vector<8x1xf32>
    %545 = vector.broadcast %544 : vector<8x1xf32> to vector<8x8xf32>
    %546 = arith.mulf %541, %545 : vector<8x8xf32>
    %547 = vector.shape_cast %546 : vector<8x8xf32> to vector<8x8x1xf32>
    %548 = vector.broadcast %547 : vector<8x8x1xf32> to vector<8x8x32xf32>
    %549 = arith.mulf %548, %384 : vector<8x8x32xf32>
    %cst_111 = arith.constant dense<0.000000e+00> : vector<8x32xf32>
    %550 = vector.multi_reduction <add>, %549, %cst_111 [1] : vector<8x8x32xf32> to vector<8x32xf32>
    %551 = vector.broadcast %392 : vector<1x32xf32> to vector<8x32xf32>
    %552 = arith.mulf %550, %551 : vector<8x32xf32>
    %cst_112 = arith.constant dense<0.000000e+00> : vector<8xf32>
    %553 = vector.multi_reduction <add>, %552, %cst_112 [1] : vector<8x32xf32> to vector<8xf32>
    %554 = vector.shape_cast %553 : vector<8xf32> to vector<8x1xf32>
    %555 = vector.extract_strided_slice %396 {offsets = [0, 2, 0], sizes = [8, 1, 1], strides = [1, 1, 1]} : vector<8x8x1xf32> to vector<8x1x1xf32>
    %556 = vector.shape_cast %555 : vector<8x1x1xf32> to vector<8x1xf32>
    %557 = vector.broadcast %393 : vector<1x1xf32> to vector<8x1xf32>
    %558 = arith.mulf %556, %557 : vector<8x1xf32>
    %559 = arith.addf %554, %558 : vector<8x1xf32>
    %560 = vector.broadcast %559 : vector<8x1xf32> to vector<8x128xf32>
    %561 = vector.broadcast %394 : vector<1x128xf32> to vector<8x128xf32>
    %562 = arith.mulf %560, %561 : vector<8x128xf32>
    %cst_113 = arith.constant dense<0.000000e+00> : vector<8x128xf32>
    %563 = tpu.matmul %526, %387, %cst_113 {dimension_numbers = #tpu.dot_dimension_numbers<[1], [0], [0], [1], [0, 0, 1, 1], [], []>} : vector<8x32xbf16>, vector<32x128xbf16>, vector<8x128xf32> -> vector<8x128xf32>
    %564 = arith.addf %562, %563 : vector<8x128xf32>
    %565 = vector.broadcast %395 : vector<1x128xf32> to vector<8x128xf32>
    %566 = arith.addf %564, %565 : vector<8x128xf32>
    %567 = vector.extract_strided_slice %566 {offsets = [0, 0], sizes = [8, 96], strides = [1, 1]} : vector<8x128xf32> to vector<8x96xf32>
    %568 = arith.negf %567 : vector<8x96xf32>
    %569 = math.exp %568 : vector<8x96xf32>
    %cst_114 = arith.constant 1.000000e+00 : f32
    %570 = vector.broadcast %cst_114 : f32 to vector<8x96xf32>
    %571 = arith.addf %570, %569 : vector<8x96xf32>
    %572 = arith.divf %570, %571 : vector<8x96xf32>
    %573 = vector.extract_strided_slice %566 {offsets = [0, 96], sizes = [8, 32], strides = [1, 1]} : vector<8x128xf32> to vector<8x32xf32>
    %574 = math.tanh %573 : vector<8x32xf32>
    %575 = vector.extract_strided_slice %572 {offsets = [0, 32], sizes = [8, 32], strides = [1, 1]} : vector<8x96xf32> to vector<8x32xf32>
    %576 = arith.mulf %575, %518 : vector<8x32xf32>
    %577 = vector.extract_strided_slice %572 {offsets = [0, 0], sizes = [8, 32], strides = [1, 1]} : vector<8x96xf32> to vector<8x32xf32>
    %578 = arith.mulf %577, %574 : vector<8x32xf32>
    %579 = arith.addf %576, %578 : vector<8x32xf32>
    %580 = vector.extract_strided_slice %572 {offsets = [0, 64], sizes = [8, 32], strides = [1, 1]} : vector<8x96xf32> to vector<8x32xf32>
    %581 = math.tanh %579 : vector<8x32xf32>
    %582 = arith.mulf %580, %581 : vector<8x32xf32>
    %c66 = arith.constant 66 : index
    %c0_115 = arith.constant 0 : index
    %583 = vector.load %arg4[%c66, %c0_115] : memref<88x128xf32, #tpu.memory_space<vmem>>, vector<1x32xf32>
    %584 = vector.broadcast %583 : vector<1x32xf32> to vector<8x32xf32>
    %585 = arith.mulf %582, %584 : vector<8x32xf32>
    %586 = arith.addf %525, %585 : vector<8x32xf32>
    %587 = arith.truncf %582 : vector<8x32xf32> to vector<8x32xbf16>
    %588 = arith.truncf %579 : vector<8x32xf32> to vector<8x32xbf16>
    %589 = tpu.concatenate %587, %588 in 1 : vector<8x32xbf16>, vector<8x32xbf16> -> vector<8x64xbf16>
    %cst_116 = arith.constant dense<0.000000e+00> : vector<8x32xf32>
    %590 = tpu.matmul %589, %386, %cst_116 {dimension_numbers = #tpu.dot_dimension_numbers<[1], [0], [0], [1], [0, 0, 1, 1], [], []>} : vector<8x64xbf16>, vector<64x32xbf16>, vector<8x32xf32> -> vector<8x32xf32>
    %591 = vector.shape_cast %590 : vector<8x32xf32> to vector<8x1x32xf32>
    %592 = vector.broadcast %591 : vector<8x1x32xf32> to vector<8x8x32xf32>
    %593 = arith.addf %592, %402 : vector<8x8x32xf32>
    %594 = math.tanh %593 : vector<8x8x32xf32>
    %595 = vector.broadcast %391 : vector<1x1x32xf32> to vector<8x8x32xf32>
    %596 = arith.mulf %594, %595 : vector<8x8x32xf32>
    %cst_117 = arith.constant dense<0.000000e+00> : vector<8x8xf32>
    %597 = vector.multi_reduction <add>, %596, %cst_117 [2] : vector<8x8x32xf32> to vector<8x8xf32>
    %cst_118 = arith.constant dense<0xFF800000> : vector<8xf32>
    %598 = vector.multi_reduction <maximumf>, %597, %cst_118 [1] : vector<8x8xf32> to vector<8xf32>
    %599 = vector.shape_cast %598 : vector<8xf32> to vector<8x1xf32>
    %600 = vector.broadcast %599 : vector<8x1xf32> to vector<8x8xf32>
    %601 = arith.subf %597, %600 : vector<8x8xf32>
    %602 = math.exp %601 : vector<8x8xf32>
    %cst_119 = arith.constant dense<0.000000e+00> : vector<8xf32>
    %603 = vector.multi_reduction <add>, %602, %cst_119 [1] : vector<8x8xf32> to vector<8xf32>
    %604 = vector.shape_cast %603 : vector<8xf32> to vector<8x1xf32>
    %605 = tpu.reciprocal %604 {approx = true} : vector<8x1xf32> -> vector<8x1xf32>
    %606 = vector.broadcast %605 : vector<8x1xf32> to vector<8x8xf32>
    %607 = arith.mulf %602, %606 : vector<8x8xf32>
    %608 = vector.shape_cast %607 : vector<8x8xf32> to vector<8x8x1xf32>
    %609 = vector.broadcast %608 : vector<8x8x1xf32> to vector<8x8x32xf32>
    %610 = arith.mulf %609, %384 : vector<8x8x32xf32>
    %cst_120 = arith.constant dense<0.000000e+00> : vector<8x32xf32>
    %611 = vector.multi_reduction <add>, %610, %cst_120 [1] : vector<8x8x32xf32> to vector<8x32xf32>
    %612 = vector.broadcast %392 : vector<1x32xf32> to vector<8x32xf32>
    %613 = arith.mulf %611, %612 : vector<8x32xf32>
    %cst_121 = arith.constant dense<0.000000e+00> : vector<8xf32>
    %614 = vector.multi_reduction <add>, %613, %cst_121 [1] : vector<8x32xf32> to vector<8xf32>
    %615 = vector.shape_cast %614 : vector<8xf32> to vector<8x1xf32>
    %616 = vector.extract_strided_slice %396 {offsets = [0, 3, 0], sizes = [8, 1, 1], strides = [1, 1, 1]} : vector<8x8x1xf32> to vector<8x1x1xf32>
    %617 = vector.shape_cast %616 : vector<8x1x1xf32> to vector<8x1xf32>
    %618 = vector.broadcast %393 : vector<1x1xf32> to vector<8x1xf32>
    %619 = arith.mulf %617, %618 : vector<8x1xf32>
    %620 = arith.addf %615, %619 : vector<8x1xf32>
    %621 = vector.broadcast %620 : vector<8x1xf32> to vector<8x128xf32>
    %622 = vector.broadcast %394 : vector<1x128xf32> to vector<8x128xf32>
    %623 = arith.mulf %621, %622 : vector<8x128xf32>
    %cst_122 = arith.constant dense<0.000000e+00> : vector<8x128xf32>
    %624 = tpu.matmul %587, %387, %cst_122 {dimension_numbers = #tpu.dot_dimension_numbers<[1], [0], [0], [1], [0, 0, 1, 1], [], []>} : vector<8x32xbf16>, vector<32x128xbf16>, vector<8x128xf32> -> vector<8x128xf32>
    %625 = arith.addf %623, %624 : vector<8x128xf32>
    %626 = vector.broadcast %395 : vector<1x128xf32> to vector<8x128xf32>
    %627 = arith.addf %625, %626 : vector<8x128xf32>
    %628 = vector.extract_strided_slice %627 {offsets = [0, 0], sizes = [8, 96], strides = [1, 1]} : vector<8x128xf32> to vector<8x96xf32>
    %629 = arith.negf %628 : vector<8x96xf32>
    %630 = math.exp %629 : vector<8x96xf32>
    %cst_123 = arith.constant 1.000000e+00 : f32
    %631 = vector.broadcast %cst_123 : f32 to vector<8x96xf32>
    %632 = arith.addf %631, %630 : vector<8x96xf32>
    %633 = arith.divf %631, %632 : vector<8x96xf32>
    %634 = vector.extract_strided_slice %627 {offsets = [0, 96], sizes = [8, 32], strides = [1, 1]} : vector<8x128xf32> to vector<8x32xf32>
    %635 = math.tanh %634 : vector<8x32xf32>
    %636 = vector.extract_strided_slice %633 {offsets = [0, 32], sizes = [8, 32], strides = [1, 1]} : vector<8x96xf32> to vector<8x32xf32>
    %637 = arith.mulf %636, %579 : vector<8x32xf32>
    %638 = vector.extract_strided_slice %633 {offsets = [0, 0], sizes = [8, 32], strides = [1, 1]} : vector<8x96xf32> to vector<8x32xf32>
    %639 = arith.mulf %638, %635 : vector<8x32xf32>
    %640 = arith.addf %637, %639 : vector<8x32xf32>
    %641 = vector.extract_strided_slice %633 {offsets = [0, 64], sizes = [8, 32], strides = [1, 1]} : vector<8x96xf32> to vector<8x32xf32>
    %642 = math.tanh %640 : vector<8x32xf32>
    %643 = arith.mulf %641, %642 : vector<8x32xf32>
    %c67 = arith.constant 67 : index
    %c0_124 = arith.constant 0 : index
    %644 = vector.load %arg4[%c67, %c0_124] : memref<88x128xf32, #tpu.memory_space<vmem>>, vector<1x32xf32>
    %645 = vector.broadcast %644 : vector<1x32xf32> to vector<8x32xf32>
    %646 = arith.mulf %643, %645 : vector<8x32xf32>
    %647 = arith.addf %586, %646 : vector<8x32xf32>
    %648 = arith.truncf %643 : vector<8x32xf32> to vector<8x32xbf16>
    %649 = arith.truncf %640 : vector<8x32xf32> to vector<8x32xbf16>
    %650 = tpu.concatenate %648, %649 in 1 : vector<8x32xbf16>, vector<8x32xbf16> -> vector<8x64xbf16>
    %cst_125 = arith.constant dense<0.000000e+00> : vector<8x32xf32>
    %651 = tpu.matmul %650, %386, %cst_125 {dimension_numbers = #tpu.dot_dimension_numbers<[1], [0], [0], [1], [0, 0, 1, 1], [], []>} : vector<8x64xbf16>, vector<64x32xbf16>, vector<8x32xf32> -> vector<8x32xf32>
    %652 = vector.shape_cast %651 : vector<8x32xf32> to vector<8x1x32xf32>
    %653 = vector.broadcast %652 : vector<8x1x32xf32> to vector<8x8x32xf32>
    %654 = arith.addf %653, %402 : vector<8x8x32xf32>
    %655 = math.tanh %654 : vector<8x8x32xf32>
    %656 = vector.broadcast %391 : vector<1x1x32xf32> to vector<8x8x32xf32>
    %657 = arith.mulf %655, %656 : vector<8x8x32xf32>
    %cst_126 = arith.constant dense<0.000000e+00> : vector<8x8xf32>
    %658 = vector.multi_reduction <add>, %657, %cst_126 [2] : vector<8x8x32xf32> to vector<8x8xf32>
    %cst_127 = arith.constant dense<0xFF800000> : vector<8xf32>
    %659 = vector.multi_reduction <maximumf>, %658, %cst_127 [1] : vector<8x8xf32> to vector<8xf32>
    %660 = vector.shape_cast %659 : vector<8xf32> to vector<8x1xf32>
    %661 = vector.broadcast %660 : vector<8x1xf32> to vector<8x8xf32>
    %662 = arith.subf %658, %661 : vector<8x8xf32>
    %663 = math.exp %662 : vector<8x8xf32>
    %cst_128 = arith.constant dense<0.000000e+00> : vector<8xf32>
    %664 = vector.multi_reduction <add>, %663, %cst_128 [1] : vector<8x8xf32> to vector<8xf32>
    %665 = vector.shape_cast %664 : vector<8xf32> to vector<8x1xf32>
    %666 = tpu.reciprocal %665 {approx = true} : vector<8x1xf32> -> vector<8x1xf32>
    %667 = vector.broadcast %666 : vector<8x1xf32> to vector<8x8xf32>
    %668 = arith.mulf %663, %667 : vector<8x8xf32>
    %669 = vector.shape_cast %668 : vector<8x8xf32> to vector<8x8x1xf32>
    %670 = vector.broadcast %669 : vector<8x8x1xf32> to vector<8x8x32xf32>
    %671 = arith.mulf %670, %384 : vector<8x8x32xf32>
    %cst_129 = arith.constant dense<0.000000e+00> : vector<8x32xf32>
    %672 = vector.multi_reduction <add>, %671, %cst_129 [1] : vector<8x8x32xf32> to vector<8x32xf32>
    %673 = vector.broadcast %392 : vector<1x32xf32> to vector<8x32xf32>
    %674 = arith.mulf %672, %673 : vector<8x32xf32>
    %cst_130 = arith.constant dense<0.000000e+00> : vector<8xf32>
    %675 = vector.multi_reduction <add>, %674, %cst_130 [1] : vector<8x32xf32> to vector<8xf32>
    %676 = vector.shape_cast %675 : vector<8xf32> to vector<8x1xf32>
    %677 = vector.extract_strided_slice %396 {offsets = [0, 4, 0], sizes = [8, 1, 1], strides = [1, 1, 1]} : vector<8x8x1xf32> to vector<8x1x1xf32>
    %678 = vector.shape_cast %677 : vector<8x1x1xf32> to vector<8x1xf32>
    %679 = vector.broadcast %393 : vector<1x1xf32> to vector<8x1xf32>
    %680 = arith.mulf %678, %679 : vector<8x1xf32>
    %681 = arith.addf %676, %680 : vector<8x1xf32>
    %682 = vector.broadcast %681 : vector<8x1xf32> to vector<8x128xf32>
    %683 = vector.broadcast %394 : vector<1x128xf32> to vector<8x128xf32>
    %684 = arith.mulf %682, %683 : vector<8x128xf32>
    %cst_131 = arith.constant dense<0.000000e+00> : vector<8x128xf32>
    %685 = tpu.matmul %648, %387, %cst_131 {dimension_numbers = #tpu.dot_dimension_numbers<[1], [0], [0], [1], [0, 0, 1, 1], [], []>} : vector<8x32xbf16>, vector<32x128xbf16>, vector<8x128xf32> -> vector<8x128xf32>
    %686 = arith.addf %684, %685 : vector<8x128xf32>
    %687 = vector.broadcast %395 : vector<1x128xf32> to vector<8x128xf32>
    %688 = arith.addf %686, %687 : vector<8x128xf32>
    %689 = vector.extract_strided_slice %688 {offsets = [0, 0], sizes = [8, 96], strides = [1, 1]} : vector<8x128xf32> to vector<8x96xf32>
    %690 = arith.negf %689 : vector<8x96xf32>
    %691 = math.exp %690 : vector<8x96xf32>
    %cst_132 = arith.constant 1.000000e+00 : f32
    %692 = vector.broadcast %cst_132 : f32 to vector<8x96xf32>
    %693 = arith.addf %692, %691 : vector<8x96xf32>
    %694 = arith.divf %692, %693 : vector<8x96xf32>
    %695 = vector.extract_strided_slice %688 {offsets = [0, 96], sizes = [8, 32], strides = [1, 1]} : vector<8x128xf32> to vector<8x32xf32>
    %696 = math.tanh %695 : vector<8x32xf32>
    %697 = vector.extract_strided_slice %694 {offsets = [0, 32], sizes = [8, 32], strides = [1, 1]} : vector<8x96xf32> to vector<8x32xf32>
    %698 = arith.mulf %697, %640 : vector<8x32xf32>
    %699 = vector.extract_strided_slice %694 {offsets = [0, 0], sizes = [8, 32], strides = [1, 1]} : vector<8x96xf32> to vector<8x32xf32>
    %700 = arith.mulf %699, %696 : vector<8x32xf32>
    %701 = arith.addf %698, %700 : vector<8x32xf32>
    %702 = vector.extract_strided_slice %694 {offsets = [0, 64], sizes = [8, 32], strides = [1, 1]} : vector<8x96xf32> to vector<8x32xf32>
    %703 = math.tanh %701 : vector<8x32xf32>
    %704 = arith.mulf %702, %703 : vector<8x32xf32>
    %c68 = arith.constant 68 : index
    %c0_133 = arith.constant 0 : index
    %705 = vector.load %arg4[%c68, %c0_133] : memref<88x128xf32, #tpu.memory_space<vmem>>, vector<1x32xf32>
    %706 = vector.broadcast %705 : vector<1x32xf32> to vector<8x32xf32>
    %707 = arith.mulf %704, %706 : vector<8x32xf32>
    %708 = arith.addf %647, %707 : vector<8x32xf32>
    %709 = arith.truncf %704 : vector<8x32xf32> to vector<8x32xbf16>
    %710 = arith.truncf %701 : vector<8x32xf32> to vector<8x32xbf16>
    %711 = tpu.concatenate %709, %710 in 1 : vector<8x32xbf16>, vector<8x32xbf16> -> vector<8x64xbf16>
    %cst_134 = arith.constant dense<0.000000e+00> : vector<8x32xf32>
    %712 = tpu.matmul %711, %386, %cst_134 {dimension_numbers = #tpu.dot_dimension_numbers<[1], [0], [0], [1], [0, 0, 1, 1], [], []>} : vector<8x64xbf16>, vector<64x32xbf16>, vector<8x32xf32> -> vector<8x32xf32>
    %713 = vector.shape_cast %712 : vector<8x32xf32> to vector<8x1x32xf32>
    %714 = vector.broadcast %713 : vector<8x1x32xf32> to vector<8x8x32xf32>
    %715 = arith.addf %714, %402 : vector<8x8x32xf32>
    %716 = math.tanh %715 : vector<8x8x32xf32>
    %717 = vector.broadcast %391 : vector<1x1x32xf32> to vector<8x8x32xf32>
    %718 = arith.mulf %716, %717 : vector<8x8x32xf32>
    %cst_135 = arith.constant dense<0.000000e+00> : vector<8x8xf32>
    %719 = vector.multi_reduction <add>, %718, %cst_135 [2] : vector<8x8x32xf32> to vector<8x8xf32>
    %cst_136 = arith.constant dense<0xFF800000> : vector<8xf32>
    %720 = vector.multi_reduction <maximumf>, %719, %cst_136 [1] : vector<8x8xf32> to vector<8xf32>
    %721 = vector.shape_cast %720 : vector<8xf32> to vector<8x1xf32>
    %722 = vector.broadcast %721 : vector<8x1xf32> to vector<8x8xf32>
    %723 = arith.subf %719, %722 : vector<8x8xf32>
    %724 = math.exp %723 : vector<8x8xf32>
    %cst_137 = arith.constant dense<0.000000e+00> : vector<8xf32>
    %725 = vector.multi_reduction <add>, %724, %cst_137 [1] : vector<8x8xf32> to vector<8xf32>
    %726 = vector.shape_cast %725 : vector<8xf32> to vector<8x1xf32>
    %727 = tpu.reciprocal %726 {approx = true} : vector<8x1xf32> -> vector<8x1xf32>
    %728 = vector.broadcast %727 : vector<8x1xf32> to vector<8x8xf32>
    %729 = arith.mulf %724, %728 : vector<8x8xf32>
    %730 = vector.shape_cast %729 : vector<8x8xf32> to vector<8x8x1xf32>
    %731 = vector.broadcast %730 : vector<8x8x1xf32> to vector<8x8x32xf32>
    %732 = arith.mulf %731, %384 : vector<8x8x32xf32>
    %cst_138 = arith.constant dense<0.000000e+00> : vector<8x32xf32>
    %733 = vector.multi_reduction <add>, %732, %cst_138 [1] : vector<8x8x32xf32> to vector<8x32xf32>
    %734 = vector.broadcast %392 : vector<1x32xf32> to vector<8x32xf32>
    %735 = arith.mulf %733, %734 : vector<8x32xf32>
    %cst_139 = arith.constant dense<0.000000e+00> : vector<8xf32>
    %736 = vector.multi_reduction <add>, %735, %cst_139 [1] : vector<8x32xf32> to vector<8xf32>
    %737 = vector.shape_cast %736 : vector<8xf32> to vector<8x1xf32>
    %738 = vector.extract_strided_slice %396 {offsets = [0, 5, 0], sizes = [8, 1, 1], strides = [1, 1, 1]} : vector<8x8x1xf32> to vector<8x1x1xf32>
    %739 = vector.shape_cast %738 : vector<8x1x1xf32> to vector<8x1xf32>
    %740 = vector.broadcast %393 : vector<1x1xf32> to vector<8x1xf32>
    %741 = arith.mulf %739, %740 : vector<8x1xf32>
    %742 = arith.addf %737, %741 : vector<8x1xf32>
    %743 = vector.broadcast %742 : vector<8x1xf32> to vector<8x128xf32>
    %744 = vector.broadcast %394 : vector<1x128xf32> to vector<8x128xf32>
    %745 = arith.mulf %743, %744 : vector<8x128xf32>
    %cst_140 = arith.constant dense<0.000000e+00> : vector<8x128xf32>
    %746 = tpu.matmul %709, %387, %cst_140 {dimension_numbers = #tpu.dot_dimension_numbers<[1], [0], [0], [1], [0, 0, 1, 1], [], []>} : vector<8x32xbf16>, vector<32x128xbf16>, vector<8x128xf32> -> vector<8x128xf32>
    %747 = arith.addf %745, %746 : vector<8x128xf32>
    %748 = vector.broadcast %395 : vector<1x128xf32> to vector<8x128xf32>
    %749 = arith.addf %747, %748 : vector<8x128xf32>
    %750 = vector.extract_strided_slice %749 {offsets = [0, 0], sizes = [8, 96], strides = [1, 1]} : vector<8x128xf32> to vector<8x96xf32>
    %751 = arith.negf %750 : vector<8x96xf32>
    %752 = math.exp %751 : vector<8x96xf32>
    %cst_141 = arith.constant 1.000000e+00 : f32
    %753 = vector.broadcast %cst_141 : f32 to vector<8x96xf32>
    %754 = arith.addf %753, %752 : vector<8x96xf32>
    %755 = arith.divf %753, %754 : vector<8x96xf32>
    %756 = vector.extract_strided_slice %749 {offsets = [0, 96], sizes = [8, 32], strides = [1, 1]} : vector<8x128xf32> to vector<8x32xf32>
    %757 = math.tanh %756 : vector<8x32xf32>
    %758 = vector.extract_strided_slice %755 {offsets = [0, 32], sizes = [8, 32], strides = [1, 1]} : vector<8x96xf32> to vector<8x32xf32>
    %759 = arith.mulf %758, %701 : vector<8x32xf32>
    %760 = vector.extract_strided_slice %755 {offsets = [0, 0], sizes = [8, 32], strides = [1, 1]} : vector<8x96xf32> to vector<8x32xf32>
    %761 = arith.mulf %760, %757 : vector<8x32xf32>
    %762 = arith.addf %759, %761 : vector<8x32xf32>
    %763 = vector.extract_strided_slice %755 {offsets = [0, 64], sizes = [8, 32], strides = [1, 1]} : vector<8x96xf32> to vector<8x32xf32>
    %764 = math.tanh %762 : vector<8x32xf32>
    %765 = arith.mulf %763, %764 : vector<8x32xf32>
    %c69 = arith.constant 69 : index
    %c0_142 = arith.constant 0 : index
    %766 = vector.load %arg4[%c69, %c0_142] : memref<88x128xf32, #tpu.memory_space<vmem>>, vector<1x32xf32>
    %767 = vector.broadcast %766 : vector<1x32xf32> to vector<8x32xf32>
    %768 = arith.mulf %765, %767 : vector<8x32xf32>
    %769 = arith.addf %708, %768 : vector<8x32xf32>
    %770 = arith.truncf %765 : vector<8x32xf32> to vector<8x32xbf16>
    %771 = arith.truncf %762 : vector<8x32xf32> to vector<8x32xbf16>
    %772 = tpu.concatenate %770, %771 in 1 : vector<8x32xbf16>, vector<8x32xbf16> -> vector<8x64xbf16>
    %cst_143 = arith.constant dense<0.000000e+00> : vector<8x32xf32>
    %773 = tpu.matmul %772, %386, %cst_143 {dimension_numbers = #tpu.dot_dimension_numbers<[1], [0], [0], [1], [0, 0, 1, 1], [], []>} : vector<8x64xbf16>, vector<64x32xbf16>, vector<8x32xf32> -> vector<8x32xf32>
    %774 = vector.shape_cast %773 : vector<8x32xf32> to vector<8x1x32xf32>
    %775 = vector.broadcast %774 : vector<8x1x32xf32> to vector<8x8x32xf32>
    %776 = arith.addf %775, %402 : vector<8x8x32xf32>
    %777 = math.tanh %776 : vector<8x8x32xf32>
    %778 = vector.broadcast %391 : vector<1x1x32xf32> to vector<8x8x32xf32>
    %779 = arith.mulf %777, %778 : vector<8x8x32xf32>
    %cst_144 = arith.constant dense<0.000000e+00> : vector<8x8xf32>
    %780 = vector.multi_reduction <add>, %779, %cst_144 [2] : vector<8x8x32xf32> to vector<8x8xf32>
    %cst_145 = arith.constant dense<0xFF800000> : vector<8xf32>
    %781 = vector.multi_reduction <maximumf>, %780, %cst_145 [1] : vector<8x8xf32> to vector<8xf32>
    %782 = vector.shape_cast %781 : vector<8xf32> to vector<8x1xf32>
    %783 = vector.broadcast %782 : vector<8x1xf32> to vector<8x8xf32>
    %784 = arith.subf %780, %783 : vector<8x8xf32>
    %785 = math.exp %784 : vector<8x8xf32>
    %cst_146 = arith.constant dense<0.000000e+00> : vector<8xf32>
    %786 = vector.multi_reduction <add>, %785, %cst_146 [1] : vector<8x8xf32> to vector<8xf32>
    %787 = vector.shape_cast %786 : vector<8xf32> to vector<8x1xf32>
    %788 = tpu.reciprocal %787 {approx = true} : vector<8x1xf32> -> vector<8x1xf32>
    %789 = vector.broadcast %788 : vector<8x1xf32> to vector<8x8xf32>
    %790 = arith.mulf %785, %789 : vector<8x8xf32>
    %791 = vector.shape_cast %790 : vector<8x8xf32> to vector<8x8x1xf32>
    %792 = vector.broadcast %791 : vector<8x8x1xf32> to vector<8x8x32xf32>
    %793 = arith.mulf %792, %384 : vector<8x8x32xf32>
    %cst_147 = arith.constant dense<0.000000e+00> : vector<8x32xf32>
    %794 = vector.multi_reduction <add>, %793, %cst_147 [1] : vector<8x8x32xf32> to vector<8x32xf32>
    %795 = vector.broadcast %392 : vector<1x32xf32> to vector<8x32xf32>
    %796 = arith.mulf %794, %795 : vector<8x32xf32>
    %cst_148 = arith.constant dense<0.000000e+00> : vector<8xf32>
    %797 = vector.multi_reduction <add>, %796, %cst_148 [1] : vector<8x32xf32> to vector<8xf32>
    %798 = vector.shape_cast %797 : vector<8xf32> to vector<8x1xf32>
    %799 = vector.extract_strided_slice %396 {offsets = [0, 6, 0], sizes = [8, 1, 1], strides = [1, 1, 1]} : vector<8x8x1xf32> to vector<8x1x1xf32>
    %800 = vector.shape_cast %799 : vector<8x1x1xf32> to vector<8x1xf32>
    %801 = vector.broadcast %393 : vector<1x1xf32> to vector<8x1xf32>
    %802 = arith.mulf %800, %801 : vector<8x1xf32>
    %803 = arith.addf %798, %802 : vector<8x1xf32>
    %804 = vector.broadcast %803 : vector<8x1xf32> to vector<8x128xf32>
    %805 = vector.broadcast %394 : vector<1x128xf32> to vector<8x128xf32>
    %806 = arith.mulf %804, %805 : vector<8x128xf32>
    %cst_149 = arith.constant dense<0.000000e+00> : vector<8x128xf32>
    %807 = tpu.matmul %770, %387, %cst_149 {dimension_numbers = #tpu.dot_dimension_numbers<[1], [0], [0], [1], [0, 0, 1, 1], [], []>} : vector<8x32xbf16>, vector<32x128xbf16>, vector<8x128xf32> -> vector<8x128xf32>
    %808 = arith.addf %806, %807 : vector<8x128xf32>
    %809 = vector.broadcast %395 : vector<1x128xf32> to vector<8x128xf32>
    %810 = arith.addf %808, %809 : vector<8x128xf32>
    %811 = vector.extract_strided_slice %810 {offsets = [0, 0], sizes = [8, 96], strides = [1, 1]} : vector<8x128xf32> to vector<8x96xf32>
    %812 = arith.negf %811 : vector<8x96xf32>
    %813 = math.exp %812 : vector<8x96xf32>
    %cst_150 = arith.constant 1.000000e+00 : f32
    %814 = vector.broadcast %cst_150 : f32 to vector<8x96xf32>
    %815 = arith.addf %814, %813 : vector<8x96xf32>
    %816 = arith.divf %814, %815 : vector<8x96xf32>
    %817 = vector.extract_strided_slice %810 {offsets = [0, 96], sizes = [8, 32], strides = [1, 1]} : vector<8x128xf32> to vector<8x32xf32>
    %818 = math.tanh %817 : vector<8x32xf32>
    %819 = vector.extract_strided_slice %816 {offsets = [0, 32], sizes = [8, 32], strides = [1, 1]} : vector<8x96xf32> to vector<8x32xf32>
    %820 = arith.mulf %819, %762 : vector<8x32xf32>
    %821 = vector.extract_strided_slice %816 {offsets = [0, 0], sizes = [8, 32], strides = [1, 1]} : vector<8x96xf32> to vector<8x32xf32>
    %822 = arith.mulf %821, %818 : vector<8x32xf32>
    %823 = arith.addf %820, %822 : vector<8x32xf32>
    %824 = vector.extract_strided_slice %816 {offsets = [0, 64], sizes = [8, 32], strides = [1, 1]} : vector<8x96xf32> to vector<8x32xf32>
    %825 = math.tanh %823 : vector<8x32xf32>
    %826 = arith.mulf %824, %825 : vector<8x32xf32>
    %c70 = arith.constant 70 : index
    %c0_151 = arith.constant 0 : index
    %827 = vector.load %arg4[%c70, %c0_151] : memref<88x128xf32, #tpu.memory_space<vmem>>, vector<1x32xf32>
    %828 = vector.broadcast %827 : vector<1x32xf32> to vector<8x32xf32>
    %829 = arith.mulf %826, %828 : vector<8x32xf32>
    %830 = arith.addf %769, %829 : vector<8x32xf32>
    %831 = arith.truncf %826 : vector<8x32xf32> to vector<8x32xbf16>
    %832 = arith.truncf %823 : vector<8x32xf32> to vector<8x32xbf16>
    %833 = tpu.concatenate %831, %832 in 1 : vector<8x32xbf16>, vector<8x32xbf16> -> vector<8x64xbf16>
    %cst_152 = arith.constant dense<0.000000e+00> : vector<8x32xf32>
    %834 = tpu.matmul %833, %386, %cst_152 {dimension_numbers = #tpu.dot_dimension_numbers<[1], [0], [0], [1], [0, 0, 1, 1], [], []>} : vector<8x64xbf16>, vector<64x32xbf16>, vector<8x32xf32> -> vector<8x32xf32>
    %835 = vector.shape_cast %834 : vector<8x32xf32> to vector<8x1x32xf32>
    %836 = vector.broadcast %835 : vector<8x1x32xf32> to vector<8x8x32xf32>
    %837 = arith.addf %836, %402 : vector<8x8x32xf32>
    %838 = math.tanh %837 : vector<8x8x32xf32>
    %839 = vector.broadcast %391 : vector<1x1x32xf32> to vector<8x8x32xf32>
    %840 = arith.mulf %838, %839 : vector<8x8x32xf32>
    %cst_153 = arith.constant dense<0.000000e+00> : vector<8x8xf32>
    %841 = vector.multi_reduction <add>, %840, %cst_153 [2] : vector<8x8x32xf32> to vector<8x8xf32>
    %cst_154 = arith.constant dense<0xFF800000> : vector<8xf32>
    %842 = vector.multi_reduction <maximumf>, %841, %cst_154 [1] : vector<8x8xf32> to vector<8xf32>
    %843 = vector.shape_cast %842 : vector<8xf32> to vector<8x1xf32>
    %844 = vector.broadcast %843 : vector<8x1xf32> to vector<8x8xf32>
    %845 = arith.subf %841, %844 : vector<8x8xf32>
    %846 = math.exp %845 : vector<8x8xf32>
    %cst_155 = arith.constant dense<0.000000e+00> : vector<8xf32>
    %847 = vector.multi_reduction <add>, %846, %cst_155 [1] : vector<8x8xf32> to vector<8xf32>
    %848 = vector.shape_cast %847 : vector<8xf32> to vector<8x1xf32>
    %849 = tpu.reciprocal %848 {approx = true} : vector<8x1xf32> -> vector<8x1xf32>
    %850 = vector.broadcast %849 : vector<8x1xf32> to vector<8x8xf32>
    %851 = arith.mulf %846, %850 : vector<8x8xf32>
    %852 = vector.shape_cast %851 : vector<8x8xf32> to vector<8x8x1xf32>
    %853 = vector.broadcast %852 : vector<8x8x1xf32> to vector<8x8x32xf32>
    %854 = arith.mulf %853, %384 : vector<8x8x32xf32>
    %cst_156 = arith.constant dense<0.000000e+00> : vector<8x32xf32>
    %855 = vector.multi_reduction <add>, %854, %cst_156 [1] : vector<8x8x32xf32> to vector<8x32xf32>
    %856 = vector.broadcast %392 : vector<1x32xf32> to vector<8x32xf32>
    %857 = arith.mulf %855, %856 : vector<8x32xf32>
    %cst_157 = arith.constant dense<0.000000e+00> : vector<8xf32>
    %858 = vector.multi_reduction <add>, %857, %cst_157 [1] : vector<8x32xf32> to vector<8xf32>
    %859 = vector.shape_cast %858 : vector<8xf32> to vector<8x1xf32>
    %860 = vector.extract_strided_slice %396 {offsets = [0, 7, 0], sizes = [8, 1, 1], strides = [1, 1, 1]} : vector<8x8x1xf32> to vector<8x1x1xf32>
    %861 = vector.shape_cast %860 : vector<8x1x1xf32> to vector<8x1xf32>
    %862 = vector.broadcast %393 : vector<1x1xf32> to vector<8x1xf32>
    %863 = arith.mulf %861, %862 : vector<8x1xf32>
    %864 = arith.addf %859, %863 : vector<8x1xf32>
    %865 = vector.broadcast %864 : vector<8x1xf32> to vector<8x128xf32>
    %866 = vector.broadcast %394 : vector<1x128xf32> to vector<8x128xf32>
    %867 = arith.mulf %865, %866 : vector<8x128xf32>
    %cst_158 = arith.constant dense<0.000000e+00> : vector<8x128xf32>
    %868 = tpu.matmul %831, %387, %cst_158 {dimension_numbers = #tpu.dot_dimension_numbers<[1], [0], [0], [1], [0, 0, 1, 1], [], []>} : vector<8x32xbf16>, vector<32x128xbf16>, vector<8x128xf32> -> vector<8x128xf32>
    %869 = arith.addf %867, %868 : vector<8x128xf32>
    %870 = vector.broadcast %395 : vector<1x128xf32> to vector<8x128xf32>
    %871 = arith.addf %869, %870 : vector<8x128xf32>
    %872 = vector.extract_strided_slice %871 {offsets = [0, 0], sizes = [8, 96], strides = [1, 1]} : vector<8x128xf32> to vector<8x96xf32>
    %873 = arith.negf %872 : vector<8x96xf32>
    %874 = math.exp %873 : vector<8x96xf32>
    %cst_159 = arith.constant 1.000000e+00 : f32
    %875 = vector.broadcast %cst_159 : f32 to vector<8x96xf32>
    %876 = arith.addf %875, %874 : vector<8x96xf32>
    %877 = arith.divf %875, %876 : vector<8x96xf32>
    %878 = vector.extract_strided_slice %871 {offsets = [0, 96], sizes = [8, 32], strides = [1, 1]} : vector<8x128xf32> to vector<8x32xf32>
    %879 = math.tanh %878 : vector<8x32xf32>
    %880 = vector.extract_strided_slice %877 {offsets = [0, 32], sizes = [8, 32], strides = [1, 1]} : vector<8x96xf32> to vector<8x32xf32>
    %881 = arith.mulf %880, %823 : vector<8x32xf32>
    %882 = vector.extract_strided_slice %877 {offsets = [0, 0], sizes = [8, 32], strides = [1, 1]} : vector<8x96xf32> to vector<8x32xf32>
    %883 = arith.mulf %882, %879 : vector<8x32xf32>
    %884 = arith.addf %881, %883 : vector<8x32xf32>
    %885 = vector.extract_strided_slice %877 {offsets = [0, 64], sizes = [8, 32], strides = [1, 1]} : vector<8x96xf32> to vector<8x32xf32>
    %886 = math.tanh %884 : vector<8x32xf32>
    %887 = arith.mulf %885, %886 : vector<8x32xf32>
    %c71 = arith.constant 71 : index
    %c0_160 = arith.constant 0 : index
    %888 = vector.load %arg4[%c71, %c0_160] : memref<88x128xf32, #tpu.memory_space<vmem>>, vector<1x32xf32>
    %889 = vector.broadcast %888 : vector<1x32xf32> to vector<8x32xf32>
    %890 = arith.mulf %887, %889 : vector<8x32xf32>
    %891 = arith.addf %830, %890 : vector<8x32xf32>
    %c72 = arith.constant 72 : index
    %c0_161 = arith.constant 0 : index
    %892 = vector.load %arg4[%c72, %c0_161] : memref<88x128xf32, #tpu.memory_space<vmem>>, vector<1x32xf32>
    %c80_162 = arith.constant 80 : index
    %c0_163 = arith.constant 0 : index
    %893 = vector.load %arg4[%c80_162, %c0_163] : memref<88x128xf32, #tpu.memory_space<vmem>>, vector<1x1xf32>
    %cst_164 = arith.constant dense<0.000000e+00> : vector<8xf32>
    %894 = vector.multi_reduction <add>, %891, %cst_164 [1] : vector<8x32xf32> to vector<8xf32>
    %895 = vector.shape_cast %894 : vector<8xf32> to vector<8x1xf32>
    %896 = vector.broadcast %892 : vector<1x32xf32> to vector<8x32xf32>
    %897 = arith.mulf %855, %896 : vector<8x32xf32>
    %cst_165 = arith.constant dense<0.000000e+00> : vector<8xf32>
    %898 = vector.multi_reduction <add>, %897, %cst_165 [1] : vector<8x32xf32> to vector<8xf32>
    %899 = vector.shape_cast %898 : vector<8xf32> to vector<8x1xf32>
    %900 = arith.addf %895, %899 : vector<8x1xf32>
    %901 = vector.broadcast %893 : vector<1x1xf32> to vector<8x1xf32>
    %902 = arith.addf %900, %901 : vector<8x1xf32>
    %c0_166 = arith.constant 0 : index
    %c0_167 = arith.constant 0 : index
    %903 = vector.load %arg5[%c0_166, %c0_167] : memref<8x1xf32, #tpu.memory_space<vmem>>, vector<8x1xf32>
    tpu.vector_store %arg5[%c0_166, %c0_167], %902 {strides = array<i32>} : memref<8x1xf32, #tpu.memory_space<vmem>>, vector<8x1xf32>,
    return
  }
}

</mosaic_0001>

<bundles_post_ra>
// kernel: tpu_custom_call.1
= control target key start
LH: loop header
LB: loop body
LE: loop exit
PB: predicated region body
PF: predicated region fallthrough
CT: control target
= control target key end

     0   :  { %10 = vsyncpa [#allocation3], 0  ;;  %s11847_s0 = inlined_call_operand.vmem [shape: f32[8,8,8], index: 0, kind: input, shape index: {}]   ;;  %s11848_s1 = inlined_call_operand.vmem [shape: f32[8,8,1], index: 1, kind: input, shape index: {}]   ;;  %s11849_s2 = inlined_call_operand.hbm [shape: f32[8,8,8], index: 2, kind: input, shape index: {}]   ;;  %s11850_s3 = inlined_call_operand.hbm [shape: bf16[240,128], index: 3, kind: input, shape index: {}]   ;;  %s11851_s4 = inlined_call_operand.hbm [shape: f32[88,128], index: 4, kind: input, shape index: {}]   ;;  %s11852_s5 = inlined_call_operand.vmem [shape: f32[8,1], index: 5, kind: output, shape index: {}]  }
   0x1   :  { %11 = vsyncpa [#allocation5], 0  ;;  %s33_s20 = sshll.u32 %s11850_s3, 4  ;;  %s8935_s21 = smov [#allocation4]   ;;  %s34_s20 = int_to_ptr.hbm [resolvable:$true] %s33_s20 }
   0x2   :  { %s35_s22 = sshll.u32 %s8935_s21, 4  ;;  %s20_s25 = sshll.u32 %s11849_s2, 4  ;;  %s36_s22 = int_to_ptr.vmem [resolvable:$true] %s35_s22  ;;  %s21_s25 = int_to_ptr.hbm [resolvable:$true] %s20_s25 }
   0x3   :  { %s8936_s26 = smov 64   ;;  %s8937_s27 = smov 4  }
   0x4   :  { %41 = dma.hbm_to_vmem [thread:$0]  %s34_s20, 1920, %s36_s22, [#allocation5], %s8936_s26, %s8936_s26, %s8937_s27  }
   0x5   :  { %s8938_s28 = smov [#allocation2]   ;;  %s8939_s30 = smov 128  }
   0x6   :  { %s22_s29 = sshll.u32 %s8938_s28, 4  ;;  %s8940_s6 = smov 8   ;;  %s23_s29 = int_to_ptr.vmem [resolvable:$true] %s22_s29 }
   0x7   :  { %28 = dma.hbm_to_vmem [thread:$0]  %s21_s25, 1024, %s23_s29, [#allocation3], %s8939_s30, %s8939_s30, %s8940_s6  }
   0x8   :  { %s46_s8 = sshll.u32 %s11851_s4, 4  ;;  %s8941_s9 = smov [#allocation6]   ;;  %s47_s8 = int_to_ptr.hbm [resolvable:$true] %s46_s8 }
   0x9   :  { %s48_s10 = sshll.u32 %s8941_s9, 4  ;;  %s49_s10 = int_to_ptr.vmem [resolvable:$true] %s48_s10 }
   0xa   :  { %54 = dma.hbm_to_vmem [thread:$0]  %s47_s8, 1408, %s49_s10, [#allocation5], %s8939_s30, %s8939_s30, %s8940_s6  }
   0xb   :  { %8931 = dma.done.wait [#allocation3], 1024  }
   0xc   :  { %8932 = vsyncadd [#allocation3], 4294966272 }
   0xd   :  { %8933 = dma.done.wait [#allocation5], 3328  }
   0xe   :  { %8934 = vsyncadd [#allocation5], 4294963968  ;;  %v11853_v0 = vmov 0   ;;  %v8988_v1 = vld [vmem:[#allocation4 + $0x40] sm:$0xff]  ;;  %v8990_v2 = vld [vmem:[#allocation4 + $0x38] sm:$0xff]  ;;  %vm189_vm0 = vcmask 64512  }
   0xf   :  { %8055 = vset.pattern.permute.xlu2 %v11853_v0  ;;  %8054 = vset.pattern.permute.xlu1 %v11853_v0  ;;  %v8994_v3 = vld [vmem:[#allocation4 + $0x30] sm:$0xff]  ;;  %v8999_v4 = vld [vmem:[#allocation4 + $0x28] sm:$0xff]  ;;  %v9009_v6 = vld [vmem:[#allocation2] sm:$0xff]  ;;  %vm232_vm1 = vcmask 1041409   ;;  %vm234_vm2 = vcmask 1042434   ;;  %vm236_vm3 = vcmask 1043459  }
  0x10   :  { %8053 = vset.pattern.permute.xlu0 %v11853_v0  ;;  %131 = vmatpush.bf16.msra.mxu0 %v8988_v1  ;;  %v9011_v11 = vld [vmem:[#allocation2 + $0x20] sm:$0xff]  ;;  %v9013_v12 = vld [vmem:[#allocation2 + $0x10] sm:$0xff]  ;;  %v9015_v13 = vld [vmem:[#allocation2 + $0x8] sm:$0xff]  ;;  %vm238_vm4 = vcmask 1044484   ;;  %vm240_vm5 = vcmask 1045509   ;;  %vm242_vm6 = vcmask 1046534  }
  0x11   :  { %615 = vmatpush.bf16.msra.mxu3 %v8988_v1  ;;  %v9018_v20 = vld [vmem:[#allocation2 + $0x28] sm:$0xff]  ;;  %v9023_v27 = vld [vmem:[#allocation2 + $0x18] sm:$0xff]  ;;  %v9029_v34 = vld [vmem:[#allocation2 + $0x30] sm:$0xff]  ;;  %vm244_vm7 = vcmask 1047559   ;;  %vm543_vm8 = vcmask 1043456   ;;  %s8943_s25 = smov 32  }
  0x12   :  { %v9026_v30 = vld [vmem:[#allocation6] ss:$0 sm:$0xff]  ;;  %vm468_vm13 = vcmask 261120   ;;  %vm123_vm14 = vcmask 523264  }
  0x13   :  { %v9033_v40 = vld [vmem:[#allocation2 + $0x38] sm:$0xff] }
  0x14   :  { %132 = vmatpush.bf16.msra.mxu0 %v8990_v2 }
  0x15   :  { %616 = vmatpush.bf16.msra.mxu3 %v8990_v2 }
  0x18   :  { %133 = vmatpush.bf16.msra.mxu0 %v8994_v3 }
  0x19   :  { %617 = vmatpush.bf16.msra.mxu3 %v8994_v3 }
  0x1c   :  { %134 = vmatpush.bf16.msra.mxu0 %v8999_v4 }
  0x1d   :  { %618 = vmatpush.bf16.msra.mxu3 %v8999_v4 }
  0x1f   :  { %135 = vmatmul.bf16.vlgmr.msra.gmra.mxu0 %v11853_v0 }
  0x20   :  { %1062 = vmatpush.bf16.msrb.mxu0 %v8988_v1 }
  0x24   :  { %1063 = vmatpush.bf16.msrb.mxu0 %v8990_v2 }
  0x28   :  { %1064 = vmatpush.bf16.msrb.mxu0 %v8994_v3 }
  0x2c   :  { %1065 = vmatpush.bf16.msrb.mxu0 %v8999_v4 }
  0x9c   :  { %v136_v5 = vpop.f32.mrf.mxu0 }
  0x9d   :  { %v148_v7 = vperm.slane %v136_v5, 0  ;;  %v144_v8 = vrot.slane %v136_v5, 4  ;;  %v142_v9 = vrot.slane %v136_v5, 2  ;;  %v141_v10 = vrot.slane %v136_v5, 1 }
  0x9e   :  { %v145_v14 = vrot.slane %v136_v5, 5  ;;  %v143_v15 = vrot.slane %v136_v5, 3  ;;  %v146_v23 = vrot.slane %v136_v5, 6  ;;  %v147_v32 = vrot.slane %v136_v5, 7 }
  0x9f   :  { %v164_v16 = vadd.f32 %v148_v7, %v9009_v6  ;;  %v152_v17 = vperm.slane %v144_v8, 0  ;;  %v150_v18 = vperm.slane %v142_v9, 0  ;;  %v149_v19 = vperm.slane %v141_v10, 0 }
  0xa0   :  { %v153_v21 = vperm.slane %v145_v14, 0  ;;  %v151_v22 = vperm.slane %v143_v15, 0  ;;  %v154_v33 = vperm.slane %v146_v23, 0  ;;  %v155_v37 = vperm.slane %v147_v32, 0 }
  0xa1   :  { %8106 = vtanh.f32 %v164_v16  ;;  %v168_v24 = vadd.f32 %v152_v17, %v9011_v11  ;;  %v166_v25 = vadd.f32 %v150_v18, %v9013_v12  ;;  %v165_v26 = vadd.f32 %v149_v19, %v9015_v13 }
  0xa2   :  { %v169_v28 = vadd.f32 %v153_v21, %v9018_v20  ;;  %v167_v31 = vadd.f32 %v151_v22, %v9023_v27  ;;  %v170_v39 = vadd.f32 %v154_v33, %v9029_v34  ;;  %v171_v47 = vadd.f32 %v155_v37, %v9033_v40 }
  0xa3   :  { %8108 = vtanh.f32 %v168_v24  ;;  %v222_v5 = vlaneseq }
  0xa4   :  { %v138_v29 = vpop.f32.mrf.mxu0  ;;  %8110 = vtanh.f32 %v166_v25 }
  0xa5   :  { %8112 = vtanh.f32 %v165_v26  ;;  %v9052_v9 = vand.u32 127, %v222_v5 }
  0xa6   :  { %8114 = vtanh.f32 %v169_v28 }
  0xa7   :  { %v8107_v35 = vpop.eup %8106  ;;  %8116 = vtanh.f32 %v167_v31 }
  0xa8   :  { %v181_v36 = vmul.f32 %v8107_v35, %v9026_v30  ;;  %8118 = vtanh.f32 %v170_v39 }
  0xa9   :  { %v8109_v38 = vpop.eup %8108  ;;  %8120 = vtanh.f32 %v171_v47 }
  0xaa   :  { %v8111_v41 = vpop.eup %8110  ;;  %v190_v42 = vsel %vm189_vm0, %v181_v36, 0.0  ;;  %v185_v43 = vmul.f32 %v8109_v38, %v9026_v30 }
  0xab   :  { %v8113_v44 = vpop.eup %8112  ;;  %191 = vadd.xlane.f32.xlu0 %v190_v42  ;;  %v183_v45 = vmul.f32 %v8111_v41, %v9026_v30 }
  0xac   :  { %v202_v46 = vsel %vm189_vm0, %v185_v43, 0.0  ;;  %v8115_v48 = vpop.eup %8114  ;;  %v182_v51 = vmul.f32 %v8113_v44, %v9026_v30 }
  0xad   :  { %203 = vadd.xlane.f32.xlu2 %v202_v46  ;;  %v196_v49 = vsel %vm189_vm0, %v183_v45, 0.0  ;;  %v8117_v50 = vpop.eup %8116  ;;  %v186_v52 = vmul.f32 %v8115_v48, %v9026_v30 }
  0xae   :  { %197 = vadd.xlane.f32.xlu1 %v196_v49  ;;  %v184_v53 = vmul.f32 %v8117_v50, %v9026_v30  ;;  %v193_v54 = vsel %vm189_vm0, %v182_v51, 0.0  ;;  %v8119_v55 = vpop.eup %8118 }
  0xaf   :  { %v205_v56 = vsel %vm189_vm0, %v186_v52, 0.0  ;;  %v8121_v58 = vpop.eup %8120  ;;  %v187_v59 = vmul.f32 %v8119_v55, %v9026_v30 }
  0xb0   :  { %v199_v57 = vsel %vm189_vm0, %v184_v53, 0.0  ;;  %v188_v60 = vmul.f32 %v8121_v58, %v9026_v30 }
  0xb1   :  { %v208_v61 = vsel %vm189_vm0, %v187_v59, 0.0 }
  0xb2   :  { %v211_v62 = vsel %vm189_vm0, %v188_v60, 0.0 }
  0xb3   :  { %194 = vadd.xlane.f32.xlu0 %v193_v54 }
  0xb5   :  { %206 = vadd.xlane.f32.xlu2 %v205_v56 }
  0xb6   :  { %200 = vadd.xlane.f32.xlu1 %v199_v57 }
  0xbb   :  { %209 = vadd.xlane.f32.xlu0 %v208_v61 }
  0xbe   :  { %212 = vadd.xlane.f32.xlu1 %v211_v62 }
 0x11e   :  { %v192_v63 = vpop.xlane.xlu0 %191 }
 0x11f   :  { %v224_v14 = vperm.slane %v192_v63, %v9052_v9 }
 0x120   :  { %v204_v7 = vpop.xlane.xlu2 %203 }
 0x121   :  { %v198_v8 = vpop.xlane.xlu1 %197  ;;  %v228_v22 = vperm.slane %v204_v7, %v9052_v9 }
 0x122   :  { %v226_v16 = vperm.slane %v198_v8, %v9052_v9 }
 0x126   :  { %v195_v10 = vpop.xlane.xlu0 %194 }
 0x127   :  { %v225_v15 = vperm.slane %v195_v10, %v9052_v9 }
 0x128   :  { %v207_v23 = vpop.xlane.xlu2 %206 }
 0x129   :  { %v233_v17 = vsel %vm232_vm1, %v225_v15, %v224_v14  ;;  %v201_v18 = vpop.xlane.xlu1 %200  ;;  %v229_v26 = vperm.slane %v207_v23, %v9052_v9 }
 0x12a   :  { %v227_v19 = vperm.slane %v201_v18, %v9052_v9  ;;  %v235_v21 = vsel %vm234_vm2, %v226_v16, %v233_v17 }
 0x12c   :  { %v237_v24 = vsel %vm236_vm3, %v227_v19, %v235_v21  ;;  %v9095_v19 = vshrl.u32 %v222_v5, 7  ;;  %v9102_v21 = vld [vmem:[%s11847_s0] sm:$0xff] }
 0x12d   :  { %v239_v25 = vsel %vm238_vm4, %v228_v22, %v237_v24  ;;  %v376_v22 = vperm.slane %v9102_v21, 0  ;;  %v9114_v24 = vld [vmem:[%s11847_s0 + $0x18] sm:$0xff] }
 0x12e   :  { %v210_v28 = vpop.xlane.xlu0 %209  ;;  %v241_v31 = vsel %vm240_vm5, %v229_v26, %v239_v25  ;;  %v397_v25 = vperm.slane %v9114_v24, 0  ;;  %v9120_v26 = vld [vmem:[%s11847_s0 + $0x8] sm:$0xff] }
 0x12f   :  { %v230_v29 = vperm.slane %v210_v28, %v9052_v9 }
 0x131   :  { %v213_v32 = vpop.xlane.xlu1 %212  ;;  %v243_v33 = vsel %vm242_vm6, %v230_v29, %v241_v31  ;;  %v383_v29 = vperm.slane %v9120_v26, 0 }
 0x132   :  { %v231_v35 = vperm.slane %v213_v32, %v9052_v9 }
 0x134   :  { %v245_v36 = vsel %vm244_vm7, %v231_v35, %v243_v33 }
 0x135   :  { %v247_v37 = vsel %vm189_vm0, %v245_v36, -inf  ;;  %v9138_v36 = vld [vmem:[%s11847_s0 + $0x38] sm:$0xff] }
 0x136   :  { %248 = vmax.xlane.f32.xlu2 %v247_v37  ;;  %v425_v37 = vperm.slane %v9138_v36, 0 }
 0x1a9   :  { %v249_v38 = vpop.xlane.xlu2 %248 }
 0x1aa   :  { %v253_v39 = vperm.slane %v249_v38, 2  ;;  %v252_v41 = vperm.slane %v249_v38, 1  ;;  %v251_v42 = vperm.slane %v249_v38, 0  ;;  %v254_v46 = vperm.slane %v249_v38, 3 }
 0x1ab   :  { %v255_v47 = vperm.slane %v249_v38, 4  ;;  %v258_v48 = vperm.slane %v249_v38, 7  ;;  %v256_v56 = vperm.slane %v249_v38, 5  ;;  %v257_v58 = vperm.slane %v249_v38, 6  ;;  %v9144_v38 = vld [vmem:[%s11847_s0 + $0x30] sm:$0xff] }
 0x1ac   :  { %v269_v43 = vsub.f32 %v198_v8, %v253_v39  ;;  %v268_v44 = vsub.f32 %v195_v10, %v252_v41  ;;  %v267_v45 = vsub.f32 %v192_v63, %v251_v42  ;;  %v270_v52 = vsub.f32 %v201_v18, %v254_v46 }
 0x1ad   :  { %v271_v53 = vsub.f32 %v204_v7, %v255_v47  ;;  %v274_v54 = vsub.f32 %v213_v32, %v258_v48  ;;  %v272_v63 = vsub.f32 %v207_v23, %v256_v56  ;;  %v273_v7 = vsub.f32 %v210_v28, %v257_v58  ;;  %v9108_v23 = vld [vmem:[%s11847_s0 + $0x10] sm:$0xff]  ;;  %v9125_v28 = vld [vmem:[%s11847_s0 + $0x28] sm:$0xff]  ;;  %v9132_v32 = vld [vmem:[%s11847_s0 + $0x20] sm:$0xff] }
 0x1ae   :  { %v279_v49 = vmul.f32 1.442695, %v269_v43  ;;  %v277_v50 = vmul.f32 1.442695, %v268_v44  ;;  %v275_v51 = vmul.f32 1.442695, %v267_v45 }
 0x1af   :  { %v281_v55 = vmul.f32 1.442695, %v270_v52  ;;  %v283_v57 = vmul.f32 1.442695, %v271_v53  ;;  %v289_v60 = vmul.f32 1.442695, %v274_v54 }
 0x1b0   :  { %8122 = vpow2.f32 %v279_v49  ;;  %v285_v8 = vmul.f32 1.442695, %v272_v63  ;;  %v287_v10 = vmul.f32 1.442695, %v273_v7  ;;  %v390_v5 = vperm.slane %v9108_v23, 0 }
 0x1b1   :  { %8124 = vpow2.f32 %v277_v50  ;;  %v411_v31 = vperm.slane %v9125_v28, 0  ;;  %v404_v33 = vperm.slane %v9132_v32, 0  ;;  %v418_v41 = vperm.slane %v9144_v38, 0 }
 0x1b2   :  { %8126 = vpow2.f32 %v275_v51 }
 0x1b3   :  { %8128 = vpow2.f32 %v281_v55 }
 0x1b4   :  { %8130 = vpow2.f32 %v283_v57 }
 0x1b5   :  { %8132 = vpow2.f32 %v289_v60 }
 0x1b6   :  { %v9070_v59 = vpop.eup %8122  ;;  %8134 = vpow2.f32 %v285_v8 }
 0x1b7   :  { %v9072_v61 = vpop.eup %8124  ;;  %306 = vperm.xlu2 %8055, %v9070_v59   ;;  %8136 = vpow2.f32 %v287_v10 }
 0x1b8   :  { %v9075_v62 = vpop.eup %8126  ;;  %303 = vperm.xlu1 %8054, %v9072_v61  }
 0x1b9   :  { %300 = vperm.xlu0 %8053, %v9075_v62   ;;  %v9079_v14 = vpop.eup %8128 }
 0x1ba   :  { %v9081_v15 = vpop.eup %8130 }
 0x1bb   :  { %v9084_v16 = vpop.eup %8132 }
 0x1bc   :  { %v9088_v17 = vpop.eup %8134 }
 0x1bd   :  { %v9090_v18 = vpop.eup %8136 }
 0x1bf   :  { %309 = vperm.xlu2 %8055, %v9079_v14  }
 0x1c0   :  { %312 = vperm.xlu1 %8054, %v9081_v15  }
 0x1c1   :  { %321 = vperm.xlu0 %8053, %v9084_v16  }
 0x1c7   :  { %315 = vperm.xlu2 %8055, %v9088_v17  }
 0x1c8   :  { %318 = vperm.xlu1 %8054, %v9090_v18  }
 0x1c9   :  { %8057 = vset.pattern.permute.xlu0 %v9095_v19 }
 0x1d0   :  { %8056 = vset.pattern.permute.xlu1 %v9095_v19 }
 0x1d1   :  { %388 = vperm.xlu0 %8057, %v383_v29  }
 0x1d8   :  { %381 = vperm.xlu1 %8056, %v376_v22  }
 0x1d9   :  { %409 = vperm.xlu0 %8057, %v404_v33  }
 0x1e0   :  { %395 = vperm.xlu1 %8056, %v390_v5  }
 0x1e1   :  { %423 = vperm.xlu0 %8057, %v418_v41  }
 0x1e8   :  { %402 = vperm.xlu1 %8056, %v397_v25  }
 0x1e9   :  { %8058 = vset.pattern.permute.xlu0 %v11853_v0 }
 0x1f0   :  { %416 = vperm.xlu1 %8056, %v411_v31  }
 0x1f8   :  { %430 = vperm.xlu1 %8056, %v425_v37  }
 0x200   :  { %8059 = vset.pattern.permute.xlu1 %v11853_v0 }
 0x211   :  { %v307_v35 = vpop.permute.xlu2 %306 }
 0x212   :  { %v325_v48 = vperm.slane %v307_v35, %v9052_v9 }
 0x219   :  { %v310_v43 = vpop.permute.xlu2 %309 }
 0x21a   :  { %v326_v51 = vperm.slane %v310_v43, %v9052_v9 }
 0x221   :  { %v316_v52 = vpop.permute.xlu2 %315 }
 0x222   :  { %v328_v56 = vperm.slane %v316_v52, %v9052_v9 }
 0x22a   :  { %v304_v39 = vpop.permute.xlu1 %303 }
 0x22b   :  { %v301_v42 = vpop.permute.xlu0 %300  ;;  %v324_v44 = vperm.slane %v304_v39, %v9052_v9 }
 0x22c   :  { %v323_v45 = vperm.slane %v301_v42, %v9052_v9 }
 0x22e   :  { %v331_v46 = vsel %vm232_vm1, %v324_v44, %v323_v45 }
 0x22f   :  { %v332_v49 = vsel %vm234_vm2, %v325_v48, %v331_v46 }
 0x230   :  { %v333_v53 = vsel %vm236_vm3, %v326_v51, %v332_v49 }
 0x232   :  { %v313_v47 = vpop.permute.xlu1 %312 }
 0x233   :  { %v327_v50 = vperm.slane %v313_v47, %v9052_v9  ;;  %v322_v55 = vpop.permute.xlu0 %321 }
 0x234   :  { %v330_v60 = vperm.slane %v322_v55, %v9052_v9 }
 0x235   :  { %v334_v54 = vsel %vm238_vm4, %v327_v50, %v333_v53 }
 0x236   :  { %v335_v63 = vsel %vm240_vm5, %v328_v56, %v334_v54 }
 0x23a   :  { %v319_v57 = vpop.permute.xlu1 %318 }
 0x23b   :  { %v329_v58 = vperm.slane %v319_v57, %v9052_v9 }
 0x23d   :  { %v336_v7 = vsel %vm242_vm6, %v329_v58, %v335_v63 }
 0x23e   :  { %v337_v8 = vsel %vm244_vm7, %v330_v60, %v336_v7 }
 0x23f   :  { %v339_v10 = vsel %vm189_vm0, %v337_v8, 0.0 }
 0x240   :  { %340 = vadd.xlane.f32.xlu2 %v339_v10 }
 0x243   :  { %v389_v29 = vpop.permute.xlu0 %388 }
 0x24a   :  { %v382_v22 = vpop.permute.xlu1 %381 }
 0x24b   :  { %v410_v46 = vpop.permute.xlu0 %409 }
 0x252   :  { %v396_v25 = vpop.permute.xlu1 %395 }
 0x253   :  { %v424_v8 = vpop.permute.xlu0 %423 }
 0x25a   :  { %v403_v43 = vpop.permute.xlu1 %402 }
 0x262   :  { %v417_v63 = vpop.permute.xlu1 %416 }
 0x2b3   :  { %v341_v5 = vpop.xlane.xlu2 %340 }
 0x2b4   :  { %8138 = vrcp.f32 %v341_v5 }
 0x2ba   :  { %v8139_v31 = vpop.eup %8138 }
 0x2bb   :  { %v345_v33 = vperm.slane %v8139_v31, 1  ;;  %v348_v35 = vperm.slane %v8139_v31, 4  ;;  %v344_v37 = vperm.slane %v8139_v31, 0  ;;  %v346_v39 = vperm.slane %v8139_v31, 2 }
 0x2bc   :  { %v347_v41 = vperm.slane %v8139_v31, 3  ;;  %v349_v57 = vperm.slane %v8139_v31, 5  ;;  %v350_v58 = vperm.slane %v8139_v31, 6  ;;  %v351_v10 = vperm.slane %v8139_v31, 7  ;;  %v9173_v31 = vld [vmem:[#allocation4 + $0x10] sm:$0xff] }
 0x2bd   :  { %v361_v42 = vmul.f32 %v9072_v61, %v345_v33  ;;  %v360_v44 = vmul.f32 %v9075_v62, %v344_v37  ;;  %v362_v45 = vmul.f32 %v9070_v59, %v346_v39  ;;  %v364_v49 = vmul.f32 %v9081_v15, %v348_v35  ;;  %v431_v39 = vpop.permute.xlu1 %430  ;;  %477 = vmatpush.bf16.msra.mxu1 %v9173_v31 }
 0x2be   :  { %v363_v48 = vmul.f32 %v9079_v14, %v347_v41  ;;  %v365_v14 = vmul.f32 %v9088_v17, %v349_v57  ;;  %v366_v7 = vmul.f32 %v9090_v18, %v350_v58  ;;  %v367_v33 = vmul.f32 %v9084_v16, %v351_v10  ;;  %1376 = vmatpush.bf16.msrb.mxu3 %v9173_v31  ;;  %v9178_v16 = vld [vmem:[#allocation4 + $0x8] sm:$0xff] }
 0x2bf   :  { %v441_v47 = vmul.f32 %v389_v29, %v361_v42  ;;  %v440_v50 = vmul.f32 %v382_v22, %v360_v44  ;;  %v442_v51 = vmul.f32 %v396_v25, %v362_v45  ;;  %v444_v61 = vmul.f32 %v410_v46, %v364_v49  ;;  %1823 = vmatpush.bf16.msra.mxu0 %v9173_v31  ;;  %v92_v44 = vld [vmem:[#allocation4] sm:$0xf] }
 0x2c0   :  { %v443_v56 = vmul.f32 %v403_v43, %v363_v48  ;;  %v445_v5 = vmul.f32 %v417_v63, %v365_v14  ;;  %v446_v29 = vmul.f32 %v424_v8, %v366_v7  ;;  %v447_v41 = vmul.f32 %v431_v39, %v367_v33 }
 0x2c1   :  { %v449_v52 = vpack.c.bf16 %v441_v47, %v441_v47  ;;  %v448_v53 = vpack.c.bf16 %v440_v50, %v440_v50  ;;  %v450_v54 = vpack.c.bf16 %v442_v51, %v442_v51  ;;  %v452_v15 = vpack.c.bf16 %v444_v61, %v444_v61  ;;  %478 = vmatpush.bf16.msra.mxu1 %v9178_v16 }
 0x2c2   :  { %v451_v59 = vpack.c.bf16 %v443_v56, %v443_v56  ;;  %v453_v35 = vpack.c.bf16 %v445_v5, %v445_v5  ;;  %v454_v37 = vpack.c.bf16 %v446_v29, %v446_v29  ;;  %v455_v43 = vpack.c.bf16 %v447_v41, %v447_v41  ;;  %1377 = vmatpush.bf16.msrb.mxu3 %v9178_v16  ;;  %v9212_v29 = vld [vmem:[#allocation6 + $0x8] ss:$0 sm:$0xff] }
 0x2c3   :  { %v493_v55 = vunpack.c.l.b16 %v449_v52  ;;  %v492_v60 = vunpack.c.l.b16 %v448_v53  ;;  %v494_v62 = vunpack.c.l.b16 %v450_v54  ;;  %v496_v25 = vunpack.c.l.b16 %v452_v15  ;;  %1824 = vmatpush.bf16.msra.mxu0 %v9178_v16 }
 0x2c4   :  { %v495_v22 = vunpack.c.l.b16 %v451_v59  ;;  %v497_v42 = vunpack.c.l.b16 %v453_v35  ;;  %v498_v17 = vunpack.c.l.b16 %v454_v37  ;;  %v499_v18 = vunpack.c.l.b16 %v455_v43  ;;  %479 = vmatmul.bf16.vlgmr.msra.gmra.mxu1 %v11853_v0 }
 0x2c5   :  { %504 = vperm.xlu1 %8059, %v493_v55   ;;  %501 = vperm.xlu0 %8058, %v492_v60   ;;  %v9181_v45 = vsel %vm543_vm8, %v92_v44, 0 }
 0x2c6   :  { %507 = vperm.xlu2 %8055, %v494_v62   ;;  %554 = vmatpush.bf16.msra.mxu2 %v9181_v45 }
 0x2c7   :  { %1002 = vmatpush.bf16.msrb.mxu1 %v9181_v45 }
 0x2ca   :  { %929 = vmatpush.bf16.msrb.mxu2 %v9173_v31 }
 0x2cb   :  { %1509 = vmatpush.bf16.msra.mxu1 %v8988_v1 }
 0x2cd   :  { %510 = vperm.xlu1 %8059, %v495_v22   ;;  %513 = vperm.xlu0 %8058, %v496_v25  }
 0x2ce   :  { %930 = vmatpush.bf16.msrb.mxu2 %v9178_v16 }
 0x2cf   :  { %1510 = vmatpush.bf16.msra.mxu1 %v8990_v2 }
 0x2d3   :  { %1511 = vmatpush.bf16.msra.mxu1 %v8994_v3 }
 0x2d5   :  { %516 = vperm.xlu1 %8059, %v497_v42   ;;  %519 = vperm.xlu0 %8058, %v498_v17  }
 0x2d7   :  { %1512 = vmatpush.bf16.msra.mxu1 %v8999_v4 }
 0x2dd   :  { %522 = vperm.xlu1 %8059, %v499_v18  }
 0x320   :  { %v508_v52 = vpop.permute.xlu2 %507 }
 0x321   :  { %v526_v55 = vperm.slane %v508_v52, %v9052_v9 }
 0x337   :  { %v505_v46 = vpop.permute.xlu1 %504  ;;  %v502_v47 = vpop.permute.xlu0 %501 }
 0x338   :  { %v524_v50 = vperm.slane %v502_v47, %v9052_v9  ;;  %v525_v51 = vperm.slane %v505_v46, %v9052_v9 }
 0x33a   :  { %v532_v53 = vsel %vm232_vm1, %v525_v51, %v524_v50 }
 0x33b   :  { %v533_v61 = vsel %vm234_vm2, %v526_v55, %v532_v53 }
 0x33f   :  { %v511_v48 = vpop.permute.xlu1 %510  ;;  %v514_v49 = vpop.permute.xlu0 %513 }
 0x340   :  { %v527_v54 = vperm.slane %v511_v48, %v9052_v9  ;;  %v528_v57 = vperm.slane %v514_v49, %v9052_v9 }
 0x341   :  { %v480_v5 = vpop.f32.mrf.mxu1 }
 0x342   :  { %v534_v58 = vsel %vm236_vm3, %v527_v54, %v533_v61 }
 0x343   :  { %v535_v14 = vsel %vm238_vm4, %v528_v57, %v534_v58 }
 0x347   :  { %v517_v56 = vpop.permute.xlu1 %516  ;;  %v520_v60 = vpop.permute.xlu0 %519 }
 0x348   :  { %v529_v62 = vperm.slane %v517_v56, %v9052_v9  ;;  %v530_v59 = vperm.slane %v520_v60, %v9052_v9 }
 0x349   :  { %v482_v25 = vpop.f32.mrf.mxu1 }
 0x34a   :  { %v536_v63 = vsel %vm240_vm5, %v529_v62, %v535_v14 }
 0x34b   :  { %v537_v8 = vsel %vm242_vm6, %v530_v59, %v536_v63 }
 0x34f   :  { %v523_v15 = vpop.permute.xlu1 %522 }
 0x350   :  { %v531_v7 = vperm.slane %v523_v15, %v9052_v9 }
 0x352   :  { %v538_v10 = vsel %vm244_vm7, %v531_v7, %v537_v8 }
 0x353   :  { %v539_v22 = vpack.c.b16 %v538_v10, %v538_v10 }
 0x355   :  { %7942 = vmatmul.msk.bf16.vlgmr.msra.gmra.mxu2 %vm189_vm0, %v539_v22 }
 0x356   :  { %1449 = vmatpush.bf16.msra.mxu2 %v9181_v45 }
 0x3d8   :  { %v556_v33 = vpop.f32.mrf.mxu2 }
 0x3d9   :  { %v557_v35 = vadd.f32 %v556_v33, %v480_v5 }
 0x3db   :  { %v561_v37 = vadd.f32 %v9212_v29, %v557_v35 }
 0x3dd   :  { %8140 = vtanh.f32 %v561_v37  ;;  %v7943_v42 = vmul.f32 -1.442695, %v561_v37 }
 0x3df   :  { %8142 = vpow2.f32 %v7943_v42 }
 0x3e0   :  { %v558_v39 = vpop.f32.mrf.mxu2 }
 0x3e3   :  { %v8141_v41 = vpop.eup %8140 }
 0x3e4   :  { %584 = vrot.lane.b32.xlu2 %v8141_v41, %s8943_s25 }
 0x3e5   :  { %v8143_v17 = vpop.eup %8142 }
 0x3e6   :  { %v565_v43 = vadd.f32 1.0, %v8143_v17 }
 0x3e8   :  { %8144 = vrcp.f32 %v565_v43  ;;  %v577_v49 = vand.u32 2147483648, %v565_v43  ;;  %vm571_vm10 = vweird.f32 %v565_v43  ;;  %v575_v50 = vand.u32 2147483647, %v565_v43 }
 0x3ea   :  { %v578_v52 = vor.u32 1.1754944e-38, %v577_v49  ;;  %vm576_vm12 = vcmp.eq.f32.partialorder %v575_v50, 8.507059e+37 }
 0x3ee   :  { %v8145_v18 = vpop.eup %8144 }
 0x3ef   :  { %v567_v44 = vmul.f32 %v8145_v18, %v565_v43  ;;  %vm572_vm9 = vweird.f32 %v8145_v18 }
 0x3f0   :  { %vm573_vm11 = vmor %vm571_vm10, %vm572_vm9 }
 0x3f1   :  { %v568_v46 = vsub.f32 1.0, %v567_v44 }
 0x3f3   :  { %v569_v47 = vmul.f32 %v8145_v18, %v568_v46 }
 0x3f5   :  { %v570_v48 = vadd.f32 %v8145_v18, %v569_v47 }
 0x3f7   :  { %v574_v51 = vsel %vm573_vm11, %v8145_v18, %v570_v48 }
 0x3f8   :  { %v579_v54 = vsel %vm576_vm12, %v578_v52, %v574_v51 }
 0x3f9   :  { %v582_v56 = vmul.f32 0.0, %v579_v54 }
 0x43e   :  { %v585_v53 = vpop.permute.xlu2 %584 }
 0x43f   :  { %v587_v55 = vmul.f32 %v585_v53, %v579_v54 }
 0x441   :  { %589 = vrot.lane.b32.xlu0 %v587_v55, %s8943_s25 }
 0x4b3   :  { %v590_v57 = vpop.permute.xlu0 %589 }
 0x4b4   :  { %v9217_v61 = vadd.f32 %v590_v57, %v582_v56 }
 0x4b6   :  { %8146 = vtanh.f32 %v9217_v61  ;;  %v600_v15 = vpack.c.bf16 %v9217_v61, %v9217_v61 }
 0x4bc   :  { %v8147_v58 = vpop.eup %8146 }
 0x4bd   :  { %595 = vrot.lane.b32.xlu1 %v8147_v58, %s8943_s25 }
 0x52f   :  { %v596_v60 = vpop.permute.xlu1 %595 }
 0x530   :  { %v9221_v62 = vmul.f32 %v596_v60, %v579_v54 }
 0x532   :  { %v599_v59 = vpack.c.bf16 %v9221_v62, %v9221_v62 }
 0x534   :  { %v602_v14 = vunpack.c.l.b16 %v599_v59 }
 0x536   :  { %v603_v63 = vpack.c.b16 %v602_v14, %v602_v14 }
 0x538   :  { %604 = vrot.lane.b32.xlu2 %v603_v63, %s8936_s26 }
 0x592   :  { %v605_v7 = vpop.permute.xlu2 %604 }
 0x593   :  { %7945 = vmatmul.msk.bf16.vlgmr.msrb.gmra.mxu2 %vm468_vm13, %v605_v7  ;;  %v608_v8 = vsel %vm468_vm13, %v605_v7, %v600_v15 }
 0x594   :  { %7944 = vmatmul.msk.bf16.vlgmr.msra.gmra.mxu3 %vm123_vm14, %v608_v8  ;;  %1956 = vmatpush.bf16.msrb.mxu2 %v8988_v1 }
 0x595   :  { %1896 = vmatpush.bf16.msra.mxu3 %v9181_v45 }
 0x598   :  { %1957 = vmatpush.bf16.msrb.mxu2 %v8990_v2 }
 0x59c   :  { %1958 = vmatpush.bf16.msrb.mxu2 %v8994_v3 }
 0x5a0   :  { %1959 = vmatpush.bf16.msrb.mxu2 %v8999_v4 }
 0x616   :  { %v9236_v10 = vpop.f32.mrf.mxu2 }
 0x617   :  { %v620_v22 = vpop.f32.mrf.mxu3 }
 0x618   :  { %v632_v5 = vperm.slane %v620_v22, 0  ;;  %v626_v25 = vrot.slane %v620_v22, 2  ;;  %v625_v33 = vrot.slane %v620_v22, 1  ;;  %v627_v35 = vrot.slane %v620_v22, 3 }
 0x619   :  { %v628_v37 = vrot.slane %v620_v22, 4  ;;  %v629_v39 = vrot.slane %v620_v22, 5  ;;  %v630_v18 = vrot.slane %v620_v22, 6  ;;  %v631_v48 = vrot.slane %v620_v22, 7 }
 0x61a   :  { %v648_v41 = vadd.f32 %v632_v5, %v9009_v6  ;;  %v634_v1 = vperm.slane %v626_v25, 0  ;;  %v633_v42 = vperm.slane %v625_v33, 0  ;;  %v635_v17 = vperm.slane %v627_v35, 0 }
 0x61b   :  { %v636_v43 = vperm.slane %v628_v37, 0  ;;  %v637_v2 = vperm.slane %v629_v39, 0  ;;  %v638_v50 = vperm.slane %v630_v18, 0  ;;  %v639_v52 = vperm.slane %v631_v48, 0 }
 0x61c   :  { %8148 = vtanh.f32 %v648_v41  ;;  %v650_v3 = vadd.f32 %v634_v1, %v9013_v12  ;;  %v649_v4 = vadd.f32 %v633_v42, %v9015_v13  ;;  %v651_v44 = vadd.f32 %v635_v17, %v9023_v27 }
 0x61d   :  { %v652_v47 = vadd.f32 %v636_v43, %v9011_v11  ;;  %v653_v6 = vadd.f32 %v637_v2, %v9018_v20  ;;  %v654_v27 = vadd.f32 %v638_v50, %v9029_v34  ;;  %v655_v56 = vadd.f32 %v639_v52, %v9033_v40 }
 0x61e   :  { %v934_v46 = vpop.f32.mrf.mxu2  ;;  %8150 = vtanh.f32 %v650_v3 }
 0x61f   :  { %v622_v49 = vpop.f32.mrf.mxu3  ;;  %8152 = vtanh.f32 %v649_v4 }
 0x620   :  { %8154 = vtanh.f32 %v651_v44 }
 0x621   :  { %8156 = vtanh.f32 %v652_v47 }
 0x622   :  { %v8149_v51 = vpop.eup %8148  ;;  %8158 = vtanh.f32 %v653_v6 }
 0x623   :  { %v664_v12 = vmul.f32 %v8149_v51, %v9026_v30  ;;  %8160 = vtanh.f32 %v654_v27 }
 0x624   :  { %v8151_v13 = vpop.eup %8150  ;;  %8162 = vtanh.f32 %v655_v56 }
 0x625   :  { %v8153_v53 = vpop.eup %8152  ;;  %v672_v54 = vsel %vm189_vm0, %v664_v12, 0.0  ;;  %v666_v11 = vmul.f32 %v8151_v13, %v9026_v30 }
 0x626   :  { %v8155_v55 = vpop.eup %8154  ;;  %673 = vadd.xlane.f32.xlu0 %v672_v54  ;;  %v665_v20 = vmul.f32 %v8153_v53, %v9026_v30 }
 0x627   :  { %v678_v57 = vsel %vm189_vm0, %v666_v11, 0.0  ;;  %v8157_v58 = vpop.eup %8156  ;;  %v667_v34 = vmul.f32 %v8155_v55, %v9026_v30 }
 0x628   :  { %679 = vadd.xlane.f32.xlu2 %v678_v57  ;;  %v675_v60 = vsel %vm189_vm0, %v665_v20, 0.0  ;;  %v8159_v59 = vpop.eup %8158  ;;  %v668_v14 = vmul.f32 %v8157_v58, %v9026_v30 }
 0x629   :  { %676 = vadd.xlane.f32.xlu1 %v675_v60  ;;  %v669_v63 = vmul.f32 %v8159_v59, %v9026_v30  ;;  %v681_v15 = vsel %vm189_vm0, %v667_v34, 0.0  ;;  %v8161_v7 = vpop.eup %8160 }
 0x62a   :  { %v684_v40 = vsel %vm189_vm0, %v668_v14, 0.0  ;;  %v8163_v8 = vpop.eup %8162  ;;  %v670_v5 = vmul.f32 %v8161_v7, %v9026_v30 }
 0x62b   :  { %v687_v22 = vsel %vm189_vm0, %v669_v63, 0.0  ;;  %v671_v25 = vmul.f32 %v8163_v8, %v9026_v30 }
 0x62c   :  { %v690_v33 = vsel %vm189_vm0, %v670_v5, 0.0 }
 0x62d   :  { %v693_v35 = vsel %vm189_vm0, %v671_v25, 0.0 }
 0x62e   :  { %682 = vadd.xlane.f32.xlu0 %v681_v15 }
 0x630   :  { %685 = vadd.xlane.f32.xlu2 %v684_v40 }
 0x631   :  { %688 = vadd.xlane.f32.xlu1 %v687_v22 }
 0x636   :  { %691 = vadd.xlane.f32.xlu0 %v690_v33 }
 0x638   :  { %694 = vadd.xlane.f32.xlu2 %v693_v35 }
 0x699   :  { %v674_v37 = vpop.xlane.xlu0 %673 }
 0x69a   :  { %v704_v42 = vperm.slane %v674_v37, %v9052_v9 }
 0x69b   :  { %v680_v39 = vpop.xlane.xlu2 %679 }
 0x69c   :  { %v677_v41 = vpop.xlane.xlu1 %676  ;;  %v706_v17 = vperm.slane %v680_v39, %v9052_v9 }
 0x69d   :  { %v705_v1 = vperm.slane %v677_v41, %v9052_v9 }
 0x69f   :  { %v712_v43 = vsel %vm232_vm1, %v705_v1, %v704_v42 }
 0x6a0   :  { %v713_v3 = vsel %vm234_vm2, %v706_v17, %v712_v43 }
 0x6a1   :  { %v683_v2 = vpop.xlane.xlu0 %682 }
 0x6a2   :  { %v707_v30 = vperm.slane %v683_v2, %v9052_v9 }
 0x6a3   :  { %v686_v18 = vpop.xlane.xlu2 %685 }
 0x6a4   :  { %v708_v4 = vperm.slane %v686_v18, %v9052_v9  ;;  %v689_v44 = vpop.xlane.xlu1 %688  ;;  %v714_v46 = vsel %vm236_vm3, %v707_v30, %v713_v3 }
 0x6a5   :  { %v709_v47 = vperm.slane %v689_v44, %v9052_v9 }
 0x6a6   :  { %v715_v48 = vsel %vm238_vm4, %v708_v4, %v714_v46  ;;  %v841_v4 = vperm.slane %v9102_v21, 1  ;;  %v876_v46 = vperm.slane %v9125_v28, 1 }
 0x6a7   :  { %v716_v51 = vsel %vm240_vm5, %v709_v47, %v715_v48  ;;  %v848_v47 = vperm.slane %v9120_v26, 1  ;;  %v890_v48 = vperm.slane %v9138_v36, 1 }
 0x6a9   :  { %v692_v49 = vpop.xlane.xlu0 %691 }
 0x6aa   :  { %v710_v6 = vperm.slane %v692_v49, %v9052_v9 }
 0x6ab   :  { %v695_v50 = vpop.xlane.xlu2 %694 }
 0x6ac   :  { %v711_v52 = vperm.slane %v695_v50, %v9052_v9  ;;  %v717_v12 = vsel %vm242_vm6, %v710_v6, %v716_v51  ;;  %v855_v6 = vperm.slane %v9108_v23, 1 }
 0x6ae   :  { %v718_v13 = vsel %vm244_vm7, %v711_v52, %v717_v12 }
 0x6af   :  { %v720_v27 = vsel %vm189_vm0, %v718_v13, -inf }
 0x6b0   :  { %721 = vmax.xlane.f32.xlu1 %v720_v27 }
 0x723   :  { %v722_v53 = vpop.xlane.xlu1 %721 }
 0x724   :  { %v726_v54 = vperm.slane %v722_v53, 2  ;;  %v725_v11 = vperm.slane %v722_v53, 1  ;;  %v724_v55 = vperm.slane %v722_v53, 0  ;;  %v729_v58 = vperm.slane %v722_v53, 5 }
 0x725   :  { %v728_v60 = vperm.slane %v722_v53, 4  ;;  %v727_v59 = vperm.slane %v722_v53, 3  ;;  %v731_v5 = vperm.slane %v722_v53, 7  ;;  %v730_v35 = vperm.slane %v722_v53, 6 }
 0x726   :  { %v742_v20 = vsub.f32 %v680_v39, %v726_v54  ;;  %v741_v56 = vsub.f32 %v677_v41, %v725_v11  ;;  %v740_v57 = vsub.f32 %v674_v37, %v724_v55  ;;  %v745_v15 = vsub.f32 %v689_v44, %v729_v58 }
 0x727   :  { %v744_v7 = vsub.f32 %v686_v18, %v728_v60  ;;  %v743_v40 = vsub.f32 %v683_v2, %v727_v59  ;;  %v747_v41 = vsub.f32 %v695_v50, %v731_v5  ;;  %v746_v1 = vsub.f32 %v692_v49, %v730_v35 }
 0x728   :  { %v752_v34 = vmul.f32 1.442695, %v742_v20  ;;  %v750_v14 = vmul.f32 1.442695, %v741_v56  ;;  %v748_v63 = vmul.f32 1.442695, %v740_v57 }
 0x729   :  { %v758_v8 = vmul.f32 1.442695, %v745_v15  ;;  %v756_v22 = vmul.f32 1.442695, %v744_v7  ;;  %v754_v33 = vmul.f32 1.442695, %v743_v40 }
 0x72a   :  { %8164 = vpow2.f32 %v752_v34  ;;  %v762_v42 = vmul.f32 1.442695, %v747_v41  ;;  %v760_v43 = vmul.f32 1.442695, %v746_v1  ;;  %v862_v44 = vperm.slane %v9114_v24, 1 }
 0x72b   :  { %8166 = vpow2.f32 %v750_v14  ;;  %v869_v24 = vperm.slane %v9132_v32, 1  ;;  %v883_v53 = vperm.slane %v9144_v38, 1 }
 0x72c   :  { %8168 = vpow2.f32 %v748_v63 }
 0x72d   :  { %8170 = vpow2.f32 %v758_v8 }
 0x72e   :  { %8172 = vpow2.f32 %v756_v22 }
 0x72f   :  { %8174 = vpow2.f32 %v754_v33 }
 0x730   :  { %v9278_v25 = vpop.eup %8164  ;;  %8176 = vpow2.f32 %v762_v42 }
 0x731   :  { %v9280_v37 = vpop.eup %8166  ;;  %779 = vperm.xlu1 %8059, %v9278_v25   ;;  %8178 = vpow2.f32 %v760_v43 }
 0x732   :  { %v9283_v39 = vpop.eup %8168  ;;  %776 = vperm.xlu2 %8055, %v9280_v37  }
 0x733   :  { %773 = vperm.xlu0 %8058, %v9283_v39   ;;  %v9287_v17 = vpop.eup %8170 }
 0x734   :  { %v9289_v2 = vpop.eup %8172 }
 0x735   :  { %v9292_v30 = vpop.eup %8174 }
 0x736   :  { %v9296_v18 = vpop.eup %8176 }
 0x737   :  { %v9298_v3 = vpop.eup %8178 }
 0x739   :  { %788 = vperm.xlu1 %8059, %v9287_v17  }
 0x73a   :  { %785 = vperm.xlu2 %8055, %v9289_v2  }
 0x73b   :  { %782 = vperm.xlu0 %8058, %v9292_v30  }
 0x742   :  { %794 = vperm.xlu2 %8055, %v9296_v18  }
 0x743   :  { %791 = vperm.xlu0 %8058, %v9298_v3  }
 0x74a   :  { %8061 = vset.pattern.permute.xlu2 %v9095_v19 }
 0x74b   :  { %8060 = vset.pattern.permute.xlu0 %v9095_v19 }
 0x752   :  { %853 = vperm.xlu2 %8061, %v848_v47  }
 0x753   :  { %846 = vperm.xlu0 %8060, %v841_v4  }
 0x75a   :  { %860 = vperm.xlu2 %8061, %v855_v6  }
 0x75b   :  { %867 = vperm.xlu0 %8060, %v862_v44  }
 0x762   :  { %874 = vperm.xlu2 %8061, %v869_v24  }
 0x763   :  { %881 = vperm.xlu0 %8060, %v876_v46  }
 0x76a   :  { %888 = vperm.xlu2 %8061, %v883_v53  }
 0x76b   :  { %895 = vperm.xlu0 %8060, %v890_v48  }
 0x772   :  { %8062 = vset.pattern.permute.xlu2 %v11853_v0 }
 0x773   :  { %8063 = vset.pattern.permute.xlu0 %v11853_v0 }
 0x78c   :  { %v777_v49 = vpop.permute.xlu2 %776 }
 0x78d   :  { %v797_v28 = vperm.slane %v777_v49, %v9052_v9 }
 0x794   :  { %v786_v52 = vpop.permute.xlu2 %785 }
 0x795   :  { %v800_v32 = vperm.slane %v786_v52, %v9052_v9 }
 0x79c   :  { %v795_v11 = vpop.permute.xlu2 %794 }
 0x79d   :  { %v803_v58 = vperm.slane %v795_v11, %v9052_v9 }
 0x7a3   :  { %v780_v51 = vpop.permute.xlu1 %779 }
 0x7a4   :  { %v798_v26 = vperm.slane %v780_v51, %v9052_v9 }
 0x7a5   :  { %v774_v50 = vpop.permute.xlu0 %773 }
 0x7a6   :  { %v796_v21 = vperm.slane %v774_v50, %v9052_v9 }
 0x7a8   :  { %v804_v36 = vsel %vm232_vm1, %v797_v28, %v796_v21 }
 0x7a9   :  { %v805_v13 = vsel %vm234_vm2, %v798_v26, %v804_v36 }
 0x7ab   :  { %v789_v54 = vpop.permute.xlu1 %788 }
 0x7ac   :  { %v801_v20 = vperm.slane %v789_v54, %v9052_v9  ;;  %v854_v63 = vpop.permute.xlu2 %853 }
 0x7ad   :  { %v783_v12 = vpop.permute.xlu0 %782 }
 0x7ae   :  { %v799_v23 = vperm.slane %v783_v12, %v9052_v9 }
 0x7b0   :  { %v806_v27 = vsel %vm236_vm3, %v799_v23, %v805_v13 }
 0x7b1   :  { %v807_v55 = vsel %vm238_vm4, %v800_v32, %v806_v27 }
 0x7b2   :  { %v808_v60 = vsel %vm240_vm5, %v801_v20, %v807_v55 }
 0x7b4   :  { %v861_v41 = vpop.permute.xlu2 %860 }
 0x7b5   :  { %v792_v56 = vpop.permute.xlu0 %791 }
 0x7b6   :  { %v802_v57 = vperm.slane %v792_v56, %v9052_v9 }
 0x7b8   :  { %v809_v59 = vsel %vm242_vm6, %v802_v57, %v808_v60 }
 0x7b9   :  { %v810_v38 = vsel %vm244_vm7, %v803_v58, %v809_v59 }
 0x7ba   :  { %v812_v34 = vsel %vm189_vm0, %v810_v38, 0.0 }
 0x7bb   :  { %813 = vadd.xlane.f32.xlu1 %v812_v34 }
 0x7c5   :  { %v847_v14 = vpop.permute.xlu0 %846 }
 0x7cd   :  { %v868_v7 = vpop.permute.xlu0 %867 }
 0x7d5   :  { %v882_v49 = vpop.permute.xlu0 %881 }
 0x7dd   :  { %v896_v23 = vpop.permute.xlu0 %895 }
 0x82e   :  { %v814_v15 = vpop.xlane.xlu1 %813 }
 0x82f   :  { %8180 = vrcp.f32 %v814_v15 }
 0x835   :  { %v8181_v40 = vpop.eup %8180 }
 0x836   :  { %v819_v8 = vperm.slane %v8181_v40, 2  ;;  %v818_v22 = vperm.slane %v8181_v40, 1  ;;  %v817_v5 = vperm.slane %v8181_v40, 0  ;;  %v820_v33 = vperm.slane %v8181_v40, 3 }
 0x837   :  { %v822_v35 = vperm.slane %v8181_v40, 5  ;;  %v821_v21 = vperm.slane %v8181_v40, 4  ;;  %v824_v24 = vperm.slane %v8181_v40, 7  ;;  %v823_v13 = vperm.slane %v8181_v40, 6 }
 0x838   :  { %v835_v1 = vmul.f32 %v9278_v25, %v819_v8  ;;  %v834_v42 = vmul.f32 %v9280_v37, %v818_v22  ;;  %v833_v43 = vmul.f32 %v9283_v39, %v817_v5  ;;  %v836_v47 = vmul.f32 %v9292_v30, %v820_v33  ;;  %v875_v39 = vpop.permute.xlu2 %874 }
 0x839   :  { %v838_v48 = vmul.f32 %v9287_v17, %v822_v35  ;;  %v837_v36 = vmul.f32 %v9289_v2, %v821_v21  ;;  %v840_v30 = vmul.f32 %v9296_v18, %v824_v24  ;;  %v839_v20 = vmul.f32 %v9298_v3, %v823_v13 }
 0x83a   :  { %v907_v4 = vmul.f32 %v861_v41, %v835_v1  ;;  %v906_v44 = vmul.f32 %v854_v63, %v834_v42  ;;  %v905_v46 = vmul.f32 %v847_v14, %v833_v43  ;;  %v908_v26 = vmul.f32 %v868_v7, %v836_v47 }
 0x83b   :  { %v910_v37 = vmul.f32 %v882_v49, %v838_v48  ;;  %v909_v27 = vmul.f32 %v875_v39, %v837_v36  ;;  %v912_v53 = vmul.f32 %v896_v23, %v840_v30 }
 0x83c   :  { %v915_v6 = vpack.c.bf16 %v907_v4, %v907_v4  ;;  %v914_v50 = vpack.c.bf16 %v906_v44, %v906_v44  ;;  %v913_v51 = vpack.c.bf16 %v905_v46, %v905_v46  ;;  %v916_v17 = vpack.c.bf16 %v908_v26, %v908_v26 }
 0x83d   :  { %v918_v12 = vpack.c.bf16 %v910_v37, %v910_v37  ;;  %v917_v11 = vpack.c.bf16 %v909_v27, %v909_v27  ;;  %v920_v55 = vpack.c.bf16 %v912_v53, %v912_v53 }
 0x83e   :  { %v946_v52 = vunpack.c.l.b16 %v915_v6  ;;  %v945_v28 = vunpack.c.l.b16 %v914_v50  ;;  %v944_v25 = vunpack.c.l.b16 %v913_v51  ;;  %v947_v32 = vunpack.c.l.b16 %v916_v17 }
 0x83f   :  { %v949_v54 = vunpack.c.l.b16 %v918_v12  ;;  %v948_v57 = vunpack.c.l.b16 %v917_v11  ;;  %v951_v58 = vunpack.c.l.b16 %v920_v55 }
 0x840   :  { %959 = vperm.xlu1 %8059, %v946_v52   ;;  %956 = vperm.xlu0 %8063, %v945_v28   ;;  %v889_v56 = vpop.permute.xlu2 %888 }
 0x841   :  { %953 = vperm.xlu2 %8062, %v944_v25   ;;  %v911_v2 = vmul.f32 %v889_v56, %v839_v20 }
 0x843   :  { %v919_v18 = vpack.c.bf16 %v911_v2, %v911_v2  ;;  %v9375_v2 = vld [vmem:[#allocation4 + $0x40] sm:$0xff] }
 0x845   :  { %v950_v60 = vunpack.c.l.b16 %v919_v18  ;;  %v9379_v18 = vld [vmem:[#allocation4 + $0x38] sm:$0xff] }
 0x848   :  { %968 = vperm.xlu0 %8063, %v949_v54  }
 0x849   :  { %962 = vperm.xlu2 %8062, %v947_v32  }
 0x850   :  { %974 = vperm.xlu0 %8063, %v951_v58  }
 0x851   :  { %965 = vperm.xlu2 %8062, %v948_v57  }
 0x859   :  { %971 = vperm.xlu2 %8062, %v950_v60   ;;  %v9382_v60 = vld [vmem:[#allocation4 + $0x30] sm:$0xff] }
 0x89b   :  { %v954_v59 = vpop.permute.xlu2 %953 }
 0x89c   :  { %v976_v15 = vperm.slane %v954_v59, %v9052_v9  ;;  %v9385_v59 = vld [vmem:[#allocation4 + $0x28] sm:$0xff] }
 0x8a3   :  { %v963_v38 = vpop.permute.xlu2 %962 }
 0x8a4   :  { %v979_v5 = vperm.slane %v963_v38, %v9052_v9 }
 0x8ab   :  { %v966_v7 = vpop.permute.xlu2 %965 }
 0x8ac   :  { %v980_v41 = vperm.slane %v966_v7, %v9052_v9 }
 0x8b2   :  { %v957_v34 = vpop.permute.xlu0 %956  ;;  %v960_v14 = vpop.permute.xlu1 %959 }
 0x8b3   :  { %v977_v63 = vperm.slane %v957_v34, %v9052_v9  ;;  %v978_v3 = vperm.slane %v960_v14, %v9052_v9  ;;  %v972_v1 = vpop.permute.xlu2 %971 }
 0x8b4   :  { %v982_v4 = vperm.slane %v972_v1, %v9052_v9 }
 0x8b5   :  { %v984_v40 = vsel %vm232_vm1, %v977_v63, %v976_v15 }
 0x8b6   :  { %v985_v8 = vsel %vm234_vm2, %v978_v3, %v984_v40  ;;  %v9388_v40 = vld [vmem:[#allocation2] sm:$0xff] }
 0x8b7   :  { %v986_v33 = vsel %vm236_vm3, %v979_v5, %v985_v8 }
 0x8b8   :  { %v987_v42 = vsel %vm238_vm4, %v980_v41, %v986_v33 }
 0x8ba   :  { %v969_v22 = vpop.permute.xlu0 %968 }
 0x8bb   :  { %v981_v35 = vperm.slane %v969_v22, %v9052_v9 }
 0x8bd   :  { %v988_v43 = vsel %vm240_vm5, %v981_v35, %v987_v42 }
 0x8be   :  { %v989_v47 = vsel %vm242_vm6, %v982_v4, %v988_v43  ;;  %v9393_v43 = vld [vmem:[#allocation2 + $0x10] sm:$0xff] }
 0x8c2   :  { %v975_v44 = vpop.permute.xlu0 %974 }
 0x8c3   :  { %v983_v46 = vperm.slane %v975_v44, %v9052_v9  ;;  %v9396_v44 = vld [vmem:[#allocation2 + $0x8] sm:$0xff] }
 0x8c5   :  { %v990_v48 = vsel %vm244_vm7, %v983_v46, %v989_v47  ;;  %v9399_v47 = vld [vmem:[#allocation2 + $0x18] sm:$0xff] }
 0x8c6   :  { %v991_v49 = vpack.c.b16 %v990_v48, %v990_v48 }
 0x8c8   :  { %7946 = vmatmul.msk.bf16.vlgmr.msrb.gmra.mxu1 %vm189_vm0, %v991_v49  ;;  %v9402_v49 = vld [vmem:[#allocation2 + $0x28] sm:$0xff] }
 0x8c9   :  { %2270 = vmatpush.bf16.msrb.mxu1 %v9173_v31 }
 0x8cd   :  { %2271 = vmatpush.bf16.msrb.mxu1 %v9178_v16 }
 0x945   :  { %v1004_v6 = vpop.f32.mrf.mxu1 }
 0x946   :  { %v1005_v50 = vadd.f32 %v1004_v6, %v9236_v10 }
 0x948   :  { %v1008_v51 = vadd.f32 %v9212_v29, %v1005_v50 }
 0x94a   :  { %8182 = vtanh.f32 %v1008_v51  ;;  %v7947_v52 = vmul.f32 -1.442695, %v1008_v51  ;;  %v9405_v51 = vld [vmem:[#allocation2 + $0x20] sm:$0xff] }
 0x94c   :  { %8184 = vpow2.f32 %v7947_v52 }
 0x94d   :  { %v1006_v21 = vpop.f32.mrf.mxu1 }
 0x950   :  { %v8183_v24 = vpop.eup %8182 }
 0x951   :  { %1031 = vrot.lane.b32.xlu1 %v8183_v24, %s8943_s25 }
 0x952   :  { %v8185_v28 = vpop.eup %8184 }
 0x953   :  { %v1012_v25 = vadd.f32 1.0, %v8185_v28 }
 0x955   :  { %8186 = vrcp.f32 %v1012_v25  ;;  %v1024_v36 = vand.u32 2147483648, %v1012_v25  ;;  %vm1018_vm9 = vweird.f32 %v1012_v25  ;;  %v1022_v10 = vand.u32 2147483647, %v1012_v25 }
 0x957   :  { %v1025_v30 = vor.u32 1.1754944e-38, %v1024_v36  ;;  %vm1023_vm11 = vcmp.eq.f32.partialorder %v1022_v10, 8.507059e+37 }
 0x95b   :  { %v8187_v26 = vpop.eup %8186 }
 0x95c   :  { %v1014_v37 = vmul.f32 %v8187_v26, %v1012_v25  ;;  %vm1019_vm15 = vweird.f32 %v8187_v26  ;;  %v9408_v25 = vld [vmem:[#allocation6] ss:$0 sm:$0xff] }
 0x95d   :  { %vm1020_vm10 = vmor %vm1018_vm9, %vm1019_vm15 }
 0x95e   :  { %v1015_v31 = vsub.f32 1.0, %v1014_v37 }
 0x960   :  { %v1016_v39 = vmul.f32 %v8187_v26, %v1015_v31 }
 0x962   :  { %v1017_v16 = vadd.f32 %v8187_v26, %v1016_v39 }
 0x964   :  { %v1021_v29 = vsel %vm1020_vm10, %v8187_v26, %v1017_v16  ;;  %v9411_v16 = vld [vmem:[#allocation2 + $0x30] sm:$0xff] }
 0x965   :  { %v1026_v12 = vsel %vm1023_vm11, %v1025_v30, %v1021_v29  ;;  %vm3911_vm11 = vcmask 1040384  }
 0x966   :  { %v1029_v13 = vmul.f32 %v1026_v12, %v9217_v61 }
 0x9c3   :  { %v1032_v17 = vpop.permute.xlu1 %1031 }
 0x9c4   :  { %v1034_v23 = vmul.f32 %v1032_v17, %v1026_v12 }
 0x9c6   :  { %1036 = vrot.lane.b32.xlu2 %v1034_v23, %s8943_s25 }
 0xa20   :  { %v1037_v27 = vpop.permute.xlu2 %1036 }
 0xa21   :  { %v9361_v53 = vadd.f32 %v1037_v27, %v1029_v13  ;;  %v9418_v13 = vld [vmem:[#allocation2 + $0x38] sm:$0xff] }
 0xa23   :  { %8188 = vtanh.f32 %v9361_v53  ;;  %v1047_v61 = vpack.c.bf16 %v9361_v53, %v9361_v53 }
 0xa29   :  { %v8189_v32 = vpop.eup %8188 }
 0xa2a   :  { %1042 = vrot.lane.b32.xlu0 %v8189_v32, %s8943_s25 }
 0xa9c   :  { %v1043_v54 = vpop.permute.xlu0 %1042 }
 0xa9d   :  { %v9365_v11 = vmul.f32 %v1043_v54, %v1026_v12 }
 0xa9f   :  { %v1046_v55 = vpack.c.bf16 %v9365_v11, %v9365_v11 }
 0xaa1   :  { %v1049_v20 = vunpack.c.l.b16 %v1046_v55 }
 0xaa3   :  { %v1050_v56 = vpack.c.b16 %v1049_v20, %v1049_v20 }
 0xaa5   :  { %1051 = vrot.lane.b32.xlu1 %v1050_v56, %s8936_s26 }
 0xb17   :  { %v1052_v57 = vpop.permute.xlu1 %1051 }
 0xb18   :  { %7949 = vmatmul.msk.bf16.vlgmr.msrb.gmra.mxu3 %vm468_vm13, %v1052_v57  ;;  %v1055_v58 = vsel %vm468_vm13, %v1052_v57, %v1047_v61 }
 0xb19   :  { %7948 = vmatmul.msk.bf16.vlgmr.msrb.gmra.mxu0 %vm123_vm14, %v1055_v58  ;;  %2403 = vmatpush.bf16.msrb.mxu3 %v9375_v2 }
 0xb1a   :  { %2343 = vmatpush.bf16.msrb.mxu0 %v9181_v45 }
 0xb1d   :  { %2404 = vmatpush.bf16.msrb.mxu3 %v9379_v18 }
 0xb21   :  { %2405 = vmatpush.bf16.msrb.mxu3 %v9382_v60 }
 0xb25   :  { %2406 = vmatpush.bf16.msrb.mxu3 %v9385_v59 }
 0xb96   :  { %v1067_v38 = vpop.f32.mrf.mxu0 }
 0xb97   :  { %v1079_v34 = vperm.slane %v1067_v38, 0  ;;  %v1073_v14 = vrot.slane %v1067_v38, 2  ;;  %v1072_v63 = vrot.slane %v1067_v38, 1  ;;  %v1074_v15 = vrot.slane %v1067_v38, 3 }
 0xb98   :  { %v1076_v7 = vrot.slane %v1067_v38, 5  ;;  %v1075_v3 = vrot.slane %v1067_v38, 4  ;;  %v1077_v1 = vrot.slane %v1067_v38, 6  ;;  %v1078_v24 = vrot.slane %v1067_v38, 7 }
 0xb99   :  { %v1095_v8 = vadd.f32 %v9388_v40, %v1079_v34  ;;  %v1081_v22 = vperm.slane %v1073_v14, 0  ;;  %v1080_v5 = vperm.slane %v1072_v63, 0  ;;  %v1082_v33 = vperm.slane %v1074_v15, 0 }
 0xb9a   :  { %v1084_v35 = vperm.slane %v1076_v7, 0  ;;  %v1083_v41 = vperm.slane %v1075_v3, 0  ;;  %v1085_v52 = vperm.slane %v1077_v1, 0  ;;  %v1086_v37 = vperm.slane %v1078_v24, 0 }
 0xb9b   :  { %v9391_v42 = vpop.f32.mrf.mxu3  ;;  %8190 = vtanh.f32 %v1095_v8  ;;  %v1097_v4 = vadd.f32 %v9393_v43, %v1081_v22  ;;  %v1096_v46 = vadd.f32 %v9396_v44, %v1080_v5  ;;  %v1098_v48 = vadd.f32 %v9399_v47, %v1082_v33 }
 0xb9c   :  { %v1100_v6 = vadd.f32 %v9402_v49, %v1084_v35  ;;  %v1099_v21 = vadd.f32 %v9405_v51, %v1083_v41  ;;  %v1101_v36 = vadd.f32 %v9411_v16, %v1085_v52  ;;  %v1102_v27 = vadd.f32 %v9418_v13, %v1086_v37 }
 0xb9d   :  { %8192 = vtanh.f32 %v1097_v4 }
 0xb9e   :  { %v1069_v50 = vpop.f32.mrf.mxu0  ;;  %8194 = vtanh.f32 %v1096_v46 }
 0xb9f   :  { %8196 = vtanh.f32 %v1098_v48 }
 0xba0   :  { %8198 = vtanh.f32 %v1100_v6 }
 0xba1   :  { %v8191_v28 = vpop.eup %8190  ;;  %8200 = vtanh.f32 %v1099_v21 }
 0xba2   :  { %v1111_v26 = vmul.f32 %v9408_v25, %v8191_v28  ;;  %8202 = vtanh.f32 %v1101_v36 }
 0xba3   :  { %v8193_v31 = vpop.eup %8192  ;;  %v1381_v39 = vpop.f32.mrf.mxu3  ;;  %8204 = vtanh.f32 %v1102_v27 }
 0xba4   :  { %v8195_v10 = vpop.eup %8194  ;;  %v1119_v29 = vsel %vm189_vm0, %v1111_v26, 0.0  ;;  %v1113_v30 = vmul.f32 %v9408_v25, %v8193_v31 }
 0xba5   :  { %v8197_v17 = vpop.eup %8196  ;;  %1120 = vadd.xlane.f32.xlu2 %v1119_v29  ;;  %v1112_v12 = vmul.f32 %v9408_v25, %v8195_v10 }
 0xba6   :  { %v1125_v23 = vsel %vm189_vm0, %v1113_v30, 0.0  ;;  %v8199_v32 = vpop.eup %8198  ;;  %v1114_v20 = vmul.f32 %v9408_v25, %v8197_v17 }
 0xba7   :  { %1126 = vadd.xlane.f32.xlu1 %v1125_v23  ;;  %v1122_v54 = vsel %vm189_vm0, %v1112_v12, 0.0  ;;  %v8201_v55 = vpop.eup %8200  ;;  %v1116_v56 = vmul.f32 %v9408_v25, %v8199_v32 }
 0xba8   :  { %1123 = vadd.xlane.f32.xlu0 %v1122_v54  ;;  %v1115_v61 = vmul.f32 %v9408_v25, %v8201_v55  ;;  %v1128_v57 = vsel %vm189_vm0, %v1114_v20, 0.0  ;;  %v8203_v58 = vpop.eup %8202 }
 0xba9   :  { %v1134_v38 = vsel %vm189_vm0, %v1116_v56, 0.0  ;;  %v8205_v14 = vpop.eup %8204  ;;  %v1117_v63 = vmul.f32 %v9408_v25, %v8203_v58 }
 0xbaa   :  { %v1131_v34 = vsel %vm189_vm0, %v1115_v61, 0.0  ;;  %v1118_v15 = vmul.f32 %v9408_v25, %v8205_v14 }
 0xbab   :  { %v1137_v7 = vsel %vm189_vm0, %v1117_v63, 0.0 }
 0xbac   :  { %v1140_v3 = vsel %vm189_vm0, %v1118_v15, 0.0 }
 0xbad   :  { %1129 = vadd.xlane.f32.xlu2 %v1128_v57 }
 0xbaf   :  { %1135 = vadd.xlane.f32.xlu1 %v1134_v38 }
 0xbb0   :  { %1132 = vadd.xlane.f32.xlu0 %v1131_v34 }
 0xbb5   :  { %1138 = vadd.xlane.f32.xlu2 %v1137_v7 }
 0xbb8   :  { %1141 = vadd.xlane.f32.xlu0 %v1140_v3 }
 0xc18   :  { %v1121_v8 = vpop.xlane.xlu2 %1120 }
 0xc19   :  { %v1151_v35 = vperm.slane %v1121_v8, %v9052_v9 }
 0xc1a   :  { %v1127_v22 = vpop.xlane.xlu1 %1126 }
 0xc1b   :  { %v1124_v5 = vpop.xlane.xlu0 %1123  ;;  %v1153_v41 = vperm.slane %v1127_v22, %v9052_v9 }
 0xc1c   :  { %v1152_v33 = vperm.slane %v1124_v5, %v9052_v9 }
 0xc1e   :  { %v1159_v1 = vsel %vm232_vm1, %v1152_v33, %v1151_v35 }
 0xc1f   :  { %v1160_v48 = vsel %vm234_vm2, %v1153_v41, %v1159_v1 }
 0xc20   :  { %v1130_v4 = vpop.xlane.xlu2 %1129 }
 0xc21   :  { %v1154_v46 = vperm.slane %v1130_v4, %v9052_v9 }
 0xc22   :  { %v1136_v6 = vpop.xlane.xlu1 %1135 }
 0xc23   :  { %v1133_v50 = vpop.xlane.xlu0 %1132  ;;  %v1161_v21 = vsel %vm236_vm3, %v1154_v46, %v1160_v48  ;;  %v1156_v52 = vperm.slane %v1136_v6, %v9052_v9 }
 0xc24   :  { %v1155_v24 = vperm.slane %v1133_v50, %v9052_v9 }
 0xc26   :  { %v1162_v28 = vsel %vm238_vm4, %v1155_v24, %v1161_v21 }
 0xc27   :  { %v1163_v31 = vsel %vm240_vm5, %v1156_v52, %v1162_v28  ;;  %v9477_v52 = vld [vmem:[%s11847_s0 + $0x8] sm:$0xff] }
 0xc28   :  { %v1139_v26 = vpop.xlane.xlu2 %1138  ;;  %v1295_v28 = vperm.slane %v9477_v52, 2 }
 0xc29   :  { %v1157_v37 = vperm.slane %v1139_v26, %v9052_v9 }
 0xc2b   :  { %v1142_v39 = vpop.xlane.xlu0 %1141  ;;  %v1164_v36 = vsel %vm242_vm6, %v1157_v37, %v1163_v31  ;;  %v9489_v31 = vld [vmem:[%s11847_s0 + $0x20] sm:$0xff] }
 0xc2c   :  { %v1158_v10 = vperm.slane %v1142_v39, %v9052_v9 }
 0xc2e   :  { %v1165_v29 = vsel %vm244_vm7, %v1158_v10, %v1164_v36  ;;  %v9495_v10 = vld [vmem:[%s11847_s0 + $0x10] sm:$0xff] }
 0xc2f   :  { %v1167_v30 = vsel %vm189_vm0, %v1165_v29, -inf  ;;  %v1302_v29 = vperm.slane %v9495_v10, 2 }
 0xc30   :  { %1168 = vmax.xlane.f32.xlu1 %v1167_v30 }
 0xca3   :  { %v1169_v17 = vpop.xlane.xlu1 %1168 }
 0xca4   :  { %v1173_v12 = vperm.slane %v1169_v17, 2  ;;  %v1172_v23 = vperm.slane %v1169_v17, 1  ;;  %v1171_v27 = vperm.slane %v1169_v17, 0  ;;  %v1176_v20 = vperm.slane %v1169_v17, 5 }
 0xca5   :  { %v1175_v56 = vperm.slane %v1169_v17, 4  ;;  %v1174_v61 = vperm.slane %v1169_v17, 3  ;;  %v1178_v3 = vperm.slane %v1169_v17, 7 }
 0xca6   :  { %v1189_v32 = vsub.f32 %v1127_v22, %v1173_v12  ;;  %v1188_v54 = vsub.f32 %v1124_v5, %v1172_v23  ;;  %v1187_v55 = vsub.f32 %v1121_v8, %v1171_v27  ;;  %v1192_v34 = vsub.f32 %v1136_v6, %v1176_v20 }
 0xca7   :  { %v1191_v14 = vsub.f32 %v1133_v50, %v1175_v56  ;;  %v1190_v63 = vsub.f32 %v1130_v4, %v1174_v61  ;;  %v1177_v5 = vperm.slane %v1169_v17, 6  ;;  %v1194_v41 = vsub.f32 %v1142_v39, %v1178_v3  ;;  %v9501_v17 = vld [vmem:[%s11847_s0 + $0x30] sm:$0xff] }
 0xca8   :  { %v1199_v57 = vmul.f32 1.442695, %v1189_v32  ;;  %v1197_v58 = vmul.f32 1.442695, %v1188_v54  ;;  %v1195_v38 = vmul.f32 1.442695, %v1187_v55 }
 0xca9   :  { %v1205_v15 = vmul.f32 1.442695, %v1192_v34  ;;  %v1203_v7 = vmul.f32 1.442695, %v1191_v14  ;;  %v1201_v22 = vmul.f32 1.442695, %v1190_v63  ;;  %v1193_v1 = vsub.f32 %v1139_v26, %v1177_v5 }
 0xcaa   :  { %8206 = vpow2.f32 %v1199_v57  ;;  %v1209_v4 = vmul.f32 1.442695, %v1194_v41  ;;  %v9483_v26 = vld [vmem:[%s11847_s0] sm:$0xff]  ;;  %v1316_v39 = vperm.slane %v9489_v31, 2  ;;  %v1330_v12 = vperm.slane %v9501_v17, 2  ;;  %v9509_v55 = vld [vmem:[%s11847_s0 + $0x18] sm:$0xff] }
 0xcab   :  { %8208 = vpow2.f32 %v1197_v58  ;;  %v1207_v48 = vmul.f32 1.442695, %v1193_v1  ;;  %v1288_v37 = vperm.slane %v9483_v26, 2  ;;  %v1309_v20 = vperm.slane %v9509_v55, 2 }
 0xcac   :  { %8210 = vpow2.f32 %v1195_v38 }
 0xcad   :  { %8212 = vpow2.f32 %v1205_v15 }
 0xcae   :  { %8214 = vpow2.f32 %v1203_v7  ;;  %v9522_v7 = vld [vmem:[%s11847_s0 + $0x28] sm:$0xff] }
 0xcaf   :  { %8216 = vpow2.f32 %v1201_v22  ;;  %v1323_v3 = vperm.slane %v9522_v7, 2 }
 0xcb0   :  { %v9448_v33 = vpop.eup %8206  ;;  %8218 = vpow2.f32 %v1209_v4 }
 0xcb1   :  { %v9450_v8 = vpop.eup %8208  ;;  %1226 = vperm.xlu1 %8059, %v9448_v33   ;;  %8220 = vpow2.f32 %v1207_v48 }
 0xcb2   :  { %v9453_v35 = vpop.eup %8210  ;;  %1223 = vperm.xlu0 %8063, %v9450_v8  }
 0xcb3   :  { %1220 = vperm.xlu2 %8062, %v9453_v35   ;;  %v9457_v46 = vpop.eup %8212 }
 0xcb4   :  { %v9459_v6 = vpop.eup %8214 }
 0xcb5   :  { %v9462_v50 = vpop.eup %8216 }
 0xcb6   :  { %v9466_v21 = vpop.eup %8218 }
 0xcb7   :  { %v9468_v24 = vpop.eup %8220 }
 0xcb9   :  { %1235 = vperm.xlu1 %8059, %v9457_v46  }
 0xcba   :  { %1232 = vperm.xlu0 %8063, %v9459_v6  }
 0xcbb   :  { %1229 = vperm.xlu2 %8062, %v9462_v50  }
 0xcc2   :  { %1241 = vperm.xlu0 %8063, %v9466_v21  }
 0xcc3   :  { %1238 = vperm.xlu2 %8062, %v9468_v24  }
 0xcca   :  { %8065 = vset.pattern.permute.xlu0 %v9095_v19 }
 0xccb   :  { %8064 = vset.pattern.permute.xlu2 %v9095_v19 }
 0xcd2   :  { %1300 = vperm.xlu0 %8065, %v1295_v28  }
 0xcd3   :  { %1293 = vperm.xlu2 %8064, %v1288_v37  }
 0xcda   :  { %1321 = vperm.xlu0 %8065, %v1316_v39   ;;  %v9535_v39 = vld [vmem:[%s11847_s0 + $0x38] sm:$0xff] }
 0xcdb   :  { %1307 = vperm.xlu2 %8064, %v1302_v29  }
 0xce2   :  { %1335 = vperm.xlu0 %8065, %v1330_v12  }
 0xce3   :  { %1314 = vperm.xlu2 %8064, %v1309_v20  }
 0xcea   :  { %8066 = vset.pattern.permute.xlu0 %v11853_v0 }
 0xceb   :  { %1328 = vperm.xlu2 %8064, %v1323_v3  }
 0xd0d   :  { %v1221_v36 = vpop.permute.xlu2 %1220 }
 0xd0e   :  { %v1243_v32 = vperm.slane %v1221_v36, %v9052_v9  ;;  %v1337_v36 = vperm.slane %v9535_v39, 2 }
 0xd10   :  { %1342 = vperm.xlu2 %8064, %v1337_v36  }
 0xd15   :  { %v1230_v54 = vpop.permute.xlu2 %1229 }
 0xd16   :  { %v1246_v34 = vperm.slane %v1230_v54, %v9052_v9 }
 0xd18   :  { %8067 = vset.pattern.permute.xlu2 %v11853_v0 }
 0xd1d   :  { %v1239_v5 = vpop.permute.xlu2 %1238 }
 0xd1e   :  { %v1249_v1 = vperm.slane %v1239_v5, %v9052_v9 }
 0xd23   :  { %v1227_v30 = vpop.permute.xlu1 %1226 }
 0xd24   :  { %v1224_v23 = vpop.permute.xlu0 %1223  ;;  %v1245_v56 = vperm.slane %v1227_v30, %v9052_v9 }
 0xd25   :  { %v1244_v27 = vperm.slane %v1224_v23, %v9052_v9 }
 0xd27   :  { %v1251_v61 = vsel %vm232_vm1, %v1244_v27, %v1243_v32 }
 0xd28   :  { %v1252_v57 = vsel %vm234_vm2, %v1245_v56, %v1251_v61 }
 0xd29   :  { %v1253_v15 = vsel %vm236_vm3, %v1246_v34, %v1252_v57 }
 0xd2b   :  { %v1236_v58 = vpop.permute.xlu1 %1235 }
 0xd2c   :  { %v1233_v38 = vpop.permute.xlu0 %1232  ;;  %v1248_v63 = vperm.slane %v1236_v58, %v9052_v9 }
 0xd2d   :  { %v1247_v14 = vperm.slane %v1233_v38, %v9052_v9  ;;  %v1294_v30 = vpop.permute.xlu2 %1293 }
 0xd2f   :  { %v1254_v22 = vsel %vm238_vm4, %v1247_v14, %v1253_v15 }
 0xd30   :  { %v1255_v41 = vsel %vm240_vm5, %v1248_v63, %v1254_v22 }
 0xd31   :  { %v1256_v28 = vsel %vm242_vm6, %v1249_v1, %v1255_v41 }
 0xd34   :  { %v1242_v4 = vpop.permute.xlu0 %1241 }
 0xd35   :  { %v1250_v48 = vperm.slane %v1242_v4, %v9052_v9  ;;  %v1308_v12 = vpop.permute.xlu2 %1307 }
 0xd37   :  { %v1257_v37 = vsel %vm244_vm7, %v1250_v48, %v1256_v28 }
 0xd38   :  { %v1259_v29 = vsel %vm189_vm0, %v1257_v37, 0.0 }
 0xd39   :  { %1260 = vadd.xlane.f32.xlu1 %v1259_v29 }
 0xd3d   :  { %v1315_v58 = vpop.permute.xlu2 %1314 }
 0xd44   :  { %v1301_v27 = vpop.permute.xlu0 %1300 }
 0xd4c   :  { %v1322_v63 = vpop.permute.xlu0 %1321 }
 0xdac   :  { %v1261_v23 = vpop.xlane.xlu1 %1260 }
 0xdad   :  { %8222 = vrcp.f32 %v1261_v23 }
 0xdb3   :  { %v8223_v32 = vpop.eup %8222 }
 0xdb4   :  { %v1268_v54 = vperm.slane %v8223_v32, 4  ;;  %v1265_v20 = vperm.slane %v8223_v32, 1  ;;  %v1264_v56 = vperm.slane %v8223_v32, 0  ;;  %v1266_v61 = vperm.slane %v8223_v32, 2 }
 0xdb5   :  { %v1267_v57 = vperm.slane %v8223_v32, 3  ;;  %v1269_v37 = vperm.slane %v8223_v32, 5  ;;  %v1270_v36 = vperm.slane %v8223_v32, 6 }
 0xdb6   :  { %v1281_v38 = vmul.f32 %v9450_v8, %v1265_v20  ;;  %v1280_v34 = vmul.f32 %v9453_v35, %v1264_v56  ;;  %v1282_v14 = vmul.f32 %v9448_v33, %v1266_v61  ;;  %v1284_v15 = vmul.f32 %v9459_v6, %v1268_v54  ;;  %v1329_v33 = vpop.permute.xlu2 %1328 }
 0xdb7   :  { %v1283_v41 = vmul.f32 %v9462_v50, %v1267_v57  ;;  %v1271_v54 = vperm.slane %v8223_v32, 7 }
 0xdb8   :  { %v1353_v3 = vmul.f32 %v1301_v27, %v1281_v38  ;;  %v1352_v22 = vmul.f32 %v1294_v30, %v1280_v34  ;;  %v1354_v5 = vmul.f32 %v1308_v12, %v1282_v14  ;;  %v1356_v28 = vmul.f32 %v1322_v63, %v1284_v15  ;;  %v1336_v27 = vpop.permute.xlu0 %1335 }
 0xdb9   :  { %v1355_v35 = vmul.f32 %v1315_v58, %v1283_v41  ;;  %v1285_v30 = vmul.f32 %v9457_v46, %v1269_v37  ;;  %v1286_v12 = vmul.f32 %v9468_v24, %v1270_v36  ;;  %v1287_v34 = vmul.f32 %v9466_v21, %v1271_v54 }
 0xdba   :  { %v1361_v1 = vpack.c.bf16 %v1353_v3, %v1353_v3  ;;  %v1360_v4 = vpack.c.bf16 %v1352_v22, %v1352_v22  ;;  %v1362_v48 = vpack.c.bf16 %v1354_v5, %v1354_v5  ;;  %v1364_v6 = vpack.c.bf16 %v1356_v28, %v1356_v28 }
 0xdbb   :  { %v1363_v50 = vpack.c.bf16 %v1355_v35, %v1355_v35  ;;  %v1357_v56 = vmul.f32 %v1329_v33, %v1285_v30  ;;  %v1358_v61 = vmul.f32 %v1336_v27, %v1286_v12 }
 0xdbc   :  { %v1392_v29 = vunpack.c.l.b16 %v1361_v1  ;;  %v1391_v8 = vunpack.c.l.b16 %v1360_v4  ;;  %v1393_v23 = vunpack.c.l.b16 %v1362_v48  ;;  %v1395_v20 = vunpack.c.l.b16 %v1364_v6 }
 0xdbd   :  { %v1394_v57 = vunpack.c.l.b16 %v1363_v50  ;;  %v1365_v38 = vpack.c.bf16 %v1357_v56, %v1357_v56  ;;  %v1366_v58 = vpack.c.bf16 %v1358_v61, %v1358_v61  ;;  %v9564_v61 = vld [vmem:[#allocation4 + $0x10] sm:$0xff] }
 0xdbe   :  { %1403 = vperm.xlu2 %8067, %v1392_v29   ;;  %1400 = vperm.xlu0 %8066, %v1391_v8   ;;  %v1343_v14 = vpop.permute.xlu2 %1342 }
 0xdbf   :  { %1406 = vperm.xlu1 %8059, %v1393_v23   ;;  %v1396_v63 = vunpack.c.l.b16 %v1365_v38  ;;  %v1397_v15 = vunpack.c.l.b16 %v1366_v58  ;;  %v1359_v3 = vmul.f32 %v1343_v14, %v1287_v34  ;;  %v9571_v34 = vld [vmem:[#allocation6 + $0x8] ss:$0 sm:$0xff] }
 0xdc1   :  { %v1367_v46 = vpack.c.bf16 %v1359_v3, %v1359_v3 }
 0xdc3   :  { %v1398_v24 = vunpack.c.l.b16 %v1367_v46 }
 0xdc6   :  { %1412 = vperm.xlu0 %8066, %v1395_v20   ;;  %1409 = vperm.xlu2 %8067, %v1394_v57   ;;  %v9567_v57 = vld [vmem:[#allocation4 + $0x8] sm:$0xff] }
 0xdce   :  { %1418 = vperm.xlu0 %8066, %v1397_v15   ;;  %1415 = vperm.xlu2 %8067, %v1396_v63  }
 0xdd6   :  { %1421 = vperm.xlu2 %8067, %v1398_v24  }
 0xe18   :  { %v1404_v32 = vpop.permute.xlu2 %1403 }
 0xe19   :  { %v1424_v48 = vperm.slane %v1404_v32, %v9052_v9 }
 0xe20   :  { %v1410_v22 = vpop.permute.xlu2 %1409 }
 0xe21   :  { %v1426_v8 = vperm.slane %v1410_v22, %v9052_v9 }
 0xe28   :  { %v1416_v4 = vpop.permute.xlu2 %1415 }
 0xe29   :  { %v1428_v6 = vperm.slane %v1416_v4, %v9052_v9 }
 0xe30   :  { %v1401_v5 = vpop.permute.xlu0 %1400  ;;  %v1422_v35 = vpop.permute.xlu2 %1421 }
 0xe31   :  { %v1423_v41 = vperm.slane %v1401_v5, %v9052_v9  ;;  %v1407_v1 = vpop.permute.xlu1 %1406  ;;  %v1430_v50 = vperm.slane %v1422_v35, %v9052_v9 }
 0xe32   :  { %v1425_v21 = vperm.slane %v1407_v1, %v9052_v9 }
 0xe33   :  { %v1431_v28 = vsel %vm232_vm1, %v1424_v48, %v1423_v41 }
 0xe34   :  { %v1432_v36 = vsel %vm234_vm2, %v1425_v21, %v1431_v28 }
 0xe35   :  { %v1433_v23 = vsel %vm236_vm3, %v1426_v8, %v1432_v36 }
 0xe38   :  { %v1413_v37 = vpop.permute.xlu0 %1412 }
 0xe39   :  { %v1427_v29 = vperm.slane %v1413_v37, %v9052_v9 }
 0xe3b   :  { %v1434_v33 = vsel %vm238_vm4, %v1427_v29, %v1433_v23 }
 0xe3c   :  { %v1435_v27 = vsel %vm240_vm5, %v1428_v6, %v1434_v33  ;;  %v3747_v33 = vrot.slane %v9365_v11, 4  ;;  %v3745_v6 = vrot.slane %v9365_v11, 2 }
 0xe40   :  { %v1419_v30 = vpop.permute.xlu0 %1418 }
 0xe41   :  { %v1429_v12 = vperm.slane %v1419_v30, %v9052_v9  ;;  %v3746_v30 = vrot.slane %v9365_v11, 3 }
 0xe43   :  { %v1436_v54 = vsel %vm242_vm6, %v1429_v12, %v1435_v27  ;;  %v3744_v12 = vrot.slane %v9365_v11, 1  ;;  %v3803_v27 = vperm.slane %v3747_v33, 0 }
 0xe44   :  { %v1437_v20 = vsel %vm244_vm7, %v1430_v50, %v1436_v54  ;;  %v3748_v50 = vrot.slane %v9365_v11, 5  ;;  %v3732_v54 = vrot.slane %v9221_v62, 4 }
 0xe45   :  { %v1438_v56 = vpack.c.b16 %v1437_v20, %v1437_v20  ;;  %v3801_v20 = vperm.slane %v3745_v6, 0 }
 0xe47   :  { %7950 = vmatmul.msk.bf16.vlgmr.msra.gmra.mxu2 %vm189_vm0, %v1438_v56  ;;  %v3802_v56 = vperm.slane %v3746_v30, 0 }
 0xe48   :  { %2717 = vmatpush.bf16.msra.mxu2 %v9564_v61 }
 0xe4c   :  { %2718 = vmatpush.bf16.msra.mxu2 %v9567_v57 }
 0xeca   :  { %v1451_v38 = vpop.f32.mrf.mxu2 }
 0xecb   :  { %v1452_v58 = vadd.f32 %v1451_v38, %v9391_v42  ;;  %v3799_v38 = vperm.slane %v9365_v11, 0 }
 0xecd   :  { %v1455_v14 = vadd.f32 %v9571_v34, %v1452_v58  ;;  %v3750_v58 = vrot.slane %v9365_v11, 7 }
 0xecf   :  { %8224 = vtanh.f32 %v1455_v14  ;;  %v7951_v3 = vmul.f32 -1.442695, %v1455_v14  ;;  %v3804_v14 = vperm.slane %v3748_v50, 0 }
 0xed1   :  { %8226 = vpow2.f32 %v7951_v3  ;;  %v3730_v3 = vrot.slane %v9221_v62, 2 }
 0xed2   :  { %v1453_v63 = vpop.f32.mrf.mxu2 }
 0xed3   :  { %v3800_v63 = vperm.slane %v3744_v12, 0 }
 0xed5   :  { %v8225_v15 = vpop.eup %8224 }
 0xed6   :  { %1478 = vrot.lane.b32.xlu0 %v8225_v15, %s8943_s25  ;;  %v3733_v15 = vrot.slane %v9221_v62, 5 }
 0xed7   :  { %v8227_v46 = vpop.eup %8226 }
 0xed8   :  { %v1459_v24 = vadd.f32 1.0, %v8227_v46  ;;  %v3731_v46 = vrot.slane %v9221_v62, 3 }
 0xeda   :  { %8228 = vrcp.f32 %v1459_v24  ;;  %v1471_v42 = vand.u32 2147483648, %v1459_v24  ;;  %vm1465_vm15 = vweird.f32 %v1459_v24  ;;  %v1469_v4 = vand.u32 2147483647, %v1459_v24 }
 0xedc   :  { %v1472_v21 = vor.u32 1.1754944e-38, %v1471_v42  ;;  %vm1470_vm10 = vcmp.eq.f32.partialorder %v1469_v4, 8.507059e+37  ;;  %v3914_v42 = vsel %vm3911_vm11, %v3730_v3, %v3801_v20  ;;  %v3915_v4 = vsel %vm3911_vm11, %v3731_v46, %v3802_v56 }
 0xee0   :  { %v8229_v32 = vpop.eup %8228 }
 0xee1   :  { %v1461_v22 = vmul.f32 %v8229_v32, %v1459_v24  ;;  %vm1466_vm12 = vweird.f32 %v8229_v32  ;;  %v3729_v24 = vrot.slane %v9221_v62, 1 }
 0xee2   :  { %vm1467_vm9 = vmor %vm1465_vm15, %vm1466_vm12  ;;  %vm3920_vm12 = vcmask 1041408  }
 0xee3   :  { %v1462_v5 = vsub.f32 1.0, %v1461_v22  ;;  %v3916_v22 = vsel %vm3911_vm11, %v3732_v54, %v3803_v27 }
 0xee5   :  { %v1463_v41 = vmul.f32 %v8229_v32, %v1462_v5  ;;  %v3734_v5 = vrot.slane %v9221_v62, 6 }
 0xee7   :  { %v1464_v1 = vadd.f32 %v8229_v32, %v1463_v41  ;;  %v3735_v41 = vrot.slane %v9221_v62, 7 }
 0xee9   :  { %v1468_v48 = vsel %vm1467_vm9, %v8229_v32, %v1464_v1 }
 0xeea   :  { %v1473_v37 = vsel %vm1470_vm10, %v1472_v21, %v1468_v48  ;;  %v3912_v48 = vsel %vm3911_vm11, %v9221_v62, %v3799_v38  ;;  %v3917_v21 = vsel %vm3911_vm11, %v3733_v15, %v3804_v14 }
 0xeeb   :  { %v1476_v29 = vmul.f32 %v1473_v37, %v9361_v53  ;;  %v3749_v53 = vrot.slane %v9365_v11, 6 }
 0xeed   :  { %v3805_v1 = vperm.slane %v3749_v53, 0 }
 0xf48   :  { %v1479_v28 = vpop.permute.xlu0 %1478 }
 0xf49   :  { %v1481_v36 = vmul.f32 %v1479_v28, %v1473_v37  ;;  %v3913_v28 = vsel %vm3911_vm11, %v3729_v24, %v3800_v63 }
 0xf4b   :  { %1483 = vrot.lane.b32.xlu1 %v1481_v36, %s8943_s25  ;;  %v3806_v36 = vperm.slane %v3750_v58, 0 }
 0xfbd   :  { %v1484_v8 = vpop.permute.xlu1 %1483 }
 0xfbe   :  { %v9577_v23 = vadd.f32 %v1484_v8, %v1476_v29 }
 0xfc0   :  { %8230 = vtanh.f32 %v9577_v23 }
 0xfc6   :  { %v8231_v35 = vpop.eup %8230 }
 0xfc7   :  { %1489 = vrot.lane.b32.xlu2 %v8231_v35, %s8943_s25 }
0x1021   :  { %v1490_v32 = vpop.permute.xlu2 %1489 }
0x1022   :  { %v1492_v11 = vmul.f32 %v1490_v32, %v1473_v37 }
0x1024   :  { %v1493_v29 = vpack.c.bf16 %v1492_v11, %v1492_v11  ;;  %v3755_v8 = vrot.slane %v1492_v11, 4  ;;  %v3756_v35 = vrot.slane %v1492_v11, 5  ;;  %v3753_v33 = vrot.slane %v1492_v11, 2 }
0x1025   :  { %v3754_v6 = vrot.slane %v1492_v11, 3  ;;  %v3752_v30 = vrot.slane %v1492_v11, 1  ;;  %v3815_v37 = vperm.slane %v1492_v11, 0  ;;  %v3757_v12 = vrot.slane %v1492_v11, 6 }
0x1026   :  { %v1496_v50 = vunpack.c.l.b16 %v1493_v29  ;;  %v3819_v53 = vperm.slane %v3755_v8, 0  ;;  %v3820_v27 = vperm.slane %v3756_v35, 0  ;;  %v3817_v54 = vperm.slane %v3753_v33, 0 }
0x1027   :  { %v3818_v20 = vperm.slane %v3754_v6, 0  ;;  %v3816_v62 = vperm.slane %v3752_v30, 0  ;;  %v9604_v56 = vsel %vm3920_vm12, %v3912_v48, %v3815_v37  ;;  %v3758_v38 = vrot.slane %v1492_v11, 7 }
0x1028   :  { %v1497_v14 = vpack.c.b16 %v1496_v50, %v1496_v50  ;;  %v9607_v58 = vsel %vm3920_vm12, %v3916_v22, %v3819_v53  ;;  %v9610_v63 = vsel %vm3920_vm12, %v3917_v21, %v3820_v27  ;;  %v9613_v15 = vsel %vm3920_vm12, %v3914_v42, %v3817_v54 }
0x1029   :  { %v9616_v3 = vsel %vm3920_vm12, %v3915_v4, %v3818_v20  ;;  %v9619_v46 = vsel %vm3920_vm12, %v3913_v28, %v3816_v62  ;;  %v3821_v24 = vperm.slane %v3757_v12, 0  ;;  %v3822_v32 = vperm.slane %v3758_v38, 0 }
0x102a   :  { %1498 = vrot.lane.b32.xlu0 %v1497_v14, %s8936_s26  ;;  %v3918_v11 = vsel %vm3911_vm11, %v3734_v5, %v3805_v1  ;;  %v3919_v22 = vsel %vm3911_vm11, %v3735_v41, %v3806_v36  ;;  %v1494_v4 = vpack.c.bf16 %v9577_v23, %v9577_v23 }
0x102b   :  { %v9625_v48 = vsel %vm3920_vm12, %v3918_v11, %v3821_v24  ;;  %v9628_v42 = vsel %vm3920_vm12, %v3919_v22, %v3822_v32  ;;  %vm3929_vm12 = vcmask 1042432  }
0x109c   :  { %v1499_v21 = vpop.permute.xlu0 %1498 }
0x109d   :  { %v1502_v28 = vsel %vm468_vm13, %v1499_v21, %v1494_v4  ;;  %7953 = vmatmul.msk.bf16.vlgmr.msra.gmra.mxu0 %vm468_vm13, %v1499_v21 }
0x109e   :  { %7952 = vmatmul.msk.bf16.vlgmr.msra.gmra.mxu1 %vm123_vm14, %v1502_v28  ;;  %2850 = vmatpush.bf16.msra.mxu0 %v9375_v2 }
0x109f   :  { %2790 = vmatpush.bf16.msra.mxu1 %v9181_v45 }
0x10a2   :  { %2851 = vmatpush.bf16.msra.mxu0 %v9379_v18 }
0x10a6   :  { %2852 = vmatpush.bf16.msra.mxu0 %v9382_v60 }
0x10aa   :  { %2853 = vmatpush.bf16.msra.mxu0 %v9385_v59 }
0x111a   :  { %v9640_v5 = vpop.f32.mrf.mxu0 }
0x111b   :  { %v1514_v41 = vpop.f32.mrf.mxu1 }
0x111c   :  { %v1526_v1 = vperm.slane %v1514_v41, 0  ;;  %v1520_v36 = vrot.slane %v1514_v41, 2  ;;  %v1519_v29 = vrot.slane %v1514_v41, 1  ;;  %v1521_v8 = vrot.slane %v1514_v41, 3 }
0x111d   :  { %v1523_v35 = vrot.slane %v1514_v41, 5  ;;  %v1522_v33 = vrot.slane %v1514_v41, 4  ;;  %v1524_v50 = vrot.slane %v1514_v41, 6  ;;  %v1525_v62 = vrot.slane %v1514_v41, 7 }
0x111e   :  { %v1542_v6 = vadd.f32 %v9388_v40, %v1526_v1  ;;  %v1528_v2 = vperm.slane %v1520_v36, 0  ;;  %v1527_v30 = vperm.slane %v1519_v29, 0  ;;  %v1529_v37 = vperm.slane %v1521_v8, 0 }
0x111f   :  { %v1531_v12 = vperm.slane %v1523_v35, 0  ;;  %v1530_v18 = vperm.slane %v1522_v33, 0  ;;  %v1532_v38 = vperm.slane %v1524_v50, 0 }
0x1120   :  { %8232 = vtanh.f32 %v1542_v6  ;;  %v1544_v60 = vadd.f32 %v9393_v43, %v1528_v2  ;;  %v1543_v59 = vadd.f32 %v9396_v44, %v1527_v30  ;;  %v1545_v53 = vadd.f32 %v9399_v47, %v1529_v37 }
0x1121   :  { %v1547_v54 = vadd.f32 %v9402_v49, %v1531_v12  ;;  %v1546_v40 = vadd.f32 %v9405_v51, %v1530_v18  ;;  %v1533_v43 = vperm.slane %v1525_v62, 0  ;;  %v1548_v47 = vadd.f32 %v9411_v16, %v1532_v38 }
0x1122   :  { %v1828_v27 = vpop.f32.mrf.mxu0  ;;  %8234 = vtanh.f32 %v1544_v60 }
0x1123   :  { %v1516_v20 = vpop.f32.mrf.mxu1  ;;  %8236 = vtanh.f32 %v1543_v59  ;;  %v1549_v21 = vadd.f32 %v9418_v13, %v1533_v43 }
0x1124   :  { %8238 = vtanh.f32 %v1545_v53 }
0x1125   :  { %8240 = vtanh.f32 %v1547_v54 }
0x1126   :  { %v8233_v14 = vpop.eup %8232  ;;  %8242 = vtanh.f32 %v1546_v40 }
0x1127   :  { %v1558_v24 = vmul.f32 %v9408_v25, %v8233_v14  ;;  %8244 = vtanh.f32 %v1548_v47 }
0x1128   :  { %v8235_v44 = vpop.eup %8234  ;;  %8246 = vtanh.f32 %v1549_v21 }
0x1129   :  { %v8237_v32 = vpop.eup %8236  ;;  %v1566_v11 = vsel %vm189_vm0, %v1558_v24, 0.0  ;;  %v1560_v49 = vmul.f32 %v9408_v25, %v8235_v44 }
0x112a   :  { %v8239_v22 = vpop.eup %8238  ;;  %1567 = vadd.xlane.f32.xlu1 %v1566_v11  ;;  %v1559_v51 = vmul.f32 %v9408_v25, %v8237_v32 }
0x112b   :  { %v1572_v4 = vsel %vm189_vm0, %v1560_v49, 0.0  ;;  %v8241_v28 = vpop.eup %8240  ;;  %v1561_v16 = vmul.f32 %v9408_v25, %v8239_v22 }
0x112c   :  { %1573 = vadd.xlane.f32.xlu0 %v1572_v4  ;;  %v1569_v41 = vsel %vm189_vm0, %v1559_v51, 0.0  ;;  %v8243_v1 = vpop.eup %8242  ;;  %v1563_v36 = vmul.f32 %v9408_v25, %v8241_v28 }
0x112d   :  { %1570 = vadd.xlane.f32.xlu2 %v1569_v41  ;;  %v1562_v29 = vmul.f32 %v9408_v25, %v8243_v1  ;;  %v1575_v8 = vsel %vm189_vm0, %v1561_v16, 0.0  ;;  %v8245_v35 = vpop.eup %8244 }
0x112e   :  { %v1581_v13 = vsel %vm189_vm0, %v1563_v36, 0.0  ;;  %v8247_v6 = vpop.eup %8246  ;;  %v1564_v2 = vmul.f32 %v9408_v25, %v8245_v35 }
0x112f   :  { %v1578_v33 = vsel %vm189_vm0, %v1562_v29, 0.0  ;;  %v1565_v30 = vmul.f32 %v9408_v25, %v8247_v6 }
0x1130   :  { %v1584_v37 = vsel %vm189_vm0, %v1564_v2, 0.0 }
0x1131   :  { %v1587_v12 = vsel %vm189_vm0, %v1565_v30, 0.0 }
0x1132   :  { %1576 = vadd.xlane.f32.xlu1 %v1575_v8 }
0x1134   :  { %1582 = vadd.xlane.f32.xlu0 %v1581_v13 }
0x1135   :  { %1579 = vadd.xlane.f32.xlu2 %v1578_v33 }
0x113a   :  { %1585 = vadd.xlane.f32.xlu1 %v1584_v37 }
0x113d   :  { %1588 = vadd.xlane.f32.xlu2 %v1587_v12 }
0x119d   :  { %v1568_v18 = vpop.xlane.xlu1 %1567 }
0x119e   :  { %v1598_v53 = vperm.slane %v1568_v18, %v9052_v9 }
0x119f   :  { %v1574_v50 = vpop.xlane.xlu0 %1573 }
0x11a0   :  { %v1571_v60 = vpop.xlane.xlu2 %1570  ;;  %v1600_v27 = vperm.slane %v1574_v50, %v9052_v9 }
0x11a1   :  { %v1599_v59 = vperm.slane %v1571_v60, %v9052_v9 }
0x11a3   :  { %v1606_v54 = vsel %vm232_vm1, %v1599_v59, %v1598_v53 }
0x11a4   :  { %v1607_v40 = vsel %vm234_vm2, %v1600_v27, %v1606_v54 }
0x11a5   :  { %v1577_v20 = vpop.xlane.xlu1 %1576 }
0x11a6   :  { %v1601_v25 = vperm.slane %v1577_v20, %v9052_v9 }
0x11a7   :  { %v1583_v62 = vpop.xlane.xlu0 %1582 }
0x11a8   :  { %v1580_v38 = vpop.xlane.xlu2 %1579  ;;  %v1608_v14 = vsel %vm236_vm3, %v1601_v25, %v1607_v40  ;;  %v1603_v43 = vperm.slane %v1583_v62, %v9052_v9 }
0x11a9   :  { %v1602_v24 = vperm.slane %v1580_v38, %v9052_v9 }
0x11ab   :  { %v1609_v44 = vsel %vm238_vm4, %v1602_v24, %v1608_v14 }
0x11ac   :  { %v1610_v11 = vsel %vm240_vm5, %v1603_v43, %v1609_v44 }
0x11ad   :  { %v1586_v47 = vpop.xlane.xlu1 %1585 }
0x11ae   :  { %v1604_v32 = vperm.slane %v1586_v47, %v9052_v9 }
0x11b0   :  { %v1589_v49 = vpop.xlane.xlu2 %1588  ;;  %v1611_v22 = vsel %vm242_vm6, %v1604_v32, %v1610_v11  ;;  %v1735_v11 = vperm.slane %v9483_v26, 3 }
0x11b1   :  { %v1605_v51 = vperm.slane %v1589_v49, %v9052_v9 }
0x11b3   :  { %v1612_v4 = vsel %vm244_vm7, %v1605_v51, %v1611_v22  ;;  %v1756_v22 = vperm.slane %v9509_v55, 3  ;;  %v1742_v51 = vperm.slane %v9477_v52, 3 }
0x11b4   :  { %v1614_v21 = vsel %vm189_vm0, %v1612_v4, -inf  ;;  %v1770_v4 = vperm.slane %v9522_v7, 3 }
0x11b5   :  { %1615 = vmax.xlane.f32.xlu0 %v1614_v21  ;;  %v1763_v21 = vperm.slane %v9489_v31, 3 }
0x1228   :  { %v1616_v28 = vpop.xlane.xlu0 %1615 }
0x1229   :  { %v1620_v41 = vperm.slane %v1616_v28, 2  ;;  %v1619_v1 = vperm.slane %v1616_v28, 1  ;;  %v1618_v16 = vperm.slane %v1616_v28, 0  ;;  %v1622_v35 = vperm.slane %v1616_v28, 4 }
0x122a   :  { %v1623_v13 = vperm.slane %v1616_v28, 5  ;;  %v1621_v33 = vperm.slane %v1616_v28, 3  ;;  %v1625_v27 = vperm.slane %v1616_v28, 7 }
0x122b   :  { %v1636_v36 = vsub.f32 %v1574_v50, %v1620_v41  ;;  %v1635_v29 = vsub.f32 %v1571_v60, %v1619_v1  ;;  %v1634_v8 = vsub.f32 %v1568_v18, %v1618_v16  ;;  %v1638_v37 = vsub.f32 %v1580_v38, %v1622_v35 }
0x122c   :  { %v1639_v12 = vsub.f32 %v1583_v62, %v1623_v13  ;;  %v1637_v59 = vsub.f32 %v1577_v20, %v1621_v33  ;;  %v1624_v60 = vperm.slane %v1616_v28, 6  ;;  %v1641_v38 = vsub.f32 %v1589_v49, %v1625_v27 }
0x122d   :  { %v1646_v6 = vmul.f32 1.442695, %v1636_v36  ;;  %v1644_v2 = vmul.f32 1.442695, %v1635_v29  ;;  %v1642_v30 = vmul.f32 1.442695, %v1634_v8 }
0x122e   :  { %v1650_v53 = vmul.f32 1.442695, %v1638_v37  ;;  %v1652_v54 = vmul.f32 1.442695, %v1639_v12  ;;  %v1648_v50 = vmul.f32 1.442695, %v1637_v59  ;;  %v1640_v20 = vsub.f32 %v1586_v47, %v1624_v60 }
0x122f   :  { %8248 = vpow2.f32 %v1646_v6  ;;  %v1656_v62 = vmul.f32 1.442695, %v1641_v38  ;;  %v1749_v49 = vperm.slane %v9495_v10, 3  ;;  %v1784_v28 = vperm.slane %v9535_v39, 3 }
0x1230   :  { %8250 = vpow2.f32 %v1644_v2  ;;  %v1654_v24 = vmul.f32 1.442695, %v1640_v20  ;;  %v1777_v41 = vperm.slane %v9501_v17, 3 }
0x1231   :  { %8252 = vpow2.f32 %v1642_v30 }
0x1232   :  { %8254 = vpow2.f32 %v1650_v53 }
0x1233   :  { %8256 = vpow2.f32 %v1652_v54 }
0x1234   :  { %8258 = vpow2.f32 %v1648_v50 }
0x1235   :  { %v9682_v25 = vpop.eup %8248  ;;  %8260 = vpow2.f32 %v1656_v62 }
0x1236   :  { %v9684_v18 = vpop.eup %8250  ;;  %1673 = vperm.xlu0 %8066, %v9682_v25   ;;  %8262 = vpow2.f32 %v1654_v24 }
0x1237   :  { %v9687_v40 = vpop.eup %8252  ;;  %1670 = vperm.xlu2 %8067, %v9684_v18  }
0x1238   :  { %1667 = vperm.xlu1 %8059, %v9687_v40   ;;  %v9691_v14 = vpop.eup %8254 }
0x1239   :  { %v9693_v43 = vpop.eup %8256 }
0x123a   :  { %v9696_v44 = vpop.eup %8258 }
0x123b   :  { %v9700_v32 = vpop.eup %8260 }
0x123c   :  { %v9703_v47 = vpop.eup %8262 }
0x123e   :  { %1679 = vperm.xlu0 %8066, %v9691_v14  }
0x123f   :  { %1682 = vperm.xlu2 %8067, %v9693_v43  }
0x1240   :  { %1676 = vperm.xlu1 %8059, %v9696_v44  }
0x1246   :  { %1688 = vperm.xlu0 %8066, %v9700_v32  }
0x1248   :  { %1685 = vperm.xlu1 %8059, %v9703_v47  }
0x124e   :  { %8069 = vset.pattern.permute.xlu0 %v9095_v19 }
0x1250   :  { %8068 = vset.pattern.permute.xlu1 %v9095_v19 }
0x1256   :  { %1747 = vperm.xlu0 %8069, %v1742_v51  }
0x1258   :  { %1740 = vperm.xlu1 %8068, %v1735_v11  }
0x125e   :  { %1768 = vperm.xlu0 %8069, %v1763_v21  }
0x1260   :  { %1754 = vperm.xlu1 %8068, %v1749_v49  }
0x1266   :  { %1782 = vperm.xlu0 %8069, %v1777_v41  }
0x1268   :  { %1761 = vperm.xlu1 %8068, %v1756_v22  }
0x126e   :  { %8070 = vset.pattern.permute.xlu0 %v11853_v0 }
0x1270   :  { %1775 = vperm.xlu1 %8068, %v1770_v4  }
0x1278   :  { %1789 = vperm.xlu1 %8068, %v1784_v28  }
0x1280   :  { %8071 = vset.pattern.permute.xlu1 %v11853_v0 }
0x1291   :  { %v1671_v1 = vpop.permute.xlu2 %1670 }
0x1292   :  { %v1691_v52 = vperm.slane %v1671_v1, %v9052_v9 }
0x1299   :  { %v1683_v35 = vpop.permute.xlu2 %1682 }
0x129a   :  { %v1695_v6 = vperm.slane %v1683_v35, %v9052_v9 }
0x12a8   :  { %v1674_v26 = vpop.permute.xlu0 %1673 }
0x12a9   :  { %v1692_v16 = vperm.slane %v1674_v26, %v9052_v9 }
0x12aa   :  { %v1668_v10 = vpop.permute.xlu1 %1667 }
0x12ab   :  { %v1690_v55 = vperm.slane %v1668_v10, %v9052_v9 }
0x12ad   :  { %v1698_v31 = vsel %vm232_vm1, %v1691_v52, %v1690_v55 }
0x12ae   :  { %v1699_v17 = vsel %vm234_vm2, %v1692_v16, %v1698_v31 }
0x12b0   :  { %v1680_v7 = vpop.permute.xlu0 %1679 }
0x12b1   :  { %v1694_v29 = vperm.slane %v1680_v7, %v9052_v9 }
0x12b2   :  { %v1677_v39 = vpop.permute.xlu1 %1676 }
0x12b3   :  { %v1693_v36 = vperm.slane %v1677_v39, %v9052_v9 }
0x12b5   :  { %v1700_v8 = vsel %vm236_vm3, %v1693_v36, %v1699_v17 }
0x12b6   :  { %v1701_v33 = vsel %vm238_vm4, %v1694_v29, %v1700_v8 }
0x12b7   :  { %v1702_v12 = vsel %vm240_vm5, %v1695_v6, %v1701_v33 }
0x12b8   :  { %v1689_v13 = vpop.permute.xlu0 %1688 }
0x12b9   :  { %v1697_v2 = vperm.slane %v1689_v13, %v9052_v9 }
0x12ba   :  { %v1686_v30 = vpop.permute.xlu1 %1685 }
0x12bb   :  { %v1696_v37 = vperm.slane %v1686_v30, %v9052_v9 }
0x12bd   :  { %v1703_v59 = vsel %vm242_vm6, %v1696_v37, %v1702_v12 }
0x12be   :  { %v1704_v53 = vsel %vm244_vm7, %v1697_v2, %v1703_v59 }
0x12bf   :  { %v1706_v27 = vsel %vm189_vm0, %v1704_v53, 0.0 }
0x12c0   :  { %1707 = vadd.xlane.f32.xlu2 %v1706_v27 }
0x12c8   :  { %v1748_v20 = vpop.permute.xlu0 %1747 }
0x12ca   :  { %v1741_v54 = vpop.permute.xlu1 %1740 }
0x12d0   :  { %v1769_v10 = vpop.permute.xlu0 %1768 }
0x12d2   :  { %v1755_v50 = vpop.permute.xlu1 %1754 }
0x12d8   :  { %v1783_v37 = vpop.permute.xlu0 %1782 }
0x12da   :  { %v1762_v60 = vpop.permute.xlu1 %1761 }
0x12e2   :  { %v1776_v62 = vpop.permute.xlu1 %1775 }
0x12ea   :  { %v1790_v36 = vpop.permute.xlu1 %1789 }
0x1333   :  { %v1708_v38 = vpop.xlane.xlu2 %1707 }
0x1334   :  { %8264 = vrcp.f32 %v1708_v38 }
0x133a   :  { %v8265_v24 = vpop.eup %8264 }
0x133b   :  { %v1718_v11 = vperm.slane %v8265_v24, 7  ;;  %v1712_v49 = vperm.slane %v8265_v24, 1  ;;  %v1715_v22 = vperm.slane %v8265_v24, 4  ;;  %v1711_v51 = vperm.slane %v8265_v24, 0 }
0x133c   :  { %v1713_v4 = vperm.slane %v8265_v24, 2  ;;  %v1714_v21 = vperm.slane %v8265_v24, 3 }
0x133d   :  { %v1728_v28 = vmul.f32 %v9684_v18, %v1712_v49  ;;  %v1727_v26 = vmul.f32 %v9687_v40, %v1711_v51  ;;  %v1734_v1 = vmul.f32 %v9700_v32, %v1718_v11  ;;  %v1731_v52 = vmul.f32 %v9691_v14, %v1715_v22 }
0x133e   :  { %v1729_v41 = vmul.f32 %v9682_v25, %v1713_v4  ;;  %v1730_v31 = vmul.f32 %v9696_v44, %v1714_v21  ;;  %v1717_v18 = vperm.slane %v8265_v24, 6  ;;  %v1716_v40 = vperm.slane %v8265_v24, 5 }
0x133f   :  { %v1800_v55 = vmul.f32 %v1748_v20, %v1728_v28  ;;  %v1799_v7 = vmul.f32 %v1741_v54, %v1727_v26  ;;  %v1806_v8 = vmul.f32 %v1790_v36, %v1734_v1  ;;  %v1803_v13 = vmul.f32 %v1769_v10, %v1731_v52 }
0x1340   :  { %v1801_v16 = vmul.f32 %v1755_v50, %v1729_v41  ;;  %v1802_v6 = vmul.f32 %v1762_v60, %v1730_v31  ;;  %v1733_v2 = vmul.f32 %v9703_v47, %v1717_v18  ;;  %v1732_v30 = vmul.f32 %v9693_v43, %v1716_v40 }
0x1341   :  { %v1808_v39 = vpack.c.bf16 %v1800_v55, %v1800_v55  ;;  %v1807_v29 = vpack.c.bf16 %v1799_v7, %v1799_v7  ;;  %v1814_v14 = vpack.c.bf16 %v1806_v8, %v1806_v8  ;;  %v1811_v32 = vpack.c.bf16 %v1803_v13, %v1803_v13 }
0x1342   :  { %v1809_v17 = vpack.c.bf16 %v1801_v16, %v1801_v16  ;;  %v1810_v44 = vpack.c.bf16 %v1802_v6, %v1802_v6  ;;  %v1805_v53 = vmul.f32 %v1783_v37, %v1733_v2  ;;  %v1804_v54 = vmul.f32 %v1776_v62, %v1732_v30 }
0x1343   :  { %v1839_v35 = vunpack.c.l.b16 %v1808_v39  ;;  %v1838_v25 = vunpack.c.l.b16 %v1807_v29  ;;  %v1845_v12 = vunpack.c.l.b16 %v1814_v14  ;;  %v1842_v59 = vunpack.c.l.b16 %v1811_v32 }
0x1344   :  { %v1840_v33 = vunpack.c.l.b16 %v1809_v17  ;;  %v1841_v27 = vunpack.c.l.b16 %v1810_v44  ;;  %v1813_v50 = vpack.c.bf16 %v1805_v53, %v1805_v53  ;;  %v1812_v60 = vpack.c.bf16 %v1804_v54, %v1804_v54 }
0x1345   :  { %1850 = vperm.xlu2 %8067, %v1839_v35   ;;  %1847 = vperm.xlu0 %8070, %v1838_v25  }
0x1346   :  { %1853 = vperm.xlu1 %8071, %v1840_v33   ;;  %v1844_v38 = vunpack.c.l.b16 %v1813_v50  ;;  %v1843_v20 = vunpack.c.l.b16 %v1812_v60 }
0x134d   :  { %1868 = vperm.xlu2 %8067, %v1845_v12   ;;  %1859 = vperm.xlu0 %8070, %v1842_v59  }
0x134e   :  { %1856 = vperm.xlu1 %8071, %v1841_v27  }
0x1355   :  { %1865 = vperm.xlu0 %8070, %v1844_v38  }
0x1356   :  { %1862 = vperm.xlu1 %8071, %v1843_v20  }
0x139f   :  { %v1851_v11 = vpop.permute.xlu2 %1850 }
0x13a0   :  { %v1871_v51 = vperm.slane %v1851_v11, %v9052_v9 }
0x13a7   :  { %v1869_v41 = vpop.permute.xlu2 %1868 }
0x13a8   :  { %v1877_v31 = vperm.slane %v1869_v41, %v9052_v9 }
0x13b7   :  { %v1848_v24 = vpop.permute.xlu0 %1847 }
0x13b8   :  { %v1854_v47 = vpop.permute.xlu1 %1853  ;;  %v1870_v43 = vperm.slane %v1848_v24, %v9052_v9 }
0x13b9   :  { %v1872_v62 = vperm.slane %v1854_v47, %v9052_v9 }
0x13ba   :  { %v1878_v4 = vsel %vm232_vm1, %v1871_v51, %v1870_v43 }
0x13bb   :  { %v1879_v28 = vsel %vm234_vm2, %v1872_v62, %v1878_v4 }
0x13bf   :  { %v1860_v49 = vpop.permute.xlu0 %1859 }
0x13c0   :  { %v1857_v22 = vpop.permute.xlu1 %1856  ;;  %v1874_v26 = vperm.slane %v1860_v49, %v9052_v9 }
0x13c1   :  { %v1873_v21 = vperm.slane %v1857_v22, %v9052_v9 }
0x13c3   :  { %v1880_v10 = vsel %vm236_vm3, %v1873_v21, %v1879_v28 }
0x13c4   :  { %v1881_v16 = vsel %vm238_vm4, %v1874_v26, %v1880_v10 }
0x13c7   :  { %v1866_v1 = vpop.permute.xlu0 %1865 }
0x13c8   :  { %v1863_v55 = vpop.permute.xlu1 %1862  ;;  %v1876_v52 = vperm.slane %v1866_v1, %v9052_v9 }
0x13c9   :  { %v1875_v7 = vperm.slane %v1863_v55, %v9052_v9 }
0x13cb   :  { %v1882_v39 = vsel %vm240_vm5, %v1875_v7, %v1881_v16 }
0x13cc   :  { %v1883_v36 = vsel %vm242_vm6, %v1876_v52, %v1882_v39 }
0x13cd   :  { %v1884_v29 = vsel %vm244_vm7, %v1877_v31, %v1883_v36 }
0x13ce   :  { %v1885_v17 = vpack.c.b16 %v1884_v29, %v1884_v29  ;;  %v8804_v29 = vld [vmem:[#allocation4 + $0x30] sm:$0xff] }
0x13d0   :  { %7954 = vmatmul.msk.bf16.vlgmr.msra.gmra.mxu3 %vm189_vm0, %v1885_v17 }
0x13d1   :  { %3164 = vmatpush.bf16.msra.mxu3 %v9564_v61 }
0x13d5   :  { %3165 = vmatpush.bf16.msra.mxu3 %v9567_v57 }
0x1453   :  { %v1898_v8 = vpop.f32.mrf.mxu3 }
0x1454   :  { %v1899_v18 = vadd.f32 %v1898_v8, %v9640_v5 }
0x1456   :  { %v1902_v35 = vadd.f32 %v9571_v34, %v1899_v18 }
0x1458   :  { %8266 = vtanh.f32 %v1902_v35  ;;  %v7955_v25 = vmul.f32 -1.442695, %v1902_v35 }
0x145a   :  { %8268 = vpow2.f32 %v7955_v25 }
0x145b   :  { %v1900_v40 = vpop.f32.mrf.mxu3 }
0x145e   :  { %v8267_v13 = vpop.eup %8266 }
0x145f   :  { %1925 = vrot.lane.b32.xlu1 %v8267_v13, %s8943_s25 }
0x1460   :  { %v8269_v33 = vpop.eup %8268 }
0x1461   :  { %v1906_v6 = vadd.f32 1.0, %v8269_v33 }
0x1463   :  { %8270 = vrcp.f32 %v1906_v6  ;;  %v1918_v44 = vand.u32 2147483648, %v1906_v6  ;;  %vm1912_vm9 = vweird.f32 %v1906_v6  ;;  %v1916_v5 = vand.u32 2147483647, %v1906_v6 }
0x1465   :  { %v1919_v30 = vor.u32 1.1754944e-38, %v1918_v44  ;;  %vm1917_vm11 = vcmp.eq.f32.partialorder %v1916_v5, 8.507059e+37 }
0x1469   :  { %v8271_v14 = vpop.eup %8270 }
0x146a   :  { %v1908_v32 = vmul.f32 %v8271_v14, %v1906_v6  ;;  %vm1913_vm15 = vweird.f32 %v8271_v14 }
0x146b   :  { %vm1914_vm10 = vmor %vm1912_vm9, %vm1913_vm15 }
0x146c   :  { %v1909_v61 = vsub.f32 1.0, %v1908_v32 }
0x146e   :  { %v1910_v2 = vmul.f32 %v8271_v14, %v1909_v61 }
0x1470   :  { %v1911_v57 = vadd.f32 %v8271_v14, %v1910_v2 }
0x1472   :  { %v1915_v34 = vsel %vm1914_vm10, %v8271_v14, %v1911_v57  ;;  %v9810_v14 = vld [vmem:[#allocation2] sm:$0xff] }
0x1473   :  { %v1920_v12 = vsel %vm1917_vm11, %v1919_v30, %v1915_v34  ;;  %v9813_v30 = vld [vmem:[#allocation2 + $0x10] sm:$0xff] }
0x1474   :  { %v1923_v53 = vmul.f32 %v1920_v12, %v9577_v23 }
0x14d1   :  { %v1926_v37 = vpop.permute.xlu1 %1925 }
0x14d2   :  { %v1928_v59 = vmul.f32 %v1926_v37, %v1920_v12 }
0x14d4   :  { %1930 = vrot.lane.b32.xlu0 %v1928_v59, %s8943_s25 }
0x1546   :  { %v1931_v27 = vpop.permute.xlu0 %1930 }
0x1547   :  { %v9765_v54 = vadd.f32 %v1931_v27, %v1923_v53  ;;  %v9819_v53 = vld [vmem:[#allocation2 + $0x18] sm:$0xff] }
0x1549   :  { %8272 = vtanh.f32 %v9765_v54 }
0x154f   :  { %v8273_v50 = vpop.eup %8272 }
0x1550   :  { %1936 = vrot.lane.b32.xlu2 %v8273_v50, %s8943_s25  ;;  %v9822_v50 = vld [vmem:[#allocation2 + $0x28] sm:$0xff] }
0x15aa   :  { %v1937_v60 = vpop.permute.xlu2 %1936 }
0x15ab   :  { %v1939_v38 = vmul.f32 %v1937_v60, %v1920_v12  ;;  %v9816_v12 = vld [vmem:[#allocation2 + $0x8] sm:$0xff] }
0x15ad   :  { %v1940_v20 = vpack.c.bf16 %v1939_v38, %v1939_v38  ;;  %v3763_v24 = vrot.slane %v1939_v38, 4  ;;  %v3764_v47 = vrot.slane %v1939_v38, 5  ;;  %v3761_v11 = vrot.slane %v1939_v38, 2 }
0x15ae   :  { %v3762_v43 = vrot.slane %v1939_v38, 3  ;;  %v3760_v49 = vrot.slane %v1939_v38, 1  ;;  %v3831_v22 = vperm.slane %v1939_v38, 0  ;;  %v3765_v51 = vrot.slane %v1939_v38, 6 }
0x15af   :  { %v1943_v23 = vunpack.c.l.b16 %v1940_v20  ;;  %v3835_v62 = vperm.slane %v3763_v24, 0  ;;  %v3836_v4 = vperm.slane %v3764_v47, 0  ;;  %v3833_v21 = vperm.slane %v3761_v11, 0  ;;  %v9825_v20 = vld [vmem:[#allocation2 + $0x20] sm:$0xff] }
0x15b0   :  { %v3834_v28 = vperm.slane %v3762_v43, 0  ;;  %v3832_v26 = vperm.slane %v3760_v49, 0  ;;  %v9771_v41 = vsel %vm3929_vm12, %v9604_v56, %v3831_v22  ;;  %v3766_v10 = vrot.slane %v1939_v38, 7  ;;  %v9828_v49 = vld [vmem:[#allocation6] ss:$0 sm:$0xff] }
0x15b1   :  { %v1944_v1 = vpack.c.b16 %v1943_v23, %v1943_v23  ;;  %v9775_v55 = vsel %vm3929_vm12, %v9607_v58, %v3835_v62  ;;  %v9779_v52 = vsel %vm3929_vm12, %v9610_v63, %v3836_v4  ;;  %v9783_v7 = vsel %vm3929_vm12, %v9613_v15, %v3833_v21  ;;  %v9831_v62 = vld [vmem:[#allocation2 + $0x30] sm:$0xff] }
0x15b2   :  { %v9787_v16 = vsel %vm3929_vm12, %v9616_v3, %v3834_v28  ;;  %v9791_v56 = vsel %vm3929_vm12, %v9619_v46, %v3832_v26  ;;  %v3837_v31 = vperm.slane %v3765_v51, 0  ;;  %v3838_v39 = vperm.slane %v3766_v10, 0  ;;  %v8802_v46 = vld [vmem:[#allocation4 + $0x40] sm:$0xff] }
0x15b3   :  { %1945 = vrot.lane.b32.xlu1 %v1944_v1, %s8936_s26  ;;  %v1941_v15 = vpack.c.bf16 %v9765_v54, %v9765_v54 }
0x15b4   :  { %v9796_v58 = vsel %vm3929_vm12, %v9625_v48, %v3837_v31  ;;  %v9800_v63 = vsel %vm3929_vm12, %v9628_v42, %v3838_v39  ;;  %v8803_v48 = vld [vmem:[#allocation4 + $0x38] sm:$0xff]  ;;  %v8805_v42 = vld [vmem:[#allocation4 + $0x28] sm:$0xff] }
0x15b5   :  { %v9838_v39 = vld [vmem:[#allocation2 + $0x38] sm:$0xff] }
0x1625   :  { %v1946_v3 = vpop.permute.xlu1 %1945 }
0x1626   :  { %v1949_v36 = vsel %vm468_vm13, %v1946_v3, %v1941_v15  ;;  %7957 = vmatmul.msk.bf16.vlgmr.msrb.gmra.mxu1 %vm468_vm13, %v1946_v3 }
0x1627   :  { %7956 = vmatmul.msk.bf16.vlgmr.msrb.gmra.mxu2 %vm123_vm14, %v1949_v36  ;;  %3297 = vmatpush.bf16.msrb.mxu1 %v8802_v46 }
0x1628   :  { %3237 = vmatpush.bf16.msrb.mxu2 %v9181_v45 }
0x162b   :  { %3298 = vmatpush.bf16.msrb.mxu1 %v8803_v48 }
0x162f   :  { %3299 = vmatpush.bf16.msrb.mxu1 %v8804_v29 }
0x1633   :  { %3300 = vmatpush.bf16.msrb.mxu1 %v8805_v42 }
0x16a3   :  { %v9808_v17 = vpop.f32.mrf.mxu1 }
0x16aa   :  { %v1961_v8 = vpop.f32.mrf.mxu2 }
0x16ab   :  { %v2275_v18 = vpop.f32.mrf.mxu1  ;;  %v1973_v35 = vperm.slane %v1961_v8, 0  ;;  %v1967_v40 = vrot.slane %v1961_v8, 2  ;;  %v1966_v13 = vrot.slane %v1961_v8, 1  ;;  %v1968_v25 = vrot.slane %v1961_v8, 3 }
0x16ac   :  { %v1970_v33 = vrot.slane %v1961_v8, 5  ;;  %v1969_v6 = vrot.slane %v1961_v8, 4  ;;  %v1971_v34 = vrot.slane %v1961_v8, 6  ;;  %v1972_v47 = vrot.slane %v1961_v8, 7 }
0x16ad   :  { %v1989_v32 = vadd.f32 %v9810_v14, %v1973_v35  ;;  %v1975_v61 = vperm.slane %v1967_v40, 0  ;;  %v1974_v2 = vperm.slane %v1966_v13, 0  ;;  %v1976_v57 = vperm.slane %v1968_v25, 0 }
0x16ae   :  { %v1978_v44 = vperm.slane %v1970_v33, 0  ;;  %v1977_v5 = vperm.slane %v1969_v6, 0  ;;  %v1979_v11 = vperm.slane %v1971_v34, 0  ;;  %v1980_v51 = vperm.slane %v1972_v47, 0 }
0x16af   :  { %8274 = vtanh.f32 %v1989_v32  ;;  %v1991_v37 = vadd.f32 %v9813_v30, %v1975_v61  ;;  %v1990_v59 = vadd.f32 %v9816_v12, %v1974_v2  ;;  %v1992_v27 = vadd.f32 %v9819_v53, %v1976_v57 }
0x16b0   :  { %v1994_v60 = vadd.f32 %v9822_v50, %v1978_v44  ;;  %v1993_v24 = vadd.f32 %v9825_v20, %v1977_v5  ;;  %v1995_v4 = vadd.f32 %v9831_v62, %v1979_v11  ;;  %v1996_v15 = vadd.f32 %v9838_v39, %v1980_v51 }
0x16b1   :  { %8276 = vtanh.f32 %v1991_v37 }
0x16b2   :  { %v1963_v38 = vpop.f32.mrf.mxu2  ;;  %8278 = vtanh.f32 %v1990_v59 }
0x16b3   :  { %8280 = vtanh.f32 %v1992_v27 }
0x16b4   :  { %8282 = vtanh.f32 %v1994_v60 }
0x16b5   :  { %v8275_v43 = vpop.eup %8274  ;;  %8284 = vtanh.f32 %v1993_v24 }
0x16b6   :  { %v2005_v22 = vmul.f32 %v9828_v49, %v8275_v43  ;;  %8286 = vtanh.f32 %v1995_v4 }
0x16b7   :  { %v8277_v23 = vpop.eup %8276  ;;  %8288 = vtanh.f32 %v1996_v15 }
0x16b8   :  { %v8279_v21 = vpop.eup %8278  ;;  %v2013_v28 = vsel %vm189_vm0, %v2005_v22, 0.0  ;;  %v2007_v26 = vmul.f32 %v9828_v49, %v8277_v23 }
0x16b9   :  { %v8281_v10 = vpop.eup %8280  ;;  %2014 = vadd.xlane.f32.xlu0 %v2013_v28  ;;  %v2006_v1 = vmul.f32 %v9828_v49, %v8279_v21 }
0x16ba   :  { %v2019_v31 = vsel %vm189_vm0, %v2007_v26, 0.0  ;;  %v8283_v3 = vpop.eup %8282  ;;  %v2008_v48 = vmul.f32 %v9828_v49, %v8281_v10 }
0x16bb   :  { %2020 = vadd.xlane.f32.xlu1 %v2019_v31  ;;  %v2016_v36 = vsel %vm189_vm0, %v2006_v1, 0.0  ;;  %v8285_v46 = vpop.eup %8284  ;;  %v2010_v29 = vmul.f32 %v9828_v49, %v8283_v3 }
0x16bc   :  { %2017 = vadd.xlane.f32.xlu2 %v2016_v36  ;;  %v2009_v42 = vmul.f32 %v9828_v49, %v8285_v46  ;;  %v2022_v8 = vsel %vm189_vm0, %v2008_v48, 0.0  ;;  %v8287_v18 = vpop.eup %8286 }
0x16bd   :  { %v2028_v35 = vsel %vm189_vm0, %v2010_v29, 0.0  ;;  %v8289_v13 = vpop.eup %8288  ;;  %v2011_v25 = vmul.f32 %v9828_v49, %v8287_v18 }
0x16be   :  { %v2025_v40 = vsel %vm189_vm0, %v2009_v42, 0.0  ;;  %v2012_v33 = vmul.f32 %v9828_v49, %v8289_v13 }
0x16bf   :  { %v2031_v6 = vsel %vm189_vm0, %v2011_v25, 0.0 }
0x16c0   :  { %v2034_v32 = vsel %vm189_vm0, %v2012_v33, 0.0 }
0x16c1   :  { %2023 = vadd.xlane.f32.xlu0 %v2022_v8 }
0x16c3   :  { %2029 = vadd.xlane.f32.xlu1 %v2028_v35 }
0x16c4   :  { %2026 = vadd.xlane.f32.xlu2 %v2025_v40 }
0x16c9   :  { %2032 = vadd.xlane.f32.xlu0 %v2031_v6 }
0x16cc   :  { %2035 = vadd.xlane.f32.xlu2 %v2034_v32 }
0x172c   :  { %v2015_v61 = vpop.xlane.xlu0 %2014 }
0x172d   :  { %v2045_v5 = vperm.slane %v2015_v61, %v9052_v9 }
0x172e   :  { %v2021_v2 = vpop.xlane.xlu1 %2020 }
0x172f   :  { %v2018_v57 = vpop.xlane.xlu2 %2017  ;;  %v2047_v34 = vperm.slane %v2021_v2, %v9052_v9 }
0x1730   :  { %v2046_v44 = vperm.slane %v2018_v57, %v9052_v9 }
0x1732   :  { %v2053_v37 = vsel %vm232_vm1, %v2046_v44, %v2045_v5 }
0x1733   :  { %v2054_v60 = vsel %vm234_vm2, %v2047_v34, %v2053_v37 }
0x1734   :  { %v2024_v59 = vpop.xlane.xlu0 %2023 }
0x1735   :  { %v2048_v27 = vperm.slane %v2024_v59, %v9052_v9 }
0x1736   :  { %v2030_v38 = vpop.xlane.xlu1 %2029 }
0x1737   :  { %v2027_v24 = vpop.xlane.xlu2 %2026  ;;  %v2055_v47 = vsel %vm236_vm3, %v2048_v27, %v2054_v60  ;;  %v2050_v43 = vperm.slane %v2030_v38, %v9052_v9 }
0x1738   :  { %v2049_v11 = vperm.slane %v2027_v24, %v9052_v9 }
0x173a   :  { %v2056_v22 = vsel %vm238_vm4, %v2049_v11, %v2055_v47 }
0x173b   :  { %v2057_v4 = vsel %vm240_vm5, %v2050_v43, %v2056_v22 }
0x173c   :  { %v2033_v51 = vpop.xlane.xlu0 %2032 }
0x173d   :  { %v2051_v23 = vperm.slane %v2033_v51, %v9052_v9 }
0x173f   :  { %v2036_v21 = vpop.xlane.xlu2 %2035  ;;  %v2058_v28 = vsel %vm242_vm6, %v2051_v23, %v2057_v4  ;;  %v9903_v4 = vld [vmem:[%s11847_s0 + $0x10] sm:$0xff] }
0x1740   :  { %v2052_v26 = vperm.slane %v2036_v21, %v9052_v9 }
0x1742   :  { %v2059_v10 = vsel %vm244_vm7, %v2052_v26, %v2058_v28  ;;  %v9909_v28 = vld [vmem:[%s11847_s0 + $0x8] sm:$0xff] }
0x1743   :  { %v2061_v1 = vsel %vm189_vm0, %v2059_v10, -inf  ;;  %v2189_v26 = vperm.slane %v9909_v28, 4  ;;  %v9915_v10 = vld [vmem:[%s11847_s0 + $0x20] sm:$0xff] }
0x1744   :  { %2062 = vmax.xlane.f32.xlu1 %v2061_v1  ;;  %v2210_v1 = vperm.slane %v9915_v10, 4 }
0x17b7   :  { %v2063_v31 = vpop.xlane.xlu1 %2062 }
0x17b8   :  { %v2065_v15 = vperm.slane %v2063_v31, 0  ;;  %v2066_v3 = vperm.slane %v2063_v31, 1  ;;  %v2067_v36 = vperm.slane %v2063_v31, 2  ;;  %v2071_v46 = vperm.slane %v2063_v31, 6 }
0x17b9   :  { %v2068_v8 = vperm.slane %v2063_v31, 3  ;;  %v2069_v18 = vperm.slane %v2063_v31, 4  ;;  %v2072_v44 = vperm.slane %v2063_v31, 7  ;;  %v2070_v37 = vperm.slane %v2063_v31, 5 }
0x17ba   :  { %v2081_v48 = vsub.f32 %v2015_v61, %v2065_v15  ;;  %v2082_v29 = vsub.f32 %v2018_v57, %v2066_v3  ;;  %v2083_v42 = vsub.f32 %v2021_v2, %v2067_v36  ;;  %v2087_v25 = vsub.f32 %v2033_v51, %v2071_v46  ;;  %v9897_v51 = vld [vmem:[%s11847_s0] sm:$0xff]  ;;  %v9921_v15 = vld [vmem:[%s11847_s0 + $0x18] sm:$0xff]  ;;  %v9927_v46 = vld [vmem:[%s11847_s0 + $0x30] sm:$0xff] }
0x17bb   :  { %v2085_v33 = vsub.f32 %v2027_v24, %v2069_v18  ;;  %v2084_v6 = vsub.f32 %v2024_v59, %v2068_v8  ;;  %v2088_v27 = vsub.f32 %v2036_v21, %v2072_v44  ;;  %v2086_v59 = vsub.f32 %v2030_v38, %v2070_v37 }
0x17bc   :  { %v2089_v35 = vmul.f32 1.442695, %v2081_v48  ;;  %v2091_v40 = vmul.f32 1.442695, %v2082_v29  ;;  %v2093_v13 = vmul.f32 1.442695, %v2083_v42 }
0x17bd   :  { %v2101_v32 = vmul.f32 1.442695, %v2087_v25  ;;  %v2097_v5 = vmul.f32 1.442695, %v2085_v33  ;;  %v2095_v61 = vmul.f32 1.442695, %v2084_v6 }
0x17be   :  { %8290 = vpow2.f32 %v2093_v13  ;;  %v2103_v60 = vmul.f32 1.442695, %v2088_v27  ;;  %v2099_v47 = vmul.f32 1.442695, %v2086_v59  ;;  %v2182_v23 = vperm.slane %v9897_v51, 4  ;;  %v9933_v42 = vld [vmem:[%s11847_s0 + $0x28] sm:$0xff] }
0x17bf   :  { %8292 = vpow2.f32 %v2091_v40  ;;  %v2196_v21 = vperm.slane %v9903_v4, 4  ;;  %v2203_v3 = vperm.slane %v9921_v15, 4  ;;  %v2224_v48 = vperm.slane %v9927_v46, 4 }
0x17c0   :  { %8294 = vpow2.f32 %v2089_v35  ;;  %v2217_v8 = vperm.slane %v9933_v42, 4 }
0x17c1   :  { %8296 = vpow2.f32 %v2101_v32  ;;  %v9944_v32 = vld [vmem:[%s11847_s0 + $0x38] sm:$0xff] }
0x17c2   :  { %8298 = vpow2.f32 %v2097_v5  ;;  %v2231_v44 = vperm.slane %v9944_v32, 4 }
0x17c3   :  { %8300 = vpow2.f32 %v2095_v61 }
0x17c4   :  { %v9868_v34 = vpop.eup %8290  ;;  %8302 = vpow2.f32 %v2103_v60 }
0x17c5   :  { %v9870_v57 = vpop.eup %8292  ;;  %2120 = vperm.xlu1 %8071, %v9868_v34   ;;  %8304 = vpow2.f32 %v2099_v47 }
0x17c6   :  { %v9873_v2 = vpop.eup %8294  ;;  %2117 = vperm.xlu2 %8067, %v9870_v57  }
0x17c7   :  { %2114 = vperm.xlu0 %8070, %v9873_v2   ;;  %v9877_v24 = vpop.eup %8296 }
0x17c8   :  { %v9879_v11 = vpop.eup %8298 }
0x17c9   :  { %v9882_v43 = vpop.eup %8300 }
0x17ca   :  { %v9886_v22 = vpop.eup %8302 }
0x17cb   :  { %v9889_v38 = vpop.eup %8304 }
0x17cd   :  { %2132 = vperm.xlu1 %8071, %v9877_v24  }
0x17ce   :  { %2126 = vperm.xlu2 %8067, %v9879_v11  }
0x17cf   :  { %2123 = vperm.xlu0 %8070, %v9882_v43  }
0x17d5   :  { %8072 = vset.pattern.permute.xlu1 %v9095_v19 }
0x17d6   :  { %2135 = vperm.xlu2 %8067, %v9886_v22  }
0x17d7   :  { %2129 = vperm.xlu0 %8070, %v9889_v38  }
0x17dd   :  { %2187 = vperm.xlu1 %8072, %v2182_v23  }
0x17de   :  { %8073 = vset.pattern.permute.xlu2 %v9095_v19 }
0x17e5   :  { %2201 = vperm.xlu1 %8072, %v2196_v21  }
0x17e6   :  { %2194 = vperm.xlu2 %8073, %v2189_v26  }
0x17ed   :  { %2215 = vperm.xlu1 %8072, %v2210_v1  }
0x17ee   :  { %2208 = vperm.xlu2 %8073, %v2203_v3  }
0x17f5   :  { %2229 = vperm.xlu1 %8072, %v2224_v48  }
0x17f6   :  { %2222 = vperm.xlu2 %8073, %v2217_v8  }
0x17fd   :  { %8074 = vset.pattern.permute.xlu1 %v11853_v0 }
0x17fe   :  { %2236 = vperm.xlu2 %8073, %v2231_v44  }
0x1806   :  { %8075 = vset.pattern.permute.xlu2 %v11853_v0 }
0x1820   :  { %v2118_v31 = vpop.permute.xlu2 %2117 }
0x1821   :  { %v2138_v13 = vperm.slane %v2118_v31, %v9052_v9 }
0x1828   :  { %v2127_v18 = vpop.permute.xlu2 %2126 }
0x1829   :  { %v2141_v27 = vperm.slane %v2127_v18, %v9052_v9 }
0x1830   :  { %v2136_v59 = vpop.permute.xlu2 %2135 }
0x1831   :  { %v2144_v26 = vperm.slane %v2136_v59, %v9052_v9 }
0x1837   :  { %v2121_v29 = vpop.permute.xlu1 %2120 }
0x1838   :  { %v2139_v25 = vperm.slane %v2121_v29, %v9052_v9 }
0x1839   :  { %v2115_v36 = vpop.permute.xlu0 %2114 }
0x183a   :  { %v2137_v35 = vperm.slane %v2115_v36, %v9052_v9 }
0x183c   :  { %v2145_v33 = vsel %vm232_vm1, %v2138_v13, %v2137_v35 }
0x183d   :  { %v2146_v5 = vsel %vm234_vm2, %v2139_v25, %v2145_v33 }
0x183f   :  { %v2133_v37 = vpop.permute.xlu1 %2132 }
0x1840   :  { %v2143_v23 = vperm.slane %v2133_v37, %v9052_v9  ;;  %v2195_v8 = vpop.permute.xlu2 %2194 }
0x1841   :  { %v2124_v40 = vpop.permute.xlu0 %2123 }
0x1842   :  { %v2140_v6 = vperm.slane %v2124_v40, %v9052_v9 }
0x1844   :  { %v2147_v61 = vsel %vm236_vm3, %v2140_v6, %v2146_v5 }
0x1845   :  { %v2148_v21 = vsel %vm238_vm4, %v2141_v27, %v2147_v61 }
0x1848   :  { %v2209_v44 = vpop.permute.xlu2 %2208 }
0x1849   :  { %v2130_v60 = vpop.permute.xlu0 %2129 }
0x184a   :  { %v2142_v47 = vperm.slane %v2130_v60, %v9052_v9 }
0x184c   :  { %v2149_v1 = vsel %vm240_vm5, %v2142_v47, %v2148_v21 }
0x184d   :  { %v2150_v31 = vsel %vm242_vm6, %v2143_v23, %v2149_v1 }
0x184e   :  { %v2151_v3 = vsel %vm244_vm7, %v2144_v26, %v2150_v31 }
0x184f   :  { %v2153_v36 = vsel %vm189_vm0, %v2151_v3, 0.0  ;;  %v2188_v48 = vpop.permute.xlu1 %2187 }
0x1850   :  { %2154 = vadd.xlane.f32.xlu0 %v2153_v36 }
0x1857   :  { %v2202_v18 = vpop.permute.xlu1 %2201 }
0x185f   :  { %v2216_v27 = vpop.permute.xlu1 %2215 }
0x18c3   :  { %v2155_v29 = vpop.xlane.xlu0 %2154 }
0x18c4   :  { %8306 = vrcp.f32 %v2155_v29 }
0x18ca   :  { %v8307_v35 = vpop.eup %8306 }
0x18cb   :  { %v2162_v40 = vperm.slane %v8307_v35, 4  ;;  %v2160_v13 = vperm.slane %v8307_v35, 2  ;;  %v2159_v25 = vperm.slane %v8307_v35, 1  ;;  %v2158_v33 = vperm.slane %v8307_v35, 0 }
0x18cc   :  { %v2161_v6 = vperm.slane %v8307_v35, 3  ;;  %v2164_v3 = vperm.slane %v8307_v35, 6 }
0x18cd   :  { %v2176_v5 = vmul.f32 %v9868_v34, %v2160_v13  ;;  %v2175_v37 = vmul.f32 %v9870_v57, %v2159_v25  ;;  %v2174_v61 = vmul.f32 %v9873_v2, %v2158_v33  ;;  %v2178_v59 = vmul.f32 %v9879_v11, %v2162_v40  ;;  %v2223_v11 = vpop.permute.xlu2 %2222 }
0x18ce   :  { %v2177_v21 = vmul.f32 %v9882_v43, %v2161_v6  ;;  %v2163_v13 = vperm.slane %v8307_v35, 5  ;;  %v2230_v43 = vpop.permute.xlu1 %2229  ;;  %v2165_v6 = vperm.slane %v8307_v35, 7 }
0x18cf   :  { %v2248_v60 = vmul.f32 %v2202_v18, %v2176_v5  ;;  %v2247_v47 = vmul.f32 %v2195_v8, %v2175_v37  ;;  %v2246_v23 = vmul.f32 %v2188_v48, %v2174_v61  ;;  %v2250_v36 = vmul.f32 %v2216_v27, %v2178_v59 }
0x18d0   :  { %v2249_v57 = vmul.f32 %v2209_v44, %v2177_v21  ;;  %v2180_v8 = vmul.f32 %v9877_v24, %v2164_v3  ;;  %v2179_v48 = vmul.f32 %v9889_v38, %v2163_v13 }
0x18d1   :  { %v2256_v26 = vpack.c.bf16 %v2248_v60, %v2248_v60  ;;  %v2255_v1 = vpack.c.bf16 %v2247_v47, %v2247_v47  ;;  %v2254_v31 = vpack.c.bf16 %v2246_v23, %v2246_v23  ;;  %v2258_v2 = vpack.c.bf16 %v2250_v36, %v2250_v36 }
0x18d2   :  { %v2257_v18 = vpack.c.bf16 %v2249_v57, %v2249_v57  ;;  %v2252_v25 = vmul.f32 %v2230_v43, %v2180_v8  ;;  %v2251_v33 = vmul.f32 %v2223_v11, %v2179_v48 }
0x18d3   :  { %v2287_v29 = vunpack.c.l.b16 %v2256_v26  ;;  %v2286_v0 = vunpack.c.l.b16 %v2255_v1  ;;  %v2285_v34 = vunpack.c.l.b16 %v2254_v31  ;;  %v2289_v40 = vunpack.c.l.b16 %v2258_v2 }
0x18d4   :  { %v2288_v5 = vunpack.c.l.b16 %v2257_v18  ;;  %v2260_v37 = vpack.c.bf16 %v2252_v25, %v2252_v25  ;;  %v2259_v44 = vpack.c.bf16 %v2251_v33, %v2251_v33 }
0x18d5   :  { %2300 = vperm.xlu0 %8070, %v2287_v29   ;;  %2297 = vperm.xlu2 %8075, %v2286_v0   ;;  %v2181_v0 = vmul.f32 %v9886_v22, %v2165_v6  ;;  %v2237_v61 = vpop.permute.xlu2 %2236 }
0x18d6   :  { %2294 = vperm.xlu1 %8074, %v2285_v34   ;;  %v2291_v27 = vunpack.c.l.b16 %v2260_v37  ;;  %v2290_v59 = vunpack.c.l.b16 %v2259_v44  ;;  %v8824_v37 = vld [vmem:[#allocation4 + $0x8] sm:$0xff] }
0x18d7   :  { %v2253_v60 = vmul.f32 %v2237_v61, %v2181_v0  ;;  %v9985_v61 = vld [vmem:[#allocation6 + $0x8] ss:$0 sm:$0xff] }
0x18d9   :  { %v2261_v24 = vpack.c.bf16 %v2253_v60, %v2253_v60 }
0x18db   :  { %v2292_v38 = vunpack.c.l.b16 %v2261_v24 }
0x18dd   :  { %2306 = vperm.xlu2 %8075, %v2289_v40  }
0x18de   :  { %2303 = vperm.xlu1 %8074, %v2288_v5   ;;  %v8823_v5 = vld [vmem:[#allocation4 + $0x10] sm:$0xff] }
0x18e5   :  { %2312 = vperm.xlu2 %8075, %v2291_v27  }
0x18e6   :  { %2309 = vperm.xlu1 %8074, %v2290_v59  }
0x18ee   :  { %2315 = vperm.xlu1 %8074, %v2292_v38  }
0x192f   :  { %v2298_v23 = vpop.permute.xlu2 %2297 }
0x1930   :  { %v2318_v31 = vperm.slane %v2298_v23, %v9052_v9 }
0x1937   :  { %v2307_v35 = vpop.permute.xlu2 %2306 }
0x1938   :  { %v2321_v2 = vperm.slane %v2307_v35, %v9052_v9 }
0x193f   :  { %v2313_v11 = vpop.permute.xlu2 %2312 }
0x1940   :  { %v2323_v43 = vperm.slane %v2313_v11, %v9052_v9 }
0x1947   :  { %v2301_v26 = vpop.permute.xlu0 %2300 }
0x1948   :  { %v2295_v47 = vpop.permute.xlu1 %2294  ;;  %v2319_v22 = vperm.slane %v2301_v26, %v9052_v9 }
0x1949   :  { %v2317_v1 = vperm.slane %v2295_v47, %v9052_v9 }
0x194b   :  { %v2325_v3 = vsel %vm232_vm1, %v2318_v31, %v2317_v1 }
0x194c   :  { %v2326_v34 = vsel %vm234_vm2, %v2319_v22, %v2325_v3 }
0x1950   :  { %v2304_v21 = vpop.permute.xlu1 %2303 }
0x1951   :  { %v2320_v36 = vperm.slane %v2304_v21, %v9052_v9 }
0x1953   :  { %v2327_v13 = vsel %vm236_vm3, %v2320_v36, %v2326_v34 }
0x1954   :  { %v2328_v8 = vsel %vm238_vm4, %v2321_v2, %v2327_v13 }
0x1958   :  { %v2310_v29 = vpop.permute.xlu1 %2309 }
0x1959   :  { %v2322_v57 = vperm.slane %v2310_v29, %v9052_v9 }
0x195b   :  { %v2329_v48 = vsel %vm240_vm5, %v2322_v57, %v2328_v8 }
0x195c   :  { %v2330_v25 = vsel %vm242_vm6, %v2323_v43, %v2329_v48 }
0x1960   :  { %v2316_v18 = vpop.permute.xlu1 %2315 }
0x1961   :  { %v2324_v40 = vperm.slane %v2316_v18, %v9052_v9 }
0x1963   :  { %v2331_v33 = vsel %vm244_vm7, %v2324_v40, %v2330_v25 }
0x1964   :  { %v2332_v6 = vpack.c.b16 %v2331_v33, %v2331_v33 }
0x1966   :  { %7958 = vmatmul.msk.bf16.vlgmr.msrb.gmra.mxu0 %vm189_vm0, %v2332_v6 }
0x1967   :  { %3611 = vmatpush.bf16.msrb.mxu0 %v8823_v5 }
0x196b   :  { %3612 = vmatpush.bf16.msrb.mxu0 %v8824_v37 }
0x19e3   :  { %v2345_v44 = vpop.f32.mrf.mxu0 }
0x19e4   :  { %v2346_v0 = vadd.f32 %v2345_v44, %v9808_v17 }
0x19e6   :  { %v2349_v27 = vadd.f32 %v9985_v61, %v2346_v0 }
0x19e8   :  { %8308 = vtanh.f32 %v2349_v27  ;;  %v7959_v24 = vmul.f32 -1.442695, %v2349_v27 }
0x19ea   :  { %8310 = vpow2.f32 %v7959_v24 }
0x19eb   :  { %v2347_v59 = vpop.f32.mrf.mxu0 }
0x19ee   :  { %v8309_v60 = vpop.eup %8308 }
0x19ef   :  { %2372 = vrot.lane.b32.xlu0 %v8309_v60, %s8943_s25 }
0x19f0   :  { %v8311_v38 = vpop.eup %8310 }
0x19f1   :  { %v2353_v47 = vadd.f32 1.0, %v8311_v38 }
0x19f3   :  { %8312 = vrcp.f32 %v2353_v47  ;;  %v2365_v17 = vand.u32 2147483648, %v2353_v47  ;;  %vm2359_vm9 = vweird.f32 %v2353_v47  ;;  %v2363_v31 = vand.u32 2147483647, %v2353_v47 }
0x19f5   :  { %v2366_v3 = vor.u32 1.1754944e-38, %v2365_v17  ;;  %vm2364_vm11 = vcmp.eq.f32.partialorder %v2363_v31, 8.507059e+37 }
0x19f9   :  { %v8313_v23 = vpop.eup %8312 }
0x19fa   :  { %v2355_v21 = vmul.f32 %v8313_v23, %v2353_v47  ;;  %vm2360_vm15 = vweird.f32 %v8313_v23 }
0x19fb   :  { %vm2361_vm10 = vmor %vm2359_vm9, %vm2360_vm15 }
0x19fc   :  { %v2356_v35 = vsub.f32 1.0, %v2355_v21 }
0x19fe   :  { %v2357_v26 = vmul.f32 %v8313_v23, %v2356_v35 }
0x1a00   :  { %v2358_v1 = vadd.f32 %v8313_v23, %v2357_v26 }
0x1a02   :  { %v2362_v22 = vsel %vm2361_vm10, %v8313_v23, %v2358_v1  ;;  %vm3946_vm10 = vcmask 1044480  }
0x1a03   :  { %v2367_v29 = vsel %vm2364_vm11, %v2366_v3, %v2362_v22 }
0x1a04   :  { %v2370_v13 = vmul.f32 %v2367_v29, %v9765_v54 }
0x1a61   :  { %v2373_v36 = vpop.permute.xlu0 %2372 }
0x1a62   :  { %v2375_v34 = vmul.f32 %v2373_v36, %v2367_v29 }
0x1a64   :  { %2377 = vrot.lane.b32.xlu2 %v2375_v34, %s8943_s25 }
0x1abe   :  { %v2378_v57 = vpop.permute.xlu2 %2377 }
0x1abf   :  { %v9991_v2 = vadd.f32 %v2378_v57, %v2370_v13 }
0x1ac1   :  { %8314 = vtanh.f32 %v9991_v2 }
0x1ac7   :  { %v8315_v11 = vpop.eup %8314 }
0x1ac8   :  { %2383 = vrot.lane.b32.xlu1 %v8315_v11, %s8943_s25 }
0x1b3a   :  { %v2384_v8 = vpop.permute.xlu1 %2383 }
0x1b3b   :  { %v2386_v48 = vmul.f32 %v2384_v8, %v2367_v29 }
0x1b3d   :  { %v2387_v43 = vpack.c.bf16 %v2386_v48, %v2386_v48  ;;  %v3771_v18 = vrot.slane %v2386_v48, 4  ;;  %v3772_v40 = vrot.slane %v2386_v48, 5  ;;  %v3769_v25 = vrot.slane %v2386_v48, 2 }
0x1b3e   :  { %v3770_v33 = vrot.slane %v2386_v48, 3  ;;  %v3768_v6 = vrot.slane %v2386_v48, 1  ;;  %v3847_v5 = vperm.slane %v2386_v48, 0  ;;  %v3773_v37 = vrot.slane %v2386_v48, 6 }
0x1b3f   :  { %v2390_v44 = vunpack.c.l.b16 %v2387_v43  ;;  %v3851_v54 = vperm.slane %v3771_v18, 0  ;;  %v3852_v0 = vperm.slane %v3772_v40, 0  ;;  %v3849_v27 = vperm.slane %v3769_v25, 0 }
0x1b40   :  { %v3850_v59 = vperm.slane %v3770_v33, 0  ;;  %v3848_v60 = vperm.slane %v3768_v6, 0  ;;  %v9997_v24 = vsel %vm543_vm8, %v9771_v41, %v3847_v5  ;;  %v3774_v38 = vrot.slane %v2386_v48, 7 }
0x1b41   :  { %v2391_v47 = vpack.c.b16 %v2390_v44, %v2390_v44  ;;  %v10001_v23 = vsel %vm543_vm8, %v9775_v55, %v3851_v54  ;;  %v10005_v21 = vsel %vm543_vm8, %v9779_v52, %v3852_v0  ;;  %v10009_v35 = vsel %vm543_vm8, %v9783_v7, %v3849_v27 }
0x1b42   :  { %v10013_v26 = vsel %vm543_vm8, %v9787_v16, %v3850_v59  ;;  %v10017_v41 = vsel %vm543_vm8, %v9791_v56, %v3848_v60  ;;  %v3853_v1 = vperm.slane %v3773_v37, 0  ;;  %v3854_v17 = vperm.slane %v3774_v38, 0 }
0x1b43   :  { %2392 = vrot.lane.b32.xlu0 %v2391_v47, %s8936_s26  ;;  %v2388_v7 = vpack.c.bf16 %v9991_v2, %v9991_v2 }
0x1b44   :  { %v10022_v55 = vsel %vm543_vm8, %v9796_v58, %v3853_v1  ;;  %v10026_v52 = vsel %vm543_vm8, %v9800_v63, %v3854_v17 }
0x1bb5   :  { %v2393_v16 = vpop.permute.xlu0 %2392 }
0x1bb6   :  { %v2396_v31 = vsel %vm468_vm13, %v2393_v16, %v2388_v7  ;;  %7961 = vmatmul.msk.bf16.vlgmr.msra.gmra.mxu2 %vm468_vm13, %v2393_v16 }
0x1bb7   :  { %7960 = vmatmul.msk.bf16.vlgmr.msrb.gmra.mxu3 %vm123_vm14, %v2396_v31 }
0x1bb8   :  { %3684 = vmatpush.bf16.msrb.mxu3 %v9181_v45 }
0x1c39   :  { %v10034_v56 = vpop.f32.mrf.mxu2 }
0x1c3a   :  { %v2408_v58 = vpop.f32.mrf.mxu3 }
0x1c3b   :  { %v2420_v22 = vperm.slane %v2408_v58, 0  ;;  %v2414_v3 = vrot.slane %v2408_v58, 2  ;;  %v2413_v36 = vrot.slane %v2408_v58, 1  ;;  %v2415_v63 = vrot.slane %v2408_v58, 3 }
0x1c3c   :  { %v2418_v29 = vrot.slane %v2408_v58, 6  ;;  %v2416_v34 = vrot.slane %v2408_v58, 4  ;;  %v2417_v18 = vrot.slane %v2408_v58, 5  ;;  %v2419_v37 = vrot.slane %v2408_v58, 7 }
0x1c3d   :  { %v2436_v13 = vadd.f32 %v9810_v14, %v2420_v22  ;;  %v2422_v57 = vperm.slane %v2414_v3, 0  ;;  %v2421_v11 = vperm.slane %v2413_v36, 0  ;;  %v2423_v8 = vperm.slane %v2415_v63, 0 }
0x1c3e   :  { %v2426_v48 = vperm.slane %v2418_v29, 0  ;;  %v2424_v43 = vperm.slane %v2416_v34, 0  ;;  %v2425_v44 = vperm.slane %v2417_v18, 0 }
0x1c3f   :  { %8316 = vtanh.f32 %v2436_v13  ;;  %v2438_v45 = vadd.f32 %v9813_v30, %v2422_v57  ;;  %v2437_v40 = vadd.f32 %v9816_v12, %v2421_v11  ;;  %v2439_v25 = vadd.f32 %v9819_v53, %v2423_v8 }
0x1c40   :  { %v2442_v6 = vadd.f32 %v9831_v62, %v2426_v48  ;;  %v2440_v14 = vadd.f32 %v9825_v20, %v2424_v43  ;;  %v2427_v30 = vperm.slane %v2419_v37, 0  ;;  %v2441_v53 = vadd.f32 %v9822_v50, %v2425_v44 }
0x1c41   :  { %v2722_v33 = vpop.f32.mrf.mxu2  ;;  %8318 = vtanh.f32 %v2438_v45 }
0x1c42   :  { %v2410_v5 = vpop.f32.mrf.mxu3  ;;  %8320 = vtanh.f32 %v2437_v40  ;;  %v2443_v47 = vadd.f32 %v9838_v39, %v2427_v30 }
0x1c43   :  { %8322 = vtanh.f32 %v2439_v25 }
0x1c44   :  { %8324 = vtanh.f32 %v2442_v6 }
0x1c45   :  { %v8317_v54 = vpop.eup %8316  ;;  %8326 = vtanh.f32 %v2440_v14 }
0x1c46   :  { %v2452_v0 = vmul.f32 %v9828_v49, %v8317_v54  ;;  %8328 = vtanh.f32 %v2441_v53 }
0x1c47   :  { %v8319_v12 = vpop.eup %8318  ;;  %8330 = vtanh.f32 %v2443_v47 }
0x1c48   :  { %v8321_v27 = vpop.eup %8320  ;;  %v2460_v59 = vsel %vm189_vm0, %v2452_v0, 0.0  ;;  %v2454_v62 = vmul.f32 %v9828_v49, %v8319_v12 }
0x1c49   :  { %v8323_v60 = vpop.eup %8322  ;;  %2461 = vadd.xlane.f32.xlu2 %v2460_v59  ;;  %v2453_v20 = vmul.f32 %v9828_v49, %v8321_v27 }
0x1c4a   :  { %v2466_v38 = vsel %vm189_vm0, %v2454_v62, 0.0  ;;  %v8325_v1 = vpop.eup %8324  ;;  %v2455_v50 = vmul.f32 %v9828_v49, %v8323_v60 }
0x1c4b   :  { %2467 = vadd.xlane.f32.xlu0 %v2466_v38  ;;  %v2463_v17 = vsel %vm189_vm0, %v2453_v20, 0.0  ;;  %v8327_v7 = vpop.eup %8326  ;;  %v2458_v16 = vmul.f32 %v9828_v49, %v8325_v1 }
0x1c4c   :  { %2464 = vadd.xlane.f32.xlu1 %v2463_v17  ;;  %v2456_v31 = vmul.f32 %v9828_v49, %v8327_v7  ;;  %v2469_v58 = vsel %vm189_vm0, %v2455_v50, 0.0  ;;  %v8329_v22 = vpop.eup %8328 }
0x1c4d   :  { %v2478_v39 = vsel %vm189_vm0, %v2458_v16, 0.0  ;;  %v8331_v36 = vpop.eup %8330  ;;  %v2457_v63 = vmul.f32 %v9828_v49, %v8329_v22 }
0x1c4e   :  { %v2472_v3 = vsel %vm189_vm0, %v2456_v31, 0.0  ;;  %v2459_v29 = vmul.f32 %v9828_v49, %v8331_v36 }
0x1c4f   :  { %v2475_v34 = vsel %vm189_vm0, %v2457_v63, 0.0 }
0x1c50   :  { %v2481_v13 = vsel %vm189_vm0, %v2459_v29, 0.0 }
0x1c51   :  { %2470 = vadd.xlane.f32.xlu2 %v2469_v58 }
0x1c53   :  { %2479 = vadd.xlane.f32.xlu0 %v2478_v39 }
0x1c54   :  { %2473 = vadd.xlane.f32.xlu1 %v2472_v3 }
0x1c59   :  { %2476 = vadd.xlane.f32.xlu2 %v2475_v34 }
0x1c5c   :  { %2482 = vadd.xlane.f32.xlu1 %v2481_v13 }
0x1cbc   :  { %v2462_v57 = vpop.xlane.xlu2 %2461 }
0x1cbd   :  { %v2492_v18 = vperm.slane %v2462_v57, %v9052_v9 }
0x1cbe   :  { %v2468_v8 = vpop.xlane.xlu0 %2467 }
0x1cbf   :  { %v2465_v11 = vpop.xlane.xlu1 %2464  ;;  %v2494_v45 = vperm.slane %v2468_v8, %v9052_v9 }
0x1cc0   :  { %v2493_v48 = vperm.slane %v2465_v11, %v9052_v9 }
0x1cc2   :  { %v2500_v40 = vsel %vm232_vm1, %v2493_v48, %v2492_v18 }
0x1cc3   :  { %v2501_v33 = vsel %vm234_vm2, %v2494_v45, %v2500_v40 }
0x1cc4   :  { %v2471_v43 = vpop.xlane.xlu2 %2470 }
0x1cc5   :  { %v2495_v49 = vperm.slane %v2471_v43, %v9052_v9 }
0x1cc6   :  { %v2480_v14 = vpop.xlane.xlu0 %2479 }
0x1cc7   :  { %v2474_v25 = vpop.xlane.xlu1 %2473  ;;  %v2502_v5 = vsel %vm236_vm3, %v2495_v49, %v2501_v33  ;;  %v2498_v54 = vperm.slane %v2480_v14, %v9052_v9 }
0x1cc8   :  { %v2496_v6 = vperm.slane %v2474_v25, %v9052_v9 }
0x1cca   :  { %v2503_v0 = vsel %vm238_vm4, %v2496_v6, %v2502_v5 }
0x1ccc   :  { %v2477_v37 = vpop.xlane.xlu2 %2476 }
0x1ccd   :  { %v2497_v44 = vperm.slane %v2477_v37, %v9052_v9 }
0x1ccf   :  { %v2483_v30 = vpop.xlane.xlu1 %2482  ;;  %v2504_v12 = vsel %vm240_vm5, %v2497_v44, %v2503_v0  ;;  %v2629_v44 = vperm.slane %v9897_v51, 5  ;;  %v2650_v51 = vperm.slane %v9921_v15, 5 }
0x1cd0   :  { %v2499_v53 = vperm.slane %v2483_v30, %v9052_v9  ;;  %v2505_v27 = vsel %vm242_vm6, %v2498_v54, %v2504_v12  ;;  %v2657_v54 = vperm.slane %v9915_v10, 5  ;;  %v2671_v12 = vperm.slane %v9927_v46, 5 }
0x1cd2   :  { %v2506_v59 = vsel %vm244_vm7, %v2499_v53, %v2505_v27 }
0x1cd3   :  { %v2508_v62 = vsel %vm189_vm0, %v2506_v59, -inf }
0x1cd4   :  { %2509 = vmax.xlane.f32.xlu2 %v2508_v62 }
0x1d47   :  { %v2510_v60 = vpop.xlane.xlu2 %2509 }
0x1d48   :  { %v2512_v20 = vperm.slane %v2510_v60, 0  ;;  %v2513_v38 = vperm.slane %v2510_v60, 1  ;;  %v2514_v47 = vperm.slane %v2510_v60, 2  ;;  %v2518_v1 = vperm.slane %v2510_v60, 6 }
0x1d49   :  { %v2515_v16 = vperm.slane %v2510_v60, 3  ;;  %v2517_v31 = vperm.slane %v2510_v60, 5  ;;  %v2516_v48 = vperm.slane %v2510_v60, 4  ;;  %v2519_v45 = vperm.slane %v2510_v60, 7 }
0x1d4a   :  { %v2528_v17 = vsub.f32 %v2462_v57, %v2512_v20  ;;  %v2529_v7 = vsub.f32 %v2465_v11, %v2513_v38  ;;  %v2530_v50 = vsub.f32 %v2468_v8, %v2514_v47  ;;  %v2534_v3 = vsub.f32 %v2480_v14, %v2518_v1 }
0x1d4b   :  { %v2533_v36 = vsub.f32 %v2477_v37, %v2517_v31  ;;  %v2531_v63 = vsub.f32 %v2471_v43, %v2515_v16  ;;  %v2532_v8 = vsub.f32 %v2474_v25, %v2516_v48  ;;  %v2535_v6 = vsub.f32 %v2483_v30, %v2519_v45 }
0x1d4c   :  { %v2536_v58 = vmul.f32 1.442695, %v2528_v17  ;;  %v2538_v22 = vmul.f32 1.442695, %v2529_v7  ;;  %v2540_v39 = vmul.f32 1.442695, %v2530_v50 }
0x1d4d   :  { %v2548_v29 = vmul.f32 1.442695, %v2534_v3  ;;  %v2546_v34 = vmul.f32 1.442695, %v2533_v36  ;;  %v2542_v18 = vmul.f32 1.442695, %v2531_v63 }
0x1d4e   :  { %8332 = vpow2.f32 %v2540_v39  ;;  %v2544_v40 = vmul.f32 1.442695, %v2532_v8  ;;  %v2550_v5 = vmul.f32 1.442695, %v2535_v6  ;;  %v2636_v37 = vperm.slane %v9909_v28, 5 }
0x1d4f   :  { %8334 = vpow2.f32 %v2538_v22  ;;  %v2643_v30 = vperm.slane %v9903_v4, 5  ;;  %v2664_v17 = vperm.slane %v9933_v42, 5  ;;  %v11856_v7 = vmov 0  }
0x1d50   :  { %8336 = vpow2.f32 %v2536_v58  ;;  %v2678_v42 = vperm.slane %v9944_v32, 5 }
0x1d51   :  { %8338 = vpow2.f32 %v2548_v29 }
0x1d52   :  { %8340 = vpow2.f32 %v2546_v34 }
0x1d53   :  { %8342 = vpow2.f32 %v2542_v18 }
0x1d54   :  { %v10076_v13 = vpop.eup %8332  ;;  %8344 = vpow2.f32 %v2544_v40 }
0x1d55   :  { %v10078_v57 = vpop.eup %8334  ;;  %2567 = vperm.xlu2 %8075, %v10076_v13   ;;  %8346 = vpow2.f32 %v2550_v5 }
0x1d56   :  { %v10081_v11 = vpop.eup %8336  ;;  %2564 = vperm.xlu1 %8074, %v10078_v57  }
0x1d57   :  { %2561 = vperm.xlu0 %8070, %v10081_v11   ;;  %v10085_v43 = vpop.eup %8338 }
0x1d58   :  { %v10087_v49 = vpop.eup %8340 }
0x1d59   :  { %v10090_v33 = vpop.eup %8342 }
0x1d5a   :  { %v10095_v25 = vpop.eup %8344 }
0x1d5b   :  { %v10098_v14 = vpop.eup %8346 }
0x1d5d   :  { %2579 = vperm.xlu2 %8075, %v10085_v43  }
0x1d5e   :  { %2576 = vperm.xlu1 %8074, %v10087_v49  }
0x1d5f   :  { %2570 = vperm.xlu0 %8070, %v10090_v33  }
0x1d65   :  { %8076 = vset.pattern.permute.xlu2 %v9095_v19 }
0x1d67   :  { %2573 = vperm.xlu0 %8070, %v10095_v25  }
0x1d6d   :  { %2634 = vperm.xlu2 %8076, %v2629_v44  }
0x1d6f   :  { %2582 = vperm.xlu0 %8070, %v10098_v14  }
0x1d75   :  { %2648 = vperm.xlu2 %8076, %v2643_v30  }
0x1d77   :  { %8077 = vset.pattern.permute.xlu0 %v9095_v19 }
0x1d7d   :  { %2655 = vperm.xlu2 %8076, %v2650_v51  }
0x1d7f   :  { %2641 = vperm.xlu0 %8077, %v2636_v37  }
0x1d85   :  { %2669 = vperm.xlu2 %8076, %v2664_v17  }
0x1d87   :  { %2662 = vperm.xlu0 %8077, %v2657_v54  }
0x1d8d   :  { %2683 = vperm.xlu2 %8076, %v2678_v42  }
0x1d8f   :  { %2676 = vperm.xlu0 %8077, %v2671_v12  }
0x1d95   :  { %8079 = vset.pattern.permute.xlu2 %v11856_v7 }
0x1d97   :  { %8078 = vset.pattern.permute.xlu0 %v11856_v7 }
0x1daf   :  { %v2568_v59 = vpop.permute.xlu2 %2567 }
0x1db0   :  { %v2586_v4 = vperm.slane %v2568_v59, %v9052_v9 }
0x1db7   :  { %v2580_v50 = vpop.permute.xlu2 %2579 }
0x1db8   :  { %v2590_v58 = vperm.slane %v2580_v50, %v9052_v9 }
0x1dc7   :  { %v2635_v29 = vpop.permute.xlu2 %2634 }
0x1dc8   :  { %v2565_v53 = vpop.permute.xlu1 %2564 }
0x1dc9   :  { %v2562_v0 = vpop.permute.xlu0 %2561  ;;  %v2585_v62 = vperm.slane %v2565_v53, %v9052_v9 }
0x1dca   :  { %v2584_v28 = vperm.slane %v2562_v0, %v9052_v9 }
0x1dcc   :  { %v2592_v60 = vsel %vm232_vm1, %v2585_v62, %v2584_v28 }
0x1dcd   :  { %v2593_v47 = vsel %vm234_vm2, %v2586_v4, %v2592_v60 }
0x1dcf   :  { %v2649_v48 = vpop.permute.xlu2 %2648 }
0x1dd0   :  { %v2577_v38 = vpop.permute.xlu1 %2576 }
0x1dd1   :  { %v2571_v27 = vpop.permute.xlu0 %2570  ;;  %v2589_v16 = vperm.slane %v2577_v38, %v9052_v9 }
0x1dd2   :  { %v2587_v10 = vperm.slane %v2571_v27, %v9052_v9 }
0x1dd4   :  { %v2594_v1 = vsel %vm236_vm3, %v2587_v10, %v2593_v47 }
0x1dd7   :  { %v2656_v44 = vpop.permute.xlu2 %2655 }
0x1dd9   :  { %v2574_v20 = vpop.permute.xlu0 %2573 }
0x1dda   :  { %v2588_v46 = vperm.slane %v2574_v20, %v9052_v9 }
0x1ddc   :  { %v2595_v15 = vsel %vm238_vm4, %v2588_v46, %v2594_v1 }
0x1ddd   :  { %v2596_v31 = vsel %vm240_vm5, %v2589_v16, %v2595_v15 }
0x1dde   :  { %v2597_v3 = vsel %vm242_vm6, %v2590_v58, %v2596_v31 }
0x1de1   :  { %v2583_v22 = vpop.permute.xlu0 %2582 }
0x1de2   :  { %v2591_v39 = vperm.slane %v2583_v22, %v9052_v9 }
0x1de4   :  { %v2598_v36 = vsel %vm244_vm7, %v2591_v39, %v2597_v3 }
0x1de5   :  { %v2600_v63 = vsel %vm189_vm0, %v2598_v36, 0.0 }
0x1de6   :  { %2601 = vadd.xlane.f32.xlu1 %v2600_v63 }
0x1df1   :  { %v2642_v18 = vpop.permute.xlu0 %2641 }
0x1df9   :  { %v2663_v30 = vpop.permute.xlu0 %2662 }
0x1e59   :  { %v2602_v34 = vpop.xlane.xlu1 %2601 }
0x1e5a   :  { %8348 = vrcp.f32 %v2602_v34 }
0x1e60   :  { %v8349_v8 = vpop.eup %8348 }
0x1e61   :  { %v2609_v45 = vperm.slane %v8349_v8, 4  ;;  %v2607_v40 = vperm.slane %v8349_v8, 2  ;;  %v2605_v6 = vperm.slane %v8349_v8, 0  ;;  %v2606_v5 = vperm.slane %v8349_v8, 1 }
0x1e62   :  { %v2608_v37 = vperm.slane %v8349_v8, 3  ;;  %v2611_v10 = vperm.slane %v8349_v8, 6  ;;  %v2610_v38 = vperm.slane %v8349_v8, 5  ;;  %v2612_v31 = vperm.slane %v8349_v8, 7 }
0x1e63   :  { %v2623_v32 = vmul.f32 %v10076_v13, %v2607_v40  ;;  %v2621_v54 = vmul.f32 %v10081_v11, %v2605_v6  ;;  %v2622_v0 = vmul.f32 %v10078_v57, %v2606_v5  ;;  %v2625_v12 = vmul.f32 %v10095_v25, %v2609_v45  ;;  %v2670_v57 = vpop.permute.xlu2 %2669 }
0x1e64   :  { %v2624_v62 = vmul.f32 %v10090_v33, %v2608_v37  ;;  %v2627_v47 = vmul.f32 %v10085_v43, %v2611_v10  ;;  %v2626_v1 = vmul.f32 %v10087_v49, %v2610_v38  ;;  %v2677_v33 = vpop.permute.xlu0 %2676  ;;  %v2628_v3 = vmul.f32 %v10098_v14, %v2612_v31 }
0x1e65   :  { %v2695_v53 = vmul.f32 %v2649_v48, %v2623_v32  ;;  %v2693_v27 = vmul.f32 %v2635_v29, %v2621_v54  ;;  %v2694_v59 = vmul.f32 %v2642_v18, %v2622_v0  ;;  %v2697_v4 = vmul.f32 %v2663_v30, %v2625_v12 }
0x1e66   :  { %v2696_v11 = vmul.f32 %v2656_v44, %v2624_v62  ;;  %v2699_v50 = vmul.f32 %v2677_v33, %v2627_v47  ;;  %v2698_v16 = vmul.f32 %v2670_v57, %v2626_v1 }
0x1e67   :  { %v2703_v28 = vpack.c.bf16 %v2695_v53, %v2695_v53  ;;  %v2701_v51 = vpack.c.bf16 %v2693_v27, %v2693_v27  ;;  %v2702_v60 = vpack.c.bf16 %v2694_v59, %v2694_v59  ;;  %v2705_v25 = vpack.c.bf16 %v2697_v4, %v2697_v4 }
0x1e68   :  { %v2704_v17 = vpack.c.bf16 %v2696_v11, %v2696_v11  ;;  %v2707_v22 = vpack.c.bf16 %v2699_v50, %v2699_v50  ;;  %v2706_v39 = vpack.c.bf16 %v2698_v16, %v2698_v16 }
0x1e69   :  { %v2734_v20 = vunpack.c.l.b16 %v2703_v28  ;;  %v2732_v46 = vunpack.c.l.b16 %v2701_v51  ;;  %v2733_v13 = vunpack.c.l.b16 %v2702_v60  ;;  %v2736_v15 = vunpack.c.l.b16 %v2705_v25 }
0x1e6a   :  { %v2735_v58 = vunpack.c.l.b16 %v2704_v17  ;;  %v2738_v42 = vunpack.c.l.b16 %v2707_v22  ;;  %v2737_v63 = vunpack.c.l.b16 %v2706_v39 }
0x1e6b   :  { %2747 = vperm.xlu1 %8074, %v2734_v20   ;;  %2741 = vperm.xlu0 %8078, %v2732_v46   ;;  %v2684_v36 = vpop.permute.xlu2 %2683 }
0x1e6c   :  { %2744 = vperm.xlu2 %8079, %v2733_v13   ;;  %v2700_v29 = vmul.f32 %v2684_v36, %v2628_v3 }
0x1e6e   :  { %v2708_v43 = vpack.c.bf16 %v2700_v29, %v2700_v29 }
0x1e70   :  { %v2739_v49 = vunpack.c.l.b16 %v2708_v43 }
0x1e73   :  { %2753 = vperm.xlu0 %8078, %v2736_v15  }
0x1e74   :  { %2750 = vperm.xlu2 %8079, %v2735_v58  }
0x1e7b   :  { %2759 = vperm.xlu0 %8078, %v2738_v42  }
0x1e7c   :  { %2756 = vperm.xlu2 %8079, %v2737_v63  }
0x1e84   :  { %2762 = vperm.xlu2 %8079, %v2739_v49  }
0x1ec6   :  { %v2745_v34 = vpop.permute.xlu2 %2744 }
0x1ec7   :  { %v2765_v6 = vperm.slane %v2745_v34, %v9052_v9 }
0x1ece   :  { %v2751_v48 = vpop.permute.xlu2 %2750 }
0x1ecf   :  { %v2767_v54 = vperm.slane %v2751_v48, %v9052_v9 }
0x1ed6   :  { %v2757_v40 = vpop.permute.xlu2 %2756 }
0x1ed7   :  { %v2769_v53 = vperm.slane %v2757_v40, %v9052_v9 }
0x1edd   :  { %v2742_v18 = vpop.permute.xlu0 %2741  ;;  %v2748_v8 = vpop.permute.xlu1 %2747 }
0x1ede   :  { %v2764_v45 = vperm.slane %v2742_v18, %v9052_v9  ;;  %v2766_v14 = vperm.slane %v2748_v8, %v9052_v9  ;;  %v2763_v30 = vpop.permute.xlu2 %2762 }
0x1edf   :  { %v2771_v62 = vperm.slane %v2763_v30, %v9052_v9 }
0x1ee0   :  { %v2772_v5 = vsel %vm232_vm1, %v2765_v6, %v2764_v45 }
0x1ee1   :  { %v2773_v44 = vsel %vm234_vm2, %v2766_v14, %v2772_v5 }
0x1ee2   :  { %v2774_v0 = vsel %vm236_vm3, %v2767_v54, %v2773_v44 }
0x1ee5   :  { %v2754_v37 = vpop.permute.xlu0 %2753 }
0x1ee6   :  { %v2768_v32 = vperm.slane %v2754_v37, %v9052_v9 }
0x1ee8   :  { %v2775_v12 = vsel %vm238_vm4, %v2768_v32, %v2774_v0 }
0x1ee9   :  { %v2776_v28 = vsel %vm240_vm5, %v2769_v53, %v2775_v12 }
0x1eed   :  { %v2760_v27 = vpop.permute.xlu0 %2759 }
0x1eee   :  { %v2770_v59 = vperm.slane %v2760_v27, %v9052_v9 }
0x1ef0   :  { %v2777_v51 = vsel %vm242_vm6, %v2770_v59, %v2776_v28 }
0x1ef1   :  { %v2778_v60 = vsel %vm244_vm7, %v2771_v62, %v2777_v51 }
0x1ef2   :  { %v2779_v10 = vpack.c.b16 %v2778_v60, %v2778_v60 }
0x1ef4   :  { %7962 = vmatmul.msk.bf16.vlgmr.msra.gmra.mxu1 %vm189_vm0, %v2779_v10 }
0x1f71   :  { %v2792_v4 = vpop.f32.mrf.mxu1 }
0x1f72   :  { %v2793_v20 = vadd.f32 %v2792_v4, %v10034_v56 }
0x1f74   :  { %v2796_v46 = vadd.f32 %v9985_v61, %v2793_v20 }
0x1f76   :  { %8350 = vtanh.f32 %v2796_v46  ;;  %v7963_v11 = vmul.f32 -1.442695, %v2796_v46  ;;  %v10199_v46 = vld [vmem:[#allocation2] sm:$0xff] }
0x1f78   :  { %8352 = vpow2.f32 %v7963_v11 }
0x1f79   :  { %v2794_v13 = vpop.f32.mrf.mxu1 }
0x1f7c   :  { %v8351_v38 = vpop.eup %8350 }
0x1f7d   :  { %2819 = vrot.lane.b32.xlu1 %v8351_v38, %s8943_s25 }
0x1f7e   :  { %v8353_v57 = vpop.eup %8352 }
0x1f7f   :  { %v2800_v25 = vadd.f32 1.0, %v8353_v57 }
0x1f81   :  { %8354 = vrcp.f32 %v2800_v25  ;;  %v2812_v50 = vand.u32 2147483648, %v2800_v25  ;;  %vm2806_vm12 = vweird.f32 %v2800_v25  ;;  %v2810_v56 = vand.u32 2147483647, %v2800_v25 }
0x1f83   :  { %v2813_v16 = vor.u32 1.1754944e-38, %v2812_v50  ;;  %vm2811_vm9 = vcmp.eq.f32.partialorder %v2810_v56, 8.507059e+37  ;;  %v10210_v56 = vld [vmem:[#allocation2 + $0x18] sm:$0xff] }
0x1f87   :  { %v8355_v47 = vpop.eup %8354 }
0x1f88   :  { %v2802_v1 = vmul.f32 %v8355_v47, %v2800_v25  ;;  %vm2807_vm8 = vweird.f32 %v8355_v47 }
0x1f89   :  { %vm2808_vm15 = vmor %vm2806_vm12, %vm2807_vm8 }
0x1f8a   :  { %v2803_v33 = vsub.f32 1.0, %v2802_v1 }
0x1f8c   :  { %v2804_v17 = vmul.f32 %v8355_v47, %v2803_v33  ;;  %v10204_v33 = vld [vmem:[#allocation2 + $0x10] sm:$0xff] }
0x1f8e   :  { %v2805_v15 = vadd.f32 %v8355_v47, %v2804_v17 }
0x1f90   :  { %v2809_v61 = vsel %vm2808_vm15, %v8355_v47, %v2805_v15  ;;  %v10207_v15 = vld [vmem:[#allocation2 + $0x8] sm:$0xff] }
0x1f91   :  { %v2814_v58 = vsel %vm2811_vm9, %v2813_v16, %v2809_v61  ;;  %v10213_v16 = vld [vmem:[#allocation2 + $0x28] sm:$0xff]  ;;  %vm3955_vm9 = vcmask 1045504  }
0x1f92   :  { %v2817_v39 = vmul.f32 %v2814_v58, %v9991_v2 }
0x1fef   :  { %v2820_v31 = vpop.permute.xlu1 %2819 }
0x1ff0   :  { %v2822_v22 = vmul.f32 %v2820_v31, %v2814_v58 }
0x1ff2   :  { %2824 = vrot.lane.b32.xlu0 %v2822_v22, %s8943_s25  ;;  %v10216_v22 = vld [vmem:[#allocation2 + $0x20] sm:$0xff] }
0x2064   :  { %v2825_v3 = vpop.permute.xlu0 %2824 }
0x2065   :  { %v10157_v36 = vadd.f32 %v2825_v3, %v2817_v39 }
0x2067   :  { %8356 = vtanh.f32 %v10157_v36 }
0x206d   :  { %v8357_v42 = vpop.eup %8356 }
0x206e   :  { %2830 = vrot.lane.b32.xlu2 %v8357_v42, %s8943_s25 }
0x20c8   :  { %v2831_v63 = vpop.permute.xlu2 %2830 }
0x20c9   :  { %v2833_v29 = vmul.f32 %v2831_v63, %v2814_v58 }
0x20cb   :  { %v2834_v43 = vpack.c.bf16 %v2833_v29, %v2833_v29  ;;  %v3779_v49 = vrot.slane %v2833_v29, 4  ;;  %v3780_v34 = vrot.slane %v2833_v29, 5  ;;  %v3777_v48 = vrot.slane %v2833_v29, 2 }
0x20cc   :  { %v3778_v18 = vrot.slane %v2833_v29, 3  ;;  %v3776_v8 = vrot.slane %v2833_v29, 1  ;;  %v3863_v45 = vperm.slane %v2833_v29, 0  ;;  %v3781_v40 = vrot.slane %v2833_v29, 6 }
0x20cd   :  { %v2837_v2 = vunpack.c.l.b16 %v2834_v43  ;;  %v3867_v6 = vperm.slane %v3779_v49, 0  ;;  %v3868_v14 = vperm.slane %v3780_v34, 0  ;;  %v3865_v5 = vperm.slane %v3777_v48, 0 }
0x20ce   :  { %v3866_v37 = vperm.slane %v3778_v18, 0  ;;  %v3864_v44 = vperm.slane %v3776_v8, 0  ;;  %v10163_v32 = vsel %vm3946_vm10, %v9997_v24, %v3863_v45  ;;  %v3782_v54 = vrot.slane %v2833_v29, 7  ;;  %v10219_v29 = vld [vmem:[#allocation6] ss:$0 sm:$0xff]  ;;  %v10222_v18 = vld [vmem:[#allocation2 + $0x30] sm:$0xff] }
0x20cf   :  { %v2838_v0 = vpack.c.b16 %v2837_v2, %v2837_v2  ;;  %v10167_v30 = vsel %vm3946_vm10, %v10001_v23, %v3867_v6  ;;  %v10171_v12 = vsel %vm3946_vm10, %v10005_v21, %v3868_v14  ;;  %v10175_v53 = vsel %vm3946_vm10, %v10009_v35, %v3865_v5 }
0x20d0   :  { %v10179_v27 = vsel %vm3946_vm10, %v10013_v26, %v3866_v37  ;;  %v10183_v24 = vsel %vm3946_vm10, %v10017_v41, %v3864_v44  ;;  %v3869_v59 = vperm.slane %v3781_v40, 0  ;;  %v3870_v62 = vperm.slane %v3782_v54, 0  ;;  %v10229_v37 = vld [vmem:[#allocation2 + $0x38] sm:$0xff] }
0x20d1   :  { %2839 = vrot.lane.b32.xlu1 %v2838_v0, %s8936_s26  ;;  %v2835_v35 = vpack.c.bf16 %v10157_v36, %v10157_v36 }
0x20d2   :  { %v10188_v23 = vsel %vm3946_vm10, %v10022_v55, %v3869_v59  ;;  %v10192_v21 = vsel %vm3946_vm10, %v10026_v52, %v3870_v62 }
0x2143   :  { %v2840_v26 = vpop.permute.xlu1 %2839 }
0x2144   :  { %v2843_v28 = vsel %vm468_vm13, %v2840_v26, %v2835_v35  ;;  %7965 = vmatmul.msk.bf16.vlgmr.msra.gmra.mxu3 %vm468_vm13, %v2840_v26 }
0x2145   :  { %7964 = vmatmul.msk.bf16.vlgmr.msra.gmra.mxu0 %vm123_vm14, %v2843_v28 }
0x21c2   :  { %v2855_v41 = vpop.f32.mrf.mxu0 }
0x21c3   :  { %v2867_v51 = vperm.slane %v2855_v41, 0  ;;  %v2861_v60 = vrot.slane %v2855_v41, 2  ;;  %v2860_v10 = vrot.slane %v2855_v41, 1  ;;  %v2862_v55 = vrot.slane %v2855_v41, 3 }
0x21c4   :  { %v2864_v4 = vrot.slane %v2855_v41, 5  ;;  %v2863_v20 = vrot.slane %v2855_v41, 4  ;;  %v2865_v47 = vrot.slane %v2855_v41, 6  ;;  %v2866_v3 = vrot.slane %v2855_v41, 7 }
0x21c5   :  { %v2883_v52 = vadd.f32 %v10199_v46, %v2867_v51  ;;  %v2869_v13 = vperm.slane %v2861_v60, 0  ;;  %v2868_v38 = vperm.slane %v2860_v10, 0  ;;  %v2870_v11 = vperm.slane %v2862_v55, 0 }
0x21c6   :  { %v2872_v57 = vperm.slane %v2864_v4, 0  ;;  %v2871_v25 = vperm.slane %v2863_v20, 0  ;;  %v2873_v42 = vperm.slane %v2865_v47, 0  ;;  %v2874_v49 = vperm.slane %v2866_v3, 0 }
0x21c7   :  { %v10202_v1 = vpop.f32.mrf.mxu3  ;;  %8358 = vtanh.f32 %v2883_v52  ;;  %v2885_v17 = vadd.f32 %v10204_v33, %v2869_v13  ;;  %v2884_v50 = vadd.f32 %v10207_v15, %v2868_v38  ;;  %v2886_v61 = vadd.f32 %v10210_v56, %v2870_v11 }
0x21c8   :  { %v2888_v31 = vadd.f32 %v10213_v16, %v2872_v57  ;;  %v2887_v39 = vadd.f32 %v10216_v22, %v2871_v25  ;;  %v2889_v8 = vadd.f32 %v10222_v18, %v2873_v42  ;;  %v2890_v44 = vadd.f32 %v10229_v37, %v2874_v49 }
0x21c9   :  { %8360 = vtanh.f32 %v2885_v17 }
0x21ca   :  { %v2857_v58 = vpop.f32.mrf.mxu0  ;;  %8362 = vtanh.f32 %v2884_v50 }
0x21cb   :  { %8364 = vtanh.f32 %v2886_v61 }
0x21cc   :  { %8366 = vtanh.f32 %v2888_v31 }
0x21cd   :  { %v8359_v63 = vpop.eup %8358  ;;  %8368 = vtanh.f32 %v2887_v39 }
0x21ce   :  { %v2899_v43 = vmul.f32 %v10219_v29, %v8359_v63  ;;  %8370 = vtanh.f32 %v2889_v8 }
0x21cf   :  { %v8361_v34 = vpop.eup %8360  ;;  %v3169_v48 = vpop.f32.mrf.mxu3  ;;  %8372 = vtanh.f32 %v2890_v44 }
0x21d0   :  { %v8363_v45 = vpop.eup %8362  ;;  %v2907_v40 = vsel %vm189_vm0, %v2899_v43, 0.0  ;;  %v2901_v2 = vmul.f32 %v10219_v29, %v8361_v34 }
0x21d1   :  { %v8365_v6 = vpop.eup %8364  ;;  %2908 = vadd.xlane.f32.xlu0 %v2907_v40  ;;  %v2900_v14 = vmul.f32 %v10219_v29, %v8363_v45 }
0x21d2   :  { %v2913_v5 = vsel %vm189_vm0, %v2901_v2, 0.0  ;;  %v8367_v54 = vpop.eup %8366  ;;  %v2902_v62 = vmul.f32 %v10219_v29, %v8365_v6 }
0x21d3   :  { %2914 = vadd.xlane.f32.xlu1 %v2913_v5  ;;  %v2910_v0 = vsel %vm189_vm0, %v2900_v14, 0.0  ;;  %v8369_v59 = vpop.eup %8368  ;;  %v2904_v35 = vmul.f32 %v10219_v29, %v8367_v54 }
0x21d4   :  { %2911 = vadd.xlane.f32.xlu2 %v2910_v0  ;;  %v2903_v26 = vmul.f32 %v10219_v29, %v8369_v59  ;;  %v2916_v28 = vsel %vm189_vm0, %v2902_v62, 0.0  ;;  %v8371_v41 = vpop.eup %8370 }
0x21d5   :  { %v2922_v51 = vsel %vm189_vm0, %v2904_v35, 0.0  ;;  %v8373_v10 = vpop.eup %8372  ;;  %v2905_v55 = vmul.f32 %v10219_v29, %v8371_v41 }
0x21d6   :  { %v2919_v60 = vsel %vm189_vm0, %v2903_v26, 0.0  ;;  %v2906_v4 = vmul.f32 %v10219_v29, %v8373_v10 }
0x21d7   :  { %v2925_v20 = vsel %vm189_vm0, %v2905_v55, 0.0 }
0x21d8   :  { %v2928_v52 = vsel %vm189_vm0, %v2906_v4, 0.0 }
0x21d9   :  { %2917 = vadd.xlane.f32.xlu0 %v2916_v28 }
0x21db   :  { %2923 = vadd.xlane.f32.xlu1 %v2922_v51 }
0x21dc   :  { %2920 = vadd.xlane.f32.xlu2 %v2919_v60 }
0x21e1   :  { %2926 = vadd.xlane.f32.xlu0 %v2925_v20 }
0x21e4   :  { %2929 = vadd.xlane.f32.xlu2 %v2928_v52 }
0x2244   :  { %v2909_v13 = vpop.xlane.xlu0 %2908 }
0x2245   :  { %v2939_v25 = vperm.slane %v2909_v13, %v9052_v9 }
0x2246   :  { %v2915_v38 = vpop.xlane.xlu1 %2914 }
0x2247   :  { %v2912_v11 = vpop.xlane.xlu2 %2911  ;;  %v2941_v47 = vperm.slane %v2915_v38, %v9052_v9 }
0x2248   :  { %v2940_v57 = vperm.slane %v2912_v11, %v9052_v9 }
0x224a   :  { %v2947_v17 = vsel %vm232_vm1, %v2940_v57, %v2939_v25 }
0x224b   :  { %v2948_v31 = vsel %vm234_vm2, %v2941_v47, %v2947_v17 }
0x224c   :  { %v2918_v50 = vpop.xlane.xlu0 %2917 }
0x224d   :  { %v2942_v61 = vperm.slane %v2918_v50, %v9052_v9 }
0x224e   :  { %v2924_v58 = vpop.xlane.xlu1 %2923 }
0x224f   :  { %v2921_v39 = vpop.xlane.xlu2 %2920  ;;  %v2949_v3 = vsel %vm236_vm3, %v2942_v61, %v2948_v31  ;;  %v2944_v63 = vperm.slane %v2924_v58, %v9052_v9 }
0x2250   :  { %v2943_v42 = vperm.slane %v2921_v39, %v9052_v9 }
0x2252   :  { %v2950_v43 = vsel %vm238_vm4, %v2943_v42, %v2949_v3 }
0x2253   :  { %v2951_v48 = vsel %vm240_vm5, %v2944_v63, %v2950_v43  ;;  %v10288_v43 = vld [vmem:[%s11847_s0] sm:$0xff] }
0x2254   :  { %v2927_v49 = vpop.xlane.xlu0 %2926 }
0x2255   :  { %v2945_v34 = vperm.slane %v2927_v49, %v9052_v9 }
0x2257   :  { %v2930_v8 = vpop.xlane.xlu2 %2929  ;;  %v2952_v45 = vsel %vm242_vm6, %v2945_v34, %v2951_v48  ;;  %v10294_v34 = vld [vmem:[%s11847_s0 + $0x10] sm:$0xff] }
0x2258   :  { %v2946_v40 = vperm.slane %v2930_v8, %v9052_v9  ;;  %v3090_v48 = vperm.slane %v10294_v34, 6 }
0x225a   :  { %v2953_v2 = vsel %vm244_vm7, %v2946_v40, %v2952_v45  ;;  %v10306_v40 = vld [vmem:[%s11847_s0 + $0x20] sm:$0xff] }
0x225b   :  { %v2955_v6 = vsel %vm189_vm0, %v2953_v2, -inf  ;;  %v3104_v2 = vperm.slane %v10306_v40, 6 }
0x225c   :  { %2956 = vmax.xlane.f32.xlu1 %v2955_v6 }
0x22cf   :  { %v2957_v14 = vpop.xlane.xlu1 %2956 }
0x22d0   :  { %v2959_v5 = vperm.slane %v2957_v14, 0  ;;  %v2960_v44 = vperm.slane %v2957_v14, 1  ;;  %v2961_v54 = vperm.slane %v2957_v14, 2  ;;  %v2965_v0 = vperm.slane %v2957_v14, 6 }
0x22d1   :  { %v2962_v26 = vperm.slane %v2957_v14, 3  ;;  %v2963_v28 = vperm.slane %v2957_v14, 4  ;;  %v2966_v52 = vperm.slane %v2957_v14, 7  ;;  %v2964_v47 = vperm.slane %v2957_v14, 5  ;;  %v10312_v14 = vld [vmem:[%s11847_s0 + $0x18] sm:$0xff] }
0x22d2   :  { %v2975_v59 = vsub.f32 %v2909_v13, %v2959_v5  ;;  %v2976_v62 = vsub.f32 %v2912_v11, %v2960_v44  ;;  %v2977_v35 = vsub.f32 %v2915_v38, %v2961_v54  ;;  %v2981_v10 = vsub.f32 %v2927_v49, %v2965_v0  ;;  %v10318_v54 = vld [vmem:[%s11847_s0 + $0x30] sm:$0xff] }
0x22d3   :  { %v2979_v55 = vsub.f32 %v2921_v39, %v2963_v28  ;;  %v2978_v4 = vsub.f32 %v2918_v50, %v2962_v26  ;;  %v2982_v17 = vsub.f32 %v2930_v8, %v2966_v52  ;;  %v2980_v50 = vsub.f32 %v2924_v58, %v2964_v47  ;;  %v10300_v8 = vld [vmem:[%s11847_s0 + $0x8] sm:$0xff] }
0x22d4   :  { %v2983_v41 = vmul.f32 1.442695, %v2975_v59  ;;  %v2985_v51 = vmul.f32 1.442695, %v2976_v62  ;;  %v2987_v60 = vmul.f32 1.442695, %v2977_v35 }
0x22d5   :  { %v2995_v20 = vmul.f32 1.442695, %v2981_v10  ;;  %v2991_v57 = vmul.f32 1.442695, %v2979_v55  ;;  %v2989_v13 = vmul.f32 1.442695, %v2978_v4 }
0x22d6   :  { %8374 = vpow2.f32 %v2987_v60  ;;  %v2997_v61 = vmul.f32 1.442695, %v2982_v17  ;;  %v2993_v39 = vmul.f32 1.442695, %v2980_v50  ;;  %v3076_v49 = vperm.slane %v10288_v43, 6  ;;  %v10324_v62 = vld [vmem:[%s11847_s0 + $0x28] sm:$0xff] }
0x22d7   :  { %8376 = vpow2.f32 %v2985_v51  ;;  %v3083_v45 = vperm.slane %v10300_v8, 6  ;;  %v3097_v5 = vperm.slane %v10312_v14, 6  ;;  %v3118_v0 = vperm.slane %v10318_v54, 6  ;;  %v10335_v4 = vld [vmem:[%s11847_s0 + $0x38] sm:$0xff] }
0x22d8   :  { %8378 = vpow2.f32 %v2983_v41  ;;  %v3111_v35 = vperm.slane %v10324_v62, 6 }
0x22d9   :  { %8380 = vpow2.f32 %v2995_v20  ;;  %v3125_v20 = vperm.slane %v10335_v4, 6 }
0x22da   :  { %8382 = vpow2.f32 %v2991_v57 }
0x22db   :  { %8384 = vpow2.f32 %v2989_v13 }
0x22dc   :  { %v10259_v25 = vpop.eup %8374  ;;  %8386 = vpow2.f32 %v2997_v61 }
0x22dd   :  { %v10261_v11 = vpop.eup %8376  ;;  %3014 = vperm.xlu1 %8074, %v10259_v25   ;;  %8388 = vpow2.f32 %v2993_v39 }
0x22de   :  { %v10264_v38 = vpop.eup %8378  ;;  %3011 = vperm.xlu2 %8079, %v10261_v11  }
0x22df   :  { %3008 = vperm.xlu0 %8078, %v10264_v38   ;;  %v10268_v31 = vpop.eup %8380 }
0x22e0   :  { %v10270_v3 = vpop.eup %8382 }
0x22e1   :  { %v10273_v42 = vpop.eup %8384 }
0x22e2   :  { %v10277_v63 = vpop.eup %8386 }
0x22e3   :  { %v10280_v58 = vpop.eup %8388 }
0x22e5   :  { %3026 = vperm.xlu1 %8074, %v10268_v31  }
0x22e6   :  { %3020 = vperm.xlu2 %8079, %v10270_v3  }
0x22e7   :  { %3017 = vperm.xlu0 %8078, %v10273_v42  }
0x22ed   :  { %8080 = vset.pattern.permute.xlu1 %v9095_v19 }
0x22ee   :  { %3029 = vperm.xlu2 %8079, %v10277_v63  }
0x22ef   :  { %3023 = vperm.xlu0 %8078, %v10280_v58  }
0x22f5   :  { %3081 = vperm.xlu1 %8080, %v3076_v49  }
0x22f6   :  { %8081 = vset.pattern.permute.xlu2 %v9095_v19 }
0x22fd   :  { %3095 = vperm.xlu1 %8080, %v3090_v48  }
0x22fe   :  { %3088 = vperm.xlu2 %8081, %v3083_v45  }
0x2305   :  { %3109 = vperm.xlu1 %8080, %v3104_v2  }
0x2306   :  { %3102 = vperm.xlu2 %8081, %v3097_v5  }
0x230d   :  { %3123 = vperm.xlu1 %8080, %v3118_v0  }
0x230e   :  { %3116 = vperm.xlu2 %8081, %v3111_v35  }
0x2315   :  { %8082 = vset.pattern.permute.xlu1 %v11856_v7 }
0x2316   :  { %3130 = vperm.xlu2 %8081, %v3125_v20  }
0x231e   :  { %8083 = vset.pattern.permute.xlu2 %v11856_v7 }
0x2338   :  { %v3012_v6 = vpop.permute.xlu2 %3011 }
0x2339   :  { %v3032_v51 = vperm.slane %v3012_v6, %v9052_v9 }
0x2340   :  { %v3021_v26 = vpop.permute.xlu2 %3020 }
0x2341   :  { %v3035_v13 = vperm.slane %v3021_v26, %v9052_v9 }
0x2348   :  { %v3030_v17 = vpop.permute.xlu2 %3029 }
0x2349   :  { %v3038_v48 = vperm.slane %v3030_v17, %v9052_v9 }
0x234f   :  { %v3015_v59 = vpop.permute.xlu1 %3014 }
0x2350   :  { %v3033_v60 = vperm.slane %v3015_v59, %v9052_v9 }
0x2351   :  { %v3009_v44 = vpop.permute.xlu0 %3008 }
0x2352   :  { %v3031_v28 = vperm.slane %v3009_v44, %v9052_v9 }
0x2354   :  { %v3039_v10 = vsel %vm232_vm1, %v3032_v51, %v3031_v28 }
0x2355   :  { %v3040_v52 = vsel %vm234_vm2, %v3033_v60, %v3039_v10 }
0x2357   :  { %v3027_v57 = vpop.permute.xlu1 %3026 }
0x2358   :  { %v3037_v39 = vperm.slane %v3027_v57, %v9052_v9  ;;  %v3089_v59 = vpop.permute.xlu2 %3088 }
0x2359   :  { %v3018_v41 = vpop.permute.xlu0 %3017 }
0x235a   :  { %v3034_v55 = vperm.slane %v3018_v41, %v9052_v9 }
0x235c   :  { %v3041_v47 = vsel %vm236_vm3, %v3034_v55, %v3040_v52 }
0x235d   :  { %v3042_v49 = vsel %vm238_vm4, %v3035_v13, %v3041_v47 }
0x2360   :  { %v3103_v55 = vpop.permute.xlu2 %3102 }
0x2361   :  { %v3024_v50 = vpop.permute.xlu0 %3023 }
0x2362   :  { %v3036_v61 = vperm.slane %v3024_v50, %v9052_v9 }
0x2364   :  { %v3043_v45 = vsel %vm240_vm5, %v3036_v61, %v3042_v49 }
0x2365   :  { %v3044_v2 = vsel %vm242_vm6, %v3037_v39, %v3043_v45 }
0x2366   :  { %v3045_v6 = vsel %vm244_vm7, %v3038_v48, %v3044_v2 }
0x2367   :  { %v3047_v5 = vsel %vm189_vm0, %v3045_v6, 0.0  ;;  %v3082_v44 = vpop.permute.xlu1 %3081 }
0x2368   :  { %3048 = vadd.xlane.f32.xlu0 %v3047_v5 }
0x236f   :  { %v3096_v35 = vpop.permute.xlu1 %3095 }
0x2377   :  { %v3110_v47 = vpop.permute.xlu1 %3109 }
0x23db   :  { %v3049_v0 = vpop.xlane.xlu0 %3048 }
0x23dc   :  { %8390 = vrcp.f32 %v3049_v0 }
0x23e2   :  { %v8391_v26 = vpop.eup %8390 }
0x23e3   :  { %v3056_v28 = vperm.slane %v8391_v26, 4  ;;  %v3054_v41 = vperm.slane %v8391_v26, 2  ;;  %v3053_v51 = vperm.slane %v8391_v26, 1  ;;  %v3052_v60 = vperm.slane %v8391_v26, 0 }
0x23e4   :  { %v3055_v10 = vperm.slane %v8391_v26, 3  ;;  %v3058_v2 = vperm.slane %v8391_v26, 6 }
0x23e5   :  { %v3070_v20 = vmul.f32 %v10259_v25, %v3054_v41  ;;  %v3069_v52 = vmul.f32 %v10261_v11, %v3053_v51  ;;  %v3068_v57 = vmul.f32 %v10264_v38, %v3052_v60  ;;  %v3072_v13 = vmul.f32 %v10270_v3, %v3056_v28  ;;  %v3117_v3 = vpop.permute.xlu2 %3116 }
0x23e6   :  { %v3071_v39 = vmul.f32 %v10273_v42, %v3055_v10  ;;  %v3057_v41 = vperm.slane %v8391_v26, 5  ;;  %v3124_v42 = vpop.permute.xlu1 %3123  ;;  %v3059_v10 = vperm.slane %v8391_v26, 7 }
0x23e7   :  { %v3142_v17 = vmul.f32 %v3096_v35, %v3070_v20  ;;  %v3141_v50 = vmul.f32 %v3089_v59, %v3069_v52  ;;  %v3140_v61 = vmul.f32 %v3082_v44, %v3068_v57  ;;  %v3144_v6 = vmul.f32 %v3110_v47, %v3072_v13 }
0x23e8   :  { %v3143_v11 = vmul.f32 %v3103_v55, %v3071_v39  ;;  %v3074_v59 = vmul.f32 %v10268_v31, %v3058_v2  ;;  %v3073_v44 = vmul.f32 %v10280_v58, %v3057_v41  ;;  %v3075_v57 = vmul.f32 %v10277_v63, %v3059_v10 }
0x23e9   :  { %v3150_v49 = vpack.c.bf16 %v3142_v17, %v3142_v17  ;;  %v3149_v48 = vpack.c.bf16 %v3141_v50, %v3141_v50  ;;  %v3148_v45 = vpack.c.bf16 %v3140_v61, %v3140_v61  ;;  %v3152_v38 = vpack.c.bf16 %v3144_v6, %v3144_v6 }
0x23ea   :  { %v3151_v35 = vpack.c.bf16 %v3143_v11, %v3143_v11  ;;  %v3146_v51 = vmul.f32 %v3124_v42, %v3074_v59  ;;  %v3145_v60 = vmul.f32 %v3117_v3, %v3073_v44 }
0x23eb   :  { %v3181_v5 = vunpack.c.l.b16 %v3150_v49  ;;  %v3180_v0 = vunpack.c.l.b16 %v3149_v48  ;;  %v3179_v25 = vunpack.c.l.b16 %v3148_v45  ;;  %v3183_v28 = vunpack.c.l.b16 %v3152_v38 }
0x23ec   :  { %v3182_v20 = vunpack.c.l.b16 %v3151_v35  ;;  %v3154_v52 = vpack.c.bf16 %v3146_v51, %v3146_v51  ;;  %v3153_v55 = vpack.c.bf16 %v3145_v60, %v3145_v60 }
0x23ed   :  { %3194 = vperm.xlu0 %8078, %v3181_v5   ;;  %3191 = vperm.xlu2 %8083, %v3180_v0   ;;  %v3131_v47 = vpop.permute.xlu2 %3130 }
0x23ee   :  { %3188 = vperm.xlu1 %8082, %v3179_v25   ;;  %v3185_v13 = vunpack.c.l.b16 %v3154_v52  ;;  %v3184_v17 = vunpack.c.l.b16 %v3153_v55  ;;  %v3147_v50 = vmul.f32 %v3131_v47, %v3075_v57  ;;  %v10376_v55 = vld [vmem:[#allocation6 + $0x8] ss:$0 sm:$0xff] }
0x23f0   :  { %v3155_v31 = vpack.c.bf16 %v3147_v50, %v3147_v50 }
0x23f2   :  { %v3186_v58 = vunpack.c.l.b16 %v3155_v31 }
0x23f5   :  { %3200 = vperm.xlu2 %8083, %v3183_v28  }
0x23f6   :  { %3197 = vperm.xlu1 %8082, %v3182_v20  }
0x23fd   :  { %3206 = vperm.xlu2 %8083, %v3185_v13  }
0x23fe   :  { %3203 = vperm.xlu1 %8082, %v3184_v17  }
0x2406   :  { %3209 = vperm.xlu1 %8082, %v3186_v58  }
0x2447   :  { %v3192_v39 = vpop.permute.xlu2 %3191 }
0x2448   :  { %v3212_v2 = vperm.slane %v3192_v39, %v9052_v9 }
0x244f   :  { %v3201_v26 = vpop.permute.xlu2 %3200 }
0x2450   :  { %v3215_v38 = vperm.slane %v3201_v26, %v9052_v9 }
0x2457   :  { %v3207_v3 = vpop.permute.xlu2 %3206 }
0x2458   :  { %v3217_v42 = vperm.slane %v3207_v3, %v9052_v9 }
0x245f   :  { %v3195_v48 = vpop.permute.xlu0 %3194 }
0x2460   :  { %v3189_v61 = vpop.permute.xlu1 %3188  ;;  %v3213_v63 = vperm.slane %v3195_v48, %v9052_v9 }
0x2461   :  { %v3211_v45 = vperm.slane %v3189_v61, %v9052_v9 }
0x2463   :  { %v3219_v6 = vsel %vm232_vm1, %v3212_v2, %v3211_v45 }
0x2464   :  { %v3220_v25 = vsel %vm234_vm2, %v3213_v63, %v3219_v6 }
0x2468   :  { %v3198_v49 = vpop.permute.xlu1 %3197 }
0x2469   :  { %v3214_v5 = vperm.slane %v3198_v49, %v9052_v9 }
0x246b   :  { %v3221_v41 = vsel %vm236_vm3, %v3214_v5, %v3220_v25 }
0x246c   :  { %v3222_v59 = vsel %vm238_vm4, %v3215_v38, %v3221_v41 }
0x2470   :  { %v3204_v0 = vpop.permute.xlu1 %3203 }
0x2471   :  { %v3216_v11 = vperm.slane %v3204_v0, %v9052_v9 }
0x2473   :  { %v3223_v44 = vsel %vm240_vm5, %v3216_v11, %v3222_v59 }
0x2474   :  { %v3224_v51 = vsel %vm242_vm6, %v3217_v42, %v3223_v44 }
0x2478   :  { %v3210_v35 = vpop.permute.xlu1 %3209 }
0x2479   :  { %v3218_v28 = vperm.slane %v3210_v35, %v9052_v9 }
0x247b   :  { %v3225_v60 = vsel %vm244_vm7, %v3218_v28, %v3224_v51 }
0x247c   :  { %v3226_v10 = vpack.c.b16 %v3225_v60, %v3225_v60 }
0x247e   :  { %7966 = vmatmul.msk.bf16.vlgmr.msrb.gmra.mxu2 %vm189_vm0, %v3226_v10 }
0x2501   :  { %v3239_v20 = vpop.f32.mrf.mxu2 }
0x2502   :  { %v3240_v52 = vadd.f32 %v3239_v20, %v10202_v1 }
0x2504   :  { %v3243_v57 = vadd.f32 %v10376_v55, %v3240_v52 }
0x2506   :  { %8392 = vtanh.f32 %v3243_v57  ;;  %v7967_v17 = vmul.f32 -1.442695, %v3243_v57 }
0x2508   :  { %8394 = vpow2.f32 %v7967_v17 }
0x2509   :  { %v3241_v47 = vpop.f32.mrf.mxu2 }
0x250c   :  { %v8393_v13 = vpop.eup %8392 }
0x250d   :  { %3266 = vrot.lane.b32.xlu0 %v8393_v13, %s8943_s25 }
0x250e   :  { %v8395_v50 = vpop.eup %8394 }
0x250f   :  { %v3247_v31 = vadd.f32 1.0, %v8395_v50 }
0x2511   :  { %8396 = vrcp.f32 %v3247_v31  ;;  %v3259_v1 = vand.u32 2147483648, %v3247_v31  ;;  %vm3253_vm8 = vweird.f32 %v3247_v31  ;;  %v3257_v48 = vand.u32 2147483647, %v3247_v31 }
0x2513   :  { %v3260_v2 = vor.u32 1.1754944e-38, %v3259_v1  ;;  %vm3258_vm15 = vcmp.eq.f32.partialorder %v3257_v48, 8.507059e+37 }
0x2517   :  { %v8397_v58 = vpop.eup %8396 }
0x2518   :  { %v3249_v61 = vmul.f32 %v8397_v58, %v3247_v31  ;;  %vm3254_vm11 = vweird.f32 %v8397_v58 }
0x2519   :  { %vm3255_vm12 = vmor %vm3253_vm8, %vm3254_vm11 }
0x251a   :  { %v3250_v39 = vsub.f32 1.0, %v3249_v61 }
0x251c   :  { %v3251_v49 = vmul.f32 %v8397_v58, %v3250_v39 }
0x251e   :  { %v3252_v26 = vadd.f32 %v8397_v58, %v3251_v49 }
0x2520   :  { %v3256_v45 = vsel %vm3255_vm12, %v8397_v58, %v3252_v26 }
0x2521   :  { %v3261_v6 = vsel %vm3258_vm15, %v3260_v2, %v3256_v45  ;;  %vm3964_vm15 = vcmask 1046528  }
0x2522   :  { %v3264_v0 = vmul.f32 %v3261_v6, %v10157_v36 }
0x257f   :  { %v3267_v63 = vpop.permute.xlu0 %3266 }
0x2580   :  { %v3269_v5 = vmul.f32 %v3267_v63, %v3261_v6 }
0x2582   :  { %3271 = vrot.lane.b32.xlu2 %v3269_v5, %s8943_s25 }
0x25dc   :  { %v3272_v25 = vpop.permute.xlu2 %3271 }
0x25dd   :  { %v10382_v41 = vadd.f32 %v3272_v25, %v3264_v0 }
0x25df   :  { %8398 = vtanh.f32 %v10382_v41 }
0x25e5   :  { %v8399_v11 = vpop.eup %8398 }
0x25e6   :  { %3277 = vrot.lane.b32.xlu1 %v8399_v11, %s8943_s25 }
0x2658   :  { %v3278_v38 = vpop.permute.xlu1 %3277 }
0x2659   :  { %v3280_v3 = vmul.f32 %v3278_v38, %v3261_v6 }
0x265b   :  { %v3281_v59 = vpack.c.bf16 %v3280_v3, %v3280_v3  ;;  %v3787_v44 = vrot.slane %v3280_v3, 4  ;;  %v3788_v42 = vrot.slane %v3280_v3, 5  ;;  %v3785_v35 = vrot.slane %v3280_v3, 2 }
0x265c   :  { %v3786_v28 = vrot.slane %v3280_v3, 3  ;;  %v3784_v51 = vrot.slane %v3280_v3, 1  ;;  %v3879_v60 = vperm.slane %v3280_v3, 0  ;;  %v3789_v10 = vrot.slane %v3280_v3, 6 }
0x265d   :  { %v3284_v36 = vunpack.c.l.b16 %v3281_v59  ;;  %v3883_v20 = vperm.slane %v3787_v44, 0  ;;  %v3884_v52 = vperm.slane %v3788_v42, 0  ;;  %v3881_v57 = vperm.slane %v3785_v35, 0 }
0x265e   :  { %v3882_v47 = vperm.slane %v3786_v28, 0  ;;  %v3880_v13 = vperm.slane %v3784_v51, 0  ;;  %v10388_v17 = vsel %vm3955_vm9, %v10163_v32, %v3879_v60  ;;  %v3790_v50 = vrot.slane %v3280_v3, 7 }
0x265f   :  { %v3285_v31 = vpack.c.b16 %v3284_v36, %v3284_v36  ;;  %v10392_v58 = vsel %vm3955_vm9, %v10167_v30, %v3883_v20  ;;  %v10396_v61 = vsel %vm3955_vm9, %v10171_v12, %v3884_v52  ;;  %v10400_v39 = vsel %vm3955_vm9, %v10175_v53, %v3881_v57 }
0x2660   :  { %v10404_v49 = vsel %vm3955_vm9, %v10179_v27, %v3882_v47  ;;  %v10408_v32 = vsel %vm3955_vm9, %v10183_v24, %v3880_v13  ;;  %v3885_v26 = vperm.slane %v3789_v10, 0  ;;  %v3886_v1 = vperm.slane %v3790_v50, 0 }
0x2661   :  { %3286 = vrot.lane.b32.xlu0 %v3285_v31, %s8936_s26  ;;  %v3282_v53 = vpack.c.bf16 %v10382_v41, %v10382_v41 }
0x2662   :  { %v10413_v30 = vsel %vm3955_vm9, %v10188_v23, %v3885_v26  ;;  %v10417_v12 = vsel %vm3955_vm9, %v10192_v21, %v3886_v1  ;;  %vm4384_vm9 = vcmask 785920  }
0x26d3   :  { %v3287_v27 = vpop.permute.xlu0 %3286 }
0x26d4   :  { %v3290_v48 = vsel %vm468_vm13, %v3287_v27, %v3282_v53  ;;  %7969 = vmatmul.msk.bf16.vlgmr.msrb.gmra.mxu0 %vm468_vm13, %v3287_v27 }
0x26d5   :  { %7968 = vmatmul.msk.bf16.vlgmr.msrb.gmra.mxu1 %vm123_vm14, %v3290_v48 }
0x2751   :  { %v10424_v24 = vpop.f32.mrf.mxu0 }
0x2752   :  { %v3302_v45 = vpop.f32.mrf.mxu1 }
0x2753   :  { %v3314_v2 = vperm.slane %v3302_v45, 0  ;;  %v3308_v23 = vrot.slane %v3302_v45, 2  ;;  %v3307_v63 = vrot.slane %v3302_v45, 1  ;;  %v3309_v6 = vrot.slane %v3302_v45, 3 }
0x2754   :  { %v3312_v5 = vrot.slane %v3302_v45, 6  ;;  %v3310_v21 = vrot.slane %v3302_v45, 4  ;;  %v3311_v44 = vrot.slane %v3302_v45, 5  ;;  %v3313_v36 = vrot.slane %v3302_v45, 7 }
0x2755   :  { %v3330_v0 = vadd.f32 %v10199_v46, %v3314_v2  ;;  %v3316_v25 = vperm.slane %v3308_v23, 0  ;;  %v3315_v11 = vperm.slane %v3307_v63, 0  ;;  %v3317_v38 = vperm.slane %v3309_v6, 0 }
0x2756   :  { %v3320_v3 = vperm.slane %v3312_v5, 0  ;;  %v3318_v59 = vperm.slane %v3310_v21, 0  ;;  %v3319_v20 = vperm.slane %v3311_v44, 0 }
0x2757   :  { %8400 = vtanh.f32 %v3330_v0  ;;  %v3332_v42 = vadd.f32 %v10204_v33, %v3316_v25  ;;  %v3331_v35 = vadd.f32 %v10207_v15, %v3315_v11  ;;  %v3333_v28 = vadd.f32 %v10210_v56, %v3317_v38 }
0x2758   :  { %v3336_v60 = vadd.f32 %v10222_v18, %v3320_v3  ;;  %v3334_v46 = vadd.f32 %v10216_v22, %v3318_v59  ;;  %v3321_v33 = vperm.slane %v3313_v36, 0  ;;  %v3335_v56 = vadd.f32 %v10213_v16, %v3319_v20 }
0x2759   :  { %v3616_v51 = vpop.f32.mrf.mxu0  ;;  %8402 = vtanh.f32 %v3332_v42 }
0x275a   :  { %v3304_v10 = vpop.f32.mrf.mxu1  ;;  %8404 = vtanh.f32 %v3331_v35  ;;  %v3337_v26 = vadd.f32 %v10229_v37, %v3321_v33 }
0x275b   :  { %8406 = vtanh.f32 %v3333_v28 }
0x275c   :  { %8408 = vtanh.f32 %v3336_v60 }
0x275d   :  { %v8401_v52 = vpop.eup %8400  ;;  %8410 = vtanh.f32 %v3334_v46 }
0x275e   :  { %v3346_v57 = vmul.f32 %v10219_v29, %v8401_v52  ;;  %8412 = vtanh.f32 %v3335_v56 }
0x275f   :  { %v8403_v15 = vpop.eup %8402  ;;  %8414 = vtanh.f32 %v3337_v26 }
0x2760   :  { %v8405_v47 = vpop.eup %8404  ;;  %v3354_v13 = vsel %vm189_vm0, %v3346_v57, 0.0  ;;  %v3348_v18 = vmul.f32 %v10219_v29, %v8403_v15 }
0x2761   :  { %v8407_v50 = vpop.eup %8406  ;;  %3355 = vadd.xlane.f32.xlu2 %v3354_v13  ;;  %v3347_v22 = vmul.f32 %v10219_v29, %v8405_v47 }
0x2762   :  { %v3360_v31 = vsel %vm189_vm0, %v3348_v18, 0.0  ;;  %v8409_v1 = vpop.eup %8408  ;;  %v3349_v16 = vmul.f32 %v10219_v29, %v8407_v50 }
0x2763   :  { %3361 = vadd.xlane.f32.xlu0 %v3360_v31  ;;  %v3357_v53 = vsel %vm189_vm0, %v3347_v22, 0.0  ;;  %v8411_v27 = vpop.eup %8410  ;;  %v3352_v48 = vmul.f32 %v10219_v29, %v8409_v1 }
0x2764   :  { %3358 = vadd.xlane.f32.xlu1 %v3357_v53  ;;  %v3350_v45 = vmul.f32 %v10219_v29, %v8411_v27  ;;  %v3363_v2 = vsel %vm189_vm0, %v3349_v16, 0.0  ;;  %v8413_v23 = vpop.eup %8412 }
0x2765   :  { %v3372_v37 = vsel %vm189_vm0, %v3352_v48, 0.0  ;;  %v8415_v6 = vpop.eup %8414  ;;  %v3351_v5 = vmul.f32 %v10219_v29, %v8413_v23 }
0x2766   :  { %v3366_v63 = vsel %vm189_vm0, %v3350_v45, 0.0  ;;  %v3353_v21 = vmul.f32 %v10219_v29, %v8415_v6 }
0x2767   :  { %v3369_v0 = vsel %vm189_vm0, %v3351_v5, 0.0 }
0x2768   :  { %v3375_v25 = vsel %vm189_vm0, %v3353_v21, 0.0 }
0x2769   :  { %3364 = vadd.xlane.f32.xlu2 %v3363_v2 }
0x276b   :  { %3373 = vadd.xlane.f32.xlu0 %v3372_v37 }
0x276c   :  { %3367 = vadd.xlane.f32.xlu1 %v3366_v63 }
0x2771   :  { %3370 = vadd.xlane.f32.xlu2 %v3369_v0 }
0x2774   :  { %3376 = vadd.xlane.f32.xlu1 %v3375_v25 }
0x27d4   :  { %v3356_v11 = vpop.xlane.xlu2 %3355 }
0x27d5   :  { %v3386_v42 = vperm.slane %v3356_v11, %v9052_v9 }
0x27d6   :  { %v3362_v3 = vpop.xlane.xlu0 %3361 }
0x27d7   :  { %v3359_v38 = vpop.xlane.xlu1 %3358  ;;  %v3388_v35 = vperm.slane %v3362_v3, %v9052_v9 }
0x27d8   :  { %v3387_v59 = vperm.slane %v3359_v38, %v9052_v9 }
0x27da   :  { %v3394_v28 = vsel %vm232_vm1, %v3387_v59, %v3386_v42 }
0x27db   :  { %v3395_v60 = vsel %vm234_vm2, %v3388_v35, %v3394_v28 }
0x27dc   :  { %v3365_v44 = vpop.xlane.xlu2 %3364 }
0x27dd   :  { %v3389_v29 = vperm.slane %v3365_v44, %v9052_v9 }
0x27de   :  { %v3374_v36 = vpop.xlane.xlu0 %3373 }
0x27df   :  { %v3368_v51 = vpop.xlane.xlu1 %3367  ;;  %v3396_v46 = vsel %vm236_vm3, %v3389_v29, %v3395_v60  ;;  %v3392_v57 = vperm.slane %v3374_v36, %v9052_v9 }
0x27e0   :  { %v3390_v10 = vperm.slane %v3368_v51, %v9052_v9 }
0x27e2   :  { %v3397_v33 = vsel %vm238_vm4, %v3390_v10, %v3396_v46 }
0x27e4   :  { %v3371_v20 = vpop.xlane.xlu2 %3370 }
0x27e5   :  { %v3391_v52 = vperm.slane %v3371_v20, %v9052_v9 }
0x27e7   :  { %v3377_v15 = vpop.xlane.xlu1 %3376  ;;  %v3398_v56 = vsel %vm240_vm5, %v3391_v52, %v3397_v33  ;;  %v3530_v52 = vperm.slane %v10300_v8, 7  ;;  %v3551_v33 = vperm.slane %v10306_v40, 7 }
0x27e8   :  { %v3393_v47 = vperm.slane %v3377_v15, %v9052_v9  ;;  %v3399_v13 = vsel %vm242_vm6, %v3392_v57, %v3398_v56  ;;  %v3523_v57 = vperm.slane %v10288_v43, 7  ;;  %v3537_v56 = vperm.slane %v10294_v34, 7 }
0x27e9   :  { %v3544_v43 = vperm.slane %v10312_v14, 7 }
0x27ea   :  { %v3400_v18 = vsel %vm244_vm7, %v3393_v47, %v3399_v13  ;;  %v3565_v47 = vperm.slane %v10318_v54, 7 }
0x27eb   :  { %v3402_v50 = vsel %vm189_vm0, %v3400_v18, -inf }
0x27ec   :  { %3403 = vmax.xlane.f32.xlu2 %v3402_v50 }
0x285f   :  { %v3404_v22 = vpop.xlane.xlu2 %3403 }
0x2860   :  { %v3406_v31 = vperm.slane %v3404_v22, 0  ;;  %v3407_v26 = vperm.slane %v3404_v22, 1  ;;  %v3408_v1 = vperm.slane %v3404_v22, 2  ;;  %v3412_v53 = vperm.slane %v3404_v22, 6 }
0x2861   :  { %v3409_v45 = vperm.slane %v3404_v22, 3  ;;  %v3411_v2 = vperm.slane %v3404_v22, 5  ;;  %v3410_v42 = vperm.slane %v3404_v22, 4  ;;  %v3413_v28 = vperm.slane %v3404_v22, 7 }
0x2862   :  { %v3422_v27 = vsub.f32 %v3356_v11, %v3406_v31  ;;  %v3423_v16 = vsub.f32 %v3359_v38, %v3407_v26  ;;  %v3424_v48 = vsub.f32 %v3362_v3, %v3408_v1  ;;  %v3428_v6 = vsub.f32 %v3374_v36, %v3412_v53 }
0x2863   :  { %v3427_v5 = vsub.f32 %v3371_v20, %v3411_v2  ;;  %v3425_v21 = vsub.f32 %v3365_v44, %v3409_v45  ;;  %v3426_v3 = vsub.f32 %v3368_v51, %v3410_v42  ;;  %v3429_v46 = vsub.f32 %v3377_v15, %v3413_v28 }
0x2864   :  { %v3430_v23 = vmul.f32 1.442695, %v3422_v27  ;;  %v3432_v37 = vmul.f32 1.442695, %v3423_v16  ;;  %v3434_v63 = vmul.f32 1.442695, %v3424_v48 }
0x2865   :  { %v3442_v0 = vmul.f32 1.442695, %v3428_v6  ;;  %v3440_v25 = vmul.f32 1.442695, %v3427_v5  ;;  %v3436_v35 = vmul.f32 1.442695, %v3425_v21 }
0x2866   :  { %8416 = vpow2.f32 %v3434_v63  ;;  %v3438_v29 = vmul.f32 1.442695, %v3426_v3  ;;  %v3444_v36 = vmul.f32 1.442695, %v3429_v46  ;;  %v3558_v27 = vperm.slane %v10324_v62, 7 }
0x2867   :  { %8418 = vpow2.f32 %v3432_v37  ;;  %v3572_v62 = vperm.slane %v10335_v4, 7 }
0x2868   :  { %8420 = vpow2.f32 %v3430_v23 }
0x2869   :  { %8422 = vpow2.f32 %v3442_v0 }
0x286a   :  { %8424 = vpow2.f32 %v3440_v25 }
0x286b   :  { %8426 = vpow2.f32 %v3436_v35 }
0x286c   :  { %v10466_v59 = vpop.eup %8416  ;;  %8428 = vpow2.f32 %v3438_v29 }
0x286d   :  { %v10468_v11 = vpop.eup %8418  ;;  %3461 = vperm.xlu2 %8083, %v10466_v59   ;;  %8430 = vpow2.f32 %v3444_v36 }
0x286e   :  { %v10471_v38 = vpop.eup %8420  ;;  %3458 = vperm.xlu1 %8082, %v10468_v11  }
0x286f   :  { %3455 = vperm.xlu0 %8078, %v10471_v38   ;;  %v10475_v44 = vpop.eup %8422 }
0x2870   :  { %v10477_v60 = vpop.eup %8424 }
0x2871   :  { %v10480_v10 = vpop.eup %8426 }
0x2872   :  { %v10485_v51 = vpop.eup %8428 }
0x2873   :  { %v10488_v20 = vpop.eup %8430 }
0x2875   :  { %3473 = vperm.xlu2 %8083, %v10475_v44  }
0x2876   :  { %3470 = vperm.xlu1 %8082, %v10477_v60  }
0x2877   :  { %3464 = vperm.xlu0 %8078, %v10480_v10  }
0x287d   :  { %8084 = vset.pattern.permute.xlu2 %v9095_v19 }
0x287f   :  { %3467 = vperm.xlu0 %8078, %v10485_v51  }
0x2885   :  { %3528 = vperm.xlu2 %8084, %v3523_v57  }
0x2887   :  { %3476 = vperm.xlu0 %8078, %v10488_v20  }
0x288d   :  { %3542 = vperm.xlu2 %8084, %v3537_v56  }
0x288f   :  { %8085 = vset.pattern.permute.xlu0 %v9095_v19 }
0x2895   :  { %3549 = vperm.xlu2 %8084, %v3544_v43  }
0x2897   :  { %3535 = vperm.xlu0 %8085, %v3530_v52  }
0x289d   :  { %3563 = vperm.xlu2 %8084, %v3558_v27  }
0x289f   :  { %3556 = vperm.xlu0 %8085, %v3551_v33  }
0x28a5   :  { %3577 = vperm.xlu2 %8084, %v3572_v62  }
0x28a7   :  { %3570 = vperm.xlu0 %8085, %v3565_v47  }
0x28ad   :  { %8087 = vset.pattern.permute.xlu2 %v11856_v7 }
0x28af   :  { %8086 = vset.pattern.permute.xlu0 %v11856_v7 }
0x28c7   :  { %v3462_v50 = vpop.permute.xlu2 %3461 }
0x28c8   :  { %v3480_v34 = vperm.slane %v3462_v50, %v9052_v9 }
0x28cf   :  { %v3474_v16 = vpop.permute.xlu2 %3473 }
0x28d0   :  { %v3484_v2 = vperm.slane %v3474_v16, %v9052_v9 }
0x28df   :  { %v3529_v21 = vpop.permute.xlu2 %3528 }
0x28e0   :  { %v3459_v13 = vpop.permute.xlu1 %3458 }
0x28e1   :  { %v3456_v15 = vpop.permute.xlu0 %3455  ;;  %v3479_v19 = vperm.slane %v3459_v13, %v9052_v9 }
0x28e2   :  { %v3478_v8 = vperm.slane %v3456_v15, %v9052_v9 }
0x28e4   :  { %v3486_v22 = vsel %vm232_vm1, %v3479_v19, %v3478_v8 }
0x28e5   :  { %v3487_v1 = vsel %vm234_vm2, %v3480_v34, %v3486_v22 }
0x28e7   :  { %v3543_v0 = vpop.permute.xlu2 %3542 }
0x28e8   :  { %v3471_v26 = vpop.permute.xlu1 %3470 }
0x28e9   :  { %v3465_v18 = vpop.permute.xlu0 %3464  ;;  %v3483_v48 = vperm.slane %v3471_v26, %v9052_v9 }
0x28ea   :  { %v3481_v40 = vperm.slane %v3465_v18, %v9052_v9 }
0x28ec   :  { %v3488_v53 = vsel %vm236_vm3, %v3481_v40, %v3487_v1 }
0x28ef   :  { %v3550_v52 = vpop.permute.xlu2 %3549 }
0x28f1   :  { %v3468_v31 = vpop.permute.xlu0 %3467 }
0x28f2   :  { %v3482_v54 = vperm.slane %v3468_v31, %v9052_v9 }
0x28f4   :  { %v3489_v14 = vsel %vm238_vm4, %v3482_v54, %v3488_v53 }
0x28f5   :  { %v3490_v45 = vsel %vm240_vm5, %v3483_v48, %v3489_v14 }
0x28f6   :  { %v3491_v63 = vsel %vm242_vm6, %v3484_v2, %v3490_v45 }
0x28f9   :  { %v3477_v23 = vpop.permute.xlu0 %3476 }
0x28fa   :  { %v3485_v37 = vperm.slane %v3477_v23, %v9052_v9 }
0x28fc   :  { %v3492_v6 = vsel %vm244_vm7, %v3485_v37, %v3491_v63 }
0x28fd   :  { %v3494_v5 = vsel %vm189_vm0, %v3492_v6, 0.0 }
0x28fe   :  { %3495 = vadd.xlane.f32.xlu1 %v3494_v5 }
0x2909   :  { %v3536_v42 = vpop.permute.xlu0 %3535 }
0x2911   :  { %v3557_v56 = vpop.permute.xlu0 %3556 }
0x2919   :  { %v3571_v53 = vpop.permute.xlu0 %3570 }
0x2971   :  { %v3496_v25 = vpop.xlane.xlu1 %3495 }
0x2972   :  { %8432 = vrcp.f32 %v3496_v25 }
0x2978   :  { %v8433_v35 = vpop.eup %8432 }
0x2979   :  { %v3503_v3 = vperm.slane %v8433_v35, 4  ;;  %v3501_v28 = vperm.slane %v8433_v35, 2  ;;  %v3499_v29 = vperm.slane %v8433_v35, 0  ;;  %v3500_v46 = vperm.slane %v8433_v35, 1 }
0x297a   :  { %v3502_v36 = vperm.slane %v8433_v35, 3  ;;  %v3504_v22 = vperm.slane %v8433_v35, 5  ;;  %v3505_v34 = vperm.slane %v8433_v35, 6  ;;  %v3506_v27 = vperm.slane %v8433_v35, 7 }
0x297b   :  { %v3517_v4 = vmul.f32 %v10466_v59, %v3501_v28  ;;  %v3515_v57 = vmul.f32 %v10471_v38, %v3499_v29  ;;  %v3516_v33 = vmul.f32 %v10468_v11, %v3500_v46  ;;  %v3519_v15 = vmul.f32 %v10485_v51, %v3503_v3  ;;  %v3564_v11 = vpop.permute.xlu2 %3563 }
0x297c   :  { %v3518_v50 = vmul.f32 %v10480_v10, %v3502_v36  ;;  %v3520_v51 = vmul.f32 %v10477_v60, %v3504_v22  ;;  %v3521_v1 = vmul.f32 %v10475_v44, %v3505_v34  ;;  %v3522_v23 = vmul.f32 %v10488_v20, %v3506_v27 }
0x297d   :  { %v3589_v47 = vmul.f32 %v3543_v0, %v3517_v4  ;;  %v3587_v13 = vmul.f32 %v3529_v21, %v3515_v57  ;;  %v3588_v18 = vmul.f32 %v3536_v42, %v3516_v33  ;;  %v3591_v40 = vmul.f32 %v3557_v56, %v3519_v15 }
0x297e   :  { %v3590_v38 = vmul.f32 %v3550_v52, %v3518_v50  ;;  %v3592_v14 = vmul.f32 %v3564_v11, %v3520_v51  ;;  %v3593_v48 = vmul.f32 %v3571_v53, %v3521_v1 }
0x297f   :  { %v3597_v19 = vpack.c.bf16 %v3589_v47, %v3589_v47  ;;  %v3595_v8 = vpack.c.bf16 %v3587_v13, %v3587_v13  ;;  %v3596_v43 = vpack.c.bf16 %v3588_v18, %v3588_v18  ;;  %v3599_v26 = vpack.c.bf16 %v3591_v40, %v3591_v40 }
0x2980   :  { %v3598_v10 = vpack.c.bf16 %v3590_v38, %v3590_v38  ;;  %v3600_v2 = vpack.c.bf16 %v3592_v14, %v3592_v14  ;;  %v3601_v37 = vpack.c.bf16 %v3593_v48, %v3593_v48 }
0x2981   :  { %v3628_v31 = vunpack.c.l.b16 %v3597_v19  ;;  %v3626_v59 = vunpack.c.l.b16 %v3595_v8  ;;  %v3627_v54 = vunpack.c.l.b16 %v3596_v43  ;;  %v3630_v16 = vunpack.c.l.b16 %v3599_v26 }
0x2982   :  { %v3629_v45 = vunpack.c.l.b16 %v3598_v10  ;;  %v3631_v6 = vunpack.c.l.b16 %v3600_v2  ;;  %v3632_v60 = vunpack.c.l.b16 %v3601_v37 }
0x2983   :  { %3641 = vperm.xlu2 %8087, %v3628_v31   ;;  %3635 = vperm.xlu0 %8086, %v3626_v59   ;;  %v3578_v63 = vpop.permute.xlu2 %3577 }
0x2984   :  { %3638 = vperm.xlu1 %8082, %v3627_v54   ;;  %v3594_v62 = vmul.f32 %v3578_v63, %v3522_v23 }
0x2986   :  { %v3602_v44 = vpack.c.bf16 %v3594_v62, %v3594_v62 }
0x2988   :  { %v3633_v5 = vunpack.c.l.b16 %v3602_v44 }
0x298b   :  { %3644 = vperm.xlu2 %8087, %v3629_v45   ;;  %3647 = vperm.xlu0 %8086, %v3630_v16  }
0x2993   :  { %3650 = vperm.xlu2 %8087, %v3631_v6   ;;  %3653 = vperm.xlu0 %8086, %v3632_v60  }
0x299b   :  { %3656 = vperm.xlu2 %8087, %v3633_v5  }
0x29dd   :  { %v3642_v21 = vpop.permute.xlu2 %3641 }
0x29de   :  { %v3660_v46 = vperm.slane %v3642_v21, %v9052_v9 }
0x29e5   :  { %v3645_v0 = vpop.permute.xlu2 %3644 }
0x29e6   :  { %v3661_v4 = vperm.slane %v3645_v0, %v9052_v9 }
0x29ed   :  { %v3651_v28 = vpop.permute.xlu2 %3650 }
0x29ee   :  { %v3663_v56 = vperm.slane %v3651_v28, %v9052_v9 }
0x29f5   :  { %v3636_v25 = vpop.permute.xlu0 %3635  ;;  %v3657_v33 = vpop.permute.xlu2 %3656 }
0x29f6   :  { %v3639_v42 = vpop.permute.xlu1 %3638  ;;  %v3658_v3 = vperm.slane %v3636_v25, %v9052_v9  ;;  %v3665_v18 = vperm.slane %v3657_v33, %v9052_v9 }
0x29f7   :  { %v3659_v35 = vperm.slane %v3639_v42, %v9052_v9 }
0x29f9   :  { %v3666_v20 = vsel %vm232_vm1, %v3659_v35, %v3658_v3 }
0x29fa   :  { %v3667_v36 = vsel %vm234_vm2, %v3660_v46, %v3666_v20 }
0x29fb   :  { %v3668_v57 = vsel %vm236_vm3, %v3661_v4, %v3667_v36 }
0x29fd   :  { %v3648_v29 = vpop.permute.xlu0 %3647 }
0x29fe   :  { %v3662_v52 = vperm.slane %v3648_v29, %v9052_v9 }
0x2a00   :  { %v3669_v15 = vsel %vm238_vm4, %v3662_v52, %v3668_v57 }
0x2a01   :  { %v3670_v50 = vsel %vm240_vm5, %v3663_v56, %v3669_v15 }
0x2a05   :  { %v3654_v47 = vpop.permute.xlu0 %3653 }
0x2a06   :  { %v3664_v13 = vperm.slane %v3654_v47, %v9052_v9  ;;  %v8037_v47 = vld [vmem:[#allocation4 + $0x70] sm:$0xff] }
0x2a07   :  { %4049 = vmatpush.bf16.msra.mxu2 %v8037_v47 }
0x2a08   :  { %v3671_v19 = vsel %vm242_vm6, %v3664_v13, %v3670_v50  ;;  %v10592_v13 = vld [vmem:[#allocation4 + $0x60] sm:$0xff]  ;;  %v10595_v50 = vld [vmem:[#allocation4 + $0x58] sm:$0xff] }
0x2a09   :  { %v3672_v8 = vsel %vm244_vm7, %v3665_v18, %v3671_v19  ;;  %4109 = vmatpush.bf16.msra.mxu1 %v10592_v13  ;;  %v8036_v18 = vld [vmem:[#allocation4 + $0x68] sm:$0xff]  ;;  %4611 = vmatpush.bf16.msra.mxu3 %v10592_v13 }
0x2a0a   :  { %v3673_v43 = vpack.c.b16 %v3672_v8, %v3672_v8 }
0x2a0b   :  { %4050 = vmatpush.bf16.msra.mxu2 %v8036_v18 }
0x2a0c   :  { %7970 = vmatmul.msk.bf16.vlgmr.msrb.gmra.mxu3 %vm189_vm0, %v3673_v43 }
0x2a0d   :  { %4110 = vmatpush.bf16.msra.mxu1 %v10595_v50  ;;  %4612 = vmatpush.bf16.msra.mxu3 %v10595_v50 }
0x2a0f   :  { %6941 = vmatpush.bf16.msrb.mxu2 %v10592_v13 }
0x2a13   :  { %6942 = vmatpush.bf16.msrb.mxu2 %v10595_v50 }
0x2a8f   :  { %v3686_v22 = vpop.f32.mrf.mxu3 }
0x2a90   :  { %v3687_v40 = vadd.f32 %v3686_v22, %v10424_v24 }
0x2a92   :  { %v3690_v34 = vadd.f32 %v10376_v55, %v3687_v40 }
0x2a94   :  { %8434 = vtanh.f32 %v3690_v34  ;;  %v7971_v54 = vmul.f32 -1.442695, %v3690_v34 }
0x2a96   :  { %8436 = vpow2.f32 %v7971_v54 }
0x2a97   :  { %v3688_v31 = vpop.f32.mrf.mxu3 }
0x2a98   :  { %v10619_v31 = vld [vmem:[#allocation6 + $0x10] ss:$0 sm:$0xff] }
0x2a9a   :  { %v8435_v59 = vpop.eup %8434 }
0x2a9b   :  { %3713 = vrot.lane.b32.xlu1 %v8435_v59, %s8943_s25 }
0x2a9c   :  { %v8437_v38 = vpop.eup %8436 }
0x2a9d   :  { %v3694_v11 = vadd.f32 1.0, %v8437_v38 }
0x2a9f   :  { %8438 = vrcp.f32 %v3694_v11  ;;  %v3706_v27 = vand.u32 2147483648, %v3694_v11  ;;  %vm3700_vm11 = vweird.f32 %v3694_v11  ;;  %v3704_v24 = vand.u32 2147483647, %v3694_v11 }
0x2aa1   :  { %v3707_v14 = vor.u32 1.1754944e-38, %v3706_v27  ;;  %vm3705_vm12 = vcmp.eq.f32.partialorder %v3704_v24, 8.507059e+37 }
0x2aa5   :  { %v8439_v51 = vpop.eup %8438 }
0x2aa6   :  { %v3696_v26 = vmul.f32 %v8439_v51, %v3694_v11  ;;  %vm3701_vm10 = vweird.f32 %v8439_v51 }
0x2aa7   :  { %vm3702_vm8 = vmor %vm3700_vm11, %vm3701_vm10 }
0x2aa8   :  { %v3697_v1 = vsub.f32 1.0, %v3696_v26 }
0x2aaa   :  { %v3698_v10 = vmul.f32 %v8439_v51, %v3697_v1 }
0x2aac   :  { %v3699_v53 = vadd.f32 %v8439_v51, %v3698_v10  ;;  %v10627_v10 = vld [vmem:[#allocation6 + $0x18] ss:$0 sm:$0xff] }
0x2aae   :  { %v3703_v55 = vsel %vm3702_vm8, %v8439_v51, %v3699_v53 }
0x2aaf   :  { %v3708_v48 = vsel %vm3705_vm12, %v3707_v14, %v3703_v55 }
0x2ab0   :  { %v3711_v2 = vmul.f32 %v3708_v48, %v10382_v41 }
0x2b0d   :  { %v3714_v16 = vpop.permute.xlu1 %3713 }
0x2b0e   :  { %v3716_v45 = vmul.f32 %v3714_v16, %v3708_v48 }
0x2b10   :  { %3718 = vrot.lane.b32.xlu0 %v3716_v45, %s8943_s25 }
0x2b82   :  { %v3719_v23 = vpop.permute.xlu0 %3718 }
0x2b83   :  { %v3721_v37 = vadd.f32 %v3719_v23, %v3711_v2 }
0x2b85   :  { %8440 = vtanh.f32 %v3721_v37 }
0x2b8b   :  { %v8441_v63 = vpop.eup %8440 }
0x2b8c   :  { %3724 = vrot.lane.b32.xlu2 %v8441_v63, %s8943_s25 }
0x2be6   :  { %v3725_v6 = vpop.permute.xlu2 %3724 }
0x2be7   :  { %v3727_v62 = vmul.f32 %v3725_v6, %v3708_v48 }
0x2be9   :  { %v3795_v60 = vrot.slane %v3727_v62, 4  ;;  %v3796_v44 = vrot.slane %v3727_v62, 5  ;;  %v3793_v5 = vrot.slane %v3727_v62, 2  ;;  %v3794_v21 = vrot.slane %v3727_v62, 3 }
0x2bea   :  { %v3792_v0 = vrot.slane %v3727_v62, 1  ;;  %v3895_v25 = vperm.slane %v3727_v62, 0  ;;  %v3797_v20 = vrot.slane %v3727_v62, 6  ;;  %v3798_v29 = vrot.slane %v3727_v62, 7 }
0x2beb   :  { %v3899_v42 = vperm.slane %v3795_v60, 0  ;;  %v3900_v35 = vperm.slane %v3796_v44, 0  ;;  %v3897_v3 = vperm.slane %v3793_v5, 0  ;;  %v3898_v28 = vperm.slane %v3794_v21, 0 }
0x2bec   :  { %v3896_v41 = vperm.slane %v3792_v0, 0  ;;  %v3902_v15 = vperm.slane %v3798_v29, 0 }
0x2bed   :  { %v10550_v46 = vsel %vm3964_vm15, %v10392_v58, %v3899_v42  ;;  %v10554_v36 = vsel %vm3964_vm15, %v10396_v61, %v3900_v35  ;;  %v10558_v52 = vsel %vm3964_vm15, %v10400_v39, %v3897_v3  ;;  %v10562_v4 = vsel %vm3964_vm15, %v10404_v49, %v3898_v28 }
0x2bee   :  { %v4005_v57 = vpack.c.bf16 %v10554_v36, %v10550_v46  ;;  %v4004_v33 = vpack.c.bf16 %v10562_v4, %v10558_v52  ;;  %v10570_v58 = vsel %vm3964_vm15, %v10388_v17, %v3895_v25  ;;  %v10574_v61 = vsel %vm3964_vm15, %v10408_v32, %v3896_v41 }
0x2bef   :  { %v4003_v39 = vpack.c.bf16 %v10574_v61, %v10570_v58  ;;  %v3901_v49 = vperm.slane %v3797_v20, 0  ;;  %v10587_v17 = vsel %vm3964_vm15, %v10417_v12, %v3902_v15  ;;  %v10607_v12 = vld [vmem:[#allocation4 + $0x48] sm:$0xff] }
0x2bf0   :  { %4015 = vrot.lane.b32.xlu2 %v4005_v57, %s8936_s26  ;;  %4013 = vrot.lane.b32.xlu0 %v4004_v33, %s8936_s26 }
0x2bf1   :  { %4011 = vrot.lane.b32.xlu1 %v4003_v39, %s8936_s26  ;;  %v10583_v56 = vsel %vm3964_vm15, %v10413_v30, %v3901_v49  ;;  %v10599_v30 = vld [vmem:[#allocation4 + $0x50] sm:$0xff] }
0x2bf2   :  { %v4006_v32 = vpack.c.bf16 %v10587_v17, %v10583_v56  ;;  %4111 = vmatpush.bf16.msra.mxu1 %v10599_v30  ;;  %4613 = vmatpush.bf16.msra.mxu3 %v10599_v30 }
0x2bf3   :  { %6943 = vmatpush.bf16.msrb.mxu2 %v10599_v30 }
0x2bf6   :  { %4112 = vmatpush.bf16.msra.mxu1 %v10607_v12  ;;  %4614 = vmatpush.bf16.msra.mxu3 %v10607_v12 }
0x2bf7   :  { %6944 = vmatpush.bf16.msrb.mxu2 %v10607_v12 }
0x2bf9   :  { %4017 = vrot.lane.b32.xlu1 %v4006_v32, %s8936_s26  ;;  %4113 = vmatmul.bf16.vlgmr.msra.gmra.mxu1 %v11856_v7 }
0x2c4a   :  { %v4016_v43 = vpop.permute.xlu2 %4015 }
0x2c62   :  { %v4014_v8 = vpop.permute.xlu0 %4013 }
0x2c63   :  { %v4012_v19 = vpop.permute.xlu1 %4011 }
0x2c64   :  { %7980 = vmatmul.msk.bf16.vlgmr.msra.gmra.mxu2 %vm468_vm13, %v4012_v19 }
0x2c6b   :  { %v4018_v22 = vpop.permute.xlu1 %4017 }
0x2c74   :  { %7981 = vmatmul.msk.bf16.gmra.mxu2 %vm468_vm13, %v4014_v8 }
0x2c76   :  { %v10617_v40 = vpop.f32.mrf.mxu1 }
0x2c77   :  { %v4126_v59 = vperm.slane %v10617_v40, 0  ;;  %v4119_v51 = vrot.slane %v10617_v40, 1  ;;  %v4120_v55 = vrot.slane %v10617_v40, 2  ;;  %v4121_v63 = vrot.slane %v10617_v40, 3 }
0x2c78   :  { %v4122_v25 = vrot.slane %v10617_v40, 4  ;;  %v4123_v57 = vrot.slane %v10617_v40, 5  ;;  %v4124_v8 = vrot.slane %v10617_v40, 6 }
0x2c79   :  { %v4127_v26 = vperm.slane %v4119_v51, 0  ;;  %v4128_v48 = vperm.slane %v4120_v55, 0  ;;  %v4129_v60 = vperm.slane %v4121_v63, 0 }
0x2c7a   :  { %v4130_v3 = vperm.slane %v4122_v25, 0  ;;  %v4131_v49 = vperm.slane %v4123_v57, 0 }
0x2c7e   :  { %v4116_v34 = vpop.f32.mrf.mxu1 }
0x2c84   :  { %7982 = vmatmul.msk.bf16.gmra.mxu2 %vm468_vm13, %v4016_v43 }
0x2c94   :  { %7983 = vmatmul.msk.bf16.gmra.mxu2 %vm468_vm13, %v4018_v22 }
0x2ce7   :  { %v4052_v54 = vpop.f32.mrf.mxu2 }
0x2ce8   :  { %v10623_v38 = vadd.f32 %v10619_v31, %v4052_v54 }
0x2cea   :  { %v4142_v11 = vadd.f32 %v4126_v59, %v10623_v38  ;;  %v4132_v59 = vperm.slane %v4124_v8, 0 }
0x2cec   :  { %8442 = vtanh.f32 %v4142_v11 }
0x2cef   :  { %v4054_v1 = vpop.f32.mrf.mxu2 }
0x2cf0   :  { %v10630_v53 = vadd.f32 %v10619_v31, %v4054_v1 }
0x2cf2   :  { %v8443_v27 = vpop.eup %8442  ;;  %v4143_v24 = vadd.f32 %v4127_v26, %v10630_v53  ;;  %v4125_v26 = vrot.slane %v10617_v40, 7 }
0x2cf3   :  { %v4159_v14 = vmul.f32 %v8443_v27, %v10627_v10 }
0x2cf4   :  { %8444 = vtanh.f32 %v4143_v24  ;;  %v4133_v55 = vperm.slane %v4125_v26, 0 }
0x2cf5   :  { %v4167_v16 = vsel %vm468_vm13, %v4159_v14, 0.0 }
0x2cf6   :  { %4168 = vadd.xlane.f32.xlu0 %v4167_v16 }
0x2cf7   :  { %v4057_v45 = vpop.f32.mrf.mxu2 }
0x2cf8   :  { %v10637_v2 = vadd.f32 %v10619_v31, %v4057_v45 }
0x2cfa   :  { %v8445_v23 = vpop.eup %8444  ;;  %v4144_v37 = vadd.f32 %v4128_v48, %v10637_v2 }
0x2cfb   :  { %v4160_v6 = vmul.f32 %v8445_v23, %v10627_v10 }
0x2cfc   :  { %8446 = vtanh.f32 %v4144_v37 }
0x2cfd   :  { %v4170_v62 = vsel %vm468_vm13, %v4160_v6, 0.0 }
0x2cfe   :  { %4171 = vadd.xlane.f32.xlu2 %v4170_v62 }
0x2cff   :  { %v4059_v44 = vpop.f32.mrf.mxu2 }
0x2d00   :  { %v10644_v5 = vadd.f32 %v10619_v31, %v4059_v44 }
0x2d02   :  { %v8447_v21 = vpop.eup %8446  ;;  %v4145_v0 = vadd.f32 %v4129_v60, %v10644_v5 }
0x2d03   :  { %v4161_v42 = vmul.f32 %v8447_v21, %v10627_v10 }
0x2d04   :  { %8448 = vtanh.f32 %v4145_v0 }
0x2d05   :  { %v4173_v35 = vsel %vm468_vm13, %v4161_v42, 0.0 }
0x2d06   :  { %4174 = vadd.xlane.f32.xlu1 %v4173_v35 }
0x2d07   :  { %v4062_v28 = vpop.f32.mrf.mxu2 }
0x2d08   :  { %v10651_v41 = vadd.f32 %v10619_v31, %v4062_v28 }
0x2d0a   :  { %v8449_v20 = vpop.eup %8448  ;;  %v4146_v29 = vadd.f32 %v4130_v3, %v10651_v41 }
0x2d0b   :  { %v4162_v33 = vmul.f32 %v8449_v20, %v10627_v10 }
0x2d0c   :  { %8450 = vtanh.f32 %v4146_v29 }
0x2d0d   :  { %v4176_v39 = vsel %vm468_vm13, %v4162_v33, 0.0 }
0x2d0e   :  { %4177 = vadd.xlane.f32.xlu0 %v4176_v39 }
0x2d0f   :  { %v4064_v15 = vpop.f32.mrf.mxu2 }
0x2d10   :  { %v10658_v32 = vadd.f32 %v10619_v31, %v4064_v15 }
0x2d12   :  { %v8451_v47 = vpop.eup %8450  ;;  %v4147_v18 = vadd.f32 %v4131_v49, %v10658_v32 }
0x2d13   :  { %v4163_v19 = vmul.f32 %v8451_v47, %v10627_v10 }
0x2d14   :  { %8452 = vtanh.f32 %v4147_v18 }
0x2d15   :  { %v4179_v43 = vsel %vm468_vm13, %v4163_v19, 0.0 }
0x2d16   :  { %4180 = vadd.xlane.f32.xlu2 %v4179_v43 }
0x2d17   :  { %v4067_v22 = vpop.f32.mrf.mxu2 }
0x2d18   :  { %v10665_v34 = vadd.f32 %v10619_v31, %v4067_v22 }
0x2d1a   :  { %v8453_v54 = vpop.eup %8452  ;;  %v4148_v11 = vadd.f32 %v4132_v59, %v10665_v34 }
0x2d1b   :  { %v4164_v51 = vmul.f32 %v8453_v54, %v10627_v10 }
0x2d1c   :  { %8454 = vtanh.f32 %v4148_v11 }
0x2d1d   :  { %v4182_v1 = vsel %vm468_vm13, %v4164_v51, 0.0 }
0x2d1e   :  { %4183 = vadd.xlane.f32.xlu1 %v4182_v1 }
0x2d1f   :  { %v4069_v27 = vpop.f32.mrf.mxu2 }
0x2d20   :  { %v10672_v24 = vadd.f32 %v10619_v31, %v4069_v27 }
0x2d22   :  { %v8455_v14 = vpop.eup %8454  ;;  %v4149_v16 = vadd.f32 %v4133_v55, %v10672_v24 }
0x2d23   :  { %v4165_v48 = vmul.f32 %v8455_v14, %v10627_v10 }
0x2d24   :  { %8456 = vtanh.f32 %v4149_v16 }
0x2d25   :  { %v4185_v45 = vsel %vm468_vm13, %v4165_v48, 0.0 }
0x2d26   :  { %4186 = vadd.xlane.f32.xlu0 %v4185_v45 }
0x2d2a   :  { %v8457_v23 = vpop.eup %8456 }
0x2d2b   :  { %v4166_v40 = vmul.f32 %v8457_v23, %v10627_v10 }
0x2d2d   :  { %v4188_v37 = vsel %vm468_vm13, %v4166_v40, 0.0 }
0x2d2e   :  { %4189 = vadd.xlane.f32.xlu2 %v4188_v37 }
0x2d69   :  { %v4169_v63 = vpop.xlane.xlu0 %4168 }
0x2d6a   :  { %v4199_v25 = vperm.slane %v4169_v63, %v9052_v9 }
0x2d71   :  { %v4172_v6 = vpop.xlane.xlu2 %4171 }
0x2d72   :  { %v4200_v44 = vperm.slane %v4172_v6, %v9052_v9 }
0x2d74   :  { %v4207_v28 = vsel %vm232_vm1, %v4200_v44, %v4199_v25 }
0x2d79   :  { %v4175_v31 = vpop.xlane.xlu1 %4174 }
0x2d7a   :  { %v4201_v21 = vperm.slane %v4175_v31, %v9052_v9 }
0x2d7c   :  { %v4208_v29 = vsel %vm234_vm2, %v4201_v21, %v4207_v28 }
0x2d81   :  { %v4178_v62 = vpop.xlane.xlu0 %4177 }
0x2d82   :  { %v4202_v42 = vperm.slane %v4178_v62, %v9052_v9 }
0x2d84   :  { %v4209_v33 = vsel %vm236_vm3, %v4202_v42, %v4208_v29 }
0x2d89   :  { %v4181_v60 = vpop.xlane.xlu2 %4180 }
0x2d8a   :  { %v4203_v3 = vperm.slane %v4181_v60, %v9052_v9 }
0x2d8c   :  { %v4210_v39 = vsel %vm238_vm4, %v4203_v3, %v4209_v33 }
0x2d91   :  { %v4184_v0 = vpop.xlane.xlu1 %4183 }
0x2d92   :  { %v4204_v20 = vperm.slane %v4184_v0, %v9052_v9 }
0x2d94   :  { %v4211_v47 = vsel %vm240_vm5, %v4204_v20, %v4210_v39 }
0x2d99   :  { %v4187_v35 = vpop.xlane.xlu0 %4186 }
0x2d9a   :  { %v4205_v57 = vperm.slane %v4187_v35, %v9052_v9 }
0x2d9c   :  { %v4212_v18 = vsel %vm242_vm6, %v4205_v57, %v4211_v47 }
0x2da1   :  { %v4190_v49 = vpop.xlane.xlu2 %4189 }
0x2da2   :  { %v4206_v15 = vperm.slane %v4190_v49, %v9052_v9 }
0x2da4   :  { %v4213_v19 = vsel %vm244_vm7, %v4206_v15, %v4212_v18 }
0x2da5   :  { %v4215_v8 = vsel %vm189_vm0, %v4213_v19, -inf }
0x2da6   :  { %4216 = vmax.xlane.f32.xlu1 %v4215_v8 }
0x2e19   :  { %v4217_v43 = vpop.xlane.xlu1 %4216 }
0x2e1a   :  { %v4219_v22 = vperm.slane %v4217_v43, 0  ;;  %v4220_v59 = vperm.slane %v4217_v43, 1  ;;  %v4221_v54 = vperm.slane %v4217_v43, 2  ;;  %v4225_v11 = vperm.slane %v4217_v43, 6 }
0x2e1b   :  { %v4222_v27 = vperm.slane %v4217_v43, 3  ;;  %v4223_v55 = vperm.slane %v4217_v43, 4  ;;  %v4226_v44 = vperm.slane %v4217_v43, 7  ;;  %v4224_v42 = vperm.slane %v4217_v43, 5 }
0x2e1c   :  { %v4235_v51 = vsub.f32 %v4169_v63, %v4219_v22  ;;  %v4236_v26 = vsub.f32 %v4172_v6, %v4220_v59  ;;  %v4237_v1 = vsub.f32 %v4175_v31, %v4221_v54  ;;  %v4241_v45 = vsub.f32 %v4187_v35, %v4225_v11 }
0x2e1d   :  { %v4239_v23 = vsub.f32 %v4181_v60, %v4223_v55  ;;  %v4238_v40 = vsub.f32 %v4178_v62, %v4222_v27  ;;  %v4242_v31 = vsub.f32 %v4190_v49, %v4226_v44  ;;  %v4240_v35 = vsub.f32 %v4184_v0, %v4224_v42 }
0x2e1e   :  { %v4243_v14 = vmul.f32 1.442695, %v4235_v51  ;;  %v4245_v16 = vmul.f32 1.442695, %v4236_v26  ;;  %v4247_v48 = vmul.f32 1.442695, %v4237_v1 }
0x2e1f   :  { %v4255_v37 = vmul.f32 1.442695, %v4241_v45  ;;  %v4251_v21 = vmul.f32 1.442695, %v4239_v23  ;;  %v4249_v3 = vmul.f32 1.442695, %v4238_v40 }
0x2e20   :  { %8458 = vpow2.f32 %v4247_v48  ;;  %v4257_v60 = vmul.f32 1.442695, %v4242_v31  ;;  %v4253_v62 = vmul.f32 1.442695, %v4240_v35 }
0x2e21   :  { %8460 = vpow2.f32 %v4245_v16 }
0x2e22   :  { %8462 = vpow2.f32 %v4243_v14 }
0x2e23   :  { %8464 = vpow2.f32 %v4255_v37 }
0x2e24   :  { %8466 = vpow2.f32 %v4251_v21 }
0x2e25   :  { %8468 = vpow2.f32 %v4249_v3 }
0x2e26   :  { %v8459_v25 = vpop.eup %8458  ;;  %8470 = vpow2.f32 %v4257_v60 }
0x2e27   :  { %v8461_v63 = vpop.eup %8460  ;;  %4274 = vperm.xlu1 %8082, %v8459_v25   ;;  %8472 = vpow2.f32 %v4253_v62 }
0x2e28   :  { %v8463_v6 = vpop.eup %8462  ;;  %4271 = vperm.xlu2 %8087, %v8461_v63  }
0x2e29   :  { %4268 = vperm.xlu0 %8086, %v8463_v6   ;;  %v8465_v28 = vpop.eup %8464 }
0x2e2a   :  { %v8467_v20 = vpop.eup %8466 }
0x2e2b   :  { %v8469_v29 = vpop.eup %8468 }
0x2e2c   :  { %v8471_v57 = vpop.eup %8470 }
0x2e2d   :  { %v8473_v33 = vpop.eup %8472 }
0x2e2f   :  { %4286 = vperm.xlu1 %8082, %v8465_v28  }
0x2e30   :  { %4280 = vperm.xlu2 %8087, %v8467_v20  }
0x2e31   :  { %4277 = vperm.xlu0 %8086, %v8469_v29  }
0x2e38   :  { %4289 = vperm.xlu2 %8087, %v8471_v57  }
0x2e39   :  { %4283 = vperm.xlu0 %8086, %v8473_v33  }
0x2e82   :  { %v4272_v39 = vpop.permute.xlu2 %4271 }
0x2e83   :  { %v4292_v19 = vperm.slane %v4272_v39, %v9052_v9 }
0x2e8a   :  { %v4281_v47 = vpop.permute.xlu2 %4280 }
0x2e8b   :  { %v4295_v51 = vperm.slane %v4281_v47, %v9052_v9 }
0x2e92   :  { %v4290_v26 = vpop.permute.xlu2 %4289 }
0x2e93   :  { %v4298_v16 = vperm.slane %v4290_v26, %v9052_v9 }
0x2e99   :  { %v4275_v15 = vpop.permute.xlu1 %4274 }
0x2e9a   :  { %v4293_v8 = vperm.slane %v4275_v15, %v9052_v9 }
0x2e9b   :  { %v4269_v49 = vpop.permute.xlu0 %4268 }
0x2e9c   :  { %v4291_v0 = vperm.slane %v4269_v49, %v9052_v9 }
0x2e9e   :  { %v4299_v43 = vsel %vm232_vm1, %v4292_v19, %v4291_v0 }
0x2e9f   :  { %v4300_v59 = vsel %vm234_vm2, %v4293_v8, %v4299_v43 }
0x2ea1   :  { %v4287_v54 = vpop.permute.xlu1 %4286 }
0x2ea2   :  { %v4297_v55 = vperm.slane %v4287_v54, %v9052_v9 }
0x2ea3   :  { %v4278_v18 = vpop.permute.xlu0 %4277 }
0x2ea4   :  { %v4294_v22 = vperm.slane %v4278_v18, %v9052_v9 }
0x2ea6   :  { %v4301_v11 = vsel %vm236_vm3, %v4294_v22, %v4300_v59 }
0x2ea7   :  { %v4302_v14 = vsel %vm238_vm4, %v4295_v51, %v4301_v11 }
0x2eab   :  { %v4284_v1 = vpop.permute.xlu0 %4283 }
0x2eac   :  { %v4296_v27 = vperm.slane %v4284_v1, %v9052_v9 }
0x2eae   :  { %v4303_v48 = vsel %vm240_vm5, %v4296_v27, %v4302_v14 }
0x2eaf   :  { %v4304_v45 = vsel %vm242_vm6, %v4297_v55, %v4303_v48 }
0x2eb0   :  { %v4305_v23 = vsel %vm244_vm7, %v4298_v16, %v4304_v45 }
0x2eb1   :  { %v4307_v40 = vsel %vm189_vm0, %v4305_v23, 0.0 }
0x2eb2   :  { %4308 = vadd.xlane.f32.xlu0 %v4307_v40 }
0x2f25   :  { %v4309_v37 = vpop.xlane.xlu0 %4308 }
0x2f26   :  { %8474 = vrcp.f32 %v4309_v37 }
0x2f2c   :  { %v8475_v44 = vpop.eup %8474 }
0x2f2d   :  { %v4314_v21 = vperm.slane %v8475_v44, 2  ;;  %v4313_v42 = vperm.slane %v8475_v44, 1  ;;  %v4315_v35 = vperm.slane %v8475_v44, 3  ;;  %v4312_v60 = vperm.slane %v8475_v44, 0 }
0x2f2e   :  { %v4317_v49 = vperm.slane %v8475_v44, 5  ;;  %v4316_v15 = vperm.slane %v8475_v44, 4  ;;  %v4319_v18 = vperm.slane %v8475_v44, 7  ;;  %v4318_v19 = vperm.slane %v8475_v44, 6 }
0x2f2f   :  { %v4330_v3 = vmul.f32 %v8459_v25, %v4314_v21  ;;  %v4329_v31 = vmul.f32 %v8461_v63, %v4313_v42  ;;  %v4331_v62 = vmul.f32 %v8469_v29, %v4315_v35  ;;  %v4328_v39 = vmul.f32 %v8463_v6, %v4312_v60  ;;  %v8092_v25 = vld [vmem:[#allocation6 + $0x20] ss:$0 sm:$0xff] }
0x2f30   :  { %v4333_v47 = vmul.f32 %v8473_v33, %v4317_v49  ;;  %v4332_v0 = vmul.f32 %v8467_v20, %v4316_v15  ;;  %v4335_v8 = vmul.f32 %v8471_v57, %v4319_v18  ;;  %v4334_v43 = vmul.f32 %v8465_v28, %v4318_v19 }
0x2f31   :  { %4348 = vperm.xlu2 %8087, %v4330_v3   ;;  %4343 = vperm.xlu1 %8082, %v4329_v31  }
0x2f39   :  { %4353 = vperm.xlu2 %8087, %v4331_v62   ;;  %4338 = vperm.xlu1 %8082, %v4328_v39  }
0x2f41   :  { %4363 = vperm.xlu2 %8087, %v4333_v47   ;;  %4358 = vperm.xlu1 %8082, %v4332_v0  }
0x2f49   :  { %4373 = vperm.xlu2 %8087, %v4335_v8   ;;  %4368 = vperm.xlu1 %8082, %v4334_v43  }
0x2f51   :  { %4443 = vrot.lane.b32.xlu1 %v8092_v25, %s8936_s26 }
0x2f8b   :  { %v4349_v63 = vpop.permute.xlu2 %4348 }
0x2f8c   :  { %v4378_v59 = vmul.f32 %v4349_v63, %v10558_v52 }
0x2f8e   :  { %v4399_v57 = vsel %vm4384_vm9, %v4378_v59, 0.0 }
0x2f8f   :  { %v4400_v55 = vrot.slane %v4399_v57, 4 }
0x2f91   :  { %v4401_v37 = vadd.f32 %v4400_v55, %v4399_v57 }
0x2f93   :  { %v4354_v29 = vpop.permute.xlu2 %4353  ;;  %v4402_v62 = vrot.slane %v4401_v37, 2 }
0x2f94   :  { %v4379_v20 = vmul.f32 %v4354_v29, %v10562_v4 }
0x2f95   :  { %v4403_v8 = vadd.f32 %v4402_v62, %v4401_v37 }
0x2f96   :  { %v4406_v28 = vsel %vm4384_vm9, %v4379_v20, 0.0 }
0x2f97   :  { %v4407_v14 = vrot.slane %v4406_v28, 4 }
0x2f99   :  { %v4408_v44 = vadd.f32 %v4407_v14, %v4406_v28 }
0x2f9b   :  { %v4364_v6 = vpop.permute.xlu2 %4363  ;;  %v4409_v39 = vrot.slane %v4408_v44, 2 }
0x2f9c   :  { %v4381_v11 = vmul.f32 %v4364_v6, %v10554_v36 }
0x2f9d   :  { %v4410_v25 = vadd.f32 %v4409_v39, %v4408_v44 }
0x2f9e   :  { %v4420_v45 = vsel %vm4384_vm9, %v4381_v11, 0.0 }
0x2f9f   :  { %v4421_v21 = vrot.slane %v4420_v45, 4  ;;  %v4411_v28 = vrot.slane %v4410_v25, 1 }
0x2fa1   :  { %v4422_v49 = vadd.f32 %v4421_v21, %v4420_v45 }
0x2fa3   :  { %v4344_v22 = vpop.permute.xlu1 %4343  ;;  %v4374_v54 = vpop.permute.xlu2 %4373  ;;  %v4423_v63 = vrot.slane %v4422_v49, 2 }
0x2fa4   :  { %v4377_v33 = vmul.f32 %v4344_v22, %v10574_v61  ;;  %v4383_v1 = vmul.f32 %v4374_v54, %v10587_v17  ;;  %v4404_v54 = vrot.slane %v4403_v8, 1 }
0x2fa5   :  { %v4424_v11 = vadd.f32 %v4423_v63, %v4422_v49 }
0x2fa6   :  { %v4392_v51 = vsel %vm4384_vm9, %v4377_v33, 0.0  ;;  %v4434_v23 = vsel %vm4384_vm9, %v4383_v1, 0.0  ;;  %v4405_v45 = vadd.f32 %v4404_v54, %v4403_v8 }
0x2fa7   :  { %v4393_v16 = vrot.slane %v4392_v51, 4  ;;  %v4435_v3 = vrot.slane %v4434_v23, 4 }
0x2fa9   :  { %v4394_v42 = vadd.f32 %v4393_v16, %v4392_v51  ;;  %v4436_v0 = vadd.f32 %v4435_v3, %v4434_v23  ;;  %v4412_v23 = vadd.f32 %v4411_v28, %v4410_v25 }
0x2fab   :  { %v4339_v26 = vpop.permute.xlu1 %4338  ;;  %v4395_v15 = vrot.slane %v4394_v42, 2  ;;  %v4437_v6 = vrot.slane %v4436_v0, 2 }
0x2fac   :  { %v4376_v27 = vmul.f32 %v4339_v26, %v10570_v58 }
0x2fad   :  { %v4396_v29 = vadd.f32 %v4395_v15, %v4394_v42  ;;  %v4438_v1 = vadd.f32 %v4437_v6, %v4436_v0 }
0x2fae   :  { %v4385_v48 = vsel %vm4384_vm9, %v4376_v27, 0.0 }
0x2faf   :  { %v4386_v40 = vrot.slane %v4385_v48, 4  ;;  %v4397_v51 = vrot.slane %v4396_v29, 1  ;;  %v4439_v44 = vrot.slane %v4438_v1, 1 }
0x2fb1   :  { %v4387_v35 = vadd.f32 %v4386_v40, %v4385_v48  ;;  %v4425_v40 = vrot.slane %v4424_v11, 1  ;;  %v4398_v37 = vadd.f32 %v4397_v51, %v4396_v29 }
0x2fb3   :  { %v4359_v31 = vpop.permute.xlu1 %4358  ;;  %v4388_v19 = vrot.slane %v4387_v35, 2  ;;  %v4426_v49 = vadd.f32 %v4425_v40, %v4424_v11  ;;  %v3998_v40 = vld [vmem:[%s11848_s1 + $0x18] sm:$0xff] }
0x2fb4   :  { %v4380_v60 = vmul.f32 %v4359_v31, %v10550_v46 }
0x2fb5   :  { %v4389_v20 = vadd.f32 %v4388_v19, %v4387_v35  ;;  %v4440_v19 = vadd.f32 %v4439_v44, %v4438_v1  ;;  %v10746_v1 = vld [vmem:[#allocation4 + $0x20] sm:$0xff] }
0x2fb6   :  { %v4413_v47 = vsel %vm4384_vm9, %v4380_v60, 0.0  ;;  %4540 = vmatpush.bf16.msra.mxu0 %v10746_v1  ;;  %5007 = vmatpush.bf16.msrb.mxu1 %v10746_v1 }
0x2fb7   :  { %v4414_v18 = vrot.slane %v4413_v47, 4  ;;  %v4390_v14 = vrot.slane %v4389_v20, 1  ;;  %5473 = vmatpush.bf16.msrb.mxu3 %v10746_v1 }
0x2fb9   :  { %v4415_v43 = vadd.f32 %v4414_v18, %v4413_v47  ;;  %v4391_v3 = vadd.f32 %v4390_v14, %v4389_v20 }
0x2fbb   :  { %v4416_v22 = vrot.slane %v4415_v43, 2  ;;  %v4369_v59 = vpop.permute.xlu1 %4368 }
0x2fbc   :  { %v4382_v33 = vmul.f32 %v4369_v59, %v10583_v56 }
0x2fbd   :  { %v4417_v57 = vadd.f32 %v4416_v22, %v4415_v43 }
0x2fbe   :  { %v4427_v26 = vsel %vm4384_vm9, %v4382_v33, 0.0 }
0x2fbf   :  { %v4418_v27 = vrot.slane %v4417_v57, 1  ;;  %v4428_v55 = vrot.slane %v4427_v26, 4 }
0x2fc1   :  { %v4419_v16 = vadd.f32 %v4418_v27, %v4417_v57  ;;  %v4429_v48 = vadd.f32 %v4428_v55, %v4427_v26  ;;  %v10749_v27 = vld [vmem:[#allocation4 + $0x18] sm:$0xff] }
0x2fc2   :  { %4541 = vmatpush.bf16.msra.mxu0 %v10749_v27  ;;  %5008 = vmatpush.bf16.msrb.mxu1 %v10749_v27 }
0x2fc3   :  { %v4430_v21 = vrot.slane %v4429_v48, 2  ;;  %v10728_v42 = vpop.permute.xlu1 %4443  ;;  %5474 = vmatpush.bf16.msrb.mxu3 %v10749_v27 }
0x2fc4   :  { %v4447_v31 = vmul.f32 %v10728_v42, %v4398_v37  ;;  %v4448_v35 = vmul.f32 %v10728_v42, %v4405_v45  ;;  %v4449_v60 = vmul.f32 %v10728_v42, %v4412_v23  ;;  %v4450_v39 = vmul.f32 %v10728_v42, %v4419_v16  ;;  %v3996_v16 = vld [vmem:[%s11848_s1 + $0x8] sm:$0xff]  ;;  %v3995_v23 = vld [vmem:[%s11848_s1] sm:$0xff] }
0x2fc5   :  { %v4431_v62 = vadd.f32 %v4430_v21, %v4429_v48  ;;  %v4446_v15 = vmul.f32 %v10728_v42, %v4391_v3  ;;  %v4451_v8 = vmul.f32 %v10728_v42, %v4426_v49  ;;  %v4453_v22 = vmul.f32 %v10728_v42, %v4440_v19  ;;  %4542 = vmatmul.bf16.vlgmr.msra.gmra.mxu0 %v11856_v7  ;;  %v8093_v7 = vld [vmem:[#allocation6 + $0x28] ss:$0 sm:$0xff]  ;;  %v3997_v48 = vld [vmem:[%s11848_s1 + $0x10] sm:$0xff] }
0x2fc6   :  { %v4462_v47 = vrot.slane %v4447_v31, 7  ;;  %v4464_v0 = vrot.slane %v4448_v35, 6  ;;  %v4466_v25 = vrot.slane %v4449_v60, 5  ;;  %v4468_v6 = vrot.slane %v4450_v39, 4  ;;  %5077 = vmatpush.bf16.msrb.mxu0 %v10592_v13  ;;  %5543 = vmatpush.bf16.msra.mxu1 %v10592_v13  ;;  %v3999_v3 = vld [vmem:[%s11848_s1 + $0x20] sm:$0xff] }
0x2fc7   :  { %v4432_v18 = vrot.slane %v4431_v62, 1  ;;  %v4470_v54 = vrot.slane %v4451_v8, 3  ;;  %v4474_v11 = vrot.slane %v4453_v22, 1  ;;  %v10774_v45 = vmul.f32 %v8093_v7, %v3996_v16  ;;  %v4002_v8 = vld [vmem:[%s11848_s1 + $0x38] sm:$0xff] }
0x2fc8   :  { %v4463_v43 = vsel %vm232_vm1, %v4462_v47, %v4446_v15  ;;  %v10782_v37 = vmul.f32 %v8093_v7, %v3997_v48  ;;  %v10784_v44 = vmul.f32 %v8093_v7, %v3995_v23  ;;  %v10790_v31 = vmul.f32 %v8093_v7, %v3998_v40  ;;  %v4001_v47 = vld [vmem:[%s11848_s1 + $0x30] sm:$0xff] }
0x2fc9   :  { %v4433_v63 = vadd.f32 %v4432_v18, %v4431_v62  ;;  %v4465_v29 = vsel %vm234_vm2, %v4464_v0, %v4463_v43  ;;  %v4499_v21 = vrot.slane %v10774_v45, 7  ;;  %v4000_v62 = vld [vmem:[%s11848_s1 + $0x28] sm:$0xff]  ;;  %v10798_v39 = vmul.f32 %v8093_v7, %v3999_v3 }
0x2fca   :  { %v4467_v59 = vsel %vm236_vm3, %v4466_v25, %v4465_v29  ;;  %5078 = vmatpush.bf16.msrb.mxu0 %v10595_v50  ;;  %5544 = vmatpush.bf16.msra.mxu1 %v10595_v50  ;;  %v4501_v35 = vrot.slane %v10782_v37, 6  ;;  %v4503_v49 = vrot.slane %v10790_v31, 5  ;;  %v10805_v0 = vmul.f32 %v8093_v7, %v4000_v62 }
0x2fcb   :  { %v4452_v20 = vmul.f32 %v10728_v42, %v4433_v63  ;;  %v4469_v33 = vsel %vm238_vm4, %v4468_v6, %v4467_v59  ;;  %v4500_v60 = vsel %vm232_vm1, %v4499_v21, %v10784_v44  ;;  %v4505_v18 = vrot.slane %v10798_v39, 4 }
0x2fcc   :  { %v4471_v28 = vsel %vm240_vm5, %v4470_v54, %v4469_v33  ;;  %v4502_v15 = vsel %vm234_vm2, %v4501_v35, %v4500_v60  ;;  %v10812_v43 = vmul.f32 %v8093_v7, %v4001_v47  ;;  %v4507_v63 = vrot.slane %v10805_v0, 3 }
0x2fcd   :  { %v4472_v57 = vrot.slane %v4452_v20, 2  ;;  %v4504_v19 = vsel %vm236_vm3, %v4503_v49, %v4502_v15  ;;  %v10816_v6 = vmul.f32 %v8093_v7, %v4002_v8 }
0x2fce   :  { %5079 = vmatpush.bf16.msrb.mxu0 %v10599_v30  ;;  %5545 = vmatpush.bf16.msra.mxu1 %v10599_v30  ;;  %v4506_v29 = vsel %vm238_vm4, %v4505_v18, %v4504_v19  ;;  %v4509_v22 = vrot.slane %v10812_v43, 2 }
0x2fcf   :  { %v4473_v51 = vsel %vm242_vm6, %v4472_v57, %v4471_v28  ;;  %v4508_v59 = vsel %vm240_vm5, %v4507_v63, %v4506_v29  ;;  %v4511_v20 = vrot.slane %v10816_v6, 1 }
0x2fd0   :  { %v4475_v26 = vsel %vm244_vm7, %v4474_v11, %v4473_v51  ;;  %v4510_v33 = vsel %vm242_vm6, %v4509_v22, %v4508_v59  ;;  %v10823_v51 = vld [vmem:[#allocation6 + $0x30] ss:$0 sm:$0xff] }
0x2fd1   :  { %4476 = vrot.lane.b32.xlu2 %v4475_v26, %s8936_s26  ;;  %v4512_v57 = vsel %vm244_vm7, %v4511_v20, %v4510_v33 }
0x2fd2   :  { %5080 = vmatpush.bf16.msrb.mxu0 %v10607_v12  ;;  %5546 = vmatpush.bf16.msra.mxu1 %v10607_v12 }
0x2fd6   :  { %5939 = vmatpush.bf16.msra.mxu0 %v10746_v1 }
0x2fda   :  { %5940 = vmatpush.bf16.msra.mxu0 %v10749_v27 }
0x302b   :  { %v4477_v55 = vpop.permute.xlu2 %4476 }
0x302c   :  { %v4479_v14 = vsel %vm468_vm13, %v4477_v55, 0.0  ;;  %v10825_v55 = vld [vmem:[#allocation6 + $0x38] ss:$0 sm:$0xff] }
0x302d   :  { %4480 = vadd.xlane.f32.xlu1 %v4479_v14 }
0x3042   :  { %v4543_v25 = vpop.f32.mrf.mxu0 }
0x304a   :  { %v4545_v54 = vpop.f32.mrf.mxu0 }
0x30a0   :  { %v4481_v28 = vpop.xlane.xlu1 %4480 }
0x30a1   :  { %v4514_v11 = vadd.f32 %v4512_v57, %v4481_v28 }
0x30a3   :  { %4517 = vperm.xlu0 %8086, %v4514_v11  }
0x3115   :  { %v4518_v26 = vpop.permute.xlu0 %4517 }
0x3116   :  { %v4521_v14 = vmul.f32 %v10823_v51, %v4518_v26 }
0x3118   :  { %v4547_v7 = vadd.f32 %v4543_v25, %v4521_v14 }
0x311a   :  { %v4549_v16 = vadd.f32 %v10825_v55, %v4547_v7 }
0x311c   :  { %8476 = vtanh.f32 %v4549_v16  ;;  %v8008_v23 = vmul.f32 -1.442695, %v4549_v16 }
0x311e   :  { %8478 = vpow2.f32 %v8008_v23 }
0x3122   :  { %v8477_v48 = vpop.eup %8476 }
0x3123   :  { %4572 = vrot.lane.b32.xlu2 %v8477_v48, %s8943_s25 }
0x3124   :  { %v8479_v40 = vpop.eup %8478 }
0x3125   :  { %v4553_v21 = vadd.f32 1.0, %v8479_v40 }
0x3127   :  { %8480 = vrcp.f32 %v4553_v21  ;;  %v4565_v15 = vand.u32 2147483648, %v4553_v21  ;;  %vm4559_vm11 = vweird.f32 %v4553_v21  ;;  %v4563_v47 = vand.u32 2147483647, %v4553_v21 }
0x3129   :  { %v4566_v19 = vor.u32 1.1754944e-38, %v4565_v15  ;;  %vm4564_vm12 = vcmp.eq.f32.partialorder %v4563_v47, 8.507059e+37 }
0x312d   :  { %v8481_v3 = vpop.eup %8480 }
0x312e   :  { %v4555_v35 = vmul.f32 %v8481_v3, %v4553_v21  ;;  %vm4560_vm10 = vweird.f32 %v8481_v3 }
0x312f   :  { %vm4561_vm8 = vmor %vm4559_vm11, %vm4560_vm10 }
0x3130   :  { %v4556_v60 = vsub.f32 1.0, %v4555_v35 }
0x3132   :  { %v4557_v62 = vmul.f32 %v8481_v3, %v4556_v60 }
0x3134   :  { %v4558_v49 = vadd.f32 %v8481_v3, %v4557_v62 }
0x3136   :  { %v4562_v18 = vsel %vm4561_vm8, %v8481_v3, %v4558_v49 }
0x3137   :  { %v4567_v25 = vsel %vm4564_vm12, %v4566_v19, %v4562_v18 }
0x3138   :  { %v4570_v29 = vmul.f32 0.0, %v4567_v25 }
0x317d   :  { %v4573_v8 = vpop.permute.xlu2 %4572 }
0x317e   :  { %v4575_v63 = vmul.f32 %v4573_v8, %v4567_v25 }
0x3180   :  { %4577 = vrot.lane.b32.xlu2 %v4575_v63, %s8943_s25 }
0x31da   :  { %v4578_v22 = vpop.permute.xlu2 %4577 }
0x31db   :  { %v10831_v59 = vadd.f32 %v4578_v22, %v4570_v29 }
0x31dd   :  { %8482 = vtanh.f32 %v10831_v59  ;;  %v4596_v26 = vpack.c.bf16 %v10831_v59, %v10831_v59 }
0x31e3   :  { %v8483_v20 = vpop.eup %8482 }
0x31e4   :  { %4583 = vrot.lane.b32.xlu0 %v8483_v20, %s8943_s25 }
0x3256   :  { %v4584_v33 = vpop.permute.xlu0 %4583 }
0x3257   :  { %v10835_v54 = vmul.f32 %v4584_v33, %v4567_v25 }
0x3259   :  { %v4595_v57 = vpack.c.bf16 %v10835_v54, %v10835_v54 }
0x325b   :  { %v4598_v28 = vunpack.c.l.b16 %v4595_v57 }
0x325d   :  { %v4599_v11 = vpack.c.b16 %v4598_v28, %v4598_v28 }
0x325f   :  { %4600 = vrot.lane.b32.xlu2 %v4599_v11, %s8936_s26 }
0x32b9   :  { %v4601_v14 = vpop.permute.xlu2 %4600 }
0x32ba   :  { %v4604_v7 = vsel %vm468_vm13, %v4601_v14, %v4596_v26  ;;  %8010 = vmatmul.msk.bf16.vlgmr.msrb.gmra.mxu1 %vm468_vm13, %v4601_v14 }
0x32bb   :  { %8009 = vmatmul.msk.bf16.vlgmr.msra.gmra.mxu3 %vm123_vm14, %v4604_v7  ;;  %6405 = vmatpush.bf16.msrb.mxu1 %v10746_v1 }
0x32bc   :  { %6009 = vmatpush.bf16.msra.mxu3 %v10592_v13 }
0x32bf   :  { %6406 = vmatpush.bf16.msrb.mxu1 %v10749_v27 }
0x32c0   :  { %6010 = vmatpush.bf16.msra.mxu3 %v10595_v50 }
0x32c4   :  { %6011 = vmatpush.bf16.msra.mxu3 %v10599_v30 }
0x32c8   :  { %6012 = vmatpush.bf16.msra.mxu3 %v10607_v12 }
0x3337   :  { %v10851_v16 = vpop.f32.mrf.mxu1 }
0x333e   :  { %v4616_v48 = vpop.f32.mrf.mxu3 }
0x333f   :  { %v5012_v23 = vpop.f32.mrf.mxu1  ;;  %v4628_v40 = vperm.slane %v4616_v48, 0  ;;  %v4622_v21 = vrot.slane %v4616_v48, 2  ;;  %v4621_v3 = vrot.slane %v4616_v48, 1  ;;  %v4627_v35 = vrot.slane %v4616_v48, 7 }
0x3340   :  { %v4623_v60 = vrot.slane %v4616_v48, 3  ;;  %v4626_v62 = vrot.slane %v4616_v48, 6  ;;  %v4624_v25 = vrot.slane %v4616_v48, 4 }
0x3341   :  { %v4644_v13 = vadd.f32 %v4628_v40, %v10623_v38  ;;  %v4630_v49 = vperm.slane %v4622_v21, 0  ;;  %v4629_v15 = vperm.slane %v4621_v3, 0  ;;  %v4635_v47 = vperm.slane %v4627_v35, 0 }
0x3342   :  { %v4631_v50 = vperm.slane %v4623_v60, 0  ;;  %v4634_v18 = vperm.slane %v4626_v62, 0  ;;  %v4632_v20 = vperm.slane %v4624_v25, 0  ;;  %v4625_v40 = vrot.slane %v4616_v48, 5 }
0x3343   :  { %8484 = vtanh.f32 %v4644_v13  ;;  %v4646_v30 = vadd.f32 %v4630_v49, %v10637_v2  ;;  %v4645_v12 = vadd.f32 %v4629_v15, %v10630_v53  ;;  %v4651_v19 = vadd.f32 %v4635_v47, %v10672_v24 }
0x3344   :  { %v4647_v8 = vadd.f32 %v4631_v50, %v10644_v5  ;;  %v4650_v29 = vadd.f32 %v4634_v18, %v10665_v34  ;;  %v4648_v23 = vadd.f32 %v4632_v20, %v10651_v41  ;;  %v4633_v13 = vperm.slane %v4625_v40, 0 }
0x3345   :  { %8486 = vtanh.f32 %v4646_v30 }
0x3346   :  { %v4618_v63 = vpop.f32.mrf.mxu3  ;;  %8488 = vtanh.f32 %v4645_v12  ;;  %v4649_v48 = vadd.f32 %v4633_v13, %v10658_v32 }
0x3347   :  { %8490 = vtanh.f32 %v4651_v19 }
0x3348   :  { %8492 = vtanh.f32 %v4647_v8 }
0x3349   :  { %v8485_v22 = vpop.eup %8484  ;;  %8494 = vtanh.f32 %v4650_v29 }
0x334a   :  { %v4660_v33 = vmul.f32 %v8485_v22, %v10627_v10  ;;  %8496 = vtanh.f32 %v4648_v23 }
0x334b   :  { %v8487_v57 = vpop.eup %8486  ;;  %8498 = vtanh.f32 %v4649_v48 }
0x334c   :  { %v8489_v28 = vpop.eup %8488  ;;  %v4668_v11 = vsel %vm468_vm13, %v4660_v33, 0.0  ;;  %v4662_v26 = vmul.f32 %v8487_v57, %v10627_v10 }
0x334d   :  { %v8491_v14 = vpop.eup %8490  ;;  %4669 = vadd.xlane.f32.xlu0 %v4668_v11  ;;  %v4661_v7 = vmul.f32 %v8489_v28, %v10627_v10 }
0x334e   :  { %v4674_v21 = vsel %vm468_vm13, %v4662_v26, 0.0  ;;  %v8493_v3 = vpop.eup %8492  ;;  %v4667_v62 = vmul.f32 %v8491_v14, %v10627_v10 }
0x334f   :  { %4675 = vadd.xlane.f32.xlu1 %v4674_v21  ;;  %v4671_v35 = vsel %vm468_vm13, %v4661_v7, 0.0  ;;  %v8495_v60 = vpop.eup %8494  ;;  %v4663_v49 = vmul.f32 %v8493_v3, %v10627_v10 }
0x3350   :  { %4672 = vadd.xlane.f32.xlu2 %v4671_v35  ;;  %v4666_v15 = vmul.f32 %v8495_v60, %v10627_v10  ;;  %v4689_v47 = vsel %vm468_vm13, %v4667_v62, 0.0  ;;  %v8497_v18 = vpop.eup %8496 }
0x3351   :  { %v4677_v50 = vsel %vm468_vm13, %v4663_v49, 0.0  ;;  %v4664_v12 = vmul.f32 %v8497_v18, %v10627_v10  ;;  %v8499_v8 = vpop.eup %8498 }
0x3352   :  { %v4686_v30 = vsel %vm468_vm13, %v4666_v15, 0.0  ;;  %v4665_v25 = vmul.f32 %v8499_v8, %v10627_v10 }
0x3353   :  { %v4680_v19 = vsel %vm468_vm13, %v4664_v12, 0.0 }
0x3354   :  { %v4683_v63 = vsel %vm468_vm13, %v4665_v25, 0.0 }
0x3355   :  { %4690 = vadd.xlane.f32.xlu0 %v4689_v47 }
0x3357   :  { %4678 = vadd.xlane.f32.xlu1 %v4677_v50 }
0x3358   :  { %4687 = vadd.xlane.f32.xlu2 %v4686_v30 }
0x335f   :  { %4681 = vadd.xlane.f32.xlu1 %v4680_v19 }
0x3367   :  { %4684 = vadd.xlane.f32.xlu1 %v4683_v63 }
0x33c0   :  { %v4670_v33 = vpop.xlane.xlu0 %4669 }
0x33c1   :  { %v4700_v11 = vperm.slane %v4670_v33, %v9052_v9 }
0x33c2   :  { %v4676_v29 = vpop.xlane.xlu1 %4675 }
0x33c3   :  { %v4673_v20 = vpop.xlane.xlu2 %4672  ;;  %v4702_v26 = vperm.slane %v4676_v29, %v9052_v9 }
0x33c4   :  { %v4701_v28 = vperm.slane %v4673_v20, %v9052_v9 }
0x33c6   :  { %v4708_v14 = vsel %vm232_vm1, %v4701_v28, %v4700_v11 }
0x33c7   :  { %v4709_v21 = vsel %vm234_vm2, %v4702_v26, %v4708_v14 }
0x33c8   :  { %v4691_v40 = vpop.xlane.xlu0 %4690 }
0x33c9   :  { %v4707_v49 = vperm.slane %v4691_v40, %v9052_v9 }
0x33ca   :  { %v4679_v22 = vpop.xlane.xlu1 %4678 }
0x33cb   :  { %v4703_v7 = vperm.slane %v4679_v22, %v9052_v9  ;;  %v4688_v23 = vpop.xlane.xlu2 %4687 }
0x33cc   :  { %v4706_v62 = vperm.slane %v4688_v23, %v9052_v9 }
0x33cd   :  { %v4710_v35 = vsel %vm236_vm3, %v4703_v7, %v4709_v21 }
0x33d2   :  { %v4682_v57 = vpop.xlane.xlu1 %4681 }
0x33d3   :  { %v4704_v10 = vperm.slane %v4682_v57, %v9052_v9 }
0x33d5   :  { %v4711_v13 = vsel %vm238_vm4, %v4704_v10, %v4710_v35 }
0x33da   :  { %v4685_v3 = vpop.xlane.xlu1 %4684 }
0x33db   :  { %v4705_v60 = vperm.slane %v4685_v3, %v9052_v9 }
0x33dd   :  { %v4712_v15 = vsel %vm240_vm5, %v4705_v60, %v4711_v13 }
0x33de   :  { %v4713_v47 = vsel %vm242_vm6, %v4706_v62, %v4712_v15 }
0x33df   :  { %v4714_v48 = vsel %vm244_vm7, %v4707_v49, %v4713_v47 }
0x33e0   :  { %v4716_v50 = vsel %vm189_vm0, %v4714_v48, -inf }
0x33e1   :  { %4717 = vmax.xlane.f32.xlu1 %v4716_v50 }
0x3454   :  { %v4718_v18 = vpop.xlane.xlu1 %4717 }
0x3455   :  { %v4720_v30 = vperm.slane %v4718_v18, 0  ;;  %v4721_v12 = vperm.slane %v4718_v18, 1  ;;  %v4722_v19 = vperm.slane %v4718_v18, 2  ;;  %v4726_v8 = vperm.slane %v4718_v18, 6 }
0x3456   :  { %v4723_v11 = vperm.slane %v4718_v18, 3  ;;  %v4724_v26 = vperm.slane %v4718_v18, 4  ;;  %v4725_v13 = vperm.slane %v4718_v18, 5  ;;  %v4727_v47 = vperm.slane %v4718_v18, 7 }
0x3457   :  { %v4736_v25 = vsub.f32 %v4670_v33, %v4720_v30  ;;  %v4737_v63 = vsub.f32 %v4673_v20, %v4721_v12  ;;  %v4738_v28 = vsub.f32 %v4676_v29, %v4722_v19  ;;  %v4742_v21 = vsub.f32 %v4688_v23, %v4726_v8 }
0x3458   :  { %v4739_v35 = vsub.f32 %v4679_v22, %v4723_v11  ;;  %v4740_v60 = vsub.f32 %v4682_v57, %v4724_v26  ;;  %v4741_v20 = vsub.f32 %v4685_v3, %v4725_v13  ;;  %v4743_v23 = vsub.f32 %v4691_v40, %v4727_v47 }
0x3459   :  { %v4744_v14 = vmul.f32 1.442695, %v4736_v25  ;;  %v4746_v7 = vmul.f32 1.442695, %v4737_v63  ;;  %v4748_v10 = vmul.f32 1.442695, %v4738_v28 }
0x345a   :  { %v4756_v62 = vmul.f32 1.442695, %v4742_v21  ;;  %v4750_v49 = vmul.f32 1.442695, %v4739_v35  ;;  %v4752_v48 = vmul.f32 1.442695, %v4740_v60 }
0x345b   :  { %8500 = vpow2.f32 %v4748_v10  ;;  %v4754_v22 = vmul.f32 1.442695, %v4741_v20  ;;  %v4758_v57 = vmul.f32 1.442695, %v4743_v23 }
0x345c   :  { %8502 = vpow2.f32 %v4746_v7 }
0x345d   :  { %8504 = vpow2.f32 %v4744_v14 }
0x345e   :  { %8506 = vpow2.f32 %v4756_v62 }
0x345f   :  { %8508 = vpow2.f32 %v4750_v49 }
0x3460   :  { %8510 = vpow2.f32 %v4752_v48 }
0x3461   :  { %v8501_v15 = vpop.eup %8500  ;;  %8512 = vpow2.f32 %v4754_v22 }
0x3462   :  { %v8503_v33 = vpop.eup %8502  ;;  %4775 = vperm.xlu1 %8082, %v8501_v15   ;;  %8514 = vpow2.f32 %v4758_v57 }
0x3463   :  { %v8505_v29 = vpop.eup %8504  ;;  %4772 = vperm.xlu0 %8086, %v8503_v33  }
0x3464   :  { %4769 = vperm.xlu2 %8087, %v8505_v29   ;;  %v8507_v50 = vpop.eup %8506 }
0x3465   :  { %v8509_v30 = vpop.eup %8508 }
0x3466   :  { %v8511_v12 = vpop.eup %8510 }
0x3467   :  { %v8513_v18 = vpop.eup %8512 }
0x3468   :  { %v8515_v19 = vpop.eup %8514 }
0x346a   :  { %4787 = vperm.xlu1 %8082, %v8507_v50  }
0x346b   :  { %4778 = vperm.xlu0 %8086, %v8509_v30  }
0x346c   :  { %4781 = vperm.xlu2 %8087, %v8511_v12  }
0x3473   :  { %4784 = vperm.xlu0 %8086, %v8513_v18  }
0x3474   :  { %4790 = vperm.xlu2 %8087, %v8515_v19  }
0x34be   :  { %v4770_v8 = vpop.permute.xlu2 %4769 }
0x34bf   :  { %v4792_v11 = vperm.slane %v4770_v8, %v9052_v9 }
0x34c6   :  { %v4782_v63 = vpop.permute.xlu2 %4781 }
0x34c7   :  { %v4796_v60 = vperm.slane %v4782_v63, %v9052_v9 }
0x34ce   :  { %v4791_v62 = vpop.permute.xlu2 %4790 }
0x34cf   :  { %v4799_v20 = vperm.slane %v4791_v62, %v9052_v9 }
0x34d4   :  { %v4776_v25 = vpop.permute.xlu1 %4775 }
0x34d5   :  { %v4773_v3 = vpop.permute.xlu0 %4772  ;;  %v4794_v26 = vperm.slane %v4776_v25, %v9052_v9 }
0x34d6   :  { %v4793_v40 = vperm.slane %v4773_v3, %v9052_v9 }
0x34d8   :  { %v4800_v14 = vsel %vm232_vm1, %v4793_v40, %v4792_v11 }
0x34d9   :  { %v4801_v10 = vsel %vm234_vm2, %v4794_v26, %v4800_v14 }
0x34dc   :  { %v4788_v21 = vpop.permute.xlu1 %4787 }
0x34dd   :  { %v4779_v28 = vpop.permute.xlu0 %4778  ;;  %v4798_v47 = vperm.slane %v4788_v21, %v9052_v9 }
0x34de   :  { %v4795_v7 = vperm.slane %v4779_v28, %v9052_v9 }
0x34e0   :  { %v4802_v35 = vsel %vm236_vm3, %v4795_v7, %v4801_v10 }
0x34e1   :  { %v4803_v48 = vsel %vm238_vm4, %v4796_v60, %v4802_v35 }
0x34e5   :  { %v4785_v13 = vpop.permute.xlu0 %4784 }
0x34e6   :  { %v4797_v49 = vperm.slane %v4785_v13, %v9052_v9 }
0x34e8   :  { %v4804_v23 = vsel %vm240_vm5, %v4797_v49, %v4803_v48 }
0x34e9   :  { %v4805_v22 = vsel %vm242_vm6, %v4798_v47, %v4804_v23 }
0x34ea   :  { %v4806_v57 = vsel %vm244_vm7, %v4799_v20, %v4805_v22 }
0x34eb   :  { %v4808_v8 = vsel %vm189_vm0, %v4806_v57, 0.0 }
0x34ec   :  { %4809 = vadd.xlane.f32.xlu0 %v4808_v8 }
0x355f   :  { %v4810_v3 = vpop.xlane.xlu0 %4809 }
0x3560   :  { %8516 = vrcp.f32 %v4810_v3 }
0x3566   :  { %v8517_v25 = vpop.eup %8516 }
0x3567   :  { %v4815_v63 = vperm.slane %v8517_v25, 2  ;;  %v4814_v40 = vperm.slane %v8517_v25, 1  ;;  %v4816_v26 = vperm.slane %v8517_v25, 3  ;;  %v4813_v14 = vperm.slane %v8517_v25, 0 }
0x3568   :  { %v4818_v21 = vperm.slane %v8517_v25, 5  ;;  %v4817_v35 = vperm.slane %v8517_v25, 4  ;;  %v4820_v13 = vperm.slane %v8517_v25, 7  ;;  %v4819_v49 = vperm.slane %v8517_v25, 6 }
0x3569   :  { %v4831_v28 = vmul.f32 %v8501_v15, %v4815_v63  ;;  %v4830_v11 = vmul.f32 %v8503_v33, %v4814_v40  ;;  %v4832_v7 = vmul.f32 %v8509_v30, %v4816_v26  ;;  %v4829_v10 = vmul.f32 %v8505_v29, %v4813_v14 }
0x356a   :  { %v4834_v60 = vmul.f32 %v8513_v18, %v4818_v21  ;;  %v4833_v62 = vmul.f32 %v8511_v12, %v4817_v35  ;;  %v4836_v47 = vmul.f32 %v8515_v19, %v4820_v13  ;;  %v4835_v48 = vmul.f32 %v8507_v50, %v4819_v49 }
0x356b   :  { %4849 = vperm.xlu2 %8087, %v4831_v28   ;;  %4844 = vperm.xlu1 %8082, %v4830_v11  }
0x3573   :  { %4854 = vperm.xlu2 %8087, %v4832_v7   ;;  %4839 = vperm.xlu1 %8082, %v4829_v10  }
0x357b   :  { %4864 = vperm.xlu2 %8087, %v4834_v60   ;;  %4859 = vperm.xlu1 %8082, %v4833_v62  }
0x3583   :  { %4874 = vperm.xlu2 %8087, %v4836_v47   ;;  %4869 = vperm.xlu1 %8082, %v4835_v48  }
0x35c5   :  { %v4850_v15 = vpop.permute.xlu2 %4849 }
0x35c6   :  { %v4879_v30 = vmul.f32 %v4850_v15, %v10558_v52 }
0x35c8   :  { %v4899_v12 = vsel %vm4384_vm9, %v4879_v30, 0.0 }
0x35c9   :  { %v4900_v19 = vrot.slane %v4899_v12, 4 }
0x35cb   :  { %v4901_v26 = vadd.f32 %v4900_v19, %v4899_v12 }
0x35cd   :  { %v4855_v33 = vpop.permute.xlu2 %4854  ;;  %v4902_v13 = vrot.slane %v4901_v26, 2 }
0x35ce   :  { %v4880_v22 = vmul.f32 %v4855_v33, %v10562_v4 }
0x35d0   :  { %v4906_v50 = vsel %vm4384_vm9, %v4880_v22, 0.0 }
0x35d1   :  { %v4907_v28 = vrot.slane %v4906_v50, 4 }
0x35d3   :  { %v4908_v60 = vadd.f32 %v4907_v28, %v4906_v50 }
0x35d5   :  { %v4865_v20 = vpop.permute.xlu2 %4864 }
0x35d6   :  { %v4882_v3 = vmul.f32 %v4865_v20, %v10554_v36  ;;  %v4909_v20 = vrot.slane %v4908_v60, 2 }
0x35d8   :  { %v4920_v14 = vsel %vm4384_vm9, %v4882_v3, 0.0  ;;  %v4910_v19 = vadd.f32 %v4909_v20, %v4908_v60 }
0x35d9   :  { %v4921_v62 = vrot.slane %v4920_v14, 4 }
0x35db   :  { %v4922_v30 = vadd.f32 %v4921_v62, %v4920_v14 }
0x35dd   :  { %v4845_v29 = vpop.permute.xlu1 %4844  ;;  %v4875_v8 = vpop.permute.xlu2 %4874  ;;  %v4923_v50 = vrot.slane %v4922_v30, 2 }
0x35de   :  { %v4878_v23 = vmul.f32 %v4845_v29, %v10574_v61  ;;  %v4884_v63 = vmul.f32 %v4875_v8, %v10587_v17 }
0x35df   :  { %v4924_v14 = vadd.f32 %v4923_v50, %v4922_v30 }
0x35e0   :  { %v4892_v18 = vsel %vm4384_vm9, %v4878_v23, 0.0  ;;  %v4934_v21 = vsel %vm4384_vm9, %v4884_v63, 0.0  ;;  %v4903_v23 = vadd.f32 %v4902_v13, %v4901_v26 }
0x35e1   :  { %v4893_v57 = vrot.slane %v4892_v18, 4  ;;  %v4935_v47 = vrot.slane %v4934_v21, 4  ;;  %v4925_v20 = vrot.slane %v4924_v14, 1 }
0x35e2   :  { %v4904_v63 = vrot.slane %v4903_v23, 1 }
0x35e3   :  { %v4894_v25 = vadd.f32 %v4893_v57, %v4892_v18  ;;  %v4936_v12 = vadd.f32 %v4935_v47, %v4934_v21  ;;  %v4926_v50 = vadd.f32 %v4925_v20, %v4924_v14 }
0x35e4   :  { %v4905_v62 = vadd.f32 %v4904_v63, %v4903_v23 }
0x35e5   :  { %v4840_v40 = vpop.permute.xlu1 %4839  ;;  %v4895_v7 = vrot.slane %v4894_v25, 2  ;;  %v4937_v28 = vrot.slane %v4936_v12, 2 }
0x35e6   :  { %v4877_v11 = vmul.f32 %v4840_v40, %v10570_v58 }
0x35e7   :  { %v4896_v48 = vadd.f32 %v4895_v7, %v4894_v25  ;;  %v4938_v13 = vadd.f32 %v4937_v28, %v4936_v12 }
0x35e8   :  { %v4885_v10 = vsel %vm4384_vm9, %v4877_v11, 0.0 }
0x35e9   :  { %v4886_v35 = vrot.slane %v4885_v10, 4  ;;  %v4897_v18 = vrot.slane %v4896_v48, 1 }
0x35eb   :  { %v4887_v49 = vadd.f32 %v4886_v35, %v4885_v10  ;;  %v4898_v25 = vadd.f32 %v4897_v18, %v4896_v48  ;;  %v4911_v10 = vrot.slane %v4910_v19, 1 }
0x35ed   :  { %v4888_v15 = vrot.slane %v4887_v49, 2  ;;  %v4860_v33 = vpop.permute.xlu1 %4859 }
0x35ee   :  { %v4881_v29 = vmul.f32 %v4860_v33, %v10550_v46  ;;  %v4912_v33 = vadd.f32 %v4911_v10, %v4910_v19  ;;  %v4946_v10 = vmul.f32 %v4926_v50, %v10728_v42 }
0x35ef   :  { %v4889_v22 = vadd.f32 %v4888_v15, %v4887_v49  ;;  %v4942_v49 = vmul.f32 %v4898_v25, %v10728_v42 }
0x35f0   :  { %v4913_v57 = vsel %vm4384_vm9, %v4881_v29, 0.0  ;;  %v4943_v29 = vmul.f32 %v4905_v62, %v10728_v42  ;;  %v4944_v12 = vmul.f32 %v4912_v33, %v10728_v42 }
0x35f1   :  { %v4914_v8 = vrot.slane %v4913_v57, 4  ;;  %v4890_v3 = vrot.slane %v4889_v22, 1 }
0x35f2   :  { %v4959_v63 = vrot.slane %v4943_v29, 6  ;;  %v4977_v29 = vrot.slane %v10784_v44, 1 }
0x35f3   :  { %v4915_v40 = vadd.f32 %v4914_v8, %v4913_v57  ;;  %v4891_v35 = vadd.f32 %v4890_v3, %v4889_v22  ;;  %v4939_v22 = vrot.slane %v4938_v13, 1  ;;  %v4957_v57 = vrot.slane %v4942_v49, 7 }
0x35f4   :  { %v4965_v49 = vrot.slane %v4946_v10, 3 }
0x35f5   :  { %v4916_v11 = vrot.slane %v4915_v40, 2  ;;  %v4870_v7 = vpop.permute.xlu1 %4869  ;;  %v4941_v48 = vmul.f32 %v4891_v35, %v10728_v42  ;;  %v4940_v19 = vadd.f32 %v4939_v22, %v4938_v13  ;;  %v4981_v22 = vrot.slane %v10790_v31, 6 }
0x35f6   :  { %v4883_v26 = vmul.f32 %v4870_v7, %v10583_v56  ;;  %v4961_v7 = vrot.slane %v4944_v12, 5  ;;  %v4985_v12 = vrot.slane %v10805_v0, 4 }
0x35f7   :  { %v4917_v21 = vadd.f32 %v4916_v11, %v4915_v40  ;;  %v4958_v3 = vsel %vm232_vm1, %v4957_v57, %v4941_v48 }
0x35f8   :  { %v4927_v60 = vsel %vm4384_vm9, %v4883_v26, 0.0  ;;  %v4960_v11 = vsel %vm234_vm2, %v4959_v63, %v4958_v3  ;;  %v4948_v26 = vmul.f32 %v4940_v19, %v10728_v42  ;;  %v4987_v3 = vrot.slane %v10812_v43, 3 }
0x35f9   :  { %v4918_v47 = vrot.slane %v4917_v21, 1  ;;  %v4928_v15 = vrot.slane %v4927_v60, 4  ;;  %v4962_v62 = vsel %vm236_vm3, %v4961_v7, %v4960_v11 }
0x35fb   :  { %v4919_v18 = vadd.f32 %v4918_v47, %v4917_v21  ;;  %v4929_v30 = vadd.f32 %v4928_v15, %v4927_v60  ;;  %v4969_v47 = vrot.slane %v4948_v26, 1 }
0x35fd   :  { %v4945_v23 = vmul.f32 %v4919_v18, %v10728_v42  ;;  %v4930_v8 = vrot.slane %v4929_v30, 2  ;;  %v4979_v18 = vrot.slane %v10782_v37, 7 }
0x35ff   :  { %v4931_v40 = vadd.f32 %v4930_v8, %v4929_v30  ;;  %v4963_v28 = vrot.slane %v4945_v23, 4  ;;  %v4978_v30 = vsel %vm232_vm1, %v10774_v45, %v4977_v29  ;;  %v4983_v23 = vrot.slane %v10798_v39, 5 }
0x3600   :  { %v4980_v57 = vsel %vm234_vm2, %v4979_v18, %v4978_v30 }
0x3601   :  { %v4932_v25 = vrot.slane %v4931_v40, 1  ;;  %v4964_v14 = vsel %vm238_vm4, %v4963_v28, %v4962_v62  ;;  %v4982_v8 = vsel %vm236_vm3, %v4981_v22, %v4980_v57 }
0x3602   :  { %v4966_v13 = vsel %vm240_vm5, %v4965_v49, %v4964_v14  ;;  %v4984_v50 = vsel %vm238_vm4, %v4983_v23, %v4982_v8 }
0x3603   :  { %v4933_v35 = vadd.f32 %v4932_v25, %v4931_v40  ;;  %v4986_v63 = vsel %vm240_vm5, %v4985_v12, %v4984_v50  ;;  %v4989_v40 = vrot.slane %v10816_v6, 2 }
0x3604   :  { %v4988_v19 = vsel %vm242_vm6, %v4987_v3, %v4986_v63 }
0x3605   :  { %v4947_v21 = vmul.f32 %v4933_v35, %v10728_v42  ;;  %v4990_v28 = vsel %vm244_vm7, %v4989_v40, %v4988_v19 }
0x3607   :  { %v4967_v60 = vrot.slane %v4947_v21, 2 }
0x3609   :  { %v4968_v15 = vsel %vm242_vm6, %v4967_v60, %v4966_v13 }
0x360a   :  { %v4970_v33 = vsel %vm244_vm7, %v4969_v47, %v4968_v15 }
0x360b   :  { %4971 = vrot.lane.b32.xlu1 %v4970_v33, %s8936_s26 }
0x367d   :  { %v4972_v20 = vpop.permute.xlu1 %4971 }
0x367e   :  { %v4974_v48 = vsel %vm468_vm13, %v4972_v20, 0.0 }
0x367f   :  { %4975 = vadd.xlane.f32.xlu2 %v4974_v48 }
0x36f2   :  { %v4976_v25 = vpop.xlane.xlu2 %4975 }
0x36f3   :  { %v4992_v11 = vadd.f32 %v4990_v28, %v4976_v25  ;;  %v10978_v28 = vld [vmem:[#allocation4 + $0x60] sm:$0xff]  ;;  %v10982_v25 = vld [vmem:[#allocation4 + $0x58] sm:$0xff] }
0x36f5   :  { %4995 = vperm.xlu1 %8082, %v4992_v11   ;;  %v10985_v11 = vld [vmem:[#allocation4 + $0x50] sm:$0xff] }
0x3767   :  { %v4996_v7 = vpop.permute.xlu1 %4995 }
0x3768   :  { %v4998_v10 = vmul.f32 %v10823_v51, %v4996_v7  ;;  %v10988_v7 = vld [vmem:[#allocation4 + $0x48] sm:$0xff] }
0x376a   :  { %v5014_v35 = vadd.f32 %v10851_v16, %v4998_v10 }
0x376c   :  { %v5015_v26 = vadd.f32 %v10825_v55, %v5014_v35 }
0x376e   :  { %8518 = vtanh.f32 %v5015_v26  ;;  %v8011_v21 = vmul.f32 -1.442695, %v5015_v26 }
0x3770   :  { %8520 = vpow2.f32 %v8011_v21 }
0x3774   :  { %v8519_v62 = vpop.eup %8518 }
0x3775   :  { %5038 = vrot.lane.b32.xlu0 %v8519_v62, %s8943_s25 }
0x3776   :  { %v8521_v14 = vpop.eup %8520 }
0x3777   :  { %v5019_v49 = vadd.f32 1.0, %v8521_v14 }
0x3779   :  { %8522 = vrcp.f32 %v5019_v49  ;;  %v5031_v51 = vand.u32 2147483648, %v5019_v49  ;;  %vm5025_vm10 = vweird.f32 %v5019_v49  ;;  %v5029_v16 = vand.u32 2147483647, %v5019_v49 }
0x377b   :  { %v5032_v20 = vor.u32 1.1754944e-38, %v5031_v51  ;;  %vm5030_vm8 = vcmp.eq.f32.partialorder %v5029_v16, 8.507059e+37 }
0x377f   :  { %v8523_v60 = vpop.eup %8522 }
0x3780   :  { %v5021_v13 = vmul.f32 %v8523_v60, %v5019_v49  ;;  %vm5026_vm15 = vweird.f32 %v8523_v60 }
0x3781   :  { %vm5027_vm11 = vmor %vm5025_vm10, %vm5026_vm15 }
0x3782   :  { %v5022_v47 = vsub.f32 1.0, %v5021_v13 }
0x3784   :  { %v5023_v15 = vmul.f32 %v8523_v60, %v5022_v47 }
0x3786   :  { %v5024_v33 = vadd.f32 %v8523_v60, %v5023_v15 }
0x3788   :  { %v5028_v55 = vsel %vm5027_vm11, %v8523_v60, %v5024_v33 }
0x3789   :  { %v5033_v29 = vsel %vm5030_vm8, %v5032_v20, %v5028_v55 }
0x378a   :  { %v5036_v30 = vmul.f32 %v5033_v29, %v10831_v59 }
0x37e7   :  { %v5039_v48 = vpop.permute.xlu0 %5038 }
0x37e8   :  { %v5041_v18 = vmul.f32 %v5039_v48, %v5033_v29 }
0x37ea   :  { %5043 = vrot.lane.b32.xlu1 %v5041_v18, %s8943_s25  ;;  %v10998_v18 = vld [vmem:[#allocation6 + $0x18] ss:$0 sm:$0xff] }
0x385c   :  { %v5044_v22 = vpop.permute.xlu1 %5043 }
0x385d   :  { %v10963_v57 = vadd.f32 %v5044_v22, %v5036_v30 }
0x385f   :  { %8524 = vtanh.f32 %v10963_v57  ;;  %v5062_v59 = vpack.c.bf16 %v10963_v57, %v10963_v57 }
0x3865   :  { %v8525_v23 = vpop.eup %8524 }
0x3866   :  { %5049 = vrot.lane.b32.xlu1 %v8525_v23, %s8943_s25 }
0x38d8   :  { %v5050_v8 = vpop.permute.xlu1 %5049 }
0x38d9   :  { %v10967_v12 = vmul.f32 %v5050_v8, %v5033_v29 }
0x38db   :  { %11857 = vst [vmem:[#allocation9_spill] sm:$0xff] %v10967_v12  ;;  %v5061_v50 = vpack.c.bf16 %v10967_v12, %v10967_v12 }
0x38dd   :  { %v5064_v3 = vunpack.c.l.b16 %v5061_v50 }
0x38df   :  { %v5065_v63 = vpack.c.b16 %v5064_v3, %v5064_v3 }
0x38e1   :  { %5066 = vrot.lane.b32.xlu0 %v5065_v63, %s8936_s26 }
0x3953   :  { %v5067_v40 = vpop.permute.xlu0 %5066 }
0x3954   :  { %v5070_v19 = vsel %vm468_vm13, %v5067_v40, %v5062_v59  ;;  %8013 = vmatmul.msk.bf16.vlgmr.msrb.gmra.mxu3 %vm468_vm13, %v5067_v40 }
0x3955   :  { %8012 = vmatmul.msk.bf16.vlgmr.msrb.gmra.mxu0 %vm123_vm14, %v5070_v19  ;;  %6871 = vmatpush.bf16.msrb.mxu3 %v10746_v1 }
0x3956   :  { %6475 = vmatpush.bf16.msrb.mxu0 %v10978_v28 }
0x3959   :  { %6872 = vmatpush.bf16.msrb.mxu3 %v10749_v27 }
0x395a   :  { %6476 = vmatpush.bf16.msrb.mxu0 %v10982_v25 }
0x395e   :  { %6477 = vmatpush.bf16.msrb.mxu0 %v10985_v11 }
0x3962   :  { %6478 = vmatpush.bf16.msrb.mxu0 %v10988_v7 }
0x39d2   :  { %v5082_v10 = vpop.f32.mrf.mxu0 }
0x39d3   :  { %v5094_v1 = vperm.slane %v5082_v10, 0  ;;  %v5088_v35 = vrot.slane %v5082_v10, 2  ;;  %v5087_v26 = vrot.slane %v5082_v10, 1  ;;  %v5092_v62 = vrot.slane %v5082_v10, 6 }
0x39d4   :  { %v5089_v21 = vrot.slane %v5082_v10, 3  ;;  %v5090_v55 = vrot.slane %v5082_v10, 4  ;;  %v5091_v19 = vrot.slane %v5082_v10, 5 }
0x39d5   :  { %v5110_v27 = vadd.f32 %v5094_v1, %v10623_v38  ;;  %v5096_v14 = vperm.slane %v5088_v35, 0  ;;  %v5095_v49 = vperm.slane %v5087_v26, 0  ;;  %v5100_v60 = vperm.slane %v5092_v62, 0 }
0x39d6   :  { %v5097_v13 = vperm.slane %v5089_v21, 0  ;;  %v5098_v29 = vperm.slane %v5090_v55, 0  ;;  %v5099_v21 = vperm.slane %v5091_v19, 0 }
0x39d7   :  { %v10992_v47 = vpop.f32.mrf.mxu3  ;;  %8526 = vtanh.f32 %v5110_v27  ;;  %v5112_v15 = vadd.f32 %v5096_v14, %v10637_v2  ;;  %v5111_v33 = vadd.f32 %v5095_v49, %v10630_v53  ;;  %v5116_v51 = vadd.f32 %v5100_v60, %v10665_v34 }
0x39d8   :  { %v5113_v16 = vadd.f32 %v5097_v13, %v10644_v5  ;;  %v5114_v40 = vadd.f32 %v5098_v29, %v10651_v41  ;;  %v5115_v49 = vadd.f32 %v5099_v21, %v10658_v32  ;;  %v5093_v60 = vrot.slane %v5082_v10, 7 }
0x39d9   :  { %8528 = vtanh.f32 %v5112_v15 }
0x39da   :  { %v5084_v20 = vpop.f32.mrf.mxu0  ;;  %8530 = vtanh.f32 %v5111_v33  ;;  %v5101_v33 = vperm.slane %v5093_v60, 0 }
0x39db   :  { %8532 = vtanh.f32 %v5116_v51 }
0x39dc   :  { %8534 = vtanh.f32 %v5113_v16  ;;  %v5117_v16 = vadd.f32 %v5101_v33, %v10672_v24 }
0x39dd   :  { %v8527_v48 = vpop.eup %8526  ;;  %8536 = vtanh.f32 %v5114_v40 }
0x39de   :  { %v5126_v30 = vmul.f32 %v10998_v18, %v8527_v48  ;;  %8538 = vtanh.f32 %v5115_v49 }
0x39df   :  { %v8529_v22 = vpop.eup %8528  ;;  %v5478_v23 = vpop.f32.mrf.mxu3  ;;  %8540 = vtanh.f32 %v5117_v16 }
0x39e0   :  { %v8531_v8 = vpop.eup %8530  ;;  %v5134_v50 = vsel %vm468_vm13, %v5126_v30, 0.0  ;;  %v5128_v3 = vmul.f32 %v10998_v18, %v8529_v22 }
0x39e1   :  { %v8533_v63 = vpop.eup %8532  ;;  %5135 = vadd.xlane.f32.xlu1 %v5134_v50  ;;  %v5127_v59 = vmul.f32 %v10998_v18, %v8531_v8 }
0x39e2   :  { %v5140_v1 = vsel %vm468_vm13, %v5128_v3, 0.0  ;;  %v8535_v35 = vpop.eup %8534  ;;  %v5132_v62 = vmul.f32 %v10998_v18, %v8533_v63 }
0x39e3   :  { %5141 = vadd.xlane.f32.xlu2 %v5140_v1  ;;  %v5137_v26 = vsel %vm468_vm13, %v5127_v59, 0.0  ;;  %v5129_v27 = vmul.f32 %v10998_v18, %v8535_v35  ;;  %v8537_v15 = vpop.eup %8536 }
0x39e4   :  { %5138 = vadd.xlane.f32.xlu0 %v5137_v26  ;;  %v5152_v14 = vsel %vm468_vm13, %v5132_v62, 0.0  ;;  %v5130_v51 = vmul.f32 %v10998_v18, %v8537_v15  ;;  %v8539_v20 = vpop.eup %8538 }
0x39e5   :  { %v5143_v13 = vsel %vm468_vm13, %v5129_v27, 0.0  ;;  %v5131_v48 = vmul.f32 %v10998_v18, %v8539_v20  ;;  %v8541_v10 = vpop.eup %8540 }
0x39e6   :  { %v5146_v55 = vsel %vm468_vm13, %v5130_v51, 0.0  ;;  %v5133_v30 = vmul.f32 %v10998_v18, %v8541_v10 }
0x39e7   :  { %v5149_v29 = vsel %vm468_vm13, %v5131_v48, 0.0 }
0x39e8   :  { %v5155_v22 = vsel %vm468_vm13, %v5133_v30, 0.0 }
0x39e9   :  { %5153 = vadd.xlane.f32.xlu1 %v5152_v14 }
0x39eb   :  { %5144 = vadd.xlane.f32.xlu2 %v5143_v13 }
0x39f3   :  { %5147 = vadd.xlane.f32.xlu2 %v5146_v55 }
0x39fb   :  { %5150 = vadd.xlane.f32.xlu2 %v5149_v29 }
0x3a03   :  { %5156 = vadd.xlane.f32.xlu2 %v5155_v22 }
0x3a54   :  { %v5136_v63 = vpop.xlane.xlu1 %5135 }
0x3a55   :  { %v5166_v40 = vperm.slane %v5136_v63, %v9052_v9 }
0x3a56   :  { %v5142_v23 = vpop.xlane.xlu2 %5141 }
0x3a57   :  { %v5139_v3 = vpop.xlane.xlu0 %5138  ;;  %v5168_v19 = vperm.slane %v5142_v23, %v9052_v9 }
0x3a58   :  { %v5167_v59 = vperm.slane %v5139_v3, %v9052_v9 }
0x3a5a   :  { %v5174_v35 = vsel %vm232_vm1, %v5167_v59, %v5166_v40 }
0x3a5b   :  { %v5175_v27 = vsel %vm234_vm2, %v5168_v19, %v5174_v35 }
0x3a5c   :  { %v5154_v14 = vpop.xlane.xlu1 %5153 }
0x3a5d   :  { %v5172_v15 = vperm.slane %v5154_v14, %v9052_v9 }
0x3a5e   :  { %v5145_v8 = vpop.xlane.xlu2 %5144 }
0x3a5f   :  { %v5169_v26 = vperm.slane %v5145_v8, %v9052_v9 }
0x3a61   :  { %v5176_v49 = vsel %vm236_vm3, %v5169_v26, %v5175_v27 }
0x3a66   :  { %v5148_v50 = vpop.xlane.xlu2 %5147 }
0x3a67   :  { %v5170_v62 = vperm.slane %v5148_v50, %v9052_v9 }
0x3a69   :  { %v5177_v60 = vsel %vm238_vm4, %v5170_v62, %v5176_v49 }
0x3a6e   :  { %v5151_v1 = vpop.xlane.xlu2 %5150 }
0x3a6f   :  { %v5171_v21 = vperm.slane %v5151_v1, %v9052_v9 }
0x3a71   :  { %v5178_v13 = vsel %vm240_vm5, %v5171_v21, %v5177_v60 }
0x3a72   :  { %v5179_v16 = vsel %vm242_vm6, %v5172_v15, %v5178_v13 }
0x3a76   :  { %v5157_v33 = vpop.xlane.xlu2 %5156 }
0x3a77   :  { %v5173_v51 = vperm.slane %v5157_v33, %v9052_v9 }
0x3a79   :  { %v5180_v55 = vsel %vm244_vm7, %v5173_v51, %v5179_v16 }
0x3a7a   :  { %v5182_v20 = vsel %vm189_vm0, %v5180_v55, -inf }
0x3a7b   :  { %5183 = vmax.xlane.f32.xlu0 %v5182_v20 }
0x3aee   :  { %v5184_v48 = vpop.xlane.xlu0 %5183 }
0x3aef   :  { %v5186_v29 = vperm.slane %v5184_v48, 0  ;;  %v5187_v10 = vperm.slane %v5184_v48, 1  ;;  %v5188_v30 = vperm.slane %v5184_v48, 2  ;;  %v5190_v22 = vperm.slane %v5184_v48, 4 }
0x3af0   :  { %v5189_v35 = vperm.slane %v5184_v48, 3  ;;  %v5191_v26 = vperm.slane %v5184_v48, 5  ;;  %v5193_v15 = vperm.slane %v5184_v48, 7  ;;  %v5192_v20 = vperm.slane %v5184_v48, 6 }
0x3af1   :  { %v5202_v59 = vsub.f32 %v5136_v63, %v5186_v29  ;;  %v5203_v40 = vsub.f32 %v5139_v3, %v5187_v10  ;;  %v5204_v19 = vsub.f32 %v5142_v23, %v5188_v30  ;;  %v5206_v49 = vsub.f32 %v5148_v50, %v5190_v22 }
0x3af2   :  { %v5207_v60 = vsub.f32 %v5151_v1, %v5191_v26  ;;  %v5205_v13 = vsub.f32 %v5145_v8, %v5189_v35  ;;  %v5209_v3 = vsub.f32 %v5157_v33, %v5193_v15  ;;  %v5208_v50 = vsub.f32 %v5154_v14, %v5192_v20 }
0x3af3   :  { %v5210_v62 = vmul.f32 1.442695, %v5202_v59  ;;  %v5212_v21 = vmul.f32 1.442695, %v5203_v40  ;;  %v5214_v27 = vmul.f32 1.442695, %v5204_v19 }
0x3af4   :  { %v5218_v51 = vmul.f32 1.442695, %v5206_v49  ;;  %v5220_v16 = vmul.f32 1.442695, %v5207_v60  ;;  %v5216_v12 = vmul.f32 1.442695, %v5205_v13 }
0x3af5   :  { %8542 = vpow2.f32 %v5214_v27  ;;  %v5224_v1 = vmul.f32 1.442695, %v5209_v3  ;;  %v5222_v8 = vmul.f32 1.442695, %v5208_v50 }
0x3af6   :  { %8544 = vpow2.f32 %v5212_v21 }
0x3af7   :  { %8546 = vpow2.f32 %v5210_v62 }
0x3af8   :  { %8548 = vpow2.f32 %v5218_v51 }
0x3af9   :  { %8550 = vpow2.f32 %v5220_v16 }
0x3afa   :  { %8552 = vpow2.f32 %v5216_v12 }
0x3afb   :  { %v8543_v55 = vpop.eup %8542  ;;  %8554 = vpow2.f32 %v5224_v1 }
0x3afc   :  { %v8545_v63 = vpop.eup %8544  ;;  %5241 = vperm.xlu0 %8086, %v8543_v55   ;;  %8556 = vpow2.f32 %v5222_v8 }
0x3afd   :  { %v8547_v23 = vpop.eup %8546  ;;  %5238 = vperm.xlu2 %8087, %v8545_v63  }
0x3afe   :  { %5235 = vperm.xlu1 %8082, %v8547_v23   ;;  %v8549_v29 = vpop.eup %8548 }
0x3aff   :  { %v8551_v10 = vpop.eup %8550 }
0x3b00   :  { %v8553_v30 = vpop.eup %8552 }
0x3b01   :  { %v8555_v48 = vpop.eup %8554 }
0x3b02   :  { %v8557_v22 = vpop.eup %8556 }
0x3b04   :  { %5247 = vperm.xlu0 %8086, %v8549_v29  }
0x3b05   :  { %5250 = vperm.xlu2 %8087, %v8551_v10  }
0x3b06   :  { %5244 = vperm.xlu1 %8082, %v8553_v30  }
0x3b0c   :  { %5256 = vperm.xlu0 %8086, %v8555_v48  }
0x3b0e   :  { %5253 = vperm.xlu1 %8082, %v8557_v22  }
0x3b57   :  { %v5239_v40 = vpop.permute.xlu2 %5238 }
0x3b58   :  { %v5259_v12 = vperm.slane %v5239_v40, %v9052_v9 }
0x3b5f   :  { %v5251_v13 = vpop.permute.xlu2 %5250 }
0x3b60   :  { %v5263_v16 = vperm.slane %v5251_v13, %v9052_v9 }
0x3b6e   :  { %v5242_v33 = vpop.permute.xlu0 %5241 }
0x3b6f   :  { %v5260_v35 = vperm.slane %v5242_v33, %v9052_v9 }
0x3b70   :  { %v5236_v59 = vpop.permute.xlu1 %5235 }
0x3b71   :  { %v5258_v14 = vperm.slane %v5236_v59, %v9052_v9 }
0x3b73   :  { %v5266_v26 = vsel %vm232_vm1, %v5259_v12, %v5258_v14 }
0x3b74   :  { %v5267_v49 = vsel %vm234_vm2, %v5260_v35, %v5266_v26 }
0x3b76   :  { %v5248_v19 = vpop.permute.xlu0 %5247 }
0x3b77   :  { %v5262_v27 = vperm.slane %v5248_v19, %v9052_v9 }
0x3b78   :  { %v5245_v62 = vpop.permute.xlu1 %5244 }
0x3b79   :  { %v5261_v21 = vperm.slane %v5245_v62, %v9052_v9 }
0x3b7b   :  { %v5268_v60 = vsel %vm236_vm3, %v5261_v21, %v5267_v49 }
0x3b7c   :  { %v5269_v51 = vsel %vm238_vm4, %v5262_v27, %v5268_v60 }
0x3b7d   :  { %v5270_v1 = vsel %vm240_vm5, %v5263_v16, %v5269_v51 }
0x3b7e   :  { %v5257_v15 = vpop.permute.xlu0 %5256 }
0x3b7f   :  { %v5265_v20 = vperm.slane %v5257_v15, %v9052_v9 }
0x3b80   :  { %v5254_v3 = vpop.permute.xlu1 %5253 }
0x3b81   :  { %v5264_v50 = vperm.slane %v5254_v3, %v9052_v9 }
0x3b83   :  { %v5271_v8 = vsel %vm242_vm6, %v5264_v50, %v5270_v1 }
0x3b84   :  { %v5272_v33 = vsel %vm244_vm7, %v5265_v20, %v5271_v8 }
0x3b85   :  { %v5274_v59 = vsel %vm189_vm0, %v5272_v33, 0.0 }
0x3b86   :  { %5275 = vadd.xlane.f32.xlu2 %v5274_v59 }
0x3bf9   :  { %v5276_v40 = vpop.xlane.xlu2 %5275 }
0x3bfa   :  { %8558 = vrcp.f32 %v5276_v40 }
0x3c00   :  { %v8559_v14 = vpop.eup %8558 }
0x3c01   :  { %v5281_v12 = vperm.slane %v8559_v14, 2  ;;  %v5280_v19 = vperm.slane %v8559_v14, 1  ;;  %v5282_v62 = vperm.slane %v8559_v14, 3  ;;  %v5279_v21 = vperm.slane %v8559_v14, 0 }
0x3c02   :  { %v5284_v60 = vperm.slane %v8559_v14, 5  ;;  %v5283_v13 = vperm.slane %v8559_v14, 4  ;;  %v5286_v16 = vperm.slane %v8559_v14, 7  ;;  %v5285_v20 = vperm.slane %v8559_v14, 6 }
0x3c03   :  { %v5297_v35 = vmul.f32 %v8543_v55, %v5281_v12  ;;  %v5296_v26 = vmul.f32 %v8545_v63, %v5280_v19  ;;  %v5298_v27 = vmul.f32 %v8553_v30, %v5282_v62  ;;  %v5295_v49 = vmul.f32 %v8547_v23, %v5279_v21 }
0x3c04   :  { %v5300_v15 = vmul.f32 %v8551_v10, %v5284_v60  ;;  %v5299_v51 = vmul.f32 %v8549_v29, %v5283_v13  ;;  %v5302_v3 = vmul.f32 %v8555_v48, %v5286_v16  ;;  %v5301_v50 = vmul.f32 %v8557_v22, %v5285_v20 }
0x3c05   :  { %5315 = vperm.xlu0 %8086, %v5297_v35   ;;  %5310 = vperm.xlu1 %8082, %v5296_v26  }
0x3c0d   :  { %5320 = vperm.xlu0 %8086, %v5298_v27   ;;  %5305 = vperm.xlu1 %8082, %v5295_v49  }
0x3c15   :  { %5330 = vperm.xlu0 %8086, %v5300_v15   ;;  %5325 = vperm.xlu1 %8082, %v5299_v51  }
0x3c1d   :  { %5340 = vperm.xlu0 %8086, %v5302_v3   ;;  %5335 = vperm.xlu1 %8082, %v5301_v50  }
0x3c77   :  { %v5316_v55 = vpop.permute.xlu0 %5315  ;;  %v5311_v63 = vpop.permute.xlu1 %5310 }
0x3c78   :  { %v5345_v1 = vmul.f32 %v5316_v55, %v10558_v52  ;;  %v5344_v23 = vmul.f32 %v5311_v63, %v10574_v61 }
0x3c7a   :  { %v5365_v30 = vsel %vm4384_vm9, %v5345_v1, 0.0  ;;  %v5358_v8 = vsel %vm4384_vm9, %v5344_v23, 0.0 }
0x3c7b   :  { %v5359_v10 = vrot.slane %v5358_v8, 4  ;;  %v5366_v29 = vrot.slane %v5365_v30, 4 }
0x3c7d   :  { %v5360_v33 = vadd.f32 %v5359_v10, %v5358_v8  ;;  %v5367_v14 = vadd.f32 %v5366_v29, %v5365_v30 }
0x3c7f   :  { %v5321_v59 = vpop.permute.xlu0 %5320  ;;  %v5306_v40 = vpop.permute.xlu1 %5305  ;;  %v5361_v12 = vrot.slane %v5360_v33, 2  ;;  %v5368_v21 = vrot.slane %v5367_v14, 2 }
0x3c80   :  { %v5346_v48 = vmul.f32 %v5321_v59, %v10562_v4  ;;  %v5343_v22 = vmul.f32 %v5306_v40, %v10570_v58 }
0x3c81   :  { %v5362_v60 = vadd.f32 %v5361_v12, %v5360_v33  ;;  %v5369_v50 = vadd.f32 %v5368_v21, %v5367_v14 }
0x3c82   :  { %v5372_v19 = vsel %vm4384_vm9, %v5346_v48, 0.0  ;;  %v5351_v35 = vsel %vm4384_vm9, %v5343_v22, 0.0 }
0x3c83   :  { %v5373_v26 = vrot.slane %v5372_v19, 4  ;;  %v5352_v62 = vrot.slane %v5351_v35, 4  ;;  %v5363_v63 = vrot.slane %v5362_v60, 1  ;;  %v5370_v33 = vrot.slane %v5369_v50, 1 }
0x3c85   :  { %v5374_v27 = vadd.f32 %v5373_v26, %v5372_v19  ;;  %v5353_v49 = vadd.f32 %v5352_v62, %v5351_v35  ;;  %v5364_v48 = vadd.f32 %v5363_v63, %v5362_v60 }
0x3c87   :  { %v5375_v13 = vrot.slane %v5374_v27, 2  ;;  %v5354_v15 = vrot.slane %v5353_v49, 2  ;;  %v5331_v51 = vpop.permute.xlu0 %5330  ;;  %v5326_v16 = vpop.permute.xlu1 %5325 }
0x3c88   :  { %v5348_v20 = vmul.f32 %v5331_v51, %v10554_v36  ;;  %v5347_v3 = vmul.f32 %v5326_v16, %v10550_v46 }
0x3c89   :  { %v5355_v55 = vadd.f32 %v5354_v15, %v5353_v49  ;;  %v5376_v1 = vadd.f32 %v5375_v13, %v5374_v27  ;;  %v5371_v27 = vadd.f32 %v5370_v33, %v5369_v50  ;;  %v5408_v15 = vmul.f32 %v5364_v48, %v10728_v42 }
0x3c8a   :  { %v5386_v23 = vsel %vm4384_vm9, %v5348_v20, 0.0  ;;  %v5379_v30 = vsel %vm4384_vm9, %v5347_v3, 0.0 }
0x3c8b   :  { %v5387_v8 = vrot.slane %v5386_v23, 4  ;;  %v5380_v10 = vrot.slane %v5379_v30, 4  ;;  %v5356_v29 = vrot.slane %v5355_v55, 1  ;;  %v5377_v22 = vrot.slane %v5376_v1, 1 }
0x3c8d   :  { %v5388_v59 = vadd.f32 %v5387_v8, %v5386_v23  ;;  %v5381_v40 = vadd.f32 %v5380_v10, %v5379_v30  ;;  %v5357_v14 = vadd.f32 %v5356_v29, %v5355_v55  ;;  %v5378_v51 = vadd.f32 %v5377_v22, %v5376_v1 }
0x3c8e   :  { %v5409_v30 = vmul.f32 %v5371_v27, %v10728_v42  ;;  %v5423_v29 = vrot.slane %v5408_v15, 7 }
0x3c8f   :  { %v5389_v12 = vrot.slane %v5388_v59, 2  ;;  %v5382_v19 = vrot.slane %v5381_v40, 2  ;;  %v5341_v35 = vpop.permute.xlu0 %5340  ;;  %v5336_v26 = vpop.permute.xlu1 %5335  ;;  %v5407_v55 = vmul.f32 %v5357_v14, %v10728_v42  ;;  %v5410_v33 = vmul.f32 %v5378_v51, %v10728_v42 }
0x3c90   :  { %v5350_v62 = vmul.f32 %v5341_v35, %v10587_v17  ;;  %v5349_v21 = vmul.f32 %v5336_v26, %v10583_v56 }
0x3c91   :  { %v5390_v49 = vadd.f32 %v5389_v12, %v5388_v59  ;;  %v5383_v13 = vadd.f32 %v5382_v19, %v5381_v40  ;;  %v5424_v22 = vsel %vm232_vm1, %v5423_v29, %v5407_v55  ;;  %v5425_v12 = vrot.slane %v5409_v30, 6 }
0x3c92   :  { %v5400_v16 = vsel %vm4384_vm9, %v5350_v62, 0.0  ;;  %v5393_v60 = vsel %vm4384_vm9, %v5349_v21, 0.0  ;;  %v5427_v26 = vrot.slane %v5410_v33, 5  ;;  %v5443_v29 = vrot.slane %v10784_v44, 2 }
0x3c93   :  { %v5391_v20 = vrot.slane %v5390_v49, 1  ;;  %v5384_v3 = vrot.slane %v5383_v13, 1  ;;  %v5401_v63 = vrot.slane %v5400_v16, 4  ;;  %v5394_v23 = vrot.slane %v5393_v60, 4 }
0x3c94   :  { %v5444_v33 = vrot.slane %v10774_v45, 1 }
0x3c95   :  { %v5385_v8 = vadd.f32 %v5384_v3, %v5383_v13  ;;  %v5402_v10 = vadd.f32 %v5401_v63, %v5400_v16  ;;  %v5395_v50 = vadd.f32 %v5394_v23, %v5393_v60  ;;  %v5392_v59 = vadd.f32 %v5391_v20, %v5390_v49 }
0x3c96   :  { %v5426_v13 = vsel %vm234_vm2, %v5425_v12, %v5424_v22  ;;  %v5451_v12 = vrot.slane %v10805_v0, 5 }
0x3c97   :  { %v5411_v1 = vmul.f32 %v5385_v8, %v10728_v42  ;;  %v5403_v40 = vrot.slane %v5402_v10, 2  ;;  %v5396_v48 = vrot.slane %v5395_v50, 2  ;;  %v5412_v14 = vmul.f32 %v5392_v59, %v10728_v42 }
0x3c98   :  { %v5428_v49 = vsel %vm236_vm3, %v5427_v26, %v5426_v13  ;;  %v5445_v59 = vsel %vm232_vm1, %v5444_v33, %v5443_v29 }
0x3c99   :  { %v5404_v19 = vadd.f32 %v5403_v40, %v5402_v10  ;;  %v5397_v35 = vadd.f32 %v5396_v48, %v5395_v50  ;;  %v5429_v62 = vrot.slane %v5411_v1, 4  ;;  %v5431_v16 = vrot.slane %v5412_v14, 3 }
0x3c9a   :  { %v5447_v1 = vrot.slane %v10790_v31, 7  ;;  %v5446_v40 = vsel %vm234_vm2, %v10782_v37, %v5445_v59  ;;  %v5449_v48 = vrot.slane %v10798_v39, 6  ;;  %v5455_v14 = vrot.slane %v10816_v6, 3 }
0x3c9b   :  { %v5405_v21 = vrot.slane %v5404_v19, 1  ;;  %v5398_v27 = vrot.slane %v5397_v35, 1  ;;  %v5430_v3 = vsel %vm238_vm4, %v5429_v62, %v5428_v49 }
0x3c9c   :  { %v5432_v55 = vsel %vm240_vm5, %v5431_v16, %v5430_v3  ;;  %v5448_v22 = vsel %vm236_vm3, %v5447_v1, %v5446_v40 }
0x3c9d   :  { %v5399_v15 = vadd.f32 %v5398_v27, %v5397_v35  ;;  %v5406_v51 = vadd.f32 %v5405_v21, %v5404_v19  ;;  %v5450_v19 = vsel %vm238_vm4, %v5449_v48, %v5448_v22  ;;  %v5453_v35 = vrot.slane %v10812_v43, 4 }
0x3c9e   :  { %v5452_v26 = vsel %vm240_vm5, %v5451_v12, %v5450_v19 }
0x3c9f   :  { %v5413_v60 = vmul.f32 %v5399_v15, %v10728_v42  ;;  %v5414_v20 = vmul.f32 %v5406_v51, %v10728_v42  ;;  %v5454_v62 = vsel %vm242_vm6, %v5453_v35, %v5452_v26  ;;  %v11099_v51 = vld [vmem:[#allocation6 + $0x30] ss:$0 sm:$0xff] }
0x3ca0   :  { %v5456_v21 = vsel %vm244_vm7, %v5455_v14, %v5454_v62 }
0x3ca1   :  { %v5433_v63 = vrot.slane %v5413_v60, 2  ;;  %v5435_v23 = vrot.slane %v5414_v20, 1  ;;  %v11103_v60 = vld [vmem:[#allocation6 + $0x38] ss:$0 sm:$0xff] }
0x3ca3   :  { %v5434_v30 = vsel %vm242_vm6, %v5433_v63, %v5432_v55 }
0x3ca4   :  { %v5436_v8 = vsel %vm244_vm7, %v5435_v23, %v5434_v30 }
0x3ca5   :  { %5437 = vrot.lane.b32.xlu1 %v5436_v8, %s8936_s26 }
0x3d17   :  { %v5438_v10 = vpop.permute.xlu1 %5437 }
0x3d18   :  { %v5440_v50 = vsel %vm468_vm13, %v5438_v10, 0.0 }
0x3d19   :  { %5441 = vadd.xlane.f32.xlu0 %v5440_v50 }
0x3d8c   :  { %v5442_v27 = vpop.xlane.xlu0 %5441 }
0x3d8d   :  { %v5458_v13 = vadd.f32 %v5456_v21, %v5442_v27 }
0x3d8f   :  { %5461 = vperm.xlu2 %8087, %v5458_v13  }
0x3de9   :  { %v5462_v15 = vpop.permute.xlu2 %5461 }
0x3dea   :  { %v5464_v49 = vmul.f32 %v11099_v51, %v5462_v15 }
0x3dec   :  { %v5480_v16 = vadd.f32 %v10992_v47, %v5464_v49 }
0x3dee   :  { %v5481_v20 = vadd.f32 %v11103_v60, %v5480_v16  ;;  %v11124_v16 = vld [vmem:[#allocation4 + $0x20] sm:$0xff] }
0x3df0   :  { %8560 = vtanh.f32 %v5481_v20  ;;  %v8014_v63 = vmul.f32 -1.442695, %v5481_v20  ;;  %v11128_v20 = vld [vmem:[#allocation4 + $0x18] sm:$0xff] }
0x3df2   :  { %8562 = vpow2.f32 %v8014_v63 }
0x3df6   :  { %v8561_v3 = vpop.eup %8560 }
0x3df7   :  { %5504 = vrot.lane.b32.xlu1 %v8561_v3, %s8943_s25 }
0x3df8   :  { %v8563_v23 = vpop.eup %8562 }
0x3df9   :  { %v5485_v55 = vadd.f32 1.0, %v8563_v23 }
0x3dfb   :  { %8564 = vrcp.f32 %v5485_v55  ;;  %v5497_v47 = vand.u32 2147483648, %v5485_v55  ;;  %vm5491_vm15 = vweird.f32 %v5485_v55  ;;  %v5495_v33 = vand.u32 2147483647, %v5485_v55 }
0x3dfd   :  { %v5498_v1 = vor.u32 1.1754944e-38, %v5497_v47  ;;  %vm5496_vm11 = vcmp.eq.f32.partialorder %v5495_v33, 8.507059e+37 }
0x3e01   :  { %v8565_v30 = vpop.eup %8564 }
0x3e02   :  { %v5487_v8 = vmul.f32 %v8565_v30, %v5485_v55  ;;  %vm5492_vm12 = vweird.f32 %v8565_v30 }
0x3e03   :  { %vm5493_vm10 = vmor %vm5491_vm15, %vm5492_vm12 }
0x3e04   :  { %v5488_v10 = vsub.f32 1.0, %v5487_v8 }
0x3e06   :  { %v5489_v50 = vmul.f32 %v8565_v30, %v5488_v10 }
0x3e08   :  { %v5490_v29 = vadd.f32 %v8565_v30, %v5489_v50 }
0x3e0a   :  { %v5494_v59 = vsel %vm5493_vm10, %v8565_v30, %v5490_v29 }
0x3e0b   :  { %v5499_v48 = vsel %vm5496_vm11, %v5498_v1, %v5494_v59 }
0x3e0c   :  { %v5502_v12 = vmul.f32 %v5499_v48, %v10963_v57 }
0x3e69   :  { %v5505_v40 = vpop.permute.xlu1 %5504 }
0x3e6a   :  { %v5507_v22 = vmul.f32 %v5505_v40, %v5499_v48 }
0x3e6c   :  { %5509 = vrot.lane.b32.xlu1 %v5507_v22, %s8943_s25 }
0x3ede   :  { %v5510_v19 = vpop.permute.xlu1 %5509 }
0x3edf   :  { %v11109_v35 = vadd.f32 %v5510_v19, %v5502_v12 }
0x3ee1   :  { %8566 = vtanh.f32 %v11109_v35  ;;  %v5528_v57 = vpack.c.bf16 %v11109_v35, %v11109_v35 }
0x3ee7   :  { %v8567_v26 = vpop.eup %8566 }
0x3ee8   :  { %5515 = vrot.lane.b32.xlu1 %v8567_v26, %s8943_s25 }
0x3f5a   :  { %v5516_v14 = vpop.permute.xlu1 %5515 }
0x3f5b   :  { %v11113_v62 = vmul.f32 %v5516_v14, %v5499_v48 }
0x3f5d   :  { %v5527_v21 = vpack.c.bf16 %v11113_v62, %v11113_v62 }
0x3f5f   :  { %v5530_v27 = vunpack.c.l.b16 %v5527_v21 }
0x3f61   :  { %v5531_v13 = vpack.c.b16 %v5530_v27, %v5530_v27 }
0x3f63   :  { %5532 = vrot.lane.b32.xlu2 %v5531_v13, %s8936_s26 }
0x3fbd   :  { %v5533_v15 = vpop.permute.xlu2 %5532 }
0x3fbe   :  { %v5536_v49 = vsel %vm468_vm13, %v5533_v15, %v5528_v57  ;;  %8016 = vmatmul.msk.bf16.vlgmr.msra.gmra.mxu0 %vm468_vm13, %v5533_v15 }
0x3fbf   :  { %8015 = vmatmul.msk.bf16.vlgmr.msra.gmra.mxu1 %vm123_vm14, %v5536_v49  ;;  %7407 = vmatpush.bf16.msra.mxu0 %v10978_v28 }
0x3fc0   :  { %7337 = vmatpush.bf16.msra.mxu1 %v11124_v16 }
0x3fc3   :  { %7408 = vmatpush.bf16.msra.mxu0 %v10982_v25 }
0x3fc4   :  { %7338 = vmatpush.bf16.msra.mxu1 %v11128_v20 }
0x3fc7   :  { %7409 = vmatpush.bf16.msra.mxu0 %v10985_v11 }
0x3fcb   :  { %7410 = vmatpush.bf16.msra.mxu0 %v10988_v7 }
0x403b   :  { %v11133_v3 = vpop.f32.mrf.mxu0 }
0x403c   :  { %v5548_v63 = vpop.f32.mrf.mxu1 }
0x403d   :  { %v5560_v23 = vperm.slane %v5548_v63, 0  ;;  %v5554_v55 = vrot.slane %v5548_v63, 2  ;;  %v5553_v28 = vrot.slane %v5548_v63, 1  ;;  %v5558_v30 = vrot.slane %v5548_v63, 6 }
0x403e   :  { %v5555_v8 = vrot.slane %v5548_v63, 3  ;;  %v5556_v40 = vrot.slane %v5548_v63, 4  ;;  %v5557_v49 = vrot.slane %v5548_v63, 5 }
0x403f   :  { %v5576_v10 = vadd.f32 %v5560_v23, %v10623_v38  ;;  %v5562_v50 = vperm.slane %v5554_v55, 0  ;;  %v5561_v25 = vperm.slane %v5553_v28, 0  ;;  %v5566_v29 = vperm.slane %v5558_v30, 0 }
0x4040   :  { %v5563_v47 = vperm.slane %v5555_v8, 0  ;;  %v5564_v12 = vperm.slane %v5556_v40, 0  ;;  %v5565_v8 = vperm.slane %v5557_v49, 0 }
0x4041   :  { %8568 = vtanh.f32 %v5576_v10  ;;  %v5578_v33 = vadd.f32 %v5562_v50, %v10637_v2  ;;  %v5577_v11 = vadd.f32 %v5561_v25, %v10630_v53  ;;  %v5582_v7 = vadd.f32 %v5566_v29, %v10665_v34 }
0x4042   :  { %v5579_v1 = vadd.f32 %v5563_v47, %v10644_v5  ;;  %v5580_v15 = vadd.f32 %v5564_v12, %v10651_v41  ;;  %v5581_v25 = vadd.f32 %v5565_v8, %v10658_v32  ;;  %v5559_v29 = vrot.slane %v5548_v63, 7 }
0x4043   :  { %v5944_v59 = vpop.f32.mrf.mxu0  ;;  %8570 = vtanh.f32 %v5578_v33 }
0x4044   :  { %v5550_v48 = vpop.f32.mrf.mxu1  ;;  %8572 = vtanh.f32 %v5577_v11  ;;  %v5567_v11 = vperm.slane %v5559_v29, 0 }
0x4045   :  { %8574 = vtanh.f32 %v5582_v7 }
0x4046   :  { %8576 = vtanh.f32 %v5579_v1  ;;  %v5583_v59 = vadd.f32 %v5567_v11, %v10672_v24 }
0x4047   :  { %v8569_v22 = vpop.eup %8568  ;;  %8578 = vtanh.f32 %v5580_v15 }
0x4048   :  { %v5592_v19 = vmul.f32 %v10998_v18, %v8569_v22  ;;  %8580 = vtanh.f32 %v5581_v25 }
0x4049   :  { %v8571_v26 = vpop.eup %8570  ;;  %8582 = vtanh.f32 %v5583_v59 }
0x404a   :  { %v8573_v14 = vpop.eup %8572  ;;  %v5600_v21 = vsel %vm468_vm13, %v5592_v19, 0.0  ;;  %v5594_v27 = vmul.f32 %v10998_v18, %v8571_v26 }
0x404b   :  { %v8575_v13 = vpop.eup %8574  ;;  %5601 = vadd.xlane.f32.xlu1 %v5600_v21  ;;  %v5593_v57 = vmul.f32 %v10998_v18, %v8573_v14 }
0x404c   :  { %v5606_v23 = vsel %vm468_vm13, %v5594_v27, 0.0  ;;  %v8577_v55 = vpop.eup %8576  ;;  %v5598_v30 = vmul.f32 %v10998_v18, %v8575_v13 }
0x404d   :  { %5607 = vadd.xlane.f32.xlu0 %v5606_v23  ;;  %v5603_v28 = vsel %vm468_vm13, %v5593_v57, 0.0  ;;  %v5595_v10 = vmul.f32 %v10998_v18, %v8577_v55  ;;  %v8579_v33 = vpop.eup %8578 }
0x404e   :  { %5604 = vadd.xlane.f32.xlu2 %v5603_v28  ;;  %v5618_v50 = vsel %vm468_vm13, %v5598_v30, 0.0  ;;  %v5596_v7 = vmul.f32 %v10998_v18, %v8579_v33  ;;  %v8581_v40 = vpop.eup %8580 }
0x404f   :  { %v5609_v47 = vsel %vm468_vm13, %v5595_v10, 0.0  ;;  %v5597_v48 = vmul.f32 %v10998_v18, %v8581_v40  ;;  %v8583_v63 = vpop.eup %8582 }
0x4050   :  { %v5612_v1 = vsel %vm468_vm13, %v5596_v7, 0.0  ;;  %v5599_v12 = vmul.f32 %v10998_v18, %v8583_v63 }
0x4051   :  { %v5615_v22 = vsel %vm468_vm13, %v5597_v48, 0.0 }
0x4052   :  { %v5621_v19 = vsel %vm468_vm13, %v5599_v12, 0.0 }
0x4053   :  { %5619 = vadd.xlane.f32.xlu1 %v5618_v50 }
0x4055   :  { %5610 = vadd.xlane.f32.xlu0 %v5609_v47 }
0x405d   :  { %5613 = vadd.xlane.f32.xlu0 %v5612_v1 }
0x4065   :  { %5616 = vadd.xlane.f32.xlu0 %v5615_v22 }
0x406d   :  { %5622 = vadd.xlane.f32.xlu0 %v5621_v19 }
0x40be   :  { %v5602_v13 = vpop.xlane.xlu1 %5601 }
0x40bf   :  { %v5632_v15 = vperm.slane %v5602_v13, %v9052_v9 }
0x40c0   :  { %v5608_v26 = vpop.xlane.xlu0 %5607 }
0x40c1   :  { %v5605_v27 = vpop.xlane.xlu2 %5604  ;;  %v5634_v49 = vperm.slane %v5608_v26, %v9052_v9 }
0x40c2   :  { %v5633_v57 = vperm.slane %v5605_v27, %v9052_v9 }
0x40c4   :  { %v5640_v55 = vsel %vm232_vm1, %v5633_v57, %v5632_v15 }
0x40c5   :  { %v5641_v8 = vsel %vm234_vm2, %v5634_v49, %v5640_v55 }
0x40c6   :  { %v5620_v10 = vpop.xlane.xlu1 %5619 }
0x40c7   :  { %v5638_v47 = vperm.slane %v5620_v10, %v9052_v9 }
0x40c8   :  { %v5611_v14 = vpop.xlane.xlu0 %5610 }
0x40c9   :  { %v5635_v28 = vperm.slane %v5611_v14, %v9052_v9 }
0x40cb   :  { %v5642_v50 = vsel %vm236_vm3, %v5635_v28, %v5641_v8 }
0x40d0   :  { %v5614_v21 = vpop.xlane.xlu0 %5613 }
0x40d1   :  { %v5636_v18 = vperm.slane %v5614_v21, %v9052_v9 }
0x40d3   :  { %v5643_v25 = vsel %vm238_vm4, %v5636_v18, %v5642_v50 }
0x40d8   :  { %v5617_v23 = vpop.xlane.xlu0 %5616 }
0x40d9   :  { %v5637_v30 = vperm.slane %v5617_v23, %v9052_v9 }
0x40db   :  { %v5644_v29 = vsel %vm240_vm5, %v5637_v30, %v5643_v25 }
0x40dc   :  { %v5645_v7 = vsel %vm242_vm6, %v5638_v47, %v5644_v29 }
0x40e0   :  { %v5623_v33 = vpop.xlane.xlu0 %5622 }
0x40e1   :  { %v5639_v11 = vperm.slane %v5623_v33, %v9052_v9 }
0x40e3   :  { %v5646_v59 = vsel %vm244_vm7, %v5639_v11, %v5645_v7 }
0x40e4   :  { %v5648_v1 = vsel %vm189_vm0, %v5646_v59, -inf }
0x40e5   :  { %5649 = vmax.xlane.f32.xlu2 %v5648_v1 }
0x4158   :  { %v5650_v40 = vpop.xlane.xlu2 %5649 }
0x4159   :  { %v5652_v48 = vperm.slane %v5650_v40, 0  ;;  %v5653_v22 = vperm.slane %v5650_v40, 1  ;;  %v5654_v63 = vperm.slane %v5650_v40, 2  ;;  %v5657_v12 = vperm.slane %v5650_v40, 5 }
0x415a   :  { %v5655_v49 = vperm.slane %v5650_v40, 3  ;;  %v5656_v55 = vperm.slane %v5650_v40, 4  ;;  %v5658_v47 = vperm.slane %v5650_v40, 6  ;;  %v5659_v59 = vperm.slane %v5650_v40, 7 }
0x415b   :  { %v5668_v19 = vsub.f32 %v5602_v13, %v5652_v48  ;;  %v5669_v57 = vsub.f32 %v5605_v27, %v5653_v22  ;;  %v5670_v15 = vsub.f32 %v5608_v26, %v5654_v63  ;;  %v5673_v8 = vsub.f32 %v5617_v23, %v5657_v12 }
0x415c   :  { %v5671_v50 = vsub.f32 %v5611_v14, %v5655_v49  ;;  %v5672_v25 = vsub.f32 %v5614_v21, %v5656_v55  ;;  %v5674_v27 = vsub.f32 %v5620_v10, %v5658_v47  ;;  %v5675_v23 = vsub.f32 %v5623_v33, %v5659_v59 }
0x415d   :  { %v5676_v28 = vmul.f32 1.442695, %v5668_v19  ;;  %v5678_v18 = vmul.f32 1.442695, %v5669_v57  ;;  %v5680_v30 = vmul.f32 1.442695, %v5670_v15 }
0x415e   :  { %v5686_v29 = vmul.f32 1.442695, %v5673_v8  ;;  %v5682_v11 = vmul.f32 1.442695, %v5671_v50  ;;  %v5684_v1 = vmul.f32 1.442695, %v5672_v25 }
0x415f   :  { %8584 = vpow2.f32 %v5680_v30  ;;  %v5688_v14 = vmul.f32 1.442695, %v5674_v27  ;;  %v5690_v21 = vmul.f32 1.442695, %v5675_v23 }
0x4160   :  { %8586 = vpow2.f32 %v5678_v18 }
0x4161   :  { %8588 = vpow2.f32 %v5676_v28 }
0x4162   :  { %8590 = vpow2.f32 %v5686_v29 }
0x4163   :  { %8592 = vpow2.f32 %v5682_v11 }
0x4164   :  { %8594 = vpow2.f32 %v5684_v1 }
0x4165   :  { %v8585_v7 = vpop.eup %8584  ;;  %8596 = vpow2.f32 %v5688_v14 }
0x4166   :  { %v8587_v13 = vpop.eup %8586  ;;  %5707 = vperm.xlu2 %8087, %v8585_v7   ;;  %8598 = vpow2.f32 %v5690_v21 }
0x4167   :  { %v8589_v26 = vpop.eup %8588  ;;  %5704 = vperm.xlu0 %8086, %v8587_v13  }
0x4168   :  { %5701 = vperm.xlu1 %8082, %v8589_v26   ;;  %v8591_v48 = vpop.eup %8590 }
0x4169   :  { %v8593_v22 = vpop.eup %8592 }
0x416a   :  { %v8595_v63 = vpop.eup %8594 }
0x416b   :  { %v8597_v40 = vpop.eup %8596 }
0x416c   :  { %v8599_v12 = vpop.eup %8598 }
0x416e   :  { %5716 = vperm.xlu2 %8087, %v8591_v48  }
0x416f   :  { %5710 = vperm.xlu0 %8086, %v8593_v22  }
0x4170   :  { %5713 = vperm.xlu1 %8082, %v8595_v63  }
0x4177   :  { %5719 = vperm.xlu0 %8086, %v8597_v40  }
0x4178   :  { %5722 = vperm.xlu1 %8082, %v8599_v12  }
0x41c0   :  { %v5708_v57 = vpop.permute.xlu2 %5707 }
0x41c1   :  { %v5726_v28 = vperm.slane %v5708_v57, %v9052_v9 }
0x41c8   :  { %v5717_v29 = vpop.permute.xlu2 %5716 }
0x41c9   :  { %v5729_v11 = vperm.slane %v5717_v29, %v9052_v9 }
0x41d9   :  { %v5705_v19 = vpop.permute.xlu0 %5704 }
0x41da   :  { %v5702_v10 = vpop.permute.xlu1 %5701  ;;  %v5725_v33 = vperm.slane %v5705_v19, %v9052_v9 }
0x41db   :  { %v5724_v15 = vperm.slane %v5702_v10, %v9052_v9 }
0x41dd   :  { %v5732_v49 = vsel %vm232_vm1, %v5725_v33, %v5724_v15 }
0x41de   :  { %v5733_v8 = vsel %vm234_vm2, %v5726_v28, %v5732_v49 }
0x41e1   :  { %v5711_v55 = vpop.permute.xlu0 %5710 }
0x41e2   :  { %v5727_v18 = vperm.slane %v5711_v55, %v9052_v9  ;;  %v5714_v30 = vpop.permute.xlu1 %5713 }
0x41e3   :  { %v5728_v50 = vperm.slane %v5714_v30, %v9052_v9 }
0x41e4   :  { %v5734_v25 = vsel %vm236_vm3, %v5727_v18, %v5733_v8 }
0x41e5   :  { %v5735_v47 = vsel %vm238_vm4, %v5728_v50, %v5734_v25 }
0x41e6   :  { %v5736_v14 = vsel %vm240_vm5, %v5729_v11, %v5735_v47 }
0x41e9   :  { %v5720_v59 = vpop.permute.xlu0 %5719 }
0x41ea   :  { %v5730_v1 = vperm.slane %v5720_v59, %v9052_v9  ;;  %v5723_v27 = vpop.permute.xlu1 %5722 }
0x41eb   :  { %v5731_v23 = vperm.slane %v5723_v27, %v9052_v9 }
0x41ec   :  { %v5737_v21 = vsel %vm242_vm6, %v5730_v1, %v5736_v14 }
0x41ed   :  { %v5738_v19 = vsel %vm244_vm7, %v5731_v23, %v5737_v21 }
0x41ee   :  { %v5740_v10 = vsel %vm189_vm0, %v5738_v19, 0.0 }
0x41ef   :  { %5741 = vadd.xlane.f32.xlu2 %v5740_v10 }
0x4262   :  { %v5742_v57 = vpop.xlane.xlu2 %5741 }
0x4263   :  { %8600 = vrcp.f32 %v5742_v57 }
0x4269   :  { %v8601_v33 = vpop.eup %8600 }
0x426a   :  { %v5747_v15 = vperm.slane %v8601_v33, 2  ;;  %v5746_v49 = vperm.slane %v8601_v33, 1  ;;  %v5748_v18 = vperm.slane %v8601_v33, 3  ;;  %v5745_v30 = vperm.slane %v8601_v33, 0 }
0x426b   :  { %v5750_v25 = vperm.slane %v8601_v33, 5  ;;  %v5749_v29 = vperm.slane %v8601_v33, 4  ;;  %v5752_v59 = vperm.slane %v8601_v33, 7  ;;  %v5751_v1 = vperm.slane %v8601_v33, 6 }
0x426c   :  { %v5763_v55 = vmul.f32 %v8585_v7, %v5747_v15  ;;  %v5762_v28 = vmul.f32 %v8587_v13, %v5746_v49  ;;  %v5764_v8 = vmul.f32 %v8593_v22, %v5748_v18  ;;  %v5761_v50 = vmul.f32 %v8589_v26, %v5745_v30 }
0x426d   :  { %v5766_v47 = vmul.f32 %v8591_v48, %v5750_v25  ;;  %v5765_v11 = vmul.f32 %v8595_v63, %v5749_v29  ;;  %v5768_v27 = vmul.f32 %v8599_v12, %v5752_v59  ;;  %v5767_v23 = vmul.f32 %v8597_v40, %v5751_v1 }
0x426e   :  { %5781 = vperm.xlu1 %8082, %v5763_v55   ;;  %5776 = vperm.xlu0 %8086, %v5762_v28  }
0x4276   :  { %5786 = vperm.xlu1 %8082, %v5764_v8   ;;  %5771 = vperm.xlu0 %8086, %v5761_v50  }
0x427e   :  { %5796 = vperm.xlu1 %8082, %v5766_v47   ;;  %5791 = vperm.xlu0 %8086, %v5765_v11  }
0x4286   :  { %5806 = vperm.xlu1 %8082, %v5768_v27   ;;  %5801 = vperm.xlu0 %8086, %v5767_v23  }
0x42e0   :  { %v5782_v7 = vpop.permute.xlu1 %5781  ;;  %v5777_v13 = vpop.permute.xlu0 %5776 }
0x42e1   :  { %v5811_v14 = vmul.f32 %v5782_v7, %v10558_v52  ;;  %v5810_v26 = vmul.f32 %v5777_v13, %v10574_v61 }
0x42e3   :  { %v5831_v22 = vsel %vm4384_vm9, %v5811_v14, 0.0  ;;  %v5824_v21 = vsel %vm4384_vm9, %v5810_v26, 0.0 }
0x42e4   :  { %v5825_v48 = vrot.slane %v5824_v21, 4  ;;  %v5832_v63 = vrot.slane %v5831_v22, 4 }
0x42e6   :  { %v5826_v19 = vadd.f32 %v5825_v48, %v5824_v21  ;;  %v5833_v33 = vadd.f32 %v5832_v63, %v5831_v22 }
0x42e8   :  { %v5787_v10 = vpop.permute.xlu1 %5786  ;;  %v5772_v57 = vpop.permute.xlu0 %5771  ;;  %v5827_v15 = vrot.slane %v5826_v19, 2  ;;  %v5834_v30 = vrot.slane %v5833_v33, 2 }
0x42e9   :  { %v5812_v12 = vmul.f32 %v5787_v10, %v10562_v4  ;;  %v5809_v40 = vmul.f32 %v5772_v57, %v10570_v58 }
0x42ea   :  { %v5828_v25 = vadd.f32 %v5827_v15, %v5826_v19  ;;  %v5835_v23 = vadd.f32 %v5834_v30, %v5833_v33 }
0x42eb   :  { %v5838_v49 = vsel %vm4384_vm9, %v5812_v12, 0.0  ;;  %v5817_v55 = vsel %vm4384_vm9, %v5809_v40, 0.0 }
0x42ec   :  { %v5839_v28 = vrot.slane %v5838_v49, 4  ;;  %v5818_v18 = vrot.slane %v5817_v55, 4  ;;  %v5829_v13 = vrot.slane %v5828_v25, 1  ;;  %v5836_v19 = vrot.slane %v5835_v23, 1 }
0x42ee   :  { %v5840_v8 = vadd.f32 %v5839_v28, %v5838_v49  ;;  %v5819_v50 = vadd.f32 %v5818_v18, %v5817_v55  ;;  %v5830_v12 = vadd.f32 %v5829_v13, %v5828_v25 }
0x42f0   :  { %v5841_v29 = vrot.slane %v5840_v8, 2  ;;  %v5820_v47 = vrot.slane %v5819_v50, 2  ;;  %v5797_v11 = vpop.permute.xlu1 %5796  ;;  %v5792_v59 = vpop.permute.xlu0 %5791 }
0x42f1   :  { %v5814_v1 = vmul.f32 %v5797_v11, %v10554_v36  ;;  %v5813_v27 = vmul.f32 %v5792_v59, %v10550_v46 }
0x42f2   :  { %v5821_v7 = vadd.f32 %v5820_v47, %v5819_v50  ;;  %v5842_v14 = vadd.f32 %v5841_v29, %v5840_v8  ;;  %v5837_v8 = vadd.f32 %v5836_v19, %v5835_v23  ;;  %v5874_v47 = vmul.f32 %v5830_v12, %v10728_v42 }
0x42f3   :  { %v5852_v26 = vsel %vm4384_vm9, %v5814_v1, 0.0  ;;  %v5845_v22 = vsel %vm4384_vm9, %v5813_v27, 0.0 }
0x42f4   :  { %v5853_v21 = vrot.slane %v5852_v26, 4  ;;  %v5846_v48 = vrot.slane %v5845_v22, 4  ;;  %v5822_v63 = vrot.slane %v5821_v7, 1  ;;  %v5843_v40 = vrot.slane %v5842_v14, 1 }
0x42f6   :  { %v5854_v10 = vadd.f32 %v5853_v21, %v5852_v26  ;;  %v5847_v57 = vadd.f32 %v5846_v48, %v5845_v22  ;;  %v5823_v33 = vadd.f32 %v5822_v63, %v5821_v7  ;;  %v5844_v11 = vadd.f32 %v5843_v40, %v5842_v14 }
0x42f7   :  { %v5875_v22 = vmul.f32 %v5837_v8, %v10728_v42  ;;  %v5889_v63 = vrot.slane %v5874_v47, 7 }
0x42f8   :  { %v5855_v15 = vrot.slane %v5854_v10, 2  ;;  %v5848_v49 = vrot.slane %v5847_v57, 2  ;;  %v5807_v55 = vpop.permute.xlu1 %5806  ;;  %v5802_v28 = vpop.permute.xlu0 %5801  ;;  %v5873_v7 = vmul.f32 %v5823_v33, %v10728_v42  ;;  %v5876_v19 = vmul.f32 %v5844_v11, %v10728_v42 }
0x42f9   :  { %v5816_v18 = vmul.f32 %v5807_v55, %v10587_v17  ;;  %v5815_v30 = vmul.f32 %v5802_v28, %v10583_v56 }
0x42fa   :  { %v5856_v50 = vadd.f32 %v5855_v15, %v5854_v10  ;;  %v5849_v29 = vadd.f32 %v5848_v49, %v5847_v57  ;;  %v5890_v40 = vsel %vm232_vm1, %v5889_v63, %v5873_v7  ;;  %v5891_v15 = vrot.slane %v5875_v22, 6 }
0x42fb   :  { %v5866_v59 = vsel %vm4384_vm9, %v5816_v18, 0.0  ;;  %v5859_v25 = vsel %vm4384_vm9, %v5815_v30, 0.0  ;;  %v5893_v28 = vrot.slane %v5876_v19, 5  ;;  %v5909_v63 = vrot.slane %v10784_v44, 3 }
0x42fc   :  { %v5857_v1 = vrot.slane %v5856_v50, 1  ;;  %v5850_v27 = vrot.slane %v5849_v29, 1  ;;  %v5867_v13 = vrot.slane %v5866_v59, 4  ;;  %v5860_v26 = vrot.slane %v5859_v25, 4 }
0x42fd   :  { %v5910_v19 = vrot.slane %v10774_v45, 2 }
0x42fe   :  { %v5851_v21 = vadd.f32 %v5850_v27, %v5849_v29  ;;  %v5868_v48 = vadd.f32 %v5867_v13, %v5866_v59  ;;  %v5861_v23 = vadd.f32 %v5860_v26, %v5859_v25  ;;  %v5858_v10 = vadd.f32 %v5857_v1, %v5856_v50 }
0x42ff   :  { %v5892_v29 = vsel %vm234_vm2, %v5891_v15, %v5890_v40  ;;  %v5917_v15 = vrot.slane %v10805_v0, 6 }
0x4300   :  { %v5877_v14 = vmul.f32 %v5851_v21, %v10728_v42  ;;  %v5869_v57 = vrot.slane %v5868_v48, 2  ;;  %v5862_v12 = vrot.slane %v5861_v23, 2  ;;  %v5878_v33 = vmul.f32 %v5858_v10, %v10728_v42 }
0x4301   :  { %v5894_v50 = vsel %vm236_vm3, %v5893_v28, %v5892_v29  ;;  %v5912_v10 = vrot.slane %v10782_v37, 1 }
0x4302   :  { %v5870_v49 = vadd.f32 %v5869_v57, %v5868_v48  ;;  %v5863_v55 = vadd.f32 %v5862_v12, %v5861_v23  ;;  %v5895_v18 = vrot.slane %v5877_v14, 4  ;;  %v5897_v59 = vrot.slane %v5878_v33, 3 }
0x4303   :  { %v5911_v14 = vsel %vm232_vm1, %v5910_v19, %v5909_v63  ;;  %v5915_v12 = vrot.slane %v10798_v39, 7  ;;  %v5921_v33 = vrot.slane %v10816_v6, 4 }
0x4304   :  { %v5871_v30 = vrot.slane %v5870_v49, 1  ;;  %v5864_v8 = vrot.slane %v5863_v55, 1  ;;  %v5896_v27 = vsel %vm238_vm4, %v5895_v18, %v5894_v50  ;;  %v5913_v57 = vsel %vm234_vm2, %v5912_v10, %v5911_v14 }
0x4305   :  { %v5898_v7 = vsel %vm240_vm5, %v5897_v59, %v5896_v27  ;;  %v5914_v40 = vsel %vm236_vm3, %v10790_v31, %v5913_v57 }
0x4306   :  { %v5865_v47 = vadd.f32 %v5864_v8, %v5863_v55  ;;  %v5872_v11 = vadd.f32 %v5871_v30, %v5870_v49  ;;  %v5916_v49 = vsel %vm238_vm4, %v5915_v12, %v5914_v40  ;;  %v5919_v55 = vrot.slane %v10812_v43, 5 }
0x4307   :  { %v5918_v28 = vsel %vm240_vm5, %v5917_v15, %v5916_v49 }
0x4308   :  { %v5879_v25 = vmul.f32 %v5865_v47, %v10728_v42  ;;  %v5880_v1 = vmul.f32 %v5872_v11, %v10728_v42  ;;  %v5920_v18 = vsel %vm242_vm6, %v5919_v55, %v5918_v28 }
0x4309   :  { %v5922_v30 = vsel %vm244_vm7, %v5921_v33, %v5920_v18 }
0x430a   :  { %v5899_v13 = vrot.slane %v5879_v25, 2  ;;  %v5901_v26 = vrot.slane %v5880_v1, 1 }
0x430c   :  { %v5900_v22 = vsel %vm242_vm6, %v5899_v13, %v5898_v7 }
0x430d   :  { %v5902_v21 = vsel %vm244_vm7, %v5901_v26, %v5900_v22 }
0x430e   :  { %5903 = vrot.lane.b32.xlu0 %v5902_v21, %s8936_s26 }
0x4380   :  { %v5904_v48 = vpop.permute.xlu0 %5903 }
0x4381   :  { %v5906_v23 = vsel %vm468_vm13, %v5904_v48, 0.0 }
0x4382   :  { %5907 = vadd.xlane.f32.xlu1 %v5906_v23 }
0x43f5   :  { %v5908_v8 = vpop.xlane.xlu1 %5907 }
0x43f6   :  { %v5924_v29 = vadd.f32 %v5922_v30, %v5908_v8 }
0x43f8   :  { %5927 = vperm.xlu2 %8087, %v5924_v29  }
0x4452   :  { %v5928_v47 = vpop.permute.xlu2 %5927 }
0x4453   :  { %v5930_v11 = vmul.f32 %v11099_v51, %v5928_v47 }
0x4455   :  { %v5946_v50 = vadd.f32 %v11133_v3, %v5930_v11 }
0x4457   :  { %v5947_v59 = vadd.f32 %v11103_v60, %v5946_v50 }
0x4459   :  { %8602 = vtanh.f32 %v5947_v59  ;;  %v8017_v1 = vmul.f32 -1.442695, %v5947_v59 }
0x445b   :  { %8604 = vpow2.f32 %v8017_v1 }
0x445f   :  { %v8603_v25 = vpop.eup %8602 }
0x4460   :  { %5970 = vrot.lane.b32.xlu0 %v8603_v25, %s8943_s25 }
0x4461   :  { %v8605_v27 = vpop.eup %8604 }
0x4462   :  { %v5951_v13 = vadd.f32 1.0, %v8605_v27 }
0x4464   :  { %8606 = vrcp.f32 %v5951_v13  ;;  %v5963_v51 = vand.u32 2147483648, %v5951_v13  ;;  %vm5957_vm12 = vweird.f32 %v5951_v13  ;;  %v5961_v3 = vand.u32 2147483647, %v5951_v13 }
0x4466   :  { %v5964_v23 = vor.u32 1.1754944e-38, %v5963_v51  ;;  %vm5962_vm10 = vcmp.eq.f32.partialorder %v5961_v3, 8.507059e+37 }
0x446a   :  { %v8607_v26 = vpop.eup %8606 }
0x446b   :  { %v5953_v7 = vmul.f32 %v8607_v26, %v5951_v13  ;;  %vm5958_vm8 = vweird.f32 %v8607_v26 }
0x446c   :  { %vm5959_vm15 = vmor %vm5957_vm12, %vm5958_vm8 }
0x446d   :  { %v5954_v22 = vsub.f32 1.0, %v5953_v7 }
0x446f   :  { %v5955_v21 = vmul.f32 %v8607_v26, %v5954_v22 }
0x4471   :  { %v5956_v48 = vadd.f32 %v8607_v26, %v5955_v21 }
0x4473   :  { %v5960_v60 = vsel %vm5959_vm15, %v8607_v26, %v5956_v48 }
0x4474   :  { %v5965_v19 = vsel %vm5962_vm10, %v5964_v23, %v5960_v60 }
0x4475   :  { %v5968_v14 = vmul.f32 %v5965_v19, %v11109_v35 }
0x44d2   :  { %v5971_v63 = vpop.permute.xlu0 %5970 }
0x44d3   :  { %v5973_v10 = vmul.f32 %v5971_v63, %v5965_v19  ;;  %v11268_v63 = vld [vmem:[#allocation6 + $0x18] ss:$0 sm:$0xff] }
0x44d5   :  { %5975 = vrot.lane.b32.xlu0 %v5973_v10, %s8943_s25 }
0x4547   :  { %v5976_v57 = vpop.permute.xlu0 %5975 }
0x4548   :  { %v11245_v12 = vadd.f32 %v5976_v57, %v5968_v14 }
0x454a   :  { %8608 = vtanh.f32 %v11245_v12  ;;  %v5994_v35 = vpack.c.bf16 %v11245_v12, %v11245_v12 }
0x4550   :  { %v8609_v40 = vpop.eup %8608 }
0x4551   :  { %5981 = vrot.lane.b32.xlu0 %v8609_v40, %s8943_s25 }
0x45c3   :  { %v5982_v15 = vpop.permute.xlu0 %5981 }
0x45c4   :  { %v11249_v49 = vmul.f32 %v5982_v15, %v5965_v19 }
0x45c6   :  { %v5993_v55 = vpack.c.bf16 %v11249_v49, %v11249_v49 }
0x45c8   :  { %v5996_v28 = vunpack.c.l.b16 %v5993_v55 }
0x45ca   :  { %v5997_v33 = vpack.c.b16 %v5996_v28, %v5996_v28 }
0x45cc   :  { %5998 = vrot.lane.b32.xlu2 %v5997_v33, %s8936_s26 }
0x4626   :  { %v5999_v18 = vpop.permute.xlu2 %5998 }
0x4627   :  { %v6002_v30 = vsel %vm468_vm13, %v5999_v18, %v5994_v35  ;;  %8019 = vmatmul.msk.bf16.vlgmr.msrb.gmra.mxu1 %vm468_vm13, %v5999_v18 }
0x4628   :  { %8018 = vmatmul.msk.bf16.vlgmr.msra.gmra.mxu3 %vm123_vm14, %v6002_v30 }
0x4629   :  { %7803 = vmatpush.bf16.msra.mxu3 %v11124_v16 }
0x462d   :  { %7804 = vmatpush.bf16.msra.mxu3 %v11128_v20 }
0x46a4   :  { %v11261_v8 = vpop.f32.mrf.mxu1 }
0x46ab   :  { %v6014_v29 = vpop.f32.mrf.mxu3 }
0x46ac   :  { %v6410_v47 = vpop.f32.mrf.mxu1  ;;  %v6026_v11 = vperm.slane %v6014_v29, 0  ;;  %v6020_v50 = vrot.slane %v6014_v29, 2  ;;  %v6019_v59 = vrot.slane %v6014_v29, 1  ;;  %v6024_v25 = vrot.slane %v6014_v29, 6 }
0x46ad   :  { %v6021_v1 = vrot.slane %v6014_v29, 3  ;;  %v6022_v51 = vrot.slane %v6014_v29, 4  ;;  %v6023_v33 = vrot.slane %v6014_v29, 5 }
0x46ae   :  { %v6042_v27 = vadd.f32 %v6026_v11, %v10623_v38  ;;  %v6028_v13 = vperm.slane %v6020_v50, 0  ;;  %v6027_v26 = vperm.slane %v6019_v59, 0  ;;  %v6032_v7 = vperm.slane %v6024_v25, 0 }
0x46af   :  { %v6029_v22 = vperm.slane %v6021_v1, 0  ;;  %v6030_v23 = vperm.slane %v6022_v51, 0  ;;  %v6031_v11 = vperm.slane %v6023_v33, 0  ;;  %v6025_v1 = vrot.slane %v6014_v29, 7 }
0x46b0   :  { %8610 = vtanh.f32 %v6042_v27  ;;  %v6044_v16 = vadd.f32 %v6028_v13, %v10637_v2  ;;  %v6043_v20 = vadd.f32 %v6027_v26, %v10630_v53  ;;  %v6048_v21 = vadd.f32 %v6032_v7, %v10665_v34 }
0x46b1   :  { %v6045_v48 = vadd.f32 %v6029_v22, %v10644_v5  ;;  %v6046_v28 = vadd.f32 %v6030_v23, %v10651_v41  ;;  %v6047_v25 = vadd.f32 %v6031_v11, %v10658_v32  ;;  %v6033_v26 = vperm.slane %v6025_v1, 0 }
0x46b2   :  { %8612 = vtanh.f32 %v6044_v16 }
0x46b3   :  { %v6016_v3 = vpop.f32.mrf.mxu3  ;;  %8614 = vtanh.f32 %v6043_v20  ;;  %v6049_v22 = vadd.f32 %v6033_v26, %v10672_v24 }
0x46b4   :  { %8616 = vtanh.f32 %v6048_v21 }
0x46b5   :  { %8618 = vtanh.f32 %v6045_v48 }
0x46b6   :  { %v8611_v60 = vpop.eup %8610  ;;  %8620 = vtanh.f32 %v6046_v28 }
0x46b7   :  { %v6058_v19 = vmul.f32 %v11268_v63, %v8611_v60  ;;  %8622 = vtanh.f32 %v6047_v25 }
0x46b8   :  { %v8613_v10 = vpop.eup %8612  ;;  %8624 = vtanh.f32 %v6049_v22 }
0x46b9   :  { %v8615_v14 = vpop.eup %8614  ;;  %v6066_v57 = vsel %vm468_vm13, %v6058_v19, 0.0  ;;  %v6060_v40 = vmul.f32 %v11268_v63, %v8613_v10 }
0x46ba   :  { %v8617_v15 = vpop.eup %8616  ;;  %6067 = vadd.xlane.f32.xlu0 %v6066_v57  ;;  %v6059_v55 = vmul.f32 %v11268_v63, %v8615_v14 }
0x46bb   :  { %v6072_v35 = vsel %vm468_vm13, %v6060_v40, 0.0  ;;  %v8619_v18 = vpop.eup %8618  ;;  %v6064_v47 = vmul.f32 %v11268_v63, %v8617_v15 }
0x46bc   :  { %6073 = vadd.xlane.f32.xlu1 %v6072_v35  ;;  %v6069_v30 = vsel %vm468_vm13, %v6059_v55, 0.0  ;;  %v6061_v50 = vmul.f32 %v11268_v63, %v8619_v18  ;;  %v8621_v13 = vpop.eup %8620 }
0x46bd   :  { %6070 = vadd.xlane.f32.xlu2 %v6069_v30  ;;  %v6084_v59 = vsel %vm468_vm13, %v6064_v47, 0.0  ;;  %v6062_v7 = vmul.f32 %v11268_v63, %v8621_v13  ;;  %v8623_v20 = vpop.eup %8622 }
0x46be   :  { %v6075_v27 = vsel %vm468_vm13, %v6061_v50, 0.0  ;;  %v6063_v21 = vmul.f32 %v11268_v63, %v8623_v20  ;;  %v8625_v29 = vpop.eup %8624 }
0x46bf   :  { %v6078_v16 = vsel %vm468_vm13, %v6062_v7, 0.0  ;;  %v6065_v51 = vmul.f32 %v11268_v63, %v8625_v29 }
0x46c0   :  { %v6081_v48 = vsel %vm468_vm13, %v6063_v21, 0.0 }
0x46c1   :  { %v6087_v3 = vsel %vm468_vm13, %v6065_v51, 0.0 }
0x46c2   :  { %6085 = vadd.xlane.f32.xlu0 %v6084_v59 }
0x46c4   :  { %6076 = vadd.xlane.f32.xlu1 %v6075_v27 }
0x46cc   :  { %6079 = vadd.xlane.f32.xlu1 %v6078_v16 }
0x46d4   :  { %6082 = vadd.xlane.f32.xlu1 %v6081_v48 }
0x46dc   :  { %6088 = vadd.xlane.f32.xlu1 %v6087_v3 }
0x472d   :  { %v6068_v14 = vpop.xlane.xlu0 %6067 }
0x472e   :  { %v6098_v40 = vperm.slane %v6068_v14, %v9052_v9 }
0x472f   :  { %v6074_v60 = vpop.xlane.xlu1 %6073 }
0x4730   :  { %v6071_v10 = vpop.xlane.xlu2 %6070  ;;  %v6100_v15 = vperm.slane %v6074_v60, %v9052_v9 }
0x4731   :  { %v6099_v57 = vperm.slane %v6071_v10, %v9052_v9 }
0x4733   :  { %v6106_v28 = vsel %vm232_vm1, %v6099_v57, %v6098_v40 }
0x4734   :  { %v6107_v30 = vsel %vm234_vm2, %v6100_v15, %v6106_v28 }
0x4735   :  { %v6086_v47 = vpop.xlane.xlu0 %6085 }
0x4736   :  { %v6104_v25 = vperm.slane %v6086_v47, %v9052_v9 }
0x4737   :  { %v6077_v23 = vpop.xlane.xlu1 %6076 }
0x4738   :  { %v6101_v33 = vperm.slane %v6077_v23, %v9052_v9 }
0x473a   :  { %v6108_v11 = vsel %vm236_vm3, %v6101_v33, %v6107_v30 }
0x473f   :  { %v6080_v19 = vpop.xlane.xlu1 %6079 }
0x4740   :  { %v6102_v35 = vperm.slane %v6080_v19, %v9052_v9 }
0x4742   :  { %v6109_v50 = vsel %vm238_vm4, %v6102_v35, %v6108_v11 }
0x4747   :  { %v6083_v55 = vpop.xlane.xlu1 %6082 }
0x4748   :  { %v6103_v18 = vperm.slane %v6083_v55, %v9052_v9 }
0x474a   :  { %v6110_v59 = vsel %vm240_vm5, %v6103_v18, %v6109_v50 }
0x474b   :  { %v6111_v13 = vsel %vm242_vm6, %v6104_v25, %v6110_v59 }
0x474f   :  { %v6089_v1 = vpop.xlane.xlu1 %6088 }
0x4750   :  { %v6105_v27 = vperm.slane %v6089_v1, %v9052_v9 }
0x4752   :  { %v6112_v26 = vsel %vm244_vm7, %v6105_v27, %v6111_v13 }
0x4753   :  { %v6114_v7 = vsel %vm189_vm0, %v6112_v26, -inf }
0x4754   :  { %6115 = vmax.xlane.f32.xlu2 %v6114_v7 }
0x47c7   :  { %v6116_v22 = vpop.xlane.xlu2 %6115 }
0x47c8   :  { %v6118_v16 = vperm.slane %v6116_v22, 0  ;;  %v6119_v20 = vperm.slane %v6116_v22, 1  ;;  %v6120_v21 = vperm.slane %v6116_v22, 2  ;;  %v6121_v48 = vperm.slane %v6116_v22, 3 }
0x47c9   :  { %v6123_v57 = vperm.slane %v6116_v22, 5  ;;  %v6124_v40 = vperm.slane %v6116_v22, 6  ;;  %v6122_v11 = vperm.slane %v6116_v22, 4 }
0x47ca   :  { %v6134_v29 = vsub.f32 %v6068_v14, %v6118_v16  ;;  %v6135_v51 = vsub.f32 %v6071_v10, %v6119_v20  ;;  %v6136_v3 = vsub.f32 %v6074_v60, %v6120_v21  ;;  %v6137_v35 = vsub.f32 %v6077_v23, %v6121_v48 }
0x47cb   :  { %v6140_v18 = vsub.f32 %v6086_v47, %v6124_v40  ;;  %v6139_v30 = vsub.f32 %v6083_v55, %v6123_v57  ;;  %v6138_v10 = vsub.f32 %v6080_v19, %v6122_v11  ;;  %v6125_v23 = vperm.slane %v6116_v22, 7 }
0x47cc   :  { %v6142_v15 = vmul.f32 1.442695, %v6134_v29  ;;  %v6144_v28 = vmul.f32 1.442695, %v6135_v51  ;;  %v6146_v33 = vmul.f32 1.442695, %v6136_v3 }
0x47cd   :  { %v6148_v50 = vmul.f32 1.442695, %v6137_v35  ;;  %v6154_v59 = vmul.f32 1.442695, %v6140_v18  ;;  %v6152_v27 = vmul.f32 1.442695, %v6139_v30  ;;  %v6141_v7 = vsub.f32 %v6089_v1, %v6125_v23 }
0x47ce   :  { %8626 = vpow2.f32 %v6142_v15  ;;  %v6150_v47 = vmul.f32 1.442695, %v6138_v10 }
0x47cf   :  { %8628 = vpow2.f32 %v6144_v28  ;;  %v6156_v16 = vmul.f32 1.442695, %v6141_v7 }
0x47d0   :  { %8630 = vpow2.f32 %v6146_v33 }
0x47d1   :  { %8632 = vpow2.f32 %v6148_v50 }
0x47d2   :  { %8634 = vpow2.f32 %v6154_v59 }
0x47d3   :  { %8636 = vpow2.f32 %v6152_v27 }
0x47d4   :  { %v11305_v25 = vpop.eup %8626  ;;  %8638 = vpow2.f32 %v6150_v47 }
0x47d5   :  { %v8629_v14 = vpop.eup %8628  ;;  %6167 = vperm.xlu0 %8086, %v11305_v25   ;;  %8640 = vpow2.f32 %v6156_v16 }
0x47d6   :  { %v8631_v60 = vpop.eup %8630  ;;  %6170 = vperm.xlu1 %8082, %v8629_v14  }
0x47d7   :  { %6173 = vperm.xlu2 %8087, %v8631_v60   ;;  %v8633_v55 = vpop.eup %8632 }
0x47d8   :  { %v8635_v13 = vpop.eup %8634 }
0x47d9   :  { %v8637_v26 = vpop.eup %8636 }
0x47da   :  { %v8639_v20 = vpop.eup %8638 }
0x47db   :  { %v8641_v19 = vpop.eup %8640 }
0x47dd   :  { %6176 = vperm.xlu0 %8086, %v8633_v55  }
0x47de   :  { %6185 = vperm.xlu1 %8082, %v8635_v13  }
0x47df   :  { %6182 = vperm.xlu2 %8087, %v8637_v26  }
0x47e5   :  { %6179 = vperm.xlu0 %8086, %v8639_v20  }
0x47ed   :  { %6188 = vperm.xlu0 %8086, %v8641_v19  }
0x4831   :  { %v6174_v48 = vpop.permute.xlu2 %6173 }
0x4832   :  { %v6192_v40 = vperm.slane %v6174_v48, %v9052_v9 }
0x4839   :  { %v6183_v33 = vpop.permute.xlu2 %6182 }
0x483a   :  { %v6195_v11 = vperm.slane %v6183_v33, %v9052_v9 }
0x4847   :  { %v6168_v21 = vpop.permute.xlu0 %6167 }
0x4848   :  { %v6171_v29 = vpop.permute.xlu1 %6170  ;;  %v6190_v3 = vperm.slane %v6168_v21, %v9052_v9 }
0x4849   :  { %v6191_v22 = vperm.slane %v6171_v29, %v9052_v9 }
0x484b   :  { %v6198_v57 = vsel %vm232_vm1, %v6191_v22, %v6190_v3 }
0x484c   :  { %v6199_v35 = vsel %vm234_vm2, %v6192_v40, %v6198_v57 }
0x484f   :  { %v6177_v51 = vpop.permute.xlu0 %6176 }
0x4850   :  { %v6193_v1 = vperm.slane %v6177_v51, %v9052_v9  ;;  %v6186_v50 = vpop.permute.xlu1 %6185 }
0x4851   :  { %v6196_v27 = vperm.slane %v6186_v50, %v9052_v9 }
0x4852   :  { %v6200_v18 = vsel %vm236_vm3, %v6193_v1, %v6199_v35 }
0x4857   :  { %v6180_v15 = vpop.permute.xlu0 %6179 }
0x4858   :  { %v6194_v28 = vperm.slane %v6180_v15, %v9052_v9 }
0x485a   :  { %v6201_v30 = vsel %vm238_vm4, %v6194_v28, %v6200_v18 }
0x485b   :  { %v6202_v59 = vsel %vm240_vm5, %v6195_v11, %v6201_v30 }
0x485c   :  { %v6203_v47 = vsel %vm242_vm6, %v6196_v27, %v6202_v59 }
0x485f   :  { %v6189_v10 = vpop.permute.xlu0 %6188 }
0x4860   :  { %v6197_v23 = vperm.slane %v6189_v10, %v9052_v9 }
0x4862   :  { %v6204_v7 = vsel %vm244_vm7, %v6197_v23, %v6203_v47 }
0x4863   :  { %v6206_v16 = vsel %vm189_vm0, %v6204_v7, 0.0 }
0x4864   :  { %6207 = vadd.xlane.f32.xlu2 %v6206_v16 }
0x48d7   :  { %v6208_v21 = vpop.xlane.xlu2 %6207 }
0x48d8   :  { %8642 = vrcp.f32 %v6208_v21 }
0x48de   :  { %v8643_v48 = vpop.eup %8642 }
0x48df   :  { %v6213_v29 = vperm.slane %v8643_v48, 2  ;;  %v6212_v51 = vperm.slane %v8643_v48, 1  ;;  %v6214_v57 = vperm.slane %v8643_v48, 3  ;;  %v6211_v1 = vperm.slane %v8643_v48, 0 }
0x48e0   :  { %v6216_v28 = vperm.slane %v8643_v48, 5  ;;  %v6215_v33 = vperm.slane %v8643_v48, 4  ;;  %v6218_v30 = vperm.slane %v8643_v48, 7  ;;  %v6217_v11 = vperm.slane %v8643_v48, 6 }
0x48e1   :  { %v6229_v22 = vmul.f32 %v8631_v60, %v6213_v29  ;;  %v6228_v3 = vmul.f32 %v8629_v14, %v6212_v51  ;;  %v6230_v40 = vmul.f32 %v8633_v55, %v6214_v57  ;;  %v6227_v15 = vmul.f32 %v11305_v25, %v6211_v1 }
0x48e2   :  { %v6232_v35 = vmul.f32 %v8637_v26, %v6216_v28  ;;  %v6231_v18 = vmul.f32 %v8639_v20, %v6215_v33  ;;  %v6234_v50 = vmul.f32 %v8641_v19, %v6218_v30  ;;  %v6233_v60 = vmul.f32 %v8635_v13, %v6217_v11 }
0x48e3   :  { %6247 = vperm.xlu0 %8086, %v6229_v22   ;;  %6242 = vperm.xlu1 %8082, %v6228_v3  }
0x48eb   :  { %6252 = vperm.xlu0 %8086, %v6230_v40   ;;  %6237 = vperm.xlu1 %8082, %v6227_v15  }
0x48f3   :  { %6262 = vperm.xlu0 %8086, %v6232_v35   ;;  %6257 = vperm.xlu1 %8082, %v6231_v18  }
0x48fb   :  { %6272 = vperm.xlu0 %8086, %v6234_v50   ;;  %6267 = vperm.xlu1 %8082, %v6233_v60  }
0x4955   :  { %v6248_v14 = vpop.permute.xlu0 %6247  ;;  %v6243_v59 = vpop.permute.xlu1 %6242 }
0x4956   :  { %v6277_v55 = vmul.f32 %v6248_v14, %v10558_v52  ;;  %v6276_v25 = vmul.f32 %v6243_v59, %v10574_v61 }
0x4958   :  { %v6297_v27 = vsel %vm4384_vm9, %v6277_v55, 0.0  ;;  %v6290_v10 = vsel %vm4384_vm9, %v6276_v25, 0.0 }
0x4959   :  { %v6291_v26 = vrot.slane %v6290_v10, 4  ;;  %v6298_v20 = vrot.slane %v6297_v27, 4 }
0x495b   :  { %v6292_v23 = vadd.f32 %v6291_v26, %v6290_v10  ;;  %v6299_v16 = vadd.f32 %v6298_v20, %v6297_v27 }
0x495d   :  { %v6253_v47 = vpop.permute.xlu0 %6252  ;;  %v6238_v7 = vpop.permute.xlu1 %6237  ;;  %v6293_v21 = vrot.slane %v6292_v23, 2  ;;  %v6300_v3 = vrot.slane %v6299_v16, 2 }
0x495e   :  { %v6278_v19 = vmul.f32 %v6253_v47, %v10562_v4  ;;  %v6275_v13 = vmul.f32 %v6238_v7, %v10570_v58 }
0x495f   :  { %v6294_v40 = vadd.f32 %v6293_v21, %v6292_v23  ;;  %v6301_v11 = vadd.f32 %v6300_v3, %v6299_v16 }
0x4960   :  { %v6304_v48 = vsel %vm4384_vm9, %v6278_v19, 0.0  ;;  %v6283_v29 = vsel %vm4384_vm9, %v6275_v13, 0.0 }
0x4961   :  { %v6305_v51 = vrot.slane %v6304_v48, 4  ;;  %v6284_v22 = vrot.slane %v6283_v29, 4  ;;  %v6295_v60 = vrot.slane %v6294_v40, 1  ;;  %v6302_v26 = vrot.slane %v6301_v11, 1 }
0x4963   :  { %v6306_v57 = vadd.f32 %v6305_v51, %v6304_v48  ;;  %v6285_v1 = vadd.f32 %v6284_v22, %v6283_v29  ;;  %v6296_v47 = vadd.f32 %v6295_v60, %v6294_v40  ;;  %v6303_v22 = vadd.f32 %v6302_v26, %v6301_v11 }
0x4965   :  { %v6307_v15 = vrot.slane %v6306_v57, 2  ;;  %v6286_v28 = vrot.slane %v6285_v1, 2  ;;  %v6263_v33 = vpop.permute.xlu0 %6262  ;;  %v6258_v35 = vpop.permute.xlu1 %6257  ;;  %v6341_v60 = vmul.f32 %v6303_v22, %v10728_v42 }
0x4966   :  { %v6280_v18 = vmul.f32 %v6263_v33, %v10554_v36  ;;  %v6279_v30 = vmul.f32 %v6258_v35, %v10550_v46 }
0x4967   :  { %v6287_v50 = vadd.f32 %v6286_v28, %v6285_v1  ;;  %v6308_v14 = vadd.f32 %v6307_v15, %v6306_v57  ;;  %v6340_v1 = vmul.f32 %v6296_v47, %v10728_v42  ;;  %v6357_v47 = vrot.slane %v6341_v60, 6 }
0x4968   :  { %v6318_v59 = vsel %vm4384_vm9, %v6280_v18, 0.0  ;;  %v6311_v55 = vsel %vm4384_vm9, %v6279_v30, 0.0 }
0x4969   :  { %v6319_v25 = vrot.slane %v6318_v59, 4  ;;  %v6312_v27 = vrot.slane %v6311_v55, 4  ;;  %v6288_v10 = vrot.slane %v6287_v50, 1  ;;  %v6309_v7 = vrot.slane %v6308_v14, 1 }
0x496b   :  { %v6320_v20 = vadd.f32 %v6319_v25, %v6318_v59  ;;  %v6313_v23 = vadd.f32 %v6312_v27, %v6311_v55  ;;  %v6289_v16 = vadd.f32 %v6288_v10, %v6287_v50  ;;  %v6310_v15 = vadd.f32 %v6309_v7, %v6308_v14 }
0x496c   :  { %v6355_v25 = vrot.slane %v6340_v1, 7 }
0x496d   :  { %v6321_v19 = vrot.slane %v6320_v20, 2  ;;  %v6314_v13 = vrot.slane %v6313_v23, 2  ;;  %v6273_v21 = vpop.permute.xlu0 %6272  ;;  %v6268_v48 = vpop.permute.xlu1 %6267  ;;  %v6339_v50 = vmul.f32 %v6289_v16, %v10728_v42  ;;  %v6342_v27 = vmul.f32 %v6310_v15, %v10728_v42 }
0x496e   :  { %v6282_v29 = vmul.f32 %v6273_v21, %v10587_v17  ;;  %v6281_v51 = vmul.f32 %v6268_v48, %v10583_v56 }
0x496f   :  { %v6322_v3 = vadd.f32 %v6321_v19, %v6320_v20  ;;  %v6315_v57 = vadd.f32 %v6314_v13, %v6313_v23  ;;  %v6356_v23 = vsel %vm232_vm1, %v6355_v25, %v6339_v50  ;;  %v6359_v13 = vrot.slane %v6342_v27, 5 }
0x4970   :  { %v6332_v28 = vsel %vm4384_vm9, %v6282_v29, 0.0  ;;  %v6325_v40 = vsel %vm4384_vm9, %v6281_v51, 0.0  ;;  %v6358_v51 = vsel %vm234_vm2, %v6357_v47, %v6356_v23  ;;  %v6378_v25 = vrot.slane %v10782_v37, 2 }
0x4971   :  { %v6323_v33 = vrot.slane %v6322_v3, 1  ;;  %v6316_v35 = vrot.slane %v6315_v57, 1  ;;  %v6333_v18 = vrot.slane %v6332_v28, 4  ;;  %v6326_v30 = vrot.slane %v6325_v40, 4 }
0x4972   :  { %v6360_v1 = vsel %vm236_vm3, %v6359_v13, %v6358_v51  ;;  %v6385_v47 = vrot.slane %v10812_v43, 6  ;;  %v11373_v51 = vld [vmem:[#allocation6 + $0x30] ss:$0 sm:$0xff] }
0x4973   :  { %v6317_v59 = vadd.f32 %v6316_v35, %v6315_v57  ;;  %v6334_v55 = vadd.f32 %v6333_v18, %v6332_v28  ;;  %v6327_v11 = vadd.f32 %v6326_v30, %v6325_v40  ;;  %v6324_v10 = vadd.f32 %v6323_v33, %v6322_v3 }
0x4975   :  { %v6343_v14 = vmul.f32 %v6317_v59, %v10728_v42  ;;  %v6335_v26 = vrot.slane %v6334_v55, 2  ;;  %v6328_v20 = vrot.slane %v6327_v11, 2  ;;  %v6344_v21 = vmul.f32 %v6324_v10, %v10728_v42 }
0x4976   :  { %v6380_v10 = vrot.slane %v10790_v31, 1 }
0x4977   :  { %v6336_v7 = vadd.f32 %v6335_v26, %v6334_v55  ;;  %v6329_v19 = vadd.f32 %v6328_v20, %v6327_v11  ;;  %v6361_v48 = vrot.slane %v6343_v14, 4  ;;  %v6363_v3 = vrot.slane %v6344_v21, 3 }
0x4978   :  { %v6375_v55 = vrot.slane %v10784_v44, 4  ;;  %v6376_v11 = vrot.slane %v10774_v45, 3  ;;  %v6383_v20 = vrot.slane %v10805_v0, 7 }
0x4979   :  { %v6337_v16 = vrot.slane %v6336_v7, 1  ;;  %v6330_v29 = vrot.slane %v6329_v19, 1  ;;  %v6362_v40 = vsel %vm238_vm4, %v6361_v48, %v6360_v1 }
0x497a   :  { %v6364_v18 = vsel %vm240_vm5, %v6363_v3, %v6362_v40  ;;  %v6377_v27 = vsel %vm232_vm1, %v6376_v11, %v6375_v55  ;;  %v11377_v3 = vld [vmem:[#allocation6 + $0x38] ss:$0 sm:$0xff] }
0x497b   :  { %v6338_v22 = vadd.f32 %v6337_v16, %v6336_v7  ;;  %v6331_v57 = vadd.f32 %v6330_v29, %v6329_v19  ;;  %v6379_v14 = vsel %vm234_vm2, %v6378_v25, %v6377_v27  ;;  %v6387_v19 = vrot.slane %v10816_v6, 5 }
0x497c   :  { %v6381_v26 = vsel %vm236_vm3, %v6380_v10, %v6379_v14 }
0x497d   :  { %v6345_v15 = vmul.f32 %v6331_v57, %v10728_v42  ;;  %v6346_v28 = vmul.f32 %v6338_v22, %v10728_v42  ;;  %v6382_v23 = vsel %vm238_vm4, %v10798_v39, %v6381_v26 }
0x497e   :  { %v6384_v7 = vsel %vm240_vm5, %v6383_v20, %v6382_v23 }
0x497f   :  { %v6365_v33 = vrot.slane %v6345_v15, 2  ;;  %v6367_v35 = vrot.slane %v6346_v28, 1  ;;  %v6386_v13 = vsel %vm242_vm6, %v6385_v47, %v6384_v7 }
0x4980   :  { %v6388_v21 = vsel %vm244_vm7, %v6387_v19, %v6386_v13 }
0x4981   :  { %v6366_v30 = vsel %vm242_vm6, %v6365_v33, %v6364_v18 }
0x4982   :  { %v6368_v50 = vsel %vm244_vm7, %v6367_v35, %v6366_v30 }
0x4983   :  { %6369 = vrot.lane.b32.xlu1 %v6368_v50, %s8936_s26 }
0x49f5   :  { %v6370_v60 = vpop.permute.xlu1 %6369 }
0x49f6   :  { %v6372_v59 = vsel %vm468_vm13, %v6370_v60, 0.0 }
0x49f7   :  { %6373 = vadd.xlane.f32.xlu0 %v6372_v59 }
0x4a6a   :  { %v6374_v48 = vpop.xlane.xlu0 %6373 }
0x4a6b   :  { %v6390_v16 = vadd.f32 %v6388_v21, %v6374_v48 }
0x4a6d   :  { %6393 = vperm.xlu1 %8082, %v6390_v16  }
0x4adf   :  { %v6394_v29 = vpop.permute.xlu1 %6393 }
0x4ae0   :  { %v6396_v22 = vmul.f32 %v11373_v51, %v6394_v29 }
0x4ae2   :  { %v6412_v57 = vadd.f32 %v11261_v8, %v6396_v22 }
0x4ae4   :  { %v6413_v1 = vadd.f32 %v11377_v3, %v6412_v57 }
0x4ae6   :  { %8644 = vtanh.f32 %v6413_v1  ;;  %v8020_v28 = vmul.f32 -1.442695, %v6413_v1 }
0x4ae8   :  { %8646 = vpow2.f32 %v8020_v28 }
0x4aec   :  { %v8645_v15 = vpop.eup %8644 }
0x4aed   :  { %6436 = vrot.lane.b32.xlu2 %v8645_v15, %s8943_s25 }
0x4aee   :  { %v8647_v40 = vpop.eup %8646 }
0x4aef   :  { %v6417_v33 = vadd.f32 1.0, %v8647_v40 }
0x4af1   :  { %8648 = vrcp.f32 %v6417_v33  ;;  %v6429_v8 = vand.u32 2147483648, %v6417_v33  ;;  %vm6423_vm8 = vweird.f32 %v6417_v33  ;;  %v6427_v59 = vand.u32 2147483647, %v6417_v33 }
0x4af3   :  { %v6430_v11 = vor.u32 1.1754944e-38, %v6429_v8  ;;  %vm6428_vm15 = vcmp.eq.f32.partialorder %v6427_v59, 8.507059e+37 }
0x4af7   :  { %v8649_v35 = vpop.eup %8648 }
0x4af8   :  { %v6419_v18 = vmul.f32 %v8649_v35, %v6417_v33  ;;  %vm6424_vm11 = vweird.f32 %v8649_v35 }
0x4af9   :  { %vm6425_vm12 = vmor %vm6423_vm8, %vm6424_vm11 }
0x4afa   :  { %v6420_v30 = vsub.f32 1.0, %v6419_v18 }
0x4afc   :  { %v6421_v50 = vmul.f32 %v8649_v35, %v6420_v30 }
0x4afe   :  { %v6422_v60 = vadd.f32 %v8649_v35, %v6421_v50 }
0x4b00   :  { %v6426_v55 = vsel %vm6425_vm12, %v8649_v35, %v6422_v60 }
0x4b01   :  { %v6431_v27 = vsel %vm6428_vm15, %v6430_v11, %v6426_v55 }
0x4b02   :  { %v6434_v14 = vmul.f32 %v6431_v27, %v11245_v12 }
0x4b47   :  { %v6437_v25 = vpop.permute.xlu2 %6436 }
0x4b48   :  { %v6439_v10 = vmul.f32 %v6437_v25, %v6431_v27 }
0x4b4a   :  { %6441 = vrot.lane.b32.xlu1 %v6439_v10, %s8943_s25 }
0x4bbc   :  { %v6442_v26 = vpop.permute.xlu1 %6441 }
0x4bbd   :  { %v11383_v20 = vadd.f32 %v6442_v26, %v6434_v14 }
0x4bbf   :  { %8650 = vtanh.f32 %v11383_v20  ;;  %v6460_v12 = vpack.c.bf16 %v11383_v20, %v11383_v20 }
0x4bc5   :  { %v8651_v23 = vpop.eup %8650 }
0x4bc6   :  { %6447 = vrot.lane.b32.xlu1 %v8651_v23, %s8943_s25 }
0x4c38   :  { %v6448_v47 = vpop.permute.xlu1 %6447 }
0x4c39   :  { %v11387_v7 = vmul.f32 %v6448_v47, %v6431_v27 }
0x4c3b   :  { %v6459_v19 = vpack.c.bf16 %v11387_v7, %v11387_v7 }
0x4c3d   :  { %v6462_v13 = vunpack.c.l.b16 %v6459_v19 }
0x4c3f   :  { %v6463_v21 = vpack.c.b16 %v6462_v13, %v6462_v13 }
0x4c41   :  { %6464 = vrot.lane.b32.xlu1 %v6463_v21, %s8936_s26 }
0x4cb3   :  { %v6465_v48 = vpop.permute.xlu1 %6464 }
0x4cb4   :  { %v6468_v16 = vsel %vm468_vm13, %v6465_v48, %v6460_v12  ;;  %8022 = vmatmul.msk.bf16.vlgmr.msrb.gmra.mxu3 %vm468_vm13, %v6465_v48 }
0x4cb5   :  { %8021 = vmatmul.msk.bf16.vlgmr.msrb.gmra.mxu0 %vm123_vm14, %v6468_v16 }
0x4d32   :  { %v6480_v29 = vpop.f32.mrf.mxu0 }
0x4d33   :  { %v6492_v22 = vperm.slane %v6480_v29, 0  ;;  %v6486_v57 = vrot.slane %v6480_v29, 2  ;;  %v6485_v1 = vrot.slane %v6480_v29, 1  ;;  %v6490_v15 = vrot.slane %v6480_v29, 6 }
0x4d34   :  { %v6487_v28 = vrot.slane %v6480_v29, 3  ;;  %v6488_v11 = vrot.slane %v6480_v29, 4  ;;  %v6489_v16 = vrot.slane %v6480_v29, 5 }
0x4d35   :  { %v6508_v40 = vadd.f32 %v6492_v22, %v10623_v38  ;;  %v6494_v33 = vperm.slane %v6486_v57, 0  ;;  %v6493_v35 = vperm.slane %v6485_v1, 0  ;;  %v6498_v18 = vperm.slane %v6490_v15, 0 }
0x4d36   :  { %v6495_v30 = vperm.slane %v6487_v28, 0  ;;  %v6496_v10 = vperm.slane %v6488_v11, 0  ;;  %v6497_v28 = vperm.slane %v6489_v16, 0 }
0x4d37   :  { %v11398_v50 = vpop.f32.mrf.mxu3  ;;  %8652 = vtanh.f32 %v6508_v40  ;;  %v6510_v60 = vadd.f32 %v6494_v33, %v10637_v2  ;;  %v6509_v8 = vadd.f32 %v6493_v35, %v10630_v53  ;;  %v6514_v59 = vadd.f32 %v6498_v18, %v10665_v34 }
0x4d38   :  { %v6511_v55 = vadd.f32 %v6495_v30, %v10644_v5  ;;  %v6512_v48 = vadd.f32 %v6496_v10, %v10651_v41  ;;  %v6513_v35 = vadd.f32 %v6497_v28, %v10658_v32  ;;  %v6491_v18 = vrot.slane %v6480_v29, 7 }
0x4d39   :  { %8654 = vtanh.f32 %v6510_v60 }
0x4d3a   :  { %v6482_v25 = vpop.f32.mrf.mxu0  ;;  %8656 = vtanh.f32 %v6509_v8  ;;  %v6499_v8 = vperm.slane %v6491_v18, 0 }
0x4d3b   :  { %8658 = vtanh.f32 %v6514_v59 }
0x4d3c   :  { %8660 = vtanh.f32 %v6511_v55  ;;  %v6515_v55 = vadd.f32 %v6499_v8, %v10672_v24 }
0x4d3d   :  { %v8653_v27 = vpop.eup %8652  ;;  %8662 = vtanh.f32 %v6512_v48 }
0x4d3e   :  { %v6524_v14 = vmul.f32 %v11268_v63, %v8653_v27  ;;  %8664 = vtanh.f32 %v6513_v35 }
0x4d3f   :  { %v8655_v26 = vpop.eup %8654  ;;  %v6876_v23 = vpop.f32.mrf.mxu3  ;;  %8666 = vtanh.f32 %v6515_v55 }
0x4d40   :  { %v8657_v47 = vpop.eup %8656  ;;  %v6532_v19 = vsel %vm468_vm13, %v6524_v14, 0.0  ;;  %v6526_v13 = vmul.f32 %v11268_v63, %v8655_v26 }
0x4d41   :  { %v8659_v21 = vpop.eup %8658  ;;  %6533 = vadd.xlane.f32.xlu2 %v6532_v19  ;;  %v6525_v12 = vmul.f32 %v11268_v63, %v8657_v47 }
0x4d42   :  { %v6538_v22 = vsel %vm468_vm13, %v6526_v13, 0.0  ;;  %v8661_v57 = vpop.eup %8660  ;;  %v6530_v15 = vmul.f32 %v11268_v63, %v8659_v21 }
0x4d43   :  { %6539 = vadd.xlane.f32.xlu0 %v6538_v22  ;;  %v6535_v1 = vsel %vm468_vm13, %v6525_v12, 0.0  ;;  %v6527_v40 = vmul.f32 %v11268_v63, %v8661_v57  ;;  %v8663_v60 = vpop.eup %8662 }
0x4d44   :  { %6536 = vadd.xlane.f32.xlu1 %v6535_v1  ;;  %v6550_v33 = vsel %vm468_vm13, %v6530_v15, 0.0  ;;  %v6528_v59 = vmul.f32 %v11268_v63, %v8663_v60  ;;  %v8665_v25 = vpop.eup %8664 }
0x4d45   :  { %v6541_v30 = vsel %vm468_vm13, %v6527_v40, 0.0  ;;  %v6529_v27 = vmul.f32 %v11268_v63, %v8665_v25  ;;  %v8667_v29 = vpop.eup %8666 }
0x4d46   :  { %v6544_v11 = vsel %vm468_vm13, %v6528_v59, 0.0  ;;  %v6531_v14 = vmul.f32 %v11268_v63, %v8667_v29 }
0x4d47   :  { %v6547_v10 = vsel %vm468_vm13, %v6529_v27, 0.0 }
0x4d48   :  { %v6553_v26 = vsel %vm468_vm13, %v6531_v14, 0.0 }
0x4d49   :  { %6551 = vadd.xlane.f32.xlu2 %v6550_v33 }
0x4d4b   :  { %6542 = vadd.xlane.f32.xlu0 %v6541_v30 }
0x4d53   :  { %6545 = vadd.xlane.f32.xlu0 %v6544_v11 }
0x4d5b   :  { %6548 = vadd.xlane.f32.xlu0 %v6547_v10 }
0x4d63   :  { %6554 = vadd.xlane.f32.xlu0 %v6553_v26 }
0x4db4   :  { %v6534_v21 = vpop.xlane.xlu2 %6533 }
0x4db5   :  { %v6564_v48 = vperm.slane %v6534_v21, %v9052_v9 }
0x4db6   :  { %v6540_v23 = vpop.xlane.xlu0 %6539 }
0x4db7   :  { %v6537_v13 = vpop.xlane.xlu1 %6536  ;;  %v6566_v16 = vperm.slane %v6540_v23, %v9052_v9 }
0x4db8   :  { %v6565_v12 = vperm.slane %v6537_v13, %v9052_v9 }
0x4dba   :  { %v6572_v57 = vsel %vm232_vm1, %v6565_v12, %v6564_v48 }
0x4dbb   :  { %v6573_v28 = vsel %vm234_vm2, %v6566_v16, %v6572_v57 }
0x4dbc   :  { %v6552_v40 = vpop.xlane.xlu2 %6551 }
0x4dbd   :  { %v6570_v30 = vperm.slane %v6552_v40, %v9052_v9 }
0x4dbe   :  { %v6543_v47 = vpop.xlane.xlu0 %6542 }
0x4dbf   :  { %v6567_v1 = vperm.slane %v6543_v47, %v9052_v9 }
0x4dc1   :  { %v6574_v33 = vsel %vm236_vm3, %v6567_v1, %v6573_v28 }
0x4dc6   :  { %v6546_v19 = vpop.xlane.xlu0 %6545 }
0x4dc7   :  { %v6568_v63 = vperm.slane %v6546_v19, %v9052_v9 }
0x4dc9   :  { %v6575_v35 = vsel %vm238_vm4, %v6568_v63, %v6574_v33 }
0x4dce   :  { %v6549_v22 = vpop.xlane.xlu0 %6548 }
0x4dcf   :  { %v6569_v15 = vperm.slane %v6549_v22, %v9052_v9 }
0x4dd1   :  { %v6576_v18 = vsel %vm240_vm5, %v6569_v15, %v6575_v35 }
0x4dd2   :  { %v6577_v59 = vsel %vm242_vm6, %v6570_v30, %v6576_v18 }
0x4dd6   :  { %v6555_v60 = vpop.xlane.xlu0 %6554 }
0x4dd7   :  { %v6571_v8 = vperm.slane %v6555_v60, %v9052_v9 }
0x4dd9   :  { %v6578_v55 = vsel %vm244_vm7, %v6571_v8, %v6577_v59 }
0x4dda   :  { %v6580_v11 = vsel %vm189_vm0, %v6578_v55, -inf }
0x4ddb   :  { %6581 = vmax.xlane.f32.xlu2 %v6580_v11 }
0x4e4e   :  { %v6582_v25 = vpop.xlane.xlu2 %6581 }
0x4e4f   :  { %v6584_v27 = vperm.slane %v6582_v25, 0  ;;  %v6585_v10 = vperm.slane %v6582_v25, 1  ;;  %v6586_v29 = vperm.slane %v6582_v25, 2  ;;  %v6587_v14 = vperm.slane %v6582_v25, 3 }
0x4e50   :  { %v6588_v16 = vperm.slane %v6582_v25, 4  ;;  %v6589_v57 = vperm.slane %v6582_v25, 5  ;;  %v6590_v18 = vperm.slane %v6582_v25, 6  ;;  %v6591_v8 = vperm.slane %v6582_v25, 7 }
0x4e51   :  { %v6600_v26 = vsub.f32 %v6534_v21, %v6584_v27  ;;  %v6601_v12 = vsub.f32 %v6537_v13, %v6585_v10  ;;  %v6602_v48 = vsub.f32 %v6540_v23, %v6586_v29  ;;  %v6603_v28 = vsub.f32 %v6543_v47, %v6587_v14 }
0x4e52   :  { %v6604_v33 = vsub.f32 %v6546_v19, %v6588_v16  ;;  %v6605_v35 = vsub.f32 %v6549_v22, %v6589_v57  ;;  %v6606_v11 = vsub.f32 %v6552_v40, %v6590_v18  ;;  %v6607_v47 = vsub.f32 %v6555_v60, %v6591_v8 }
0x4e53   :  { %v6608_v1 = vmul.f32 1.442695, %v6600_v26  ;;  %v6610_v63 = vmul.f32 1.442695, %v6601_v12  ;;  %v6612_v15 = vmul.f32 1.442695, %v6602_v48 }
0x4e54   :  { %v6614_v30 = vmul.f32 1.442695, %v6603_v28  ;;  %v6616_v59 = vmul.f32 1.442695, %v6604_v33  ;;  %v6618_v21 = vmul.f32 1.442695, %v6605_v35 }
0x4e55   :  { %8668 = vpow2.f32 %v6608_v1  ;;  %v6620_v19 = vmul.f32 1.442695, %v6606_v11  ;;  %v6622_v22 = vmul.f32 1.442695, %v6607_v47 }
0x4e56   :  { %8670 = vpow2.f32 %v6610_v63 }
0x4e57   :  { %8672 = vpow2.f32 %v6612_v15 }
0x4e58   :  { %8674 = vpow2.f32 %v6614_v30 }
0x4e59   :  { %8676 = vpow2.f32 %v6616_v59 }
0x4e5a   :  { %8678 = vpow2.f32 %v6618_v21 }
0x4e5b   :  { %v11439_v55 = vpop.eup %8668  ;;  %8680 = vpow2.f32 %v6620_v19 }
0x4e5c   :  { %v8671_v13 = vpop.eup %8670  ;;  %6633 = vperm.xlu1 %8082, %v11439_v55   ;;  %8682 = vpow2.f32 %v6622_v22 }
0x4e5d   :  { %v8673_v23 = vpop.eup %8672  ;;  %6636 = vperm.xlu0 %8086, %v8671_v13  }
0x4e5e   :  { %6639 = vperm.xlu2 %8087, %v8673_v23   ;;  %v8675_v27 = vpop.eup %8674 }
0x4e5f   :  { %v8677_v10 = vpop.eup %8676 }
0x4e60   :  { %v8679_v25 = vpop.eup %8678 }
0x4e61   :  { %v8681_v29 = vpop.eup %8680 }
0x4e62   :  { %v8683_v14 = vpop.eup %8682 }
0x4e64   :  { %6642 = vperm.xlu1 %8082, %v8675_v27  }
0x4e65   :  { %6645 = vperm.xlu0 %8086, %v8677_v10  }
0x4e66   :  { %6648 = vperm.xlu2 %8087, %v8679_v25  }
0x4e6c   :  { %6651 = vperm.xlu1 %8082, %v8681_v29  }
0x4e6d   :  { %6654 = vperm.xlu0 %8086, %v8683_v14  }
0x4eb8   :  { %v6640_v60 = vpop.permute.xlu2 %6639 }
0x4eb9   :  { %v6658_v1 = vperm.slane %v6640_v60, %v9052_v9 }
0x4ec0   :  { %v6649_v18 = vpop.permute.xlu2 %6648 }
0x4ec1   :  { %v6661_v8 = vperm.slane %v6649_v18, %v9052_v9 }
0x4ece   :  { %v6634_v40 = vpop.permute.xlu1 %6633 }
0x4ecf   :  { %v6637_v26 = vpop.permute.xlu0 %6636  ;;  %v6656_v48 = vperm.slane %v6634_v40, %v9052_v9 }
0x4ed0   :  { %v6657_v12 = vperm.slane %v6637_v26, %v9052_v9 }
0x4ed2   :  { %v6664_v16 = vsel %vm232_vm1, %v6657_v12, %v6656_v48 }
0x4ed3   :  { %v6665_v33 = vsel %vm234_vm2, %v6658_v1, %v6664_v16 }
0x4ed6   :  { %v6643_v57 = vpop.permute.xlu1 %6642 }
0x4ed7   :  { %v6646_v63 = vpop.permute.xlu0 %6645  ;;  %v6659_v15 = vperm.slane %v6643_v57, %v9052_v9 }
0x4ed8   :  { %v6660_v28 = vperm.slane %v6646_v63, %v9052_v9 }
0x4ed9   :  { %v6666_v35 = vsel %vm236_vm3, %v6659_v15, %v6665_v33 }
0x4eda   :  { %v6667_v30 = vsel %vm238_vm4, %v6660_v28, %v6666_v35 }
0x4edb   :  { %v6668_v19 = vsel %vm240_vm5, %v6661_v8, %v6667_v30 }
0x4ede   :  { %v6652_v59 = vpop.permute.xlu1 %6651 }
0x4edf   :  { %v6655_v21 = vpop.permute.xlu0 %6654  ;;  %v6662_v11 = vperm.slane %v6652_v59, %v9052_v9 }
0x4ee0   :  { %v6663_v47 = vperm.slane %v6655_v21, %v9052_v9 }
0x4ee1   :  { %v6669_v22 = vsel %vm242_vm6, %v6662_v11, %v6668_v19 }
0x4ee2   :  { %v6670_v40 = vsel %vm244_vm7, %v6663_v47, %v6669_v22 }
0x4ee3   :  { %v6672_v26 = vsel %vm189_vm0, %v6670_v40, 0.0 }
0x4ee4   :  { %6673 = vadd.xlane.f32.xlu2 %v6672_v26 }
0x4f57   :  { %v6674_v60 = vpop.xlane.xlu2 %6673 }
0x4f58   :  { %8684 = vrcp.f32 %v6674_v60 }
0x4f5e   :  { %v8685_v12 = vpop.eup %8684 }
0x4f5f   :  { %v6679_v48 = vperm.slane %v8685_v12, 2  ;;  %v6678_v16 = vperm.slane %v8685_v12, 1  ;;  %v6680_v63 = vperm.slane %v8685_v12, 3  ;;  %v6677_v15 = vperm.slane %v8685_v12, 0 }
0x4f60   :  { %v6682_v35 = vperm.slane %v8685_v12, 5  ;;  %v6681_v18 = vperm.slane %v8685_v12, 4  ;;  %v6684_v59 = vperm.slane %v8685_v12, 7  ;;  %v6683_v21 = vperm.slane %v8685_v12, 6 }
0x4f61   :  { %v6695_v57 = vmul.f32 %v8673_v23, %v6679_v48  ;;  %v6694_v1 = vmul.f32 %v8671_v13, %v6678_v16  ;;  %v6696_v28 = vmul.f32 %v8675_v27, %v6680_v63  ;;  %v6693_v33 = vmul.f32 %v11439_v55, %v6677_v15 }
0x4f62   :  { %v6698_v30 = vmul.f32 %v8679_v25, %v6682_v35  ;;  %v6697_v8 = vmul.f32 %v8677_v10, %v6681_v18  ;;  %v6700_v11 = vmul.f32 %v8683_v14, %v6684_v59  ;;  %v6699_v23 = vmul.f32 %v8681_v29, %v6683_v21 }
0x4f63   :  { %6713 = vperm.xlu0 %8086, %v6695_v57   ;;  %6708 = vperm.xlu1 %8082, %v6694_v1  }
0x4f6b   :  { %6718 = vperm.xlu0 %8086, %v6696_v28   ;;  %6703 = vperm.xlu1 %8082, %v6693_v33  }
0x4f73   :  { %6728 = vperm.xlu0 %8086, %v6698_v30   ;;  %6723 = vperm.xlu1 %8082, %v6697_v8  }
0x4f7b   :  { %6738 = vperm.xlu0 %8086, %v6700_v11   ;;  %6733 = vperm.xlu1 %8082, %v6699_v23  }
0x4fd5   :  { %v6714_v13 = vpop.permute.xlu0 %6713  ;;  %v6709_v47 = vpop.permute.xlu1 %6708 }
0x4fd6   :  { %v6743_v27 = vmul.f32 %v6714_v13, %v10558_v52  ;;  %v6742_v55 = vmul.f32 %v6709_v47, %v10574_v61 }
0x4fd8   :  { %v6763_v19 = vsel %vm4384_vm9, %v6743_v27, 0.0  ;;  %v6756_v22 = vsel %vm4384_vm9, %v6742_v55, 0.0 }
0x4fd9   :  { %v6757_v25 = vrot.slane %v6756_v22, 4  ;;  %v6764_v10 = vrot.slane %v6763_v19, 4 }
0x4fdb   :  { %v6758_v40 = vadd.f32 %v6757_v25, %v6756_v22  ;;  %v6765_v12 = vadd.f32 %v6764_v10, %v6763_v19 }
0x4fdd   :  { %v6719_v26 = vpop.permute.xlu0 %6718  ;;  %v6704_v60 = vpop.permute.xlu1 %6703  ;;  %v6759_v48 = vrot.slane %v6758_v40, 2  ;;  %v6766_v15 = vrot.slane %v6765_v12, 2 }
0x4fde   :  { %v6744_v14 = vmul.f32 %v6719_v26, %v10562_v4  ;;  %v6741_v29 = vmul.f32 %v6704_v60, %v10570_v58 }
0x4fdf   :  { %v6760_v35 = vadd.f32 %v6759_v48, %v6758_v40  ;;  %v6767_v23 = vadd.f32 %v6766_v15, %v6765_v12 }
0x4fe0   :  { %v6770_v16 = vsel %vm4384_vm9, %v6744_v14, 0.0  ;;  %v6749_v57 = vsel %vm4384_vm9, %v6741_v29, 0.0 }
0x4fe1   :  { %v6771_v1 = vrot.slane %v6770_v16, 4  ;;  %v6750_v63 = vrot.slane %v6749_v57, 4  ;;  %v6761_v47 = vrot.slane %v6760_v35, 1  ;;  %v6768_v40 = vrot.slane %v6767_v23, 1 }
0x4fe3   :  { %v6772_v28 = vadd.f32 %v6771_v1, %v6770_v16  ;;  %v6751_v33 = vadd.f32 %v6750_v63, %v6749_v57  ;;  %v6762_v14 = vadd.f32 %v6761_v47, %v6760_v35 }
0x4fe5   :  { %v6773_v18 = vrot.slane %v6772_v28, 2  ;;  %v6752_v30 = vrot.slane %v6751_v33, 2  ;;  %v6729_v8 = vpop.permute.xlu0 %6728  ;;  %v6724_v59 = vpop.permute.xlu1 %6723 }
0x4fe6   :  { %v6746_v21 = vmul.f32 %v6729_v8, %v10554_v36  ;;  %v6745_v11 = vmul.f32 %v6724_v59, %v10550_v46 }
0x4fe7   :  { %v6753_v13 = vadd.f32 %v6752_v30, %v6751_v33  ;;  %v6774_v27 = vadd.f32 %v6773_v18, %v6772_v28  ;;  %v6769_v28 = vadd.f32 %v6768_v40, %v6767_v23  ;;  %v6806_v30 = vmul.f32 %v6762_v14, %v10728_v42 }
0x4fe8   :  { %v6784_v55 = vsel %vm4384_vm9, %v6746_v21, 0.0  ;;  %v6777_v19 = vsel %vm4384_vm9, %v6745_v11, 0.0 }
0x4fe9   :  { %v6785_v22 = vrot.slane %v6784_v55, 4  ;;  %v6778_v25 = vrot.slane %v6777_v19, 4  ;;  %v6754_v10 = vrot.slane %v6753_v13, 1  ;;  %v6775_v29 = vrot.slane %v6774_v27, 1 }
0x4feb   :  { %v6786_v26 = vadd.f32 %v6785_v22, %v6784_v55  ;;  %v6779_v60 = vadd.f32 %v6778_v25, %v6777_v19  ;;  %v6755_v12 = vadd.f32 %v6754_v10, %v6753_v13  ;;  %v6776_v8 = vadd.f32 %v6775_v29, %v6774_v27 }
0x4fec   :  { %v6807_v19 = vmul.f32 %v6769_v28, %v10728_v42  ;;  %v6821_v10 = vrot.slane %v6806_v30, 7 }
0x4fed   :  { %v6787_v48 = vrot.slane %v6786_v26, 2  ;;  %v6780_v16 = vrot.slane %v6779_v60, 2  ;;  %v6739_v57 = vpop.permute.xlu0 %6738  ;;  %v6734_v1 = vpop.permute.xlu1 %6733  ;;  %v6805_v13 = vmul.f32 %v6755_v12, %v10728_v42  ;;  %v6808_v40 = vmul.f32 %v6776_v8, %v10728_v42 }
0x4fee   :  { %v6748_v63 = vmul.f32 %v6739_v57, %v10587_v17  ;;  %v6747_v15 = vmul.f32 %v6734_v1, %v10583_v56 }
0x4fef   :  { %v6788_v33 = vadd.f32 %v6787_v48, %v6786_v26  ;;  %v6781_v18 = vadd.f32 %v6780_v16, %v6779_v60  ;;  %v6822_v29 = vsel %vm232_vm1, %v6821_v10, %v6805_v13  ;;  %v6823_v48 = vrot.slane %v6807_v19, 6 }
0x4ff0   :  { %v6798_v59 = vsel %vm4384_vm9, %v6748_v63, 0.0  ;;  %v6791_v35 = vsel %vm4384_vm9, %v6747_v15, 0.0  ;;  %v6825_v1 = vrot.slane %v6808_v40, 5  ;;  %v6841_v10 = vrot.slane %v10784_v44, 5 }
0x4ff1   :  { %v6789_v21 = vrot.slane %v6788_v33, 1  ;;  %v6782_v11 = vrot.slane %v6781_v18, 1  ;;  %v6799_v47 = vrot.slane %v6798_v59, 4  ;;  %v6792_v55 = vrot.slane %v6791_v35, 4 }
0x4ff2   :  { %v6842_v40 = vrot.slane %v10774_v45, 4 }
0x4ff3   :  { %v6783_v22 = vadd.f32 %v6782_v11, %v6781_v18  ;;  %v6800_v25 = vadd.f32 %v6799_v47, %v6798_v59  ;;  %v6793_v23 = vadd.f32 %v6792_v55, %v6791_v35  ;;  %v6790_v26 = vadd.f32 %v6789_v21, %v6788_v33 }
0x4ff4   :  { %v6824_v18 = vsel %vm234_vm2, %v6823_v48, %v6822_v29  ;;  %v6848_v29 = vrot.slane %v10798_v39, 1 }
0x4ff5   :  { %v6809_v27 = vmul.f32 %v6783_v22, %v10728_v42  ;;  %v6801_v60 = vrot.slane %v6800_v25, 2  ;;  %v6794_v14 = vrot.slane %v6793_v23, 2  ;;  %v6810_v12 = vmul.f32 %v6790_v26, %v10728_v42 }
0x4ff6   :  { %v6826_v59 = vsel %vm236_vm3, %v6825_v1, %v6824_v18  ;;  %v6844_v26 = vrot.slane %v10782_v37, 3 }
0x4ff7   :  { %v6802_v16 = vadd.f32 %v6801_v60, %v6800_v25  ;;  %v6795_v57 = vadd.f32 %v6794_v14, %v6793_v23  ;;  %v6827_v63 = vrot.slane %v6809_v27, 4  ;;  %v6829_v33 = vrot.slane %v6810_v12, 3 }
0x4ff8   :  { %v6843_v27 = vsel %vm232_vm1, %v6842_v40, %v6841_v10  ;;  %v6846_v60 = vrot.slane %v10790_v31, 2  ;;  %v6853_v12 = vrot.slane %v10816_v6, 6 }
0x4ff9   :  { %v6803_v15 = vrot.slane %v6802_v16, 1  ;;  %v6796_v28 = vrot.slane %v6795_v57, 1  ;;  %v6828_v11 = vsel %vm238_vm4, %v6827_v63, %v6826_v59  ;;  %v6845_v14 = vsel %vm234_vm2, %v6844_v26, %v6843_v27 }
0x4ffa   :  { %v6830_v13 = vsel %vm240_vm5, %v6829_v33, %v6828_v11  ;;  %v6847_v48 = vsel %vm236_vm3, %v6846_v60, %v6845_v14 }
0x4ffb   :  { %v6804_v30 = vadd.f32 %v6803_v15, %v6802_v16  ;;  %v6797_v8 = vadd.f32 %v6796_v28, %v6795_v57  ;;  %v6849_v16 = vsel %vm238_vm4, %v6848_v29, %v6847_v48  ;;  %v6851_v57 = vrot.slane %v10812_v43, 7 }
0x4ffc   :  { %v6850_v1 = vsel %vm240_vm5, %v10805_v0, %v6849_v16 }
0x4ffd   :  { %v6811_v35 = vmul.f32 %v6797_v8, %v10728_v42  ;;  %v6812_v21 = vmul.f32 %v6804_v30, %v10728_v42  ;;  %v6852_v63 = vsel %vm242_vm6, %v6851_v57, %v6850_v1 }
0x4ffe   :  { %v6854_v15 = vsel %vm244_vm7, %v6853_v12, %v6852_v63 }
0x4fff   :  { %v6831_v47 = vrot.slane %v6811_v35, 2  ;;  %v6833_v55 = vrot.slane %v6812_v21, 1 }
0x5001   :  { %v6832_v19 = vsel %vm242_vm6, %v6831_v47, %v6830_v13 }
0x5002   :  { %v6834_v22 = vsel %vm244_vm7, %v6833_v55, %v6832_v19 }
0x5003   :  { %6835 = vrot.lane.b32.xlu1 %v6834_v22, %s8936_s26 }
0x5075   :  { %v6836_v25 = vpop.permute.xlu1 %6835 }
0x5076   :  { %v6838_v23 = vsel %vm468_vm13, %v6836_v25, 0.0 }
0x5077   :  { %6839 = vadd.xlane.f32.xlu0 %v6838_v23 }
0x50ea   :  { %v6840_v28 = vpop.xlane.xlu0 %6839 }
0x50eb   :  { %v6856_v18 = vadd.f32 %v6854_v15, %v6840_v28 }
0x50ed   :  { %6859 = vperm.xlu2 %8087, %v6856_v18  }
0x5147   :  { %v6860_v30 = vpop.permute.xlu2 %6859 }
0x5148   :  { %v6862_v8 = vmul.f32 %v11373_v51, %v6860_v30 }
0x514a   :  { %v6878_v33 = vadd.f32 %v11398_v50, %v6862_v8 }
0x514c   :  { %v6879_v59 = vadd.f32 %v11377_v3, %v6878_v33 }
0x514e   :  { %8686 = vtanh.f32 %v6879_v59  ;;  %v8023_v21 = vmul.f32 -1.442695, %v6879_v59 }
0x5150   :  { %8688 = vpow2.f32 %v8023_v21 }
0x5154   :  { %v8687_v35 = vpop.eup %8686 }
0x5155   :  { %6902 = vrot.lane.b32.xlu1 %v8687_v35, %s8943_s25 }
0x5156   :  { %v8689_v11 = vpop.eup %8688 }
0x5157   :  { %v6883_v47 = vadd.f32 1.0, %v8689_v11 }
0x5159   :  { %8690 = vrcp.f32 %v6883_v47  ;;  %v6895_v51 = vand.u32 2147483648, %v6883_v47  ;;  %vm6889_vm11 = vweird.f32 %v6883_v47  ;;  %v6893_v50 = vand.u32 2147483647, %v6883_v47 }
0x515b   :  { %v6896_v23 = vor.u32 1.1754944e-38, %v6895_v51  ;;  %vm6894_vm12 = vcmp.eq.f32.partialorder %v6893_v50, 8.507059e+37 }
0x515f   :  { %v8691_v55 = vpop.eup %8690 }
0x5160   :  { %v6885_v13 = vmul.f32 %v8691_v55, %v6883_v47  ;;  %vm6890_vm10 = vweird.f32 %v8691_v55 }
0x5161   :  { %vm6891_vm8 = vmor %vm6889_vm11, %vm6890_vm10 }
0x5162   :  { %v6886_v19 = vsub.f32 1.0, %v6885_v13 }
0x5164   :  { %v6887_v22 = vmul.f32 %v8691_v55, %v6886_v19 }
0x5166   :  { %v6888_v25 = vadd.f32 %v8691_v55, %v6887_v22 }
0x5168   :  { %v6892_v3 = vsel %vm6891_vm8, %v8691_v55, %v6888_v25 }
0x5169   :  { %v6897_v40 = vsel %vm6894_vm12, %v6896_v23, %v6892_v3 }
0x516a   :  { %v6900_v27 = vmul.f32 %v6897_v40, %v11383_v20 }
0x51c7   :  { %v6903_v10 = vpop.permute.xlu1 %6902 }
0x51c8   :  { %v6905_v26 = vmul.f32 %v6903_v10, %v6897_v40 }
0x51ca   :  { %6907 = vrot.lane.b32.xlu1 %v6905_v26, %s8943_s25  ;;  %v11534_v26 = vld [vmem:[#allocation6 + $0x18] ss:$0 sm:$0xff] }
0x523c   :  { %v6908_v60 = vpop.permute.xlu1 %6907 }
0x523d   :  { %v11513_v14 = vadd.f32 %v6908_v60, %v6900_v27 }
0x523f   :  { %8692 = vtanh.f32 %v11513_v14  ;;  %v6926_v20 = vpack.c.bf16 %v11513_v14, %v11513_v14 }
0x5245   :  { %v8693_v29 = vpop.eup %8692 }
0x5246   :  { %6913 = vrot.lane.b32.xlu1 %v8693_v29, %s8943_s25 }
0x52b8   :  { %v6914_v48 = vpop.permute.xlu1 %6913 }
0x52b9   :  { %v11517_v16 = vmul.f32 %v6914_v48, %v6897_v40 }
0x52bb   :  { %v6925_v57 = vpack.c.bf16 %v11517_v16, %v11517_v16 }
0x52bd   :  { %v6928_v1 = vunpack.c.l.b16 %v6925_v57 }
0x52bf   :  { %v6929_v12 = vpack.c.b16 %v6928_v1, %v6928_v1 }
0x52c1   :  { %6930 = vrot.lane.b32.xlu2 %v6929_v12, %s8936_s26 }
0x531b   :  { %v6931_v63 = vpop.permute.xlu2 %6930 }
0x531c   :  { %v6934_v15 = vsel %vm468_vm13, %v6931_v63, %v6926_v20  ;;  %8025 = vmatmul.msk.bf16.vlgmr.msra.gmra.mxu1 %vm468_vm13, %v6931_v63 }
0x531d   :  { %8024 = vmatmul.msk.bf16.vlgmr.msrb.gmra.mxu2 %vm123_vm14, %v6934_v15 }
0x5399   :  { %v11527_v28 = vpop.f32.mrf.mxu1 }
0x53a0   :  { %v6946_v18 = vpop.f32.mrf.mxu2 }
0x53a1   :  { %v7342_v30 = vpop.f32.mrf.mxu1  ;;  %v6958_v8 = vperm.slane %v6946_v18, 0  ;;  %v6952_v33 = vrot.slane %v6946_v18, 2  ;;  %v6951_v59 = vrot.slane %v6946_v18, 1  ;;  %v6956_v35 = vrot.slane %v6946_v18, 6 }
0x53a2   :  { %v6953_v21 = vrot.slane %v6946_v18, 3  ;;  %v6954_v3 = vrot.slane %v6946_v18, 4  ;;  %v6955_v63 = vrot.slane %v6946_v18, 5 }
0x53a3   :  { %v6974_v11 = vadd.f32 %v6958_v8, %v10623_v38  ;;  %v6960_v47 = vperm.slane %v6952_v33, 0  ;;  %v6959_v55 = vperm.slane %v6951_v59, 0  ;;  %v6964_v13 = vperm.slane %v6956_v35, 0 }
0x53a4   :  { %v6961_v19 = vperm.slane %v6953_v21, 0  ;;  %v6962_v40 = vperm.slane %v6954_v3, 0  ;;  %v6963_v59 = vperm.slane %v6955_v63, 0 }
0x53a5   :  { %8694 = vtanh.f32 %v6974_v11  ;;  %v6976_v22 = vadd.f32 %v6960_v47, %v10637_v2  ;;  %v6975_v25 = vadd.f32 %v6959_v55, %v10630_v53  ;;  %v6980_v51 = vadd.f32 %v6964_v13, %v10665_v34 }
0x53a6   :  { %v6977_v50 = vadd.f32 %v6961_v19, %v10644_v5  ;;  %v6978_v20 = vadd.f32 %v6962_v40, %v10651_v41  ;;  %v6979_v11 = vadd.f32 %v6963_v59, %v10658_v32  ;;  %v6957_v47 = vrot.slane %v6946_v18, 7 }
0x53a7   :  { %8696 = vtanh.f32 %v6976_v22 }
0x53a8   :  { %v6948_v23 = vpop.f32.mrf.mxu2  ;;  %8698 = vtanh.f32 %v6975_v25  ;;  %v6965_v19 = vperm.slane %v6957_v47, 0 }
0x53a9   :  { %8700 = vtanh.f32 %v6980_v51 }
0x53aa   :  { %8702 = vtanh.f32 %v6977_v50  ;;  %v6981_v25 = vadd.f32 %v6965_v19, %v10672_v24 }
0x53ab   :  { %v8695_v10 = vpop.eup %8694  ;;  %8704 = vtanh.f32 %v6978_v20 }
0x53ac   :  { %v6990_v27 = vmul.f32 %v11534_v26, %v8695_v10  ;;  %8706 = vtanh.f32 %v6979_v11 }
0x53ad   :  { %v8697_v60 = vpop.eup %8696  ;;  %8708 = vtanh.f32 %v6981_v25 }
0x53ae   :  { %v8699_v29 = vpop.eup %8698  ;;  %v6998_v48 = vsel %vm468_vm13, %v6990_v27, 0.0  ;;  %v6992_v57 = vmul.f32 %v11534_v26, %v8697_v60 }
0x53af   :  { %v8701_v1 = vpop.eup %8700  ;;  %6999 = vadd.xlane.f32.xlu1 %v6998_v48  ;;  %v6991_v12 = vmul.f32 %v11534_v26, %v8699_v29 }
0x53b0   :  { %v7004_v15 = vsel %vm468_vm13, %v6992_v57, 0.0  ;;  %v8703_v30 = vpop.eup %8702  ;;  %v6996_v33 = vmul.f32 %v11534_v26, %v8701_v1 }
0x53b1   :  { %7005 = vadd.xlane.f32.xlu0 %v7004_v15  ;;  %v7001_v8 = vsel %vm468_vm13, %v6991_v12, 0.0  ;;  %v6993_v35 = vmul.f32 %v11534_v26, %v8703_v30  ;;  %v8705_v13 = vpop.eup %8704 }
0x53b2   :  { %7002 = vadd.xlane.f32.xlu2 %v7001_v8  ;;  %v7016_v21 = vsel %vm468_vm13, %v6996_v33, 0.0  ;;  %v6994_v22 = vmul.f32 %v11534_v26, %v8705_v13  ;;  %v8707_v50 = vpop.eup %8706 }
0x53b3   :  { %v7007_v55 = vsel %vm468_vm13, %v6993_v35, 0.0  ;;  %v6995_v3 = vmul.f32 %v11534_v26, %v8707_v50  ;;  %v8709_v18 = vpop.eup %8708 }
0x53b4   :  { %v7010_v51 = vsel %vm468_vm13, %v6994_v22, 0.0  ;;  %v6997_v10 = vmul.f32 %v11534_v26, %v8709_v18 }
0x53b5   :  { %v7013_v23 = vsel %vm468_vm13, %v6995_v3, 0.0 }
0x53b6   :  { %v7019_v40 = vsel %vm468_vm13, %v6997_v10, 0.0 }
0x53b7   :  { %7017 = vadd.xlane.f32.xlu1 %v7016_v21 }
0x53b9   :  { %7008 = vadd.xlane.f32.xlu0 %v7007_v55 }
0x53c1   :  { %7011 = vadd.xlane.f32.xlu0 %v7010_v51 }
0x53c9   :  { %7014 = vadd.xlane.f32.xlu0 %v7013_v23 }
0x53d1   :  { %7020 = vadd.xlane.f32.xlu0 %v7019_v40 }
0x5422   :  { %v7000_v57 = vpop.xlane.xlu1 %6999 }
0x5423   :  { %v7030_v12 = vperm.slane %v7000_v57, %v9052_v9 }
0x5424   :  { %v7006_v27 = vpop.xlane.xlu0 %7005 }
0x5425   :  { %v7003_v48 = vpop.xlane.xlu2 %7002  ;;  %v7032_v20 = vperm.slane %v7006_v27, %v9052_v9 }
0x5426   :  { %v7031_v1 = vperm.slane %v7003_v48, %v9052_v9 }
0x5428   :  { %v7038_v15 = vsel %vm232_vm1, %v7031_v1, %v7030_v12 }
0x5429   :  { %v7039_v59 = vsel %vm234_vm2, %v7032_v20, %v7038_v15 }
0x542a   :  { %v7018_v35 = vpop.xlane.xlu1 %7017 }
0x542b   :  { %v7036_v55 = vperm.slane %v7018_v35, %v9052_v9 }
0x542c   :  { %v7009_v60 = vpop.xlane.xlu0 %7008 }
0x542d   :  { %v7033_v30 = vperm.slane %v7009_v60, %v9052_v9 }
0x542f   :  { %v7040_v21 = vsel %vm236_vm3, %v7033_v30, %v7039_v59 }
0x5434   :  { %v7012_v29 = vpop.xlane.xlu0 %7011 }
0x5435   :  { %v7034_v8 = vperm.slane %v7012_v29, %v9052_v9 }
0x5437   :  { %v7041_v11 = vsel %vm238_vm4, %v7034_v8, %v7040_v21 }
0x543c   :  { %v7015_v63 = vpop.xlane.xlu0 %7014 }
0x543d   :  { %v7035_v33 = vperm.slane %v7015_v63, %v9052_v9 }
0x543f   :  { %v7042_v47 = vsel %vm240_vm5, %v7035_v33, %v7041_v11 }
0x5440   :  { %v7043_v22 = vsel %vm242_vm6, %v7036_v55, %v7042_v47 }
0x5444   :  { %v7021_v13 = vpop.xlane.xlu0 %7020 }
0x5445   :  { %v7037_v19 = vperm.slane %v7021_v13, %v9052_v9 }
0x5447   :  { %v7044_v25 = vsel %vm244_vm7, %v7037_v19, %v7043_v22 }
0x5448   :  { %v7046_v51 = vsel %vm189_vm0, %v7044_v25, -inf }
0x5449   :  { %7047 = vmax.xlane.f32.xlu2 %v7046_v51 }
0x54bc   :  { %v7048_v50 = vpop.xlane.xlu2 %7047 }
0x54bd   :  { %v7050_v3 = vperm.slane %v7048_v50, 0  ;;  %v7051_v23 = vperm.slane %v7048_v50, 1  ;;  %v7052_v18 = vperm.slane %v7048_v50, 2  ;;  %v7054_v10 = vperm.slane %v7048_v50, 4 }
0x54be   :  { %v7053_v20 = vperm.slane %v7048_v50, 3  ;;  %v7056_v15 = vperm.slane %v7048_v50, 6  ;;  %v7057_v47 = vperm.slane %v7048_v50, 7  ;;  %v7055_v19 = vperm.slane %v7048_v50, 5 }
0x54bf   :  { %v7066_v40 = vsub.f32 %v7000_v57, %v7050_v3  ;;  %v7067_v1 = vsub.f32 %v7003_v48, %v7051_v23  ;;  %v7068_v12 = vsub.f32 %v7006_v27, %v7052_v18  ;;  %v7070_v59 = vsub.f32 %v7012_v29, %v7054_v10 }
0x54c0   :  { %v7069_v21 = vsub.f32 %v7009_v60, %v7053_v20  ;;  %v7072_v11 = vsub.f32 %v7018_v35, %v7056_v15  ;;  %v7073_v51 = vsub.f32 %v7021_v13, %v7057_v47  ;;  %v7071_v29 = vsub.f32 %v7015_v63, %v7055_v19 }
0x54c1   :  { %v7074_v30 = vmul.f32 1.442695, %v7066_v40  ;;  %v7076_v8 = vmul.f32 1.442695, %v7067_v1  ;;  %v7078_v33 = vmul.f32 1.442695, %v7068_v12 }
0x54c2   :  { %v7082_v55 = vmul.f32 1.442695, %v7070_v59  ;;  %v7080_v22 = vmul.f32 1.442695, %v7069_v21  ;;  %v7086_v57 = vmul.f32 1.442695, %v7072_v11 }
0x54c3   :  { %8710 = vpow2.f32 %v7074_v30  ;;  %v7088_v60 = vmul.f32 1.442695, %v7073_v51  ;;  %v7084_v35 = vmul.f32 1.442695, %v7071_v29 }
0x54c4   :  { %8712 = vpow2.f32 %v7076_v8 }
0x54c5   :  { %8714 = vpow2.f32 %v7078_v33 }
0x54c6   :  { %8716 = vpow2.f32 %v7082_v55 }
0x54c7   :  { %8718 = vpow2.f32 %v7080_v22 }
0x54c8   :  { %8720 = vpow2.f32 %v7086_v57 }
0x54c9   :  { %v11571_v25 = vpop.eup %8710  ;;  %8722 = vpow2.f32 %v7088_v60 }
0x54ca   :  { %v8713_v48 = vpop.eup %8712  ;;  %7099 = vperm.xlu1 %8082, %v11571_v25   ;;  %8724 = vpow2.f32 %v7084_v35 }
0x54cb   :  { %v8715_v27 = vpop.eup %8714  ;;  %7102 = vperm.xlu0 %8086, %v8713_v48  }
0x54cc   :  { %7105 = vperm.xlu2 %8087, %v8715_v27   ;;  %v8717_v3 = vpop.eup %8716 }
0x54cd   :  { %v8719_v23 = vpop.eup %8718 }
0x54ce   :  { %v8721_v50 = vpop.eup %8720 }
0x54cf   :  { %v8723_v18 = vpop.eup %8722 }
0x54d0   :  { %v8725_v10 = vpop.eup %8724 }
0x54d2   :  { %7111 = vperm.xlu1 %8082, %v8717_v3  }
0x54d3   :  { %7108 = vperm.xlu0 %8086, %v8719_v23  }
0x54d4   :  { %7117 = vperm.xlu2 %8087, %v8721_v50  }
0x54da   :  { %7120 = vperm.xlu1 %8082, %v8723_v18  }
0x54db   :  { %7114 = vperm.xlu0 %8086, %v8725_v10  }
0x5526   :  { %v7106_v63 = vpop.permute.xlu2 %7105 }
0x5527   :  { %v7124_v33 = vperm.slane %v7106_v63, %v9052_v9 }
0x552e   :  { %v7118_v11 = vpop.permute.xlu2 %7117 }
0x552f   :  { %v7128_v57 = vperm.slane %v7118_v11, %v9052_v9 }
0x553c   :  { %v7100_v13 = vpop.permute.xlu1 %7099 }
0x553d   :  { %v7103_v40 = vpop.permute.xlu0 %7102  ;;  %v7122_v12 = vperm.slane %v7100_v13, %v9052_v9 }
0x553e   :  { %v7123_v1 = vperm.slane %v7103_v40, %v9052_v9 }
0x5540   :  { %v7130_v30 = vsel %vm232_vm1, %v7123_v1, %v7122_v12 }
0x5541   :  { %v7131_v59 = vsel %vm234_vm2, %v7124_v33, %v7130_v30 }
0x5544   :  { %v7112_v20 = vpop.permute.xlu1 %7111 }
0x5545   :  { %v7109_v15 = vpop.permute.xlu0 %7108  ;;  %v7126_v21 = vperm.slane %v7112_v20, %v9052_v9 }
0x5546   :  { %v7125_v8 = vperm.slane %v7109_v15, %v9052_v9 }
0x5548   :  { %v7132_v47 = vsel %vm236_vm3, %v7125_v8, %v7131_v59 }
0x5549   :  { %v7133_v51 = vsel %vm238_vm4, %v7126_v21, %v7132_v47 }
0x554c   :  { %v7121_v19 = vpop.permute.xlu1 %7120 }
0x554d   :  { %v7115_v55 = vpop.permute.xlu0 %7114  ;;  %v7129_v60 = vperm.slane %v7121_v19, %v9052_v9 }
0x554e   :  { %v7127_v22 = vperm.slane %v7115_v55, %v9052_v9 }
0x5550   :  { %v7134_v29 = vsel %vm240_vm5, %v7127_v22, %v7133_v51 }
0x5551   :  { %v7135_v35 = vsel %vm242_vm6, %v7128_v57, %v7134_v29 }
0x5552   :  { %v7136_v13 = vsel %vm244_vm7, %v7129_v60, %v7135_v35 }
0x5553   :  { %v7138_v40 = vsel %vm189_vm0, %v7136_v13, 0.0 }
0x5554   :  { %7139 = vadd.xlane.f32.xlu0 %v7138_v40 }
0x55c7   :  { %v7140_v63 = vpop.xlane.xlu0 %7139 }
0x55c8   :  { %8726 = vrcp.f32 %v7140_v63 }
0x55ce   :  { %v8727_v1 = vpop.eup %8726 }
0x55cf   :  { %v7145_v12 = vperm.slane %v8727_v1, 2  ;;  %v7144_v20 = vperm.slane %v8727_v1, 1  ;;  %v7146_v8 = vperm.slane %v8727_v1, 3  ;;  %v7143_v33 = vperm.slane %v8727_v1, 0 }
0x55d0   :  { %v7148_v11 = vperm.slane %v8727_v1, 5  ;;  %v7147_v47 = vperm.slane %v8727_v1, 4  ;;  %v7150_v22 = vperm.slane %v8727_v1, 7  ;;  %v7149_v57 = vperm.slane %v8727_v1, 6 }
0x55d1   :  { %v7161_v15 = vmul.f32 %v8715_v27, %v7145_v12  ;;  %v7160_v30 = vmul.f32 %v8713_v48, %v7144_v20  ;;  %v7162_v59 = vmul.f32 %v8719_v23, %v7146_v8  ;;  %v7159_v21 = vmul.f32 %v11571_v25, %v7143_v33 }
0x55d2   :  { %v7164_v55 = vmul.f32 %v8725_v10, %v7148_v11  ;;  %v7163_v19 = vmul.f32 %v8717_v3, %v7147_v47  ;;  %v7166_v51 = vmul.f32 %v8723_v18, %v7150_v22  ;;  %v7165_v27 = vmul.f32 %v8721_v50, %v7149_v57 }
0x55d3   :  { %7179 = vperm.xlu1 %8082, %v7161_v15   ;;  %7174 = vperm.xlu2 %8087, %v7160_v30  }
0x55db   :  { %7184 = vperm.xlu1 %8082, %v7162_v59   ;;  %7169 = vperm.xlu2 %8087, %v7159_v21  }
0x55e3   :  { %7194 = vperm.xlu1 %8082, %v7164_v55   ;;  %7189 = vperm.xlu2 %8087, %v7163_v19  }
0x55eb   :  { %7204 = vperm.xlu1 %8082, %v7166_v51   ;;  %7199 = vperm.xlu2 %8087, %v7165_v27  }
0x562d   :  { %v7175_v48 = vpop.permute.xlu2 %7174 }
0x562e   :  { %v7208_v23 = vmul.f32 %v7175_v48, %v10574_v61 }
0x5630   :  { %v7222_v13 = vsel %vm4384_vm9, %v7208_v23, 0.0 }
0x5631   :  { %v7223_v63 = vrot.slane %v7222_v13, 4 }
0x5633   :  { %v7224_v8 = vadd.f32 %v7223_v63, %v7222_v13 }
0x5635   :  { %v7170_v29 = vpop.permute.xlu2 %7169  ;;  %v7225_v22 = vrot.slane %v7224_v8, 2 }
0x5636   :  { %v7207_v25 = vmul.f32 %v7170_v29, %v10570_v58 }
0x5637   :  { %v7226_v23 = vadd.f32 %v7225_v22, %v7224_v8 }
0x5638   :  { %v7215_v40 = vsel %vm4384_vm9, %v7207_v25, 0.0 }
0x5639   :  { %v7216_v12 = vrot.slane %v7215_v40, 4 }
0x563b   :  { %v7217_v11 = vadd.f32 %v7216_v12, %v7215_v40 }
0x563d   :  { %v7190_v60 = vpop.permute.xlu2 %7189  ;;  %v7218_v48 = vrot.slane %v7217_v11, 2 }
0x563e   :  { %v7211_v10 = vmul.f32 %v7190_v60, %v10550_v46 }
0x563f   :  { %v7219_v40 = vadd.f32 %v7218_v48, %v7217_v11 }
0x5640   :  { %v7243_v20 = vsel %vm4384_vm9, %v7211_v10, 0.0 }
0x5641   :  { %v7244_v59 = vrot.slane %v7243_v20, 4 }
0x5643   :  { %v7245_v51 = vadd.f32 %v7244_v59, %v7243_v20  ;;  %v7220_v59 = vrot.slane %v7219_v40, 1 }
0x5645   :  { %v7180_v35 = vpop.permute.xlu1 %7179  ;;  %v7200_v18 = vpop.permute.xlu2 %7199  ;;  %v7246_v13 = vrot.slane %v7245_v51, 2 }
0x5646   :  { %v7209_v3 = vmul.f32 %v7180_v35, %v10558_v52  ;;  %v7213_v15 = vmul.f32 %v7200_v18, %v10583_v56 }
0x5647   :  { %v7247_v20 = vadd.f32 %v7246_v13, %v7245_v51 }
0x5648   :  { %v7229_v50 = vsel %vm4384_vm9, %v7209_v3, 0.0  ;;  %v7257_v47 = vsel %vm4384_vm9, %v7213_v15, 0.0 }
0x5649   :  { %v7230_v1 = vrot.slane %v7229_v50, 4  ;;  %v7258_v27 = vrot.slane %v7257_v47, 4 }
0x564b   :  { %v7231_v30 = vadd.f32 %v7230_v1, %v7229_v50  ;;  %v7259_v3 = vadd.f32 %v7258_v27, %v7257_v47  ;;  %v7227_v1 = vrot.slane %v7226_v23, 1  ;;  %v7248_v47 = vrot.slane %v7247_v20, 1 }
0x564c   :  { %v7221_v27 = vadd.f32 %v7220_v59, %v7219_v40 }
0x564d   :  { %v7185_v33 = vpop.permute.xlu1 %7184  ;;  %v7232_v55 = vrot.slane %v7231_v30, 2  ;;  %v7228_v8 = vadd.f32 %v7227_v1, %v7226_v23  ;;  %v7249_v23 = vadd.f32 %v7248_v47, %v7247_v20 }
0x564e   :  { %v7210_v21 = vmul.f32 %v7185_v33, %v10562_v4  ;;  %v7260_v33 = vrot.slane %v7259_v3, 2 }
0x564f   :  { %v7233_v60 = vadd.f32 %v7232_v55, %v7231_v30  ;;  %v7272_v51 = vmul.f32 %v7228_v8, %v10728_v42 }
0x5650   :  { %v7236_v19 = vsel %vm4384_vm9, %v7210_v21, 0.0 }
0x5651   :  { %v7237_v57 = vrot.slane %v7236_v19, 4  ;;  %v7234_v18 = vrot.slane %v7233_v60, 1  ;;  %v7287_v1 = vrot.slane %v7272_v51, 7 }
0x5653   :  { %v7238_v29 = vadd.f32 %v7237_v57, %v7236_v19  ;;  %v7235_v30 = vadd.f32 %v7234_v18, %v7233_v60  ;;  %v7261_v57 = vadd.f32 %v7260_v33, %v7259_v3  ;;  %v7275_v33 = vmul.f32 %v7249_v23, %v10728_v42 }
0x5654   :  { %v7307_v23 = vrot.slane %v10784_v44, 6 }
0x5655   :  { %v7239_v25 = vrot.slane %v7238_v29, 2  ;;  %v7195_v35 = vpop.permute.xlu1 %7194 }
0x5656   :  { %v7212_v10 = vmul.f32 %v7195_v35, %v10554_v36 }
0x5657   :  { %v7240_v50 = vadd.f32 %v7239_v25, %v7238_v29  ;;  %v7273_v29 = vmul.f32 %v7235_v30, %v10728_v42 }
0x5658   :  { %v7250_v63 = vsel %vm4384_vm9, %v7212_v10, 0.0  ;;  %v7262_v10 = vrot.slane %v7261_v57, 1 }
0x5659   :  { %v7241_v12 = vrot.slane %v7240_v50, 1  ;;  %v7251_v15 = vrot.slane %v7250_v63, 4 }
0x565a   :  { %v7263_v59 = vadd.f32 %v7262_v10, %v7261_v57  ;;  %v7308_v10 = vrot.slane %v10774_v45, 5 }
0x565b   :  { %v7252_v21 = vadd.f32 %v7251_v15, %v7250_v63  ;;  %v7242_v55 = vadd.f32 %v7241_v12, %v7240_v50  ;;  %v7271_v50 = vmul.f32 %v7221_v27, %v10728_v42  ;;  %v7289_v63 = vrot.slane %v7273_v29, 6 }
0x565c   :  { %v7277_v47 = vmul.f32 %v7263_v59, %v10728_v42  ;;  %v7319_v59 = vrot.slane %v10816_v6, 7 }
0x565d   :  { %v7253_v19 = vrot.slane %v7252_v21, 2  ;;  %v7205_v22 = vpop.permute.xlu1 %7204  ;;  %v7274_v35 = vmul.f32 %v7242_v55, %v10728_v42 }
0x565e   :  { %v7214_v11 = vmul.f32 %v7205_v22, %v10587_v17  ;;  %v7293_v22 = vrot.slane %v7275_v33, 4  ;;  %v7297_v57 = vrot.slane %v7277_v47, 2 }
0x565f   :  { %v7254_v48 = vadd.f32 %v7253_v19, %v7252_v21  ;;  %v7291_v40 = vrot.slane %v7274_v35, 5  ;;  %v7288_v21 = vsel %vm232_vm1, %v7287_v1, %v7271_v50  ;;  %v7310_v50 = vrot.slane %v10782_v37, 4 }
0x5660   :  { %v7264_v25 = vsel %vm4384_vm9, %v7214_v11, 0.0  ;;  %v7290_v8 = vsel %vm234_vm2, %v7289_v63, %v7288_v21  ;;  %v7314_v1 = vrot.slane %v10798_v39, 2 }
0x5661   :  { %v7255_v13 = vrot.slane %v7254_v48, 1  ;;  %v7265_v60 = vrot.slane %v7264_v25, 4  ;;  %v7292_v19 = vsel %vm236_vm3, %v7291_v40, %v7290_v8 }
0x5662   :  { %v7294_v27 = vsel %vm238_vm4, %v7293_v22, %v7292_v19  ;;  %v11639_v19 = vld [vmem:[#allocation6 + $0x30] ss:$0 sm:$0xff] }
0x5663   :  { %v7256_v18 = vadd.f32 %v7255_v13, %v7254_v48  ;;  %v7266_v3 = vadd.f32 %v7265_v60, %v7264_v25 }
0x5665   :  { %v7276_v12 = vmul.f32 %v7256_v18, %v10728_v42  ;;  %v7267_v15 = vrot.slane %v7266_v3, 2  ;;  %v7309_v18 = vsel %vm232_vm1, %v7308_v10, %v7307_v23 }
0x5666   :  { %v7311_v63 = vsel %vm234_vm2, %v7310_v50, %v7309_v18 }
0x5667   :  { %v7268_v30 = vadd.f32 %v7267_v15, %v7266_v3  ;;  %v7295_v20 = vrot.slane %v7276_v12, 3  ;;  %v7312_v3 = vrot.slane %v10790_v31, 3  ;;  %v7316_v12 = vrot.slane %v10805_v0, 1 }
0x5669   :  { %v7269_v55 = vrot.slane %v7268_v30, 1  ;;  %v7296_v29 = vsel %vm240_vm5, %v7295_v20, %v7294_v27  ;;  %v7313_v40 = vsel %vm236_vm3, %v7312_v3, %v7311_v63 }
0x566a   :  { %v7298_v51 = vsel %vm242_vm6, %v7297_v57, %v7296_v29  ;;  %v7315_v15 = vsel %vm238_vm4, %v7314_v1, %v7313_v40 }
0x566b   :  { %v7270_v11 = vadd.f32 %v7269_v55, %v7268_v30  ;;  %v7317_v33 = vsel %vm240_vm5, %v7316_v12, %v7315_v15 }
0x566c   :  { %v7318_v21 = vsel %vm242_vm6, %v10812_v43, %v7317_v33 }
0x566d   :  { %v7278_v48 = vmul.f32 %v7270_v11, %v10728_v42  ;;  %v7320_v30 = vsel %vm244_vm7, %v7319_v59, %v7318_v21  ;;  %v11643_v11 = vld [vmem:[#allocation6 + $0x38] ss:$0 sm:$0xff] }
0x566f   :  { %v7299_v25 = vrot.slane %v7278_v48, 1 }
0x5671   :  { %v7300_v35 = vsel %vm244_vm7, %v7299_v25, %v7298_v51 }
0x5672   :  { %7301 = vrot.lane.b32.xlu2 %v7300_v35, %s8936_s26 }
0x56cc   :  { %v7302_v13 = vpop.permute.xlu2 %7301 }
0x56cd   :  { %v7304_v60 = vsel %vm468_vm13, %v7302_v13, 0.0 }
0x56ce   :  { %7305 = vadd.xlane.f32.xlu1 %v7304_v60 }
0x5741   :  { %v7306_v8 = vpop.xlane.xlu1 %7305 }
0x5742   :  { %v7322_v20 = vadd.f32 %v7320_v30, %v7306_v8 }
0x5744   :  { %7325 = vperm.xlu2 %8087, %v7322_v20  }
0x579e   :  { %v7326_v55 = vpop.permute.xlu2 %7325 }
0x579f   :  { %v7328_v22 = vmul.f32 %v11639_v19, %v7326_v55 }
0x57a1   :  { %v7344_v47 = vadd.f32 %v11527_v28, %v7328_v22 }
0x57a3   :  { %v7345_v27 = vadd.f32 %v11643_v11, %v7344_v47 }
0x57a5   :  { %8728 = vtanh.f32 %v7345_v27  ;;  %v8026_v29 = vmul.f32 -1.442695, %v7345_v27 }
0x57a7   :  { %8730 = vpow2.f32 %v8026_v29 }
0x57ab   :  { %v8729_v48 = vpop.eup %8728 }
0x57ac   :  { %7368 = vrot.lane.b32.xlu0 %v8729_v48, %s8943_s25 }
0x57ad   :  { %v8731_v57 = vpop.eup %8730 }
0x57ae   :  { %v7349_v25 = vadd.f32 1.0, %v8731_v57 }
0x57b0   :  { %8732 = vrcp.f32 %v7349_v25  ;;  %v7361_v28 = vand.u32 2147483648, %v7349_v25  ;;  %vm7355_vm10 = vweird.f32 %v7349_v25  ;;  %v7359_v10 = vand.u32 2147483647, %v7349_v25 }
0x57b2   :  { %v7362_v18 = vor.u32 1.1754944e-38, %v7361_v28  ;;  %vm7360_vm8 = vcmp.eq.f32.partialorder %v7359_v10, 8.507059e+37 }
0x57b6   :  { %v8733_v51 = vpop.eup %8732 }
0x57b7   :  { %v7351_v35 = vmul.f32 %v8733_v51, %v7349_v25  ;;  %vm7356_vm15 = vweird.f32 %v8733_v51 }
0x57b8   :  { %vm7357_vm11 = vmor %vm7355_vm10, %vm7356_vm15 }
0x57b9   :  { %v7352_v13 = vsub.f32 1.0, %v7351_v35 }
0x57bb   :  { %v7353_v60 = vmul.f32 %v8733_v51, %v7352_v13 }
0x57bd   :  { %v7354_v23 = vadd.f32 %v8733_v51, %v7353_v60 }
0x57bf   :  { %v7358_v50 = vsel %vm7357_vm11, %v8733_v51, %v7354_v23 }
0x57c0   :  { %v7363_v63 = vsel %vm7360_vm8, %v7362_v18, %v7358_v50 }
0x57c1   :  { %v7366_v40 = vmul.f32 %v7363_v63, %v11513_v14 }
0x581e   :  { %v7369_v3 = vpop.permute.xlu0 %7368 }
0x581f   :  { %v7371_v1 = vmul.f32 %v7369_v3, %v7363_v63 }
0x5821   :  { %7373 = vrot.lane.b32.xlu2 %v7371_v1, %s8943_s25 }
0x587b   :  { %v7374_v12 = vpop.permute.xlu2 %7373 }
0x587c   :  { %v11649_v15 = vadd.f32 %v7374_v12, %v7366_v40 }
0x587e   :  { %8734 = vtanh.f32 %v11649_v15  ;;  %v7392_v14 = vpack.c.bf16 %v11649_v15, %v11649_v15 }
0x5884   :  { %v8735_v33 = vpop.eup %8734 }
0x5885   :  { %7379 = vrot.lane.b32.xlu2 %v8735_v33, %s8943_s25 }
0x58df   :  { %v7380_v59 = vpop.permute.xlu2 %7379 }
0x58e0   :  { %v11653_v21 = vmul.f32 %v7380_v59, %v7363_v63 }
0x58e2   :  { %v7391_v30 = vpack.c.bf16 %v11653_v21, %v11653_v21 }
0x58e4   :  { %v7394_v8 = vunpack.c.l.b16 %v7391_v30 }
0x58e6   :  { %v7395_v20 = vpack.c.b16 %v7394_v8, %v7394_v8 }
0x58e8   :  { %7396 = vrot.lane.b32.xlu0 %v7395_v20, %s8936_s26 }
0x595a   :  { %v7397_v55 = vpop.permute.xlu0 %7396 }
0x595b   :  { %v7400_v22 = vsel %vm468_vm13, %v7397_v55, %v7392_v14  ;;  %8028 = vmatmul.msk.bf16.vlgmr.msra.gmra.mxu3 %vm468_vm13, %v7397_v55 }
0x595c   :  { %8027 = vmatmul.msk.bf16.vlgmr.msra.gmra.mxu0 %vm123_vm14, %v7400_v22 }
0x59d9   :  { %v7412_v47 = vpop.f32.mrf.mxu0 }
0x59da   :  { %v7424_v27 = vperm.slane %v7412_v47, 0  ;;  %v7418_v48 = vrot.slane %v7412_v47, 2  ;;  %v7417_v29 = vrot.slane %v7412_v47, 1  ;;  %v7422_v57 = vrot.slane %v7412_v47, 6 }
0x59db   :  { %v7419_v25 = vrot.slane %v7412_v47, 3  ;;  %v7420_v63 = vrot.slane %v7412_v47, 4  ;;  %v7421_v20 = vrot.slane %v7412_v47, 5 }
0x59dc   :  { %v7440_v51 = vadd.f32 %v7424_v27, %v10623_v38  ;;  %v7426_v35 = vperm.slane %v7418_v48, 0  ;;  %v7425_v13 = vperm.slane %v7417_v29, 0  ;;  %v7430_v60 = vperm.slane %v7422_v57, 0 }
0x59dd   :  { %v7427_v23 = vperm.slane %v7419_v25, 0  ;;  %v7428_v40 = vperm.slane %v7420_v63, 0  ;;  %v7429_v48 = vperm.slane %v7421_v20, 0 }
0x59de   :  { %v11664_v28 = vpop.f32.mrf.mxu3  ;;  %8736 = vtanh.f32 %v7440_v51  ;;  %v7442_v10 = vadd.f32 %v7426_v35, %v10637_v2  ;;  %v7441_v50 = vadd.f32 %v7425_v13, %v10630_v53  ;;  %v7446_v18 = vadd.f32 %v7430_v60, %v10665_v34 }
0x59df   :  { %v7443_v3 = vadd.f32 %v7427_v23, %v10644_v5  ;;  %v7444_v8 = vadd.f32 %v7428_v40, %v10651_v41  ;;  %v7445_v25 = vadd.f32 %v7429_v48, %v10658_v32  ;;  %v7423_v41 = vrot.slane %v7412_v47, 7 }
0x59e0   :  { %8738 = vtanh.f32 %v7442_v10 }
0x59e1   :  { %v7414_v1 = vpop.f32.mrf.mxu0  ;;  %8740 = vtanh.f32 %v7441_v50  ;;  %v7431_v13 = vperm.slane %v7423_v41, 0 }
0x59e2   :  { %8742 = vtanh.f32 %v7446_v18 }
0x59e3   :  { %8744 = vtanh.f32 %v7443_v3  ;;  %v7447_v23 = vadd.f32 %v7431_v13, %v10672_v24 }
0x59e4   :  { %v8737_v38 = vpop.eup %8736  ;;  %8746 = vtanh.f32 %v7444_v8 }
0x59e5   :  { %v7456_v12 = vmul.f32 %v11534_v26, %v8737_v38  ;;  %8748 = vtanh.f32 %v7445_v25 }
0x59e6   :  { %v8739_v33 = vpop.eup %8738  ;;  %v7808_v59 = vpop.f32.mrf.mxu3  ;;  %8750 = vtanh.f32 %v7447_v23 }
0x59e7   :  { %v8741_v30 = vpop.eup %8740  ;;  %v7464_v2 = vsel %vm468_vm13, %v7456_v12, 0.0  ;;  %v7458_v53 = vmul.f32 %v11534_v26, %v8739_v33 }
0x59e8   :  { %v8743_v34 = vpop.eup %8742  ;;  %7465 = vadd.xlane.f32.xlu2 %v7464_v2  ;;  %v7457_v5 = vmul.f32 %v11534_v26, %v8741_v30 }
0x59e9   :  { %v7470_v14 = vsel %vm468_vm13, %v7458_v53, 0.0  ;;  %v8745_v55 = vpop.eup %8744  ;;  %v7462_v27 = vmul.f32 %v11534_v26, %v8743_v34 }
0x59ea   :  { %7471 = vadd.xlane.f32.xlu1 %v7470_v14  ;;  %v7467_v22 = vsel %vm468_vm13, %v7457_v5, 0.0  ;;  %v7459_v29 = vmul.f32 %v11534_v26, %v8745_v55  ;;  %v8747_v35 = vpop.eup %8746 }
0x59eb   :  { %7468 = vadd.xlane.f32.xlu0 %v7467_v22  ;;  %v7482_v57 = vsel %vm468_vm13, %v7462_v27, 0.0  ;;  %v7460_v60 = vmul.f32 %v11534_v26, %v8747_v35  ;;  %v8749_v50 = vpop.eup %8748 }
0x59ec   :  { %v7473_v51 = vsel %vm468_vm13, %v7459_v29, 0.0  ;;  %v7461_v18 = vmul.f32 %v11534_v26, %v8749_v50  ;;  %v8751_v47 = vpop.eup %8750 }
0x59ed   :  { %v7476_v10 = vsel %vm468_vm13, %v7460_v60, 0.0  ;;  %v7463_v3 = vmul.f32 %v11534_v26, %v8751_v47 }
0x59ee   :  { %v7479_v32 = vsel %vm468_vm13, %v7461_v18, 0.0 }
0x59ef   :  { %v7485_v63 = vsel %vm468_vm13, %v7463_v3, 0.0 }
0x59f0   :  { %7483 = vadd.xlane.f32.xlu2 %v7482_v57 }
0x59f2   :  { %7474 = vadd.xlane.f32.xlu1 %v7473_v51 }
0x59fa   :  { %7477 = vadd.xlane.f32.xlu1 %v7476_v10 }
0x5a02   :  { %7480 = vadd.xlane.f32.xlu1 %v7479_v32 }
0x5a0a   :  { %7486 = vadd.xlane.f32.xlu1 %v7485_v63 }
0x5a5b   :  { %v7466_v12 = vpop.xlane.xlu2 %7465 }
0x5a5c   :  { %v7496_v59 = vperm.slane %v7466_v12, %v9052_v9 }
0x5a5d   :  { %v7472_v1 = vpop.xlane.xlu1 %7471 }
0x5a5e   :  { %v7469_v24 = vpop.xlane.xlu0 %7468  ;;  %v7498_v30 = vperm.slane %v7472_v1, %v9052_v9 }
0x5a5f   :  { %v7497_v33 = vperm.slane %v7469_v24, %v9052_v9 }
0x5a61   :  { %v7504_v53 = vsel %vm232_vm1, %v7497_v33, %v7496_v59 }
0x5a62   :  { %v7505_v8 = vsel %vm234_vm2, %v7498_v30, %v7504_v53 }
0x5a63   :  { %v7484_v20 = vpop.xlane.xlu2 %7483 }
0x5a64   :  { %v7502_v27 = vperm.slane %v7484_v20, %v9052_v9 }
0x5a65   :  { %v7475_v38 = vpop.xlane.xlu1 %7474 }
0x5a66   :  { %v7499_v34 = vperm.slane %v7475_v38, %v9052_v9 }
0x5a68   :  { %v7506_v14 = vsel %vm236_vm3, %v7499_v34, %v7505_v8 }
0x5a6d   :  { %v7478_v40 = vpop.xlane.xlu1 %7477 }
0x5a6e   :  { %v7500_v26 = vperm.slane %v7478_v40, %v9052_v9 }
0x5a70   :  { %v7507_v55 = vsel %vm238_vm4, %v7500_v26, %v7506_v14 }
0x5a75   :  { %v7481_v2 = vpop.xlane.xlu1 %7480 }
0x5a76   :  { %v7501_v5 = vperm.slane %v7481_v2, %v9052_v9 }
0x5a78   :  { %v7508_v22 = vsel %vm240_vm5, %v7501_v5, %v7507_v55 }
0x5a79   :  { %v7509_v57 = vsel %vm242_vm6, %v7502_v27, %v7508_v22 }
0x5a7d   :  { %v7487_v48 = vpop.xlane.xlu1 %7486 }
0x5a7e   :  { %v7503_v29 = vperm.slane %v7487_v48, %v9052_v9 }
0x5a80   :  { %v7510_v25 = vsel %vm244_vm7, %v7503_v29, %v7509_v57 }
0x5a81   :  { %v7512_v41 = vsel %vm189_vm0, %v7510_v25, -inf }
0x5a82   :  { %7513 = vmax.xlane.f32.xlu0 %v7512_v41 }
0x5af5   :  { %v7514_v51 = vpop.xlane.xlu0 %7513 }
0x5af6   :  { %v7516_v35 = vperm.slane %v7514_v51, 0  ;;  %v7517_v13 = vperm.slane %v7514_v51, 1  ;;  %v7518_v60 = vperm.slane %v7514_v51, 2  ;;  %v7519_v23 = vperm.slane %v7514_v51, 3 }
0x5af7   :  { %v7520_v32 = vperm.slane %v7514_v51, 4  ;;  %v7521_v47 = vperm.slane %v7514_v51, 5  ;;  %v7522_v34 = vperm.slane %v7514_v51, 6  ;;  %v7523_v14 = vperm.slane %v7514_v51, 7 }
0x5af8   :  { %v7532_v10 = vsub.f32 %v7466_v12, %v7516_v35  ;;  %v7533_v50 = vsub.f32 %v7469_v24, %v7517_v13  ;;  %v7534_v18 = vsub.f32 %v7472_v1, %v7518_v60  ;;  %v7535_v59 = vsub.f32 %v7475_v38, %v7519_v23 }
0x5af9   :  { %v7537_v30 = vsub.f32 %v7481_v2, %v7521_v47  ;;  %v7536_v53 = vsub.f32 %v7478_v40, %v7520_v32  ;;  %v7538_v55 = vsub.f32 %v7484_v20, %v7522_v34  ;;  %v7539_v38 = vsub.f32 %v7487_v48, %v7523_v14 }
0x5afa   :  { %v7540_v3 = vmul.f32 1.442695, %v7532_v10  ;;  %v7542_v63 = vmul.f32 1.442695, %v7533_v50  ;;  %v7544_v33 = vmul.f32 1.442695, %v7534_v18 }
0x5afb   :  { %v7546_v26 = vmul.f32 1.442695, %v7535_v59  ;;  %v7550_v5 = vmul.f32 1.442695, %v7537_v30  ;;  %v7548_v12 = vmul.f32 1.442695, %v7536_v53 }
0x5afc   :  { %8752 = vpow2.f32 %v7540_v3  ;;  %v7552_v40 = vmul.f32 1.442695, %v7538_v55  ;;  %v7554_v22 = vmul.f32 1.442695, %v7539_v38 }
0x5afd   :  { %8754 = vpow2.f32 %v7542_v63 }
0x5afe   :  { %8756 = vpow2.f32 %v7544_v33 }
0x5aff   :  { %8758 = vpow2.f32 %v7546_v26 }
0x5b00   :  { %8760 = vpow2.f32 %v7550_v5 }
0x5b01   :  { %8762 = vpow2.f32 %v7548_v12 }
0x5b02   :  { %v11705_v8 = vpop.eup %8752  ;;  %8764 = vpow2.f32 %v7552_v40 }
0x5b03   :  { %v8755_v24 = vpop.eup %8754  ;;  %7565 = vperm.xlu2 %8087, %v11705_v8   ;;  %8766 = vpow2.f32 %v7554_v22 }
0x5b04   :  { %v8757_v1 = vpop.eup %8756  ;;  %7568 = vperm.xlu1 %8082, %v8755_v24  }
0x5b05   :  { %7571 = vperm.xlu0 %8086, %v8757_v1   ;;  %v8759_v2 = vpop.eup %8758 }
0x5b06   :  { %v8761_v27 = vpop.eup %8760 }
0x5b07   :  { %v8763_v29 = vpop.eup %8762 }
0x5b08   :  { %v8765_v57 = vpop.eup %8764 }
0x5b09   :  { %v8767_v25 = vpop.eup %8766 }
0x5b0b   :  { %7574 = vperm.xlu2 %8087, %v8759_v2  }
0x5b0c   :  { %7580 = vperm.xlu1 %8082, %v8761_v27  }
0x5b0d   :  { %7577 = vperm.xlu0 %8086, %v8763_v29  }
0x5b13   :  { %7583 = vperm.xlu2 %8087, %v8765_v57  }
0x5b15   :  { %7586 = vperm.xlu0 %8086, %v8767_v25  }
0x5b5d   :  { %v7566_v20 = vpop.permute.xlu2 %7565 }
0x5b5e   :  { %v7588_v35 = vperm.slane %v7566_v20, %v9052_v9 }
0x5b65   :  { %v7575_v13 = vpop.permute.xlu2 %7574 }
0x5b66   :  { %v7591_v32 = vperm.slane %v7575_v13, %v9052_v9 }
0x5b6d   :  { %v7584_v59 = vpop.permute.xlu2 %7583 }
0x5b6e   :  { %v7594_v53 = vperm.slane %v7584_v59, %v9052_v9 }
0x5b76   :  { %v7569_v41 = vpop.permute.xlu1 %7568 }
0x5b77   :  { %v7572_v51 = vpop.permute.xlu0 %7571  ;;  %v7589_v48 = vperm.slane %v7569_v41, %v9052_v9 }
0x5b78   :  { %v7590_v60 = vperm.slane %v7572_v51, %v9052_v9 }
0x5b79   :  { %v7596_v23 = vsel %vm232_vm1, %v7589_v48, %v7588_v35 }
0x5b7a   :  { %v7597_v10 = vsel %vm234_vm2, %v7590_v60, %v7596_v23 }
0x5b7b   :  { %v7598_v3 = vsel %vm236_vm3, %v7591_v32, %v7597_v10 }
0x5b7e   :  { %v7581_v18 = vpop.permute.xlu1 %7580 }
0x5b7f   :  { %v7578_v50 = vpop.permute.xlu0 %7577  ;;  %v7593_v63 = vperm.slane %v7581_v18, %v9052_v9 }
0x5b80   :  { %v7592_v47 = vperm.slane %v7578_v50, %v9052_v9 }
0x5b82   :  { %v7599_v33 = vsel %vm238_vm4, %v7592_v47, %v7598_v3 }
0x5b83   :  { %v7600_v30 = vsel %vm240_vm5, %v7593_v63, %v7599_v33 }
0x5b84   :  { %v7601_v5 = vsel %vm242_vm6, %v7594_v53, %v7600_v30 }
0x5b87   :  { %v7587_v34 = vpop.permute.xlu0 %7586 }
0x5b88   :  { %v7595_v26 = vperm.slane %v7587_v34, %v9052_v9 }
0x5b8a   :  { %v7602_v14 = vsel %vm244_vm7, %v7595_v26, %v7601_v5 }
0x5b8b   :  { %v7604_v12 = vsel %vm189_vm0, %v7602_v14, 0.0 }
0x5b8c   :  { %7605 = vadd.xlane.f32.xlu1 %v7604_v12 }
0x5bff   :  { %v7606_v55 = vpop.xlane.xlu1 %7605 }
0x5c00   :  { %8768 = vrcp.f32 %v7606_v55 }
0x5c06   :  { %v8769_v38 = vpop.eup %8768 }
0x5c07   :  { %v7611_v40 = vperm.slane %v8769_v38, 2  ;;  %v7610_v22 = vperm.slane %v8769_v38, 1  ;;  %v7612_v51 = vperm.slane %v8769_v38, 3  ;;  %v7609_v48 = vperm.slane %v8769_v38, 0 }
0x5c08   :  { %v7614_v13 = vperm.slane %v8769_v38, 5  ;;  %v7613_v60 = vperm.slane %v8769_v38, 4  ;;  %v7616_v50 = vperm.slane %v8769_v38, 7  ;;  %v7615_v18 = vperm.slane %v8769_v38, 6 }
0x5c09   :  { %v7627_v20 = vmul.f32 %v8757_v1, %v7611_v40  ;;  %v7626_v41 = vmul.f32 %v8755_v24, %v7610_v22  ;;  %v7628_v35 = vmul.f32 %v8759_v2, %v7612_v51  ;;  %v7625_v9 = vmul.f32 %v11705_v8, %v7609_v48 }
0x5c0a   :  { %v7630_v23 = vmul.f32 %v8761_v27, %v7614_v13  ;;  %v7629_v10 = vmul.f32 %v8763_v29, %v7613_v60  ;;  %v7632_v32 = vmul.f32 %v8767_v25, %v7616_v50  ;;  %v7631_v1 = vmul.f32 %v8765_v57, %v7615_v18 }
0x5c0b   :  { %7645 = vperm.xlu0 %8086, %v7627_v20   ;;  %7640 = vperm.xlu2 %8087, %v7626_v41  }
0x5c13   :  { %7650 = vperm.xlu0 %8086, %v7628_v35   ;;  %7635 = vperm.xlu2 %8087, %v7625_v9  }
0x5c1b   :  { %7660 = vperm.xlu0 %8086, %v7630_v23   ;;  %7655 = vperm.xlu2 %8087, %v7629_v10  }
0x5c23   :  { %7670 = vperm.xlu0 %8086, %v7632_v32   ;;  %7665 = vperm.xlu2 %8087, %v7631_v1  }
0x5c65   :  { %v7641_v24 = vpop.permute.xlu2 %7640 }
0x5c66   :  { %v7674_v2 = vmul.f32 %v7641_v24, %v10574_v61 }
0x5c68   :  { %v7688_v33 = vsel %vm4384_vm9, %v7674_v2, 0.0 }
0x5c69   :  { %v7689_v30 = vrot.slane %v7688_v33, 4 }
0x5c6b   :  { %v7690_v5 = vadd.f32 %v7689_v30, %v7688_v33 }
0x5c6d   :  { %v7636_v47 = vpop.permute.xlu2 %7635  ;;  %v7691_v22 = vrot.slane %v7690_v5, 2 }
0x5c6e   :  { %v7673_v8 = vmul.f32 %v7636_v47, %v10570_v58 }
0x5c70   :  { %v7681_v59 = vsel %vm4384_vm9, %v7673_v8, 0.0 }
0x5c71   :  { %v7682_v34 = vrot.slane %v7681_v59, 4 }
0x5c73   :  { %v7683_v55 = vadd.f32 %v7682_v34, %v7681_v59 }
0x5c75   :  { %v7656_v3 = vpop.permute.xlu2 %7655  ;;  %v7684_v48 = vrot.slane %v7683_v55, 2 }
0x5c76   :  { %v7677_v29 = vmul.f32 %v7656_v3, %v10550_v46 }
0x5c77   :  { %v7685_v50 = vadd.f32 %v7684_v48, %v7683_v55 }
0x5c78   :  { %v7709_v26 = vsel %vm4384_vm9, %v7677_v29, 0.0 }
0x5c79   :  { %v7710_v12 = vrot.slane %v7709_v26, 4 }
0x5c7b   :  { %v7711_v41 = vadd.f32 %v7710_v12, %v7709_v26 }
0x5c7d   :  { %v7646_v63 = vpop.permute.xlu0 %7645  ;;  %v7666_v25 = vpop.permute.xlu2 %7665  ;;  %v7712_v23 = vrot.slane %v7711_v41, 2 }
0x5c7e   :  { %v7675_v27 = vmul.f32 %v7646_v63, %v10558_v52  ;;  %v7679_v61 = vmul.f32 %v7666_v25, %v10583_v56  ;;  %v7692_v56 = vadd.f32 %v7691_v22, %v7690_v5  ;;  %v7686_v63 = vrot.slane %v7685_v50, 1 }
0x5c7f   :  { %v7713_v2 = vadd.f32 %v7712_v23, %v7711_v41 }
0x5c80   :  { %v7695_v57 = vsel %vm4384_vm9, %v7675_v27, 0.0  ;;  %v7723_v46 = vsel %vm4384_vm9, %v7679_v61, 0.0  ;;  %v7693_v24 = vrot.slane %v7692_v56, 1  ;;  %v11746_v34 = vadd.f32 %v7686_v63, %v7685_v50 }
0x5c81   :  { %v7696_v53 = vrot.slane %v7695_v57, 4  ;;  %v7724_v51 = vrot.slane %v7723_v46, 4  ;;  %v7714_v25 = vrot.slane %v7713_v2, 1 }
0x5c82   :  { %v11741_v29 = vadd.f32 %v7693_v24, %v7692_v56 }
0x5c83   :  { %v7697_v58 = vadd.f32 %v7696_v53, %v7695_v57  ;;  %v7725_v10 = vadd.f32 %v7724_v51, %v7723_v46  ;;  %v11755_v55 = vadd.f32 %v7714_v25, %v7713_v2  ;;  %v7773_v25 = vrot.slane %v10784_v44, 7 }
0x5c84   :  { %v7738_v5 = vmul.f32 %v11741_v29, %v10728_v42  ;;  %v7784_v44 = vrot.slane %v10812_v43, 1 }
0x5c85   :  { %v7651_v14 = vpop.permute.xlu0 %7650  ;;  %v7698_v38 = vrot.slane %v7697_v58, 2  ;;  %v7726_v8 = vrot.slane %v7725_v10, 2 }
0x5c86   :  { %v7676_v52 = vmul.f32 %v7651_v14, %v10562_v4 }
0x5c87   :  { %v7699_v9 = vadd.f32 %v7698_v38, %v7697_v58  ;;  %v7727_v30 = vadd.f32 %v7726_v8, %v7725_v10 }
0x5c88   :  { %v7702_v40 = vsel %vm4384_vm9, %v7676_v52, 0.0 }
0x5c89   :  { %v7703_v20 = vrot.slane %v7702_v40, 4  ;;  %v7700_v32 = vrot.slane %v7699_v9, 1  ;;  %v7728_v46 = vrot.slane %v7727_v30, 1 }
0x5c8b   :  { %v7704_v35 = vadd.f32 %v7703_v20, %v7702_v40  ;;  %v11739_v27 = vadd.f32 %v7700_v32, %v7699_v9  ;;  %v7753_v20 = vrot.slane %v7738_v5, 7  ;;  %v11765_v9 = vadd.f32 %v7728_v46, %v7727_v30 }
0x5c8c   :  { %v7776_v30 = vrot.slane %v10782_v37, 5 }
0x5c8d   :  { %v7705_v13 = vrot.slane %v7704_v35, 2  ;;  %v7661_v60 = vpop.permute.xlu0 %7660  ;;  %v7739_v61 = vmul.f32 %v11739_v27, %v10728_v42 }
0x5c8e   :  { %v7678_v4 = vmul.f32 %v7661_v60, %v10554_v36 }
0x5c8f   :  { %v7706_v18 = vadd.f32 %v7705_v13, %v7704_v35  ;;  %v7755_v22 = vrot.slane %v7739_v61, 6  ;;  %v7741_v35 = vmul.f32 %v11755_v55, %v10728_v42 }
0x5c90   :  { %v7716_v1 = vsel %vm4384_vm9, %v7678_v4, 0.0 }
0x5c91   :  { %v7707_v47 = vrot.slane %v7706_v18, 1  ;;  %v7717_v3 = vrot.slane %v7716_v1, 4  ;;  %v7759_v50 = vrot.slane %v7741_v35, 4 }
0x5c93   :  { %v7718_v33 = vadd.f32 %v7717_v3, %v7716_v1  ;;  %v11743_v59 = vadd.f32 %v7707_v47, %v7706_v18  ;;  %v7743_v18 = vmul.f32 %v11765_v9, %v10728_v42 }
0x5c95   :  { %v7719_v57 = vrot.slane %v7718_v33, 2  ;;  %v7671_v36 = vpop.permute.xlu0 %7670  ;;  %v7740_v14 = vmul.f32 %v11743_v59, %v10728_v42  ;;  %v7763_v3 = vrot.slane %v7743_v18, 2 }
0x5c96   :  { %v7680_v53 = vmul.f32 %v7671_v36, %v10587_v17  ;;  %v7737_v17 = vmul.f32 %v11746_v34, %v10728_v42  ;;  %v8096_v36 = vld [vmem:[#allocation6 + $0x44] ss:$0 sm:$0xff] }
0x5c97   :  { %v7720_v26 = vadd.f32 %v7719_v57, %v7718_v33  ;;  %v7757_v41 = vrot.slane %v7740_v14, 5  ;;  %v7782_v14 = vrot.slane %v10805_v0, 2  ;;  %v8099_v0 = vld [vmem:[#allocation6 + $0x45] ss:$0 sm:$0xff] }
0x5c98   :  { %v7730_v58 = vsel %vm4384_vm9, %v7680_v53, 0.0  ;;  %v7754_v56 = vsel %vm232_vm1, %v7753_v20, %v7737_v17  ;;  %v8097_v17 = vld [vmem:[#allocation6 + $0x41] ss:$0 sm:$0xff] }
0x5c99   :  { %v7721_v12 = vrot.slane %v7720_v26, 1  ;;  %v7731_v52 = vrot.slane %v7730_v58, 4  ;;  %v7756_v60 = vsel %vm234_vm2, %v7755_v22, %v7754_v56 }
0x5c9a   :  { %v7758_v4 = vsel %vm236_vm3, %v7757_v41, %v7756_v60 }
0x5c9b   :  { %v11759_v38 = vadd.f32 %v7721_v12, %v7720_v26  ;;  %v7732_v40 = vadd.f32 %v7731_v52, %v7730_v58  ;;  %v7760_v1 = vsel %vm238_vm4, %v7759_v50, %v7758_v4  ;;  %v7778_v26 = vrot.slane %v10790_v31, 4 }
0x5c9c   :  { %v7780_v58 = vrot.slane %v10798_v39, 3  ;;  %v8098_v39 = vld [vmem:[#allocation6 + $0x43] ss:$0 sm:$0xff] }
0x5c9d   :  { %v7742_v51 = vmul.f32 %v11759_v38, %v10728_v42  ;;  %v7733_v48 = vrot.slane %v7732_v40, 2 }
0x5c9f   :  { %v7734_v13 = vadd.f32 %v7733_v48, %v7732_v40  ;;  %v7761_v23 = vrot.slane %v7742_v51, 3 }
0x5ca1   :  { %v7735_v10 = vrot.slane %v7734_v13, 1  ;;  %v7762_v47 = vsel %vm240_vm5, %v7761_v23, %v7760_v1  ;;  %v8100_v1 = vld [vmem:[#allocation6 + $0x40] ss:$0 sm:$0xff] }
0x5ca2   :  { %v7764_v8 = vsel %vm242_vm6, %v7763_v3, %v7762_v47  ;;  %v8102_v47 = vld [vmem:[#allocation6 + $0x48] ss:$0 sm:$0xff]  ;;  %v8103_v3 = vld [vmem:[#allocation6 + $0x46] ss:$0 sm:$0xff] }
0x5ca3   :  { %v11772_v32 = vadd.f32 %v7735_v10, %v7734_v13 }
0x5ca5   :  { %v7744_v24 = vmul.f32 %v11772_v32, %v10728_v42  ;;  %v7774_v42 = vrot.slane %v10774_v45, 6 }
0x5ca7   :  { %v7765_v2 = vrot.slane %v7744_v24, 1  ;;  %v7775_v53 = vsel %vm232_vm1, %v7774_v42, %v7773_v25  ;;  %v8101_v24 = vld [vmem:[#allocation6 + $0x42] ss:$0 sm:$0xff] }
0x5ca8   :  { %v7777_v61 = vsel %vm234_vm2, %v7776_v30, %v7775_v53  ;;  %v11858_v30 = vld [vmem:[#allocation9_spill] sm:$0xff] }
0x5ca9   :  { %v7766_v63 = vsel %vm244_vm7, %v7765_v2, %v7764_v8  ;;  %v7779_v5 = vsel %vm236_vm3, %v7778_v26, %v7777_v61  ;;  %v8104_v2 = vld [vmem:[#allocation6 + $0x47] ss:$0 sm:$0xff] }
0x5caa   :  { %7767 = vrot.lane.b32.xlu2 %v7766_v63, %s8936_s26  ;;  %v7781_v12 = vsel %vm238_vm4, %v7780_v58, %v7779_v5 }
0x5cab   :  { %v7783_v45 = vsel %vm240_vm5, %v7782_v14, %v7781_v12 }
0x5cac   :  { %v7785_v37 = vsel %vm242_vm6, %v7784_v44, %v7783_v45 }
0x5cad   :  { %v7786_v52 = vsel %vm244_vm7, %v10816_v6, %v7785_v37 }
0x5d04   :  { %v7768_v33 = vpop.permute.xlu2 %7767 }
0x5d05   :  { %v7770_v57 = vsel %vm468_vm13, %v7768_v33, 0.0 }
0x5d06   :  { %7771 = vadd.xlane.f32.xlu0 %v7770_v57 }
0x5d1a   :  { %6454 = vrot.lane.b32.xlu0 %v8096_v36, %s8936_s26 }
0x5d79   :  { %v7772_v31 = vpop.xlane.xlu0 %7771 }
0x5d7a   :  { %v7788_v46 = vadd.f32 %v7786_v52, %v7772_v31 }
0x5d7c   :  { %7791 = vperm.xlu1 %8082, %v7788_v46  }
0x5d84   :  { %5056 = vrot.lane.b32.xlu1 %v8097_v17, %s8936_s26 }
0x5d8c   :  { %5988 = vrot.lane.b32.xlu1 %v8098_v39, %s8936_s26 }
0x5d94   :  { %6920 = vrot.lane.b32.xlu1 %v8099_v0, %s8936_s26 }
0x5dee   :  { %v7792_v43 = vpop.permute.xlu1 %7791 }
0x5def   :  { %v7794_v40 = vmul.f32 %v11639_v19, %v7792_v43 }
0x5df1   :  { %v7810_v22 = vadd.f32 %v11664_v28, %v7794_v40 }
0x5df3   :  { %v7811_v20 = vadd.f32 %v11643_v11, %v7810_v22 }
0x5df5   :  { %8770 = vtanh.f32 %v7811_v20  ;;  %v8029_v41 = vmul.f32 -1.442695, %v7811_v20  ;;  %v6455_v20 = vpop.permute.xlu0 %6454 }
0x5df6   :  { %v5057_v25 = vpop.permute.xlu1 %5056 }
0x5df7   :  { %8772 = vpow2.f32 %v8029_v41  ;;  %v5059_v53 = vmul.f32 %v5057_v25, %v11858_v30 }
0x5dfb   :  { %v8771_v6 = vpop.eup %8770 }
0x5dfc   :  { %7834 = vrot.lane.b32.xlu2 %v8771_v6, %s8943_s25 }
0x5dfd   :  { %v8773_v51 = vpop.eup %8772 }
0x5dfe   :  { %v7815_v48 = vadd.f32 1.0, %v8773_v51 }
0x5e00   :  { %8774 = vrcp.f32 %v7815_v48  ;;  %v7827_v19 = vand.u32 2147483648, %v7815_v48  ;;  %vm7821_vm14 = vweird.f32 %v7815_v48  ;;  %v7825_v28 = vand.u32 2147483647, %v7815_v48 }
0x5e02   :  { %v7828_v10 = vor.u32 1.1754944e-38, %v7827_v19  ;;  %vm7826_vm12 = vcmp.eq.f32.partialorder %v7825_v28, 8.507059e+37 }
0x5e06   :  { %v8775_v35 = vpop.eup %8774 }
0x5e07   :  { %v7817_v56 = vmul.f32 %v8775_v35, %v7815_v48  ;;  %vm7822_vm0 = vweird.f32 %v8775_v35  ;;  %v6457_v48 = vmul.f32 %v6455_v20, %v11387_v7 }
0x5e08   :  { %vm7823_vm9 = vmor %vm7821_vm14, %vm7822_vm0 }
0x5e09   :  { %v7818_v13 = vsub.f32 1.0, %v7817_v56 }
0x5e0b   :  { %v7819_v60 = vmul.f32 %v8775_v35, %v7818_v13 }
0x5e0d   :  { %v7820_v23 = vadd.f32 %v8775_v35, %v7819_v60 }
0x5e0f   :  { %v7824_v11 = vsel %vm7823_vm9, %v8775_v35, %v7820_v23 }
0x5e10   :  { %v11805_v50 = vsel %vm7826_vm12, %v7828_v10, %v7824_v11 }
0x5e11   :  { %v7832_v8 = vmul.f32 %v11805_v50, %v11649_v15 }
0x5e56   :  { %v7835_v4 = vpop.permute.xlu2 %7834 }
0x5e57   :  { %v7837_v18 = vmul.f32 %v7835_v4, %v11805_v50 }
0x5e59   :  { %7839 = vrot.lane.b32.xlu2 %v7837_v18, %s8943_s25 }
0x5e61   :  { %4590 = vrot.lane.b32.xlu2 %v8100_v1, %s8936_s26 }
0x5e69   :  { %5522 = vrot.lane.b32.xlu2 %v8101_v24, %s8936_s26 }
0x5e71   :  { %7868 = vrot.lane.b32.xlu2 %v8102_v47, %s8936_s26 }
0x5e79   :  { %7386 = vrot.lane.b32.xlu2 %v8103_v3, %s8936_s26 }
0x5e81   :  { %7852 = vrot.lane.b32.xlu2 %v8104_v2, %s8936_s26 }
0x5eb3   :  { %v7840_v63 = vpop.permute.xlu2 %7839 }
0x5eb4   :  { %v7842_v33 = vadd.f32 %v7840_v63, %v7832_v8 }
0x5eb6   :  { %8776 = vtanh.f32 %v7842_v33 }
0x5ebb   :  { %v4591_v57 = vpop.permute.xlu2 %4590 }
0x5ebc   :  { %v8777_v36 = vpop.eup %8776  ;;  %v4593_v42 = vmul.f32 %v4591_v57, %v10835_v54 }
0x5ebd   :  { %7845 = vrot.lane.b32.xlu1 %v8777_v36, %s8943_s25 }
0x5ebe   :  { %v5060_v61 = vadd.f32 %v5059_v53, %v4593_v42 }
0x5ec3   :  { %v5523_v26 = vpop.permute.xlu2 %5522 }
0x5ec4   :  { %v5525_v58 = vmul.f32 %v5523_v26, %v11113_v62 }
0x5ec6   :  { %v5526_v5 = vadd.f32 %v5525_v58, %v5060_v61 }
0x5ecb   :  { %v7869_v14 = vpop.permute.xlu2 %7868 }
0x5ecc   :  { %v7872_v15 = vmul.f32 %v7869_v14, %v11741_v29  ;;  %v7873_v12 = vmul.f32 %v7869_v14, %v11739_v27  ;;  %v7874_v44 = vmul.f32 %v7869_v14, %v11743_v59  ;;  %v7875_v45 = vmul.f32 %v7869_v14, %v11755_v55 }
0x5ecd   :  { %v7871_v37 = vmul.f32 %v7869_v14, %v11746_v34  ;;  %v7876_v54 = vmul.f32 %v7869_v14, %v11759_v38  ;;  %v7877_v46 = vmul.f32 %v7869_v14, %v11765_v9  ;;  %v7878_v62 = vmul.f32 %v7869_v14, %v11772_v32  ;;  %v5989_v32 = vpop.permute.xlu1 %5988 }
0x5ece   :  { %v7887_v52 = vrot.slane %v7872_v15, 7  ;;  %v7889_v31 = vrot.slane %v7873_v12, 6  ;;  %v7891_v39 = vrot.slane %v7874_v44, 5  ;;  %v7893_v27 = vrot.slane %v7875_v45, 4 }
0x5ecf   :  { %v7895_v0 = vrot.slane %v7876_v54, 3  ;;  %v7897_v34 = vrot.slane %v7877_v46, 2  ;;  %v7899_v43 = vrot.slane %v7878_v62, 1  ;;  %v5991_v22 = vmul.f32 %v5989_v32, %v11249_v49 }
0x5ed0   :  { %v7888_v17 = vsel %vm232_vm1, %v7887_v52, %v7871_v37  ;;  %vm7910_vm1 = vcmask 7168  }
0x5ed1   :  { %v7890_v29 = vsel %vm234_vm2, %v7889_v31, %v7888_v17  ;;  %v5992_v41 = vadd.f32 %v5991_v22, %v5526_v5 }
0x5ed2   :  { %v7892_v59 = vsel %vm236_vm3, %v7891_v39, %v7890_v29 }
0x5ed3   :  { %v7894_v55 = vsel %vm238_vm4, %v7893_v27, %v7892_v59  ;;  %v7387_v51 = vpop.permute.xlu2 %7386  ;;  %v6458_v35 = vadd.f32 %v6457_v48, %v5992_v41 }
0x5ed4   :  { %v7896_v38 = vsel %vm240_vm5, %v7895_v0, %v7894_v55  ;;  %v7389_v13 = vmul.f32 %v7387_v51, %v11653_v21 }
0x5ed5   :  { %v7898_v40 = vsel %vm242_vm6, %v7897_v34, %v7896_v38  ;;  %v6921_v6 = vpop.permute.xlu1 %6920 }
0x5ed6   :  { %v7900_v9 = vsel %vm244_vm7, %v7899_v43, %v7898_v40  ;;  %v6923_v56 = vmul.f32 %v6921_v6, %v11517_v16  ;;  %v8105_v16 = vld [vmem:[#allocation6 + $0x50] ss:$0 sm:$0xff] }
0x5ed7   :  { %7901 = vrot.lane.b32.xlu2 %v7900_v9, %s8936_s26 }
0x5ed8   :  { %v6924_v23 = vadd.f32 %v6923_v56, %v6458_v35 }
0x5eda   :  { %v7390_v11 = vadd.f32 %v7389_v13, %v6924_v23 }
0x5edb   :  { %v7853_v28 = vpop.permute.xlu2 %7852 }
0x5f2f   :  { %v7846_v60 = vpop.permute.xlu1 %7845 }
0x5f30   :  { %v7848_v19 = vmul.f32 %v7846_v60, %v11805_v50 }
0x5f31   :  { %v7902_v49 = vpop.permute.xlu2 %7901 }
0x5f32   :  { %v7855_v10 = vmul.f32 %v7853_v28, %v7848_v19  ;;  %v7904_v18 = vsel %vm468_vm13, %v7902_v49, 0.0 }
0x5f34   :  { %v7856_v4 = vadd.f32 %v7855_v10, %v7390_v11 }
0x5f36   :  { %7860 = vrot.lane.b32.xlu1 %v7856_v4, %s8936_s26 }
0x5f60   :  { %7905 = vadd.xlane.f32.xlu1 %v7904_v18 }
0x5fa8   :  { %v7861_v7 = vpop.permute.xlu1 %7860 }
0x5fa9   :  { %v7863_v1 = vsel %vm468_vm13, %v7861_v7, 0.0 }
0x5faa   :  { %7864 = vadd.xlane.f32.xlu0 %v7863_v1 }
0x5fd3   :  { %v7906_v21 = vpop.xlane.xlu1 %7905 }
0x601d   :  { %v7865_v24 = vpop.xlane.xlu0 %7864 }
0x601e   :  { %v7907_v47 = vadd.f32 %v7906_v21, %v7865_v24 }
0x6020   :  { %v7909_v50 = vadd.f32 %v8105_v16, %v7907_v47 }
0x6022   :  { %7911 = vst.msk [vmem:[%s11852_s5] sm:$0xff] %vm7910_vm1, %v7909_v50 }
0x6023   :  { %7916 = vsyncpa [#allocation3], 1 }
0x6024   :  { %7917 = vsyncpa [#allocation5], 1 }

</bundles_post_ra>
